<compile_context>
chip_gen: v6e
topology: v6e:2x2x1
jax: 0.10.0
libtpu: 0.0.40
codegen_flags: <defaults>
</compile_context>

<pallas_src>
import functools
import math
from types import SimpleNamespace

import jax
import jax.numpy as jnp
from jax.experimental import pallas as pl
from jax.experimental.pallas import tpu as pltpu


# ------------------------------ helpers -------------------------------------

def _spec(shape):
    nd = len(shape)
    return pl.BlockSpec(shape, lambda *_: (0,) * nd)


def _emit_conv_bn_relu_pool(in_ref, w_ref, g_ref, be_ref, out_ref,
                            *, batch, lout, ksize, stride, pool, out_off):
    """Conv1d (bias-free) + BatchNorm1d (batch stats) + ReLU [+ MaxPool1d].

    in_ref  : (B, Lin_total, Cin) VMEM ref (conv padding rows already included)
    w_ref   : (K, Cin, Cout) bf16 VMEM ref
    g/be_ref: (1, Cout) f32 BatchNorm affine
    out_ref : (B, rows, Cout) VMEM scratch for the next layer's input; the
              payload is written at row offset `out_off` (next conv's padding).
    """
    cout = w_ref.shape[-1]

    # ---- conv as K-tap accumulation of (Lout, Cin) @ (Cin, Cout) matmuls ----
    accs = []
    for b in range(batch):
        acc = jnp.zeros((lout, cout), jnp.float32)
        for k in range(ksize):
            if stride == 1:
                xk = in_ref[b, pl.ds(k, lout), :]
            else:  # not exercised with the demo hyperparameters
                xk = in_ref[b, pl.ds(k, lout, stride), :]
            acc = acc + jnp.dot(xk.astype(jnp.bfloat16), w_ref[k],
                                preferred_element_type=jnp.float32)
        accs.append(acc)

    # ---- BatchNorm1d batch statistics over all (B * Lout) rows, per channel ----
    n = float(batch * lout)
    ssum = jnp.sum(accs[0], axis=0, keepdims=True)
    for a in accs[1:]:
        ssum = ssum + jnp.sum(a, axis=0, keepdims=True)
    mean = ssum / n
    sqs = jnp.sum((accs[0] - mean) ** 2, axis=0, keepdims=True)
    for a in accs[1:]:
        sqs = sqs + jnp.sum((a - mean) ** 2, axis=0, keepdims=True)
    var = sqs / n
    scale = jax.lax.rsqrt(var + 1e-5) * g_ref[...]          # (1, Cout)
    shift = be_ref[...] - mean * scale                      # (1, Cout)

    # ---- ReLU (+ fused MaxPool1d) epilogue, written straight to next scratch ----
    for b in range(batch):
        yb = jnp.maximum(accs[b] * scale + shift, 0.0)      # (Lout, Cout) f32
        if pool is None:
            out_ref[b, pl.ds(out_off, lout), :] = yb
        else:
            lp = lout // pool                               # PyTorch floor behavior
            for j in range(lp):
                row = yb[pool * j:pool * j + 1, :]
                for t in range(1, pool):
                    row = jnp.maximum(row, yb[pool * j + t:pool * j + t + 1, :])
                out_ref[b, pl.ds(out_off + j, 1), :] = row


# ------------------------------ fused forward --------------------------------

def net_forward(x, p, hp):
    B, T, mel = x.shape
    assert mel == hp.L1_conv_input_filters_n

    # Static per-layer configuration derived from the module definition.
    conv_cfg = [
        dict(cout=64, k=hp.L1_conv_kernel_size, s=hp.L1_conv_stride, pad=0, pool=None),
        dict(cout=64, k=hp.L2_conv_kernel_size, s=hp.L2_conv_stride, pad=0,
             pool=hp.L2_maxPool2d_kernel_size),
        dict(cout=64, k=hp.L3_conv_kernel_size, s=hp.L3_conv_stride, pad=0,
             pool=hp.L3_maxPool2d_kernel_size),
        dict(cout=128, k=hp.L4_conv_kernel_size, s=hp.L4_conv_stride, pad=hp.padding, pool=None),
        dict(cout=128, k=hp.L5_conv_kernel_size, s=hp.L5_conv_stride, pad=hp.padding,
             pool=hp.L5_maxPool2d_kernel_size),
    ]
    lvalid = T
    for c in conv_cfg:
        c["ltot_in"] = lvalid + 2 * c["pad"]
        c["lout"] = (c["ltot_in"] - c["k"]) // c["s"] + 1
        lvalid = c["lout"] // c["pool"] if c["pool"] else c["lout"]
        c["lvalid_out"] = lvalid
    for i, c in enumerate(conv_cfg):
        nxt_pad = conv_cfg[i + 1]["pad"] if i + 1 < len(conv_cfg) else 0
        c["out_off"] = nxt_pad
        c["out_rows"] = c["lvalid_out"] + 2 * nxt_pad

    c_last = conv_cfg[-1]["cout"]
    l_last = conv_cfg[-1]["lvalid_out"]
    f1 = hp.fullyConnected_B1_out_n
    f2 = hp.fullyConnected_B2_out_n
    assert hp.fullyConnected_B1_input_n == c_last * l_last

    def kernel(x_ref,
               w1, g1, be1, w2, g2, be2, w3, g3, be3, w4, g4, be4, w5, g5, be5,
               fw1, fb1, fw2, fb2, fw3, fb3,
               out_ref,
               s1, s2, s3, s4, s5):
        scr = [s1, s2, s3, s4, s5]
        cw = [w1, w2, w3, w4, w5]
        cg = [g1, g2, g3, g4, g5]
        cb = [be1, be2, be3, be4, be5]

        # zero-fill scratches whose consumer conv uses padding (pad rows stay 0)
        for i, c in enumerate(conv_cfg):
            if c["out_off"] > 0:
                scr[i][...] = jnp.zeros(scr[i].shape, scr[i].dtype)

        # conv stack (BN batch stats + ReLU + fused max-pool), all VMEM-resident
        src = x_ref
        for i, c in enumerate(conv_cfg):
            _emit_conv_bn_relu_pool(
                src, cw[i], cg[i], cb[i], scr[i],
                batch=B, lout=c["lout"], ksize=c["k"], stride=c["s"],
                pool=c["pool"], out_off=c["out_off"])
            src = scr[i]

        # fully connected head; the NCL-flatten permutation is folded into fw1
        acc = jnp.zeros((B, f1), jnp.float32)
        for l in range(l_last):
            xl = s5[:, l, :].astype(jnp.bfloat16)            # (B, c_last)
            acc = acc + jnp.dot(xl, fw1[l], preferred_element_type=jnp.float32)
        h = jnp.maximum(acc + fb1[...], 0.0)
        h = jnp.dot(h.astype(jnp.bfloat16), fw2[...],
                    preferred_element_type=jnp.float32) + fb2[...]
        h = jnp.maximum(h, 0.0)
        out = jnp.dot(h.astype(jnp.bfloat16), fw3[...],
                      preferred_element_type=jnp.float32) + fb3[...]
        out_ref[...] = out.astype(out_ref.dtype)

    operands = [x]
    in_specs = [_spec(x.shape)]
    for i in range(1, 6):
        for key in (f"c{i}_w", f"c{i}_g", f"c{i}_be"):
            operands.append(p[key])
            in_specs.append(_spec(p[key].shape))
    for key in ("fc1_w", "fc1_b", "fc2_w", "fc2_b", "fc3_w", "fc3_b"):
        operands.append(p[key])
        in_specs.append(_spec(p[key].shape))

    scratch_shapes = [pltpu.VMEM((B, c["out_rows"], c["cout"]), jnp.float32)
                      for c in conv_cfg]

    return pl.pallas_call(
        kernel,
        out_shape=jax.ShapeDtypeStruct((B, 10), jnp.float32),
        grid=(1,),
        in_specs=in_specs,
        out_specs=_spec((B, 10)),
        scratch_shapes=scratch_shapes,
        compiler_params=pltpu.CompilerParams(dimension_semantics=("arbitrary",)),
    )(*operands)


# ------------------------------ deterministic init ---------------------------

def init_params(key, hp):
    keys = iter(jax.random.split(key, 11))

    def kaiming_conv(k, cout, cin, ksz):            # nn.init.kaiming_uniform_(a=0)
        bound = math.sqrt(6.0 / (cin * ksz))
        w = jax.random.uniform(k, (cout, cin, ksz), jnp.float32, -bound, bound)
        # pre-layout once for the kernel: (K, Cin, Cout), bf16 matmul operand
        return jnp.transpose(w, (2, 1, 0)).astype(jnp.bfloat16)

    def xavier_linear(k, fin, fout):                # nn.init.xavier_uniform_
        bound = math.sqrt(6.0 / (fin + fout))
        return jax.random.uniform(k, (fout, fin), jnp.float32, -bound, bound)

    def linear_bias(k, fin, fout):                  # default nn.Linear bias init
        bound = 1.0 / math.sqrt(fin)
        return jax.random.uniform(k, (1, fout), jnp.float32, -bound, bound)

    p = {}
    conv_defs = [("c1", 64, hp.L1_conv_input_filters_n, hp.L1_conv_kernel_size),
                 ("c2", 64, 64, hp.L2_conv_kernel_size),
                 ("c3", 64, 64, hp.L3_conv_kernel_size),
                 ("c4", 128, 64, hp.L4_conv_kernel_size),
                 ("c5", 128, 128, hp.L5_conv_kernel_size)]
    for name, cout, cin, ksz in conv_defs:
        p[name + "_w"] = kaiming_conv(next(keys), cout, cin, ksz)
        # Conv1d bias is intentionally omitted: the following train-mode
        # BatchNorm1d mean subtraction cancels it exactly.
        p[name + "_g"] = jnp.ones((1, cout), jnp.float32)     # BatchNorm gamma
        p[name + "_be"] = jnp.zeros((1, cout), jnp.float32)   # BatchNorm beta

    fin1, f1 = hp.fullyConnected_B1_input_n, hp.fullyConnected_B1_out_n
    f2 = hp.fullyConnected_B2_out_n
    c_last = 128
    l_last = fin1 // c_last
    w = xavier_linear(next(keys), fin1, f1)                    # (f1, C*L), col = c*L + l
    # fold the PyTorch NCL-flatten (c*L + l) into the weight layout: (L, C, f1)
    p["fc1_w"] = jnp.transpose(w.reshape(f1, c_last, l_last), (2, 1, 0)).astype(jnp.bfloat16)
    p["fc1_b"] = linear_bias(next(keys), fin1, f1)
    p["fc2_w"] = xavier_linear(next(keys), f1, f2).T.astype(jnp.bfloat16)   # (f1, f2)
    p["fc2_b"] = linear_bias(next(keys), f1, f2)
    p["fc3_w"] = xavier_linear(next(keys), f2, 10).T.astype(jnp.bfloat16)   # (f2, 10)
    p["fc3_b"] = linear_bias(next(keys), f2, 10)
    return p


# ----------------------------------- main ------------------------------------

if __name__ == "__main__":
    hp = SimpleNamespace(
        L1_conv_input_filters_n=16,                  # mel filters = input channels
        L1_conv_kernel_size=3, L1_conv_stride=1,
        L2_conv_kernel_size=3, L2_conv_stride=1, L2_maxPool2d_kernel_size=2,
        L3_conv_kernel_size=3, L3_conv_stride=1, L3_maxPool2d_kernel_size=2,
        L4_conv_kernel_size=3, L4_conv_stride=1,
        L5_conv_kernel_size=3, L5_conv_stride=1, L5_maxPool2d_kernel_size=2,
        padding=1,
        fullyConnected_B1_input_n=128 * 7,           # 128 channels * L=7 after the conv stack
        fullyConnected_B1_out_n=64,
        fullyConnected_B2_out_n=32,
    )

    key = jax.random.PRNGKey(0)
    pkey, xkey = jax.random.split(key)
    params = init_params(pkey, hp)

    B, T, M = 2, 64, hp.L1_conv_input_filters_n
    x = jax.random.normal(xkey, (B, T, M), jnp.float32)   # (batch, time windows, mel filters)

    fwd = jax.jit(functools.partial(net_forward, hp=hp))
    logits = fwd(x, params)
    logits = jax.block_until_ready(logits)
    assert logits.shape == (B, 10), logits.shape
    assert bool(jnp.all(jnp.isfinite(logits)))
    print("KERNEL_OK")
</pallas_src>

<mosaic_0001>
module attributes {stable_mosaic.version = 11 : i64} {
  func.func @kernel(%arg0: i32, %arg1: memref<2x64x16xf32, #tpu.memory_space<vmem>>, %arg2: memref<3x16x64xbf16, #tpu.memory_space<vmem>>, %arg3: memref<1x64xf32, #tpu.memory_space<vmem>>, %arg4: memref<1x64xf32, #tpu.memory_space<vmem>>, %arg5: memref<3x64x64xbf16, #tpu.memory_space<vmem>>, %arg6: memref<1x64xf32, #tpu.memory_space<vmem>>, %arg7: memref<1x64xf32, #tpu.memory_space<vmem>>, %arg8: memref<3x64x64xbf16, #tpu.memory_space<vmem>>, %arg9: memref<1x64xf32, #tpu.memory_space<vmem>>, %arg10: memref<1x64xf32, #tpu.memory_space<vmem>>, %arg11: memref<3x64x128xbf16, #tpu.memory_space<vmem>>, %arg12: memref<1x128xf32, #tpu.memory_space<vmem>>, %arg13: memref<1x128xf32, #tpu.memory_space<vmem>>, %arg14: memref<3x128x128xbf16, #tpu.memory_space<vmem>>, %arg15: memref<1x128xf32, #tpu.memory_space<vmem>>, %arg16: memref<1x128xf32, #tpu.memory_space<vmem>>, %arg17: memref<7x128x64xbf16, #tpu.memory_space<vmem>>, %arg18: memref<1x64xf32, #tpu.memory_space<vmem>>, %arg19: memref<64x32xbf16, #tpu.memory_space<vmem>>, %arg20: memref<1x32xf32, #tpu.memory_space<vmem>>, %arg21: memref<32x10xbf16, #tpu.memory_space<vmem>>, %arg22: memref<1x10xf32, #tpu.memory_space<vmem>>, %arg23: memref<2x10xf32, #tpu.memory_space<vmem>>, %arg24: memref<2x62x64xf32, #tpu.memory_space<vmem>>, %arg25: memref<2x30x64xf32, #tpu.memory_space<vmem>>, %arg26: memref<2x16x64xf32, #tpu.memory_space<vmem>>, %arg27: memref<2x16x128xf32, #tpu.memory_space<vmem>>, %arg28: memref<2x7x128xf32, #tpu.memory_space<vmem>>) attributes {dimension_semantics = [#tpu.dimension_semantics<arbitrary>], iteration_bounds = array<i64: 1>, scalar_prefetch = 0 : i64, scratch_operands = 5 : i64, tpu.core_type = #tpu.core_type<tc>, window_params = [{pipeline_mode = #tpu.pipeline_mode<synchronous>, transform_indices = @transform_0, window_bounds = array<i64: 2, 64, 16>}, {pipeline_mode = #tpu.pipeline_mode<synchronous>, transform_indices = @transform_1, window_bounds = array<i64: 3, 16, 64>}, {pipeline_mode = #tpu.pipeline_mode<synchronous>, transform_indices = @transform_2, window_bounds = array<i64: 1, 64>}, {pipeline_mode = #tpu.pipeline_mode<synchronous>, transform_indices = @transform_3, window_bounds = array<i64: 1, 64>}, {pipeline_mode = #tpu.pipeline_mode<synchronous>, transform_indices = @transform_4, window_bounds = array<i64: 3, 64, 64>}, {pipeline_mode = #tpu.pipeline_mode<synchronous>, transform_indices = @transform_5, window_bounds = array<i64: 1, 64>}, {pipeline_mode = #tpu.pipeline_mode<synchronous>, transform_indices = @transform_6, window_bounds = array<i64: 1, 64>}, {pipeline_mode = #tpu.pipeline_mode<synchronous>, transform_indices = @transform_7, window_bounds = array<i64: 3, 64, 64>}, {pipeline_mode = #tpu.pipeline_mode<synchronous>, transform_indices = @transform_8, window_bounds = array<i64: 1, 64>}, {pipeline_mode = #tpu.pipeline_mode<synchronous>, transform_indices = @transform_9, window_bounds = array<i64: 1, 64>}, {pipeline_mode = #tpu.pipeline_mode<synchronous>, transform_indices = @transform_10, window_bounds = array<i64: 3, 64, 128>}, {pipeline_mode = #tpu.pipeline_mode<synchronous>, transform_indices = @transform_11, window_bounds = array<i64: 1, 128>}, {pipeline_mode = #tpu.pipeline_mode<synchronous>, transform_indices = @transform_12, window_bounds = array<i64: 1, 128>}, {pipeline_mode = #tpu.pipeline_mode<synchronous>, transform_indices = @transform_13, window_bounds = array<i64: 3, 128, 128>}, {pipeline_mode = #tpu.pipeline_mode<synchronous>, transform_indices = @transform_14, window_bounds = array<i64: 1, 128>}, {pipeline_mode = #tpu.pipeline_mode<synchronous>, transform_indices = @transform_15, window_bounds = array<i64: 1, 128>}, {pipeline_mode = #tpu.pipeline_mode<synchronous>, transform_indices = @transform_16, window_bounds = array<i64: 7, 128, 64>}, {pipeline_mode = #tpu.pipeline_mode<synchronous>, transform_indices = @transform_17, window_bounds = array<i64: 1, 64>}, {pipeline_mode = #tpu.pipeline_mode<synchronous>, transform_indices = @transform_18, window_bounds = array<i64: 64, 32>}, {pipeline_mode = #tpu.pipeline_mode<synchronous>, transform_indices = @transform_19, window_bounds = array<i64: 1, 32>}, {pipeline_mode = #tpu.pipeline_mode<synchronous>, transform_indices = @transform_20, window_bounds = array<i64: 32, 10>}, {pipeline_mode = #tpu.pipeline_mode<synchronous>, transform_indices = @transform_21, window_bounds = array<i64: 1, 10>}, {pipeline_mode = #tpu.pipeline_mode<synchronous>, transform_indices = @transform_22, window_bounds = array<i64: 2, 10>}]} {
    %cst = arith.constant 0.000000e+00 : f32
    %0 = vector.broadcast %cst : f32 to vector<2x16x64xf32>
    %c0 = arith.constant 0 : index
    %c0_0 = arith.constant 0 : index
    %c0_1 = arith.constant 0 : index
    %1 = vector.load %arg26[%c0, %c0_0, %c0_1] : memref<2x16x64xf32, #tpu.memory_space<vmem>>, vector<2x16x64xf32>
    tpu.vector_store %arg26[%c0, %c0_0, %c0_1], %0 {strides = array<i32>} : memref<2x16x64xf32, #tpu.memory_space<vmem>>, vector<2x16x64xf32>,
    %cst_2 = arith.constant 0.000000e+00 : f32
    %2 = vector.broadcast %cst_2 : f32 to vector<2x16x128xf32>
    %c0_3 = arith.constant 0 : index
    %c0_4 = arith.constant 0 : index
    %c0_5 = arith.constant 0 : index
    %3 = vector.load %arg27[%c0_3, %c0_4, %c0_5] : memref<2x16x128xf32, #tpu.memory_space<vmem>>, vector<2x16x128xf32>
    tpu.vector_store %arg27[%c0_3, %c0_4, %c0_5], %2 {strides = array<i32>} : memref<2x16x128xf32, #tpu.memory_space<vmem>>, vector<2x16x128xf32>,
    %cst_6 = arith.constant 0.000000e+00 : f32
    %4 = vector.broadcast %cst_6 : f32 to vector<62x64xf32>
    %c0_7 = arith.constant 0 : index
    %c0_8 = arith.constant 0 : index
    %c0_9 = arith.constant 0 : index
    %5 = vector.load %arg1[%c0_7, %c0_8, %c0_9] : memref<2x64x16xf32, #tpu.memory_space<vmem>>, vector<1x62x16xf32>
    %6 = vector.shape_cast %5 : vector<1x62x16xf32> to vector<62x16xf32>
    %7 = arith.truncf %6 : vector<62x16xf32> to vector<62x16xbf16>
    %c0_10 = arith.constant 0 : index
    %c0_11 = arith.constant 0 : index
    %c0_12 = arith.constant 0 : index
    %8 = vector.load %arg2[%c0_10, %c0_11, %c0_12] : memref<3x16x64xbf16, #tpu.memory_space<vmem>>, vector<1x16x64xbf16>
    %9 = vector.shape_cast %8 : vector<1x16x64xbf16> to vector<16x64xbf16>
    %cst_13 = arith.constant dense<0.000000e+00> : vector<62x64xf32>
    %10 = tpu.matmul %7, %9, %cst_13 {dimension_numbers = #tpu.dot_dimension_numbers<[1], [0], [0], [1], [0, 0, 1, 1], [], []>} : vector<62x16xbf16>, vector<16x64xbf16>, vector<62x64xf32> -> vector<62x64xf32>
    %11 = arith.addf %4, %10 : vector<62x64xf32>
    %c0_14 = arith.constant 0 : index
    %c1 = arith.constant 1 : index
    %c0_15 = arith.constant 0 : index
    %12 = vector.load %arg1[%c0_14, %c1, %c0_15] : memref<2x64x16xf32, #tpu.memory_space<vmem>>, vector<1x62x16xf32>
    %13 = vector.shape_cast %12 : vector<1x62x16xf32> to vector<62x16xf32>
    %14 = arith.truncf %13 : vector<62x16xf32> to vector<62x16xbf16>
    %c1_16 = arith.constant 1 : index
    %c0_17 = arith.constant 0 : index
    %c0_18 = arith.constant 0 : index
    %15 = vector.load %arg2[%c1_16, %c0_17, %c0_18] : memref<3x16x64xbf16, #tpu.memory_space<vmem>>, vector<1x16x64xbf16>
    %16 = vector.shape_cast %15 : vector<1x16x64xbf16> to vector<16x64xbf16>
    %cst_19 = arith.constant dense<0.000000e+00> : vector<62x64xf32>
    %17 = tpu.matmul %14, %16, %cst_19 {dimension_numbers = #tpu.dot_dimension_numbers<[1], [0], [0], [1], [0, 0, 1, 1], [], []>} : vector<62x16xbf16>, vector<16x64xbf16>, vector<62x64xf32> -> vector<62x64xf32>
    %18 = arith.addf %11, %17 : vector<62x64xf32>
    %c0_20 = arith.constant 0 : index
    %c2 = arith.constant 2 : index
    %c0_21 = arith.constant 0 : index
    %19 = vector.load %arg1[%c0_20, %c2, %c0_21] : memref<2x64x16xf32, #tpu.memory_space<vmem>>, vector<1x62x16xf32>
    %20 = vector.shape_cast %19 : vector<1x62x16xf32> to vector<62x16xf32>
    %21 = arith.truncf %20 : vector<62x16xf32> to vector<62x16xbf16>
    %c2_22 = arith.constant 2 : index
    %c0_23 = arith.constant 0 : index
    %c0_24 = arith.constant 0 : index
    %22 = vector.load %arg2[%c2_22, %c0_23, %c0_24] : memref<3x16x64xbf16, #tpu.memory_space<vmem>>, vector<1x16x64xbf16>
    %23 = vector.shape_cast %22 : vector<1x16x64xbf16> to vector<16x64xbf16>
    %cst_25 = arith.constant dense<0.000000e+00> : vector<62x64xf32>
    %24 = tpu.matmul %21, %23, %cst_25 {dimension_numbers = #tpu.dot_dimension_numbers<[1], [0], [0], [1], [0, 0, 1, 1], [], []>} : vector<62x16xbf16>, vector<16x64xbf16>, vector<62x64xf32> -> vector<62x64xf32>
    %25 = arith.addf %18, %24 : vector<62x64xf32>
    %cst_26 = arith.constant 0.000000e+00 : f32
    %26 = vector.broadcast %cst_26 : f32 to vector<62x64xf32>
    %c1_27 = arith.constant 1 : index
    %c0_28 = arith.constant 0 : index
    %c0_29 = arith.constant 0 : index
    %27 = vector.load %arg1[%c1_27, %c0_28, %c0_29] : memref<2x64x16xf32, #tpu.memory_space<vmem>>, vector<1x62x16xf32>
    %28 = vector.shape_cast %27 : vector<1x62x16xf32> to vector<62x16xf32>
    %29 = arith.truncf %28 : vector<62x16xf32> to vector<62x16xbf16>
    %c0_30 = arith.constant 0 : index
    %c0_31 = arith.constant 0 : index
    %c0_32 = arith.constant 0 : index
    %30 = vector.load %arg2[%c0_30, %c0_31, %c0_32] : memref<3x16x64xbf16, #tpu.memory_space<vmem>>, vector<1x16x64xbf16>
    %31 = vector.shape_cast %30 : vector<1x16x64xbf16> to vector<16x64xbf16>
    %cst_33 = arith.constant dense<0.000000e+00> : vector<62x64xf32>
    %32 = tpu.matmul %29, %31, %cst_33 {dimension_numbers = #tpu.dot_dimension_numbers<[1], [0], [0], [1], [0, 0, 1, 1], [], []>} : vector<62x16xbf16>, vector<16x64xbf16>, vector<62x64xf32> -> vector<62x64xf32>
    %33 = arith.addf %26, %32 : vector<62x64xf32>
    %c1_34 = arith.constant 1 : index
    %c1_35 = arith.constant 1 : index
    %c0_36 = arith.constant 0 : index
    %34 = vector.load %arg1[%c1_34, %c1_35, %c0_36] : memref<2x64x16xf32, #tpu.memory_space<vmem>>, vector<1x62x16xf32>
    %35 = vector.shape_cast %34 : vector<1x62x16xf32> to vector<62x16xf32>
    %36 = arith.truncf %35 : vector<62x16xf32> to vector<62x16xbf16>
    %c1_37 = arith.constant 1 : index
    %c0_38 = arith.constant 0 : index
    %c0_39 = arith.constant 0 : index
    %37 = vector.load %arg2[%c1_37, %c0_38, %c0_39] : memref<3x16x64xbf16, #tpu.memory_space<vmem>>, vector<1x16x64xbf16>
    %38 = vector.shape_cast %37 : vector<1x16x64xbf16> to vector<16x64xbf16>
    %cst_40 = arith.constant dense<0.000000e+00> : vector<62x64xf32>
    %39 = tpu.matmul %36, %38, %cst_40 {dimension_numbers = #tpu.dot_dimension_numbers<[1], [0], [0], [1], [0, 0, 1, 1], [], []>} : vector<62x16xbf16>, vector<16x64xbf16>, vector<62x64xf32> -> vector<62x64xf32>
    %40 = arith.addf %33, %39 : vector<62x64xf32>
    %c1_41 = arith.constant 1 : index
    %c2_42 = arith.constant 2 : index
    %c0_43 = arith.constant 0 : index
    %41 = vector.load %arg1[%c1_41, %c2_42, %c0_43] : memref<2x64x16xf32, #tpu.memory_space<vmem>>, vector<1x62x16xf32>
    %42 = vector.shape_cast %41 : vector<1x62x16xf32> to vector<62x16xf32>
    %43 = arith.truncf %42 : vector<62x16xf32> to vector<62x16xbf16>
    %c2_44 = arith.constant 2 : index
    %c0_45 = arith.constant 0 : index
    %c0_46 = arith.constant 0 : index
    %44 = vector.load %arg2[%c2_44, %c0_45, %c0_46] : memref<3x16x64xbf16, #tpu.memory_space<vmem>>, vector<1x16x64xbf16>
    %45 = vector.shape_cast %44 : vector<1x16x64xbf16> to vector<16x64xbf16>
    %cst_47 = arith.constant dense<0.000000e+00> : vector<62x64xf32>
    %46 = tpu.matmul %43, %45, %cst_47 {dimension_numbers = #tpu.dot_dimension_numbers<[1], [0], [0], [1], [0, 0, 1, 1], [], []>} : vector<62x16xbf16>, vector<16x64xbf16>, vector<62x64xf32> -> vector<62x64xf32>
    %47 = arith.addf %40, %46 : vector<62x64xf32>
    %cst_48 = arith.constant dense<0.000000e+00> : vector<64xf32>
    %48 = vector.multi_reduction <add>, %25, %cst_48 [0] : vector<62x64xf32> to vector<64xf32>
    %49 = vector.shape_cast %48 : vector<64xf32> to vector<1x64xf32>
    %cst_49 = arith.constant dense<0.000000e+00> : vector<64xf32>
    %50 = vector.multi_reduction <add>, %47, %cst_49 [0] : vector<62x64xf32> to vector<64xf32>
    %51 = vector.shape_cast %50 : vector<64xf32> to vector<1x64xf32>
    %52 = arith.addf %49, %51 : vector<1x64xf32>
    %cst_50 = arith.constant 1.240000e+02 : f32
    %53 = vector.broadcast %cst_50 : f32 to vector<1x64xf32>
    %54 = arith.divf %52, %53 : vector<1x64xf32>
    %55 = vector.broadcast %54 : vector<1x64xf32> to vector<62x64xf32>
    %56 = arith.subf %25, %55 : vector<62x64xf32>
    %57 = arith.mulf %56, %56 : vector<62x64xf32>
    %cst_51 = arith.constant dense<0.000000e+00> : vector<64xf32>
    %58 = vector.multi_reduction <add>, %57, %cst_51 [0] : vector<62x64xf32> to vector<64xf32>
    %59 = vector.shape_cast %58 : vector<64xf32> to vector<1x64xf32>
    %60 = vector.broadcast %54 : vector<1x64xf32> to vector<62x64xf32>
    %61 = arith.subf %47, %60 : vector<62x64xf32>
    %62 = arith.mulf %61, %61 : vector<62x64xf32>
    %cst_52 = arith.constant dense<0.000000e+00> : vector<64xf32>
    %63 = vector.multi_reduction <add>, %62, %cst_52 [0] : vector<62x64xf32> to vector<64xf32>
    %64 = vector.shape_cast %63 : vector<64xf32> to vector<1x64xf32>
    %65 = arith.addf %59, %64 : vector<1x64xf32>
    %cst_53 = arith.constant 1.240000e+02 : f32
    %66 = vector.broadcast %cst_53 : f32 to vector<1x64xf32>
    %67 = arith.divf %65, %66 : vector<1x64xf32>
    %cst_54 = arith.constant 9.99999974E-6 : f32
    %68 = vector.broadcast %cst_54 : f32 to vector<1x64xf32>
    %69 = arith.addf %67, %68 : vector<1x64xf32>
    %70 = math.rsqrt %69 : vector<1x64xf32>
    %c0_55 = arith.constant 0 : index
    %c0_56 = arith.constant 0 : index
    %71 = vector.load %arg3[%c0_55, %c0_56] : memref<1x64xf32, #tpu.memory_space<vmem>>, vector<1x64xf32>
    %72 = arith.mulf %70, %71 : vector<1x64xf32>
    %c0_57 = arith.constant 0 : index
    %c0_58 = arith.constant 0 : index
    %73 = vector.load %arg4[%c0_57, %c0_58] : memref<1x64xf32, #tpu.memory_space<vmem>>, vector<1x64xf32>
    %74 = arith.mulf %54, %72 : vector<1x64xf32>
    %75 = arith.subf %73, %74 : vector<1x64xf32>
    %76 = vector.broadcast %72 : vector<1x64xf32> to vector<62x64xf32>
    %77 = arith.mulf %25, %76 : vector<62x64xf32>
    %78 = vector.broadcast %75 : vector<1x64xf32> to vector<62x64xf32>
    %79 = arith.addf %77, %78 : vector<62x64xf32>
    %cst_59 = arith.constant 0.000000e+00 : f32
    %80 = vector.broadcast %cst_59 : f32 to vector<62x64xf32>
    %81 = arith.maximumf %79, %80 : vector<62x64xf32>
    %c0_60 = arith.constant 0 : index
    %c0_61 = arith.constant 0 : index
    %c0_62 = arith.constant 0 : index
    %82 = vector.load %arg24[%c0_60, %c0_61, %c0_62] : memref<2x62x64xf32, #tpu.memory_space<vmem>>, vector<1x62x64xf32>
    %83 = vector.shape_cast %82 : vector<1x62x64xf32> to vector<62x64xf32>
    %84 = vector.shape_cast %81 : vector<62x64xf32> to vector<1x62x64xf32>
    tpu.vector_store %arg24[%c0_60, %c0_61, %c0_62], %84 {strides = array<i32>} : memref<2x62x64xf32, #tpu.memory_space<vmem>>, vector<1x62x64xf32>,
    %85 = vector.broadcast %72 : vector<1x64xf32> to vector<62x64xf32>
    %86 = arith.mulf %47, %85 : vector<62x64xf32>
    %87 = vector.broadcast %75 : vector<1x64xf32> to vector<62x64xf32>
    %88 = arith.addf %86, %87 : vector<62x64xf32>
    %cst_63 = arith.constant 0.000000e+00 : f32
    %89 = vector.broadcast %cst_63 : f32 to vector<62x64xf32>
    %90 = arith.maximumf %88, %89 : vector<62x64xf32>
    %c1_64 = arith.constant 1 : index
    %c0_65 = arith.constant 0 : index
    %c0_66 = arith.constant 0 : index
    %91 = vector.load %arg24[%c1_64, %c0_65, %c0_66] : memref<2x62x64xf32, #tpu.memory_space<vmem>>, vector<1x62x64xf32>
    %92 = vector.shape_cast %91 : vector<1x62x64xf32> to vector<62x64xf32>
    %93 = vector.shape_cast %90 : vector<62x64xf32> to vector<1x62x64xf32>
    tpu.vector_store %arg24[%c1_64, %c0_65, %c0_66], %93 {strides = array<i32>} : memref<2x62x64xf32, #tpu.memory_space<vmem>>, vector<1x62x64xf32>,
    %cst_67 = arith.constant 0.000000e+00 : f32
    %94 = vector.broadcast %cst_67 : f32 to vector<60x64xf32>
    %c0_68 = arith.constant 0 : index
    %c0_69 = arith.constant 0 : index
    %c0_70 = arith.constant 0 : index
    %95 = vector.load %arg24[%c0_68, %c0_69, %c0_70] : memref<2x62x64xf32, #tpu.memory_space<vmem>>, vector<1x60x64xf32>
    %96 = vector.shape_cast %95 : vector<1x60x64xf32> to vector<60x64xf32>
    %97 = arith.truncf %96 : vector<60x64xf32> to vector<60x64xbf16>
    %c0_71 = arith.constant 0 : index
    %c0_72 = arith.constant 0 : index
    %c0_73 = arith.constant 0 : index
    %98 = vector.load %arg5[%c0_71, %c0_72, %c0_73] : memref<3x64x64xbf16, #tpu.memory_space<vmem>>, vector<1x64x64xbf16>
    %99 = vector.shape_cast %98 : vector<1x64x64xbf16> to vector<64x64xbf16>
    %cst_74 = arith.constant dense<0.000000e+00> : vector<60x64xf32>
    %100 = tpu.matmul %97, %99, %cst_74 {dimension_numbers = #tpu.dot_dimension_numbers<[1], [0], [0], [1], [0, 0, 1, 1], [], []>} : vector<60x64xbf16>, vector<64x64xbf16>, vector<60x64xf32> -> vector<60x64xf32>
    %101 = arith.addf %94, %100 : vector<60x64xf32>
    %c0_75 = arith.constant 0 : index
    %c1_76 = arith.constant 1 : index
    %c0_77 = arith.constant 0 : index
    %102 = vector.load %arg24[%c0_75, %c1_76, %c0_77] : memref<2x62x64xf32, #tpu.memory_space<vmem>>, vector<1x60x64xf32>
    %103 = vector.shape_cast %102 : vector<1x60x64xf32> to vector<60x64xf32>
    %104 = arith.truncf %103 : vector<60x64xf32> to vector<60x64xbf16>
    %c1_78 = arith.constant 1 : index
    %c0_79 = arith.constant 0 : index
    %c0_80 = arith.constant 0 : index
    %105 = vector.load %arg5[%c1_78, %c0_79, %c0_80] : memref<3x64x64xbf16, #tpu.memory_space<vmem>>, vector<1x64x64xbf16>
    %106 = vector.shape_cast %105 : vector<1x64x64xbf16> to vector<64x64xbf16>
    %cst_81 = arith.constant dense<0.000000e+00> : vector<60x64xf32>
    %107 = tpu.matmul %104, %106, %cst_81 {dimension_numbers = #tpu.dot_dimension_numbers<[1], [0], [0], [1], [0, 0, 1, 1], [], []>} : vector<60x64xbf16>, vector<64x64xbf16>, vector<60x64xf32> -> vector<60x64xf32>
    %108 = arith.addf %101, %107 : vector<60x64xf32>
    %c0_82 = arith.constant 0 : index
    %c2_83 = arith.constant 2 : index
    %c0_84 = arith.constant 0 : index
    %109 = vector.load %arg24[%c0_82, %c2_83, %c0_84] : memref<2x62x64xf32, #tpu.memory_space<vmem>>, vector<1x60x64xf32>
    %110 = vector.shape_cast %109 : vector<1x60x64xf32> to vector<60x64xf32>
    %111 = arith.truncf %110 : vector<60x64xf32> to vector<60x64xbf16>
    %c2_85 = arith.constant 2 : index
    %c0_86 = arith.constant 0 : index
    %c0_87 = arith.constant 0 : index
    %112 = vector.load %arg5[%c2_85, %c0_86, %c0_87] : memref<3x64x64xbf16, #tpu.memory_space<vmem>>, vector<1x64x64xbf16>
    %113 = vector.shape_cast %112 : vector<1x64x64xbf16> to vector<64x64xbf16>
    %cst_88 = arith.constant dense<0.000000e+00> : vector<60x64xf32>
    %114 = tpu.matmul %111, %113, %cst_88 {dimension_numbers = #tpu.dot_dimension_numbers<[1], [0], [0], [1], [0, 0, 1, 1], [], []>} : vector<60x64xbf16>, vector<64x64xbf16>, vector<60x64xf32> -> vector<60x64xf32>
    %115 = arith.addf %108, %114 : vector<60x64xf32>
    %cst_89 = arith.constant 0.000000e+00 : f32
    %116 = vector.broadcast %cst_89 : f32 to vector<60x64xf32>
    %c1_90 = arith.constant 1 : index
    %c0_91 = arith.constant 0 : index
    %c0_92 = arith.constant 0 : index
    %117 = vector.load %arg24[%c1_90, %c0_91, %c0_92] : memref<2x62x64xf32, #tpu.memory_space<vmem>>, vector<1x60x64xf32>
    %118 = vector.shape_cast %117 : vector<1x60x64xf32> to vector<60x64xf32>
    %119 = arith.truncf %118 : vector<60x64xf32> to vector<60x64xbf16>
    %c0_93 = arith.constant 0 : index
    %c0_94 = arith.constant 0 : index
    %c0_95 = arith.constant 0 : index
    %120 = vector.load %arg5[%c0_93, %c0_94, %c0_95] : memref<3x64x64xbf16, #tpu.memory_space<vmem>>, vector<1x64x64xbf16>
    %121 = vector.shape_cast %120 : vector<1x64x64xbf16> to vector<64x64xbf16>
    %cst_96 = arith.constant dense<0.000000e+00> : vector<60x64xf32>
    %122 = tpu.matmul %119, %121, %cst_96 {dimension_numbers = #tpu.dot_dimension_numbers<[1], [0], [0], [1], [0, 0, 1, 1], [], []>} : vector<60x64xbf16>, vector<64x64xbf16>, vector<60x64xf32> -> vector<60x64xf32>
    %123 = arith.addf %116, %122 : vector<60x64xf32>
    %c1_97 = arith.constant 1 : index
    %c1_98 = arith.constant 1 : index
    %c0_99 = arith.constant 0 : index
    %124 = vector.load %arg24[%c1_97, %c1_98, %c0_99] : memref<2x62x64xf32, #tpu.memory_space<vmem>>, vector<1x60x64xf32>
    %125 = vector.shape_cast %124 : vector<1x60x64xf32> to vector<60x64xf32>
    %126 = arith.truncf %125 : vector<60x64xf32> to vector<60x64xbf16>
    %c1_100 = arith.constant 1 : index
    %c0_101 = arith.constant 0 : index
    %c0_102 = arith.constant 0 : index
    %127 = vector.load %arg5[%c1_100, %c0_101, %c0_102] : memref<3x64x64xbf16, #tpu.memory_space<vmem>>, vector<1x64x64xbf16>
    %128 = vector.shape_cast %127 : vector<1x64x64xbf16> to vector<64x64xbf16>
    %cst_103 = arith.constant dense<0.000000e+00> : vector<60x64xf32>
    %129 = tpu.matmul %126, %128, %cst_103 {dimension_numbers = #tpu.dot_dimension_numbers<[1], [0], [0], [1], [0, 0, 1, 1], [], []>} : vector<60x64xbf16>, vector<64x64xbf16>, vector<60x64xf32> -> vector<60x64xf32>
    %130 = arith.addf %123, %129 : vector<60x64xf32>
    %c1_104 = arith.constant 1 : index
    %c2_105 = arith.constant 2 : index
    %c0_106 = arith.constant 0 : index
    %131 = vector.load %arg24[%c1_104, %c2_105, %c0_106] : memref<2x62x64xf32, #tpu.memory_space<vmem>>, vector<1x60x64xf32>
    %132 = vector.shape_cast %131 : vector<1x60x64xf32> to vector<60x64xf32>
    %133 = arith.truncf %132 : vector<60x64xf32> to vector<60x64xbf16>
    %c2_107 = arith.constant 2 : index
    %c0_108 = arith.constant 0 : index
    %c0_109 = arith.constant 0 : index
    %134 = vector.load %arg5[%c2_107, %c0_108, %c0_109] : memref<3x64x64xbf16, #tpu.memory_space<vmem>>, vector<1x64x64xbf16>
    %135 = vector.shape_cast %134 : vector<1x64x64xbf16> to vector<64x64xbf16>
    %cst_110 = arith.constant dense<0.000000e+00> : vector<60x64xf32>
    %136 = tpu.matmul %133, %135, %cst_110 {dimension_numbers = #tpu.dot_dimension_numbers<[1], [0], [0], [1], [0, 0, 1, 1], [], []>} : vector<60x64xbf16>, vector<64x64xbf16>, vector<60x64xf32> -> vector<60x64xf32>
    %137 = arith.addf %130, %136 : vector<60x64xf32>
    %cst_111 = arith.constant dense<0.000000e+00> : vector<64xf32>
    %138 = vector.multi_reduction <add>, %115, %cst_111 [0] : vector<60x64xf32> to vector<64xf32>
    %139 = vector.shape_cast %138 : vector<64xf32> to vector<1x64xf32>
    %cst_112 = arith.constant dense<0.000000e+00> : vector<64xf32>
    %140 = vector.multi_reduction <add>, %137, %cst_112 [0] : vector<60x64xf32> to vector<64xf32>
    %141 = vector.shape_cast %140 : vector<64xf32> to vector<1x64xf32>
    %142 = arith.addf %139, %141 : vector<1x64xf32>
    %cst_113 = arith.constant 1.200000e+02 : f32
    %143 = vector.broadcast %cst_113 : f32 to vector<1x64xf32>
    %144 = arith.divf %142, %143 : vector<1x64xf32>
    %145 = vector.broadcast %144 : vector<1x64xf32> to vector<60x64xf32>
    %146 = arith.subf %115, %145 : vector<60x64xf32>
    %147 = arith.mulf %146, %146 : vector<60x64xf32>
    %cst_114 = arith.constant dense<0.000000e+00> : vector<64xf32>
    %148 = vector.multi_reduction <add>, %147, %cst_114 [0] : vector<60x64xf32> to vector<64xf32>
    %149 = vector.shape_cast %148 : vector<64xf32> to vector<1x64xf32>
    %150 = vector.broadcast %144 : vector<1x64xf32> to vector<60x64xf32>
    %151 = arith.subf %137, %150 : vector<60x64xf32>
    %152 = arith.mulf %151, %151 : vector<60x64xf32>
    %cst_115 = arith.constant dense<0.000000e+00> : vector<64xf32>
    %153 = vector.multi_reduction <add>, %152, %cst_115 [0] : vector<60x64xf32> to vector<64xf32>
    %154 = vector.shape_cast %153 : vector<64xf32> to vector<1x64xf32>
    %155 = arith.addf %149, %154 : vector<1x64xf32>
    %cst_116 = arith.constant 1.200000e+02 : f32
    %156 = vector.broadcast %cst_116 : f32 to vector<1x64xf32>
    %157 = arith.divf %155, %156 : vector<1x64xf32>
    %cst_117 = arith.constant 9.99999974E-6 : f32
    %158 = vector.broadcast %cst_117 : f32 to vector<1x64xf32>
    %159 = arith.addf %157, %158 : vector<1x64xf32>
    %160 = math.rsqrt %159 : vector<1x64xf32>
    %c0_118 = arith.constant 0 : index
    %c0_119 = arith.constant 0 : index
    %161 = vector.load %arg6[%c0_118, %c0_119] : memref<1x64xf32, #tpu.memory_space<vmem>>, vector<1x64xf32>
    %162 = arith.mulf %160, %161 : vector<1x64xf32>
    %c0_120 = arith.constant 0 : index
    %c0_121 = arith.constant 0 : index
    %163 = vector.load %arg7[%c0_120, %c0_121] : memref<1x64xf32, #tpu.memory_space<vmem>>, vector<1x64xf32>
    %164 = arith.mulf %144, %162 : vector<1x64xf32>
    %165 = arith.subf %163, %164 : vector<1x64xf32>
    %166 = vector.broadcast %162 : vector<1x64xf32> to vector<60x64xf32>
    %167 = arith.mulf %115, %166 : vector<60x64xf32>
    %168 = vector.broadcast %165 : vector<1x64xf32> to vector<60x64xf32>
    %169 = arith.addf %167, %168 : vector<60x64xf32>
    %cst_122 = arith.constant 0.000000e+00 : f32
    %170 = vector.broadcast %cst_122 : f32 to vector<60x64xf32>
    %171 = arith.maximumf %169, %170 : vector<60x64xf32>
    %172 = vector.extract_strided_slice %171 {offsets = [0, 0], sizes = [1, 64], strides = [1, 1]} : vector<60x64xf32> to vector<1x64xf32>
    %173 = vector.extract_strided_slice %171 {offsets = [1, 0], sizes = [1, 64], strides = [1, 1]} : vector<60x64xf32> to vector<1x64xf32>
    %174 = arith.maximumf %172, %173 : vector<1x64xf32>
    %c0_123 = arith.constant 0 : index
    %c0_124 = arith.constant 0 : index
    %c0_125 = arith.constant 0 : index
    %175 = vector.load %arg25[%c0_123, %c0_124, %c0_125] : memref<2x30x64xf32, #tpu.memory_space<vmem>>, vector<1x1x64xf32>
    %176 = vector.shape_cast %175 : vector<1x1x64xf32> to vector<1x64xf32>
    %177 = vector.shape_cast %174 : vector<1x64xf32> to vector<1x1x64xf32>
    tpu.vector_store %arg25[%c0_123, %c0_124, %c0_125], %177 {strides = array<i32>} : memref<2x30x64xf32, #tpu.memory_space<vmem>>, vector<1x1x64xf32>,
    %178 = vector.extract_strided_slice %171 {offsets = [2, 0], sizes = [1, 64], strides = [1, 1]} : vector<60x64xf32> to vector<1x64xf32>
    %179 = vector.extract_strided_slice %171 {offsets = [3, 0], sizes = [1, 64], strides = [1, 1]} : vector<60x64xf32> to vector<1x64xf32>
    %180 = arith.maximumf %178, %179 : vector<1x64xf32>
    %c0_126 = arith.constant 0 : index
    %c1_127 = arith.constant 1 : index
    %c0_128 = arith.constant 0 : index
    %181 = vector.load %arg25[%c0_126, %c1_127, %c0_128] : memref<2x30x64xf32, #tpu.memory_space<vmem>>, vector<1x1x64xf32>
    %182 = vector.shape_cast %181 : vector<1x1x64xf32> to vector<1x64xf32>
    %183 = vector.shape_cast %180 : vector<1x64xf32> to vector<1x1x64xf32>
    tpu.vector_store %arg25[%c0_126, %c1_127, %c0_128], %183 {strides = array<i32>} : memref<2x30x64xf32, #tpu.memory_space<vmem>>, vector<1x1x64xf32>,
    %184 = vector.extract_strided_slice %171 {offsets = [4, 0], sizes = [1, 64], strides = [1, 1]} : vector<60x64xf32> to vector<1x64xf32>
    %185 = vector.extract_strided_slice %171 {offsets = [5, 0], sizes = [1, 64], strides = [1, 1]} : vector<60x64xf32> to vector<1x64xf32>
    %186 = arith.maximumf %184, %185 : vector<1x64xf32>
    %c0_129 = arith.constant 0 : index
    %c2_130 = arith.constant 2 : index
    %c0_131 = arith.constant 0 : index
    %187 = vector.load %arg25[%c0_129, %c2_130, %c0_131] : memref<2x30x64xf32, #tpu.memory_space<vmem>>, vector<1x1x64xf32>
    %188 = vector.shape_cast %187 : vector<1x1x64xf32> to vector<1x64xf32>
    %189 = vector.shape_cast %186 : vector<1x64xf32> to vector<1x1x64xf32>
    tpu.vector_store %arg25[%c0_129, %c2_130, %c0_131], %189 {strides = array<i32>} : memref<2x30x64xf32, #tpu.memory_space<vmem>>, vector<1x1x64xf32>,
    %190 = vector.extract_strided_slice %171 {offsets = [6, 0], sizes = [1, 64], strides = [1, 1]} : vector<60x64xf32> to vector<1x64xf32>
    %191 = vector.extract_strided_slice %171 {offsets = [7, 0], sizes = [1, 64], strides = [1, 1]} : vector<60x64xf32> to vector<1x64xf32>
    %192 = arith.maximumf %190, %191 : vector<1x64xf32>
    %c0_132 = arith.constant 0 : index
    %c3 = arith.constant 3 : index
    %c0_133 = arith.constant 0 : index
    %193 = vector.load %arg25[%c0_132, %c3, %c0_133] : memref<2x30x64xf32, #tpu.memory_space<vmem>>, vector<1x1x64xf32>
    %194 = vector.shape_cast %193 : vector<1x1x64xf32> to vector<1x64xf32>
    %195 = vector.shape_cast %192 : vector<1x64xf32> to vector<1x1x64xf32>
    tpu.vector_store %arg25[%c0_132, %c3, %c0_133], %195 {strides = array<i32>} : memref<2x30x64xf32, #tpu.memory_space<vmem>>, vector<1x1x64xf32>,
    %196 = vector.extract_strided_slice %171 {offsets = [8, 0], sizes = [1, 64], strides = [1, 1]} : vector<60x64xf32> to vector<1x64xf32>
    %197 = vector.extract_strided_slice %171 {offsets = [9, 0], sizes = [1, 64], strides = [1, 1]} : vector<60x64xf32> to vector<1x64xf32>
    %198 = arith.maximumf %196, %197 : vector<1x64xf32>
    %c0_134 = arith.constant 0 : index
    %c4 = arith.constant 4 : index
    %c0_135 = arith.constant 0 : index
    %199 = vector.load %arg25[%c0_134, %c4, %c0_135] : memref<2x30x64xf32, #tpu.memory_space<vmem>>, vector<1x1x64xf32>
    %200 = vector.shape_cast %199 : vector<1x1x64xf32> to vector<1x64xf32>
    %201 = vector.shape_cast %198 : vector<1x64xf32> to vector<1x1x64xf32>
    tpu.vector_store %arg25[%c0_134, %c4, %c0_135], %201 {strides = array<i32>} : memref<2x30x64xf32, #tpu.memory_space<vmem>>, vector<1x1x64xf32>,
    %202 = vector.extract_strided_slice %171 {offsets = [10, 0], sizes = [1, 64], strides = [1, 1]} : vector<60x64xf32> to vector<1x64xf32>
    %203 = vector.extract_strided_slice %171 {offsets = [11, 0], sizes = [1, 64], strides = [1, 1]} : vector<60x64xf32> to vector<1x64xf32>
    %204 = arith.maximumf %202, %203 : vector<1x64xf32>
    %c0_136 = arith.constant 0 : index
    %c5 = arith.constant 5 : index
    %c0_137 = arith.constant 0 : index
    %205 = vector.load %arg25[%c0_136, %c5, %c0_137] : memref<2x30x64xf32, #tpu.memory_space<vmem>>, vector<1x1x64xf32>
    %206 = vector.shape_cast %205 : vector<1x1x64xf32> to vector<1x64xf32>
    %207 = vector.shape_cast %204 : vector<1x64xf32> to vector<1x1x64xf32>
    tpu.vector_store %arg25[%c0_136, %c5, %c0_137], %207 {strides = array<i32>} : memref<2x30x64xf32, #tpu.memory_space<vmem>>, vector<1x1x64xf32>,
    %208 = vector.extract_strided_slice %171 {offsets = [12, 0], sizes = [1, 64], strides = [1, 1]} : vector<60x64xf32> to vector<1x64xf32>
    %209 = vector.extract_strided_slice %171 {offsets = [13, 0], sizes = [1, 64], strides = [1, 1]} : vector<60x64xf32> to vector<1x64xf32>
    %210 = arith.maximumf %208, %209 : vector<1x64xf32>
    %c0_138 = arith.constant 0 : index
    %c6 = arith.constant 6 : index
    %c0_139 = arith.constant 0 : index
    %211 = vector.load %arg25[%c0_138, %c6, %c0_139] : memref<2x30x64xf32, #tpu.memory_space<vmem>>, vector<1x1x64xf32>
    %212 = vector.shape_cast %211 : vector<1x1x64xf32> to vector<1x64xf32>
    %213 = vector.shape_cast %210 : vector<1x64xf32> to vector<1x1x64xf32>
    tpu.vector_store %arg25[%c0_138, %c6, %c0_139], %213 {strides = array<i32>} : memref<2x30x64xf32, #tpu.memory_space<vmem>>, vector<1x1x64xf32>,
    %214 = vector.extract_strided_slice %171 {offsets = [14, 0], sizes = [1, 64], strides = [1, 1]} : vector<60x64xf32> to vector<1x64xf32>
    %215 = vector.extract_strided_slice %171 {offsets = [15, 0], sizes = [1, 64], strides = [1, 1]} : vector<60x64xf32> to vector<1x64xf32>
    %216 = arith.maximumf %214, %215 : vector<1x64xf32>
    %c0_140 = arith.constant 0 : index
    %c7 = arith.constant 7 : index
    %c0_141 = arith.constant 0 : index
    %217 = vector.load %arg25[%c0_140, %c7, %c0_141] : memref<2x30x64xf32, #tpu.memory_space<vmem>>, vector<1x1x64xf32>
    %218 = vector.shape_cast %217 : vector<1x1x64xf32> to vector<1x64xf32>
    %219 = vector.shape_cast %216 : vector<1x64xf32> to vector<1x1x64xf32>
    tpu.vector_store %arg25[%c0_140, %c7, %c0_141], %219 {strides = array<i32>} : memref<2x30x64xf32, #tpu.memory_space<vmem>>, vector<1x1x64xf32>,
    %220 = vector.extract_strided_slice %171 {offsets = [16, 0], sizes = [1, 64], strides = [1, 1]} : vector<60x64xf32> to vector<1x64xf32>
    %221 = vector.extract_strided_slice %171 {offsets = [17, 0], sizes = [1, 64], strides = [1, 1]} : vector<60x64xf32> to vector<1x64xf32>
    %222 = arith.maximumf %220, %221 : vector<1x64xf32>
    %c0_142 = arith.constant 0 : index
    %c8 = arith.constant 8 : index
    %c0_143 = arith.constant 0 : index
    %223 = vector.load %arg25[%c0_142, %c8, %c0_143] : memref<2x30x64xf32, #tpu.memory_space<vmem>>, vector<1x1x64xf32>
    %224 = vector.shape_cast %223 : vector<1x1x64xf32> to vector<1x64xf32>
    %225 = vector.shape_cast %222 : vector<1x64xf32> to vector<1x1x64xf32>
    tpu.vector_store %arg25[%c0_142, %c8, %c0_143], %225 {strides = array<i32>} : memref<2x30x64xf32, #tpu.memory_space<vmem>>, vector<1x1x64xf32>,
    %226 = vector.extract_strided_slice %171 {offsets = [18, 0], sizes = [1, 64], strides = [1, 1]} : vector<60x64xf32> to vector<1x64xf32>
    %227 = vector.extract_strided_slice %171 {offsets = [19, 0], sizes = [1, 64], strides = [1, 1]} : vector<60x64xf32> to vector<1x64xf32>
    %228 = arith.maximumf %226, %227 : vector<1x64xf32>
    %c0_144 = arith.constant 0 : index
    %c9 = arith.constant 9 : index
    %c0_145 = arith.constant 0 : index
    %229 = vector.load %arg25[%c0_144, %c9, %c0_145] : memref<2x30x64xf32, #tpu.memory_space<vmem>>, vector<1x1x64xf32>
    %230 = vector.shape_cast %229 : vector<1x1x64xf32> to vector<1x64xf32>
    %231 = vector.shape_cast %228 : vector<1x64xf32> to vector<1x1x64xf32>
    tpu.vector_store %arg25[%c0_144, %c9, %c0_145], %231 {strides = array<i32>} : memref<2x30x64xf32, #tpu.memory_space<vmem>>, vector<1x1x64xf32>,
    %232 = vector.extract_strided_slice %171 {offsets = [20, 0], sizes = [1, 64], strides = [1, 1]} : vector<60x64xf32> to vector<1x64xf32>
    %233 = vector.extract_strided_slice %171 {offsets = [21, 0], sizes = [1, 64], strides = [1, 1]} : vector<60x64xf32> to vector<1x64xf32>
    %234 = arith.maximumf %232, %233 : vector<1x64xf32>
    %c0_146 = arith.constant 0 : index
    %c10 = arith.constant 10 : index
    %c0_147 = arith.constant 0 : index
    %235 = vector.load %arg25[%c0_146, %c10, %c0_147] : memref<2x30x64xf32, #tpu.memory_space<vmem>>, vector<1x1x64xf32>
    %236 = vector.shape_cast %235 : vector<1x1x64xf32> to vector<1x64xf32>
    %237 = vector.shape_cast %234 : vector<1x64xf32> to vector<1x1x64xf32>
    tpu.vector_store %arg25[%c0_146, %c10, %c0_147], %237 {strides = array<i32>} : memref<2x30x64xf32, #tpu.memory_space<vmem>>, vector<1x1x64xf32>,
    %238 = vector.extract_strided_slice %171 {offsets = [22, 0], sizes = [1, 64], strides = [1, 1]} : vector<60x64xf32> to vector<1x64xf32>
    %239 = vector.extract_strided_slice %171 {offsets = [23, 0], sizes = [1, 64], strides = [1, 1]} : vector<60x64xf32> to vector<1x64xf32>
    %240 = arith.maximumf %238, %239 : vector<1x64xf32>
    %c0_148 = arith.constant 0 : index
    %c11 = arith.constant 11 : index
    %c0_149 = arith.constant 0 : index
    %241 = vector.load %arg25[%c0_148, %c11, %c0_149] : memref<2x30x64xf32, #tpu.memory_space<vmem>>, vector<1x1x64xf32>
    %242 = vector.shape_cast %241 : vector<1x1x64xf32> to vector<1x64xf32>
    %243 = vector.shape_cast %240 : vector<1x64xf32> to vector<1x1x64xf32>
    tpu.vector_store %arg25[%c0_148, %c11, %c0_149], %243 {strides = array<i32>} : memref<2x30x64xf32, #tpu.memory_space<vmem>>, vector<1x1x64xf32>,
    %244 = vector.extract_strided_slice %171 {offsets = [24, 0], sizes = [1, 64], strides = [1, 1]} : vector<60x64xf32> to vector<1x64xf32>
    %245 = vector.extract_strided_slice %171 {offsets = [25, 0], sizes = [1, 64], strides = [1, 1]} : vector<60x64xf32> to vector<1x64xf32>
    %246 = arith.maximumf %244, %245 : vector<1x64xf32>
    %c0_150 = arith.constant 0 : index
    %c12 = arith.constant 12 : index
    %c0_151 = arith.constant 0 : index
    %247 = vector.load %arg25[%c0_150, %c12, %c0_151] : memref<2x30x64xf32, #tpu.memory_space<vmem>>, vector<1x1x64xf32>
    %248 = vector.shape_cast %247 : vector<1x1x64xf32> to vector<1x64xf32>
    %249 = vector.shape_cast %246 : vector<1x64xf32> to vector<1x1x64xf32>
    tpu.vector_store %arg25[%c0_150, %c12, %c0_151], %249 {strides = array<i32>} : memref<2x30x64xf32, #tpu.memory_space<vmem>>, vector<1x1x64xf32>,
    %250 = vector.extract_strided_slice %171 {offsets = [26, 0], sizes = [1, 64], strides = [1, 1]} : vector<60x64xf32> to vector<1x64xf32>
    %251 = vector.extract_strided_slice %171 {offsets = [27, 0], sizes = [1, 64], strides = [1, 1]} : vector<60x64xf32> to vector<1x64xf32>
    %252 = arith.maximumf %250, %251 : vector<1x64xf32>
    %c0_152 = arith.constant 0 : index
    %c13 = arith.constant 13 : index
    %c0_153 = arith.constant 0 : index
    %253 = vector.load %arg25[%c0_152, %c13, %c0_153] : memref<2x30x64xf32, #tpu.memory_space<vmem>>, vector<1x1x64xf32>
    %254 = vector.shape_cast %253 : vector<1x1x64xf32> to vector<1x64xf32>
    %255 = vector.shape_cast %252 : vector<1x64xf32> to vector<1x1x64xf32>
    tpu.vector_store %arg25[%c0_152, %c13, %c0_153], %255 {strides = array<i32>} : memref<2x30x64xf32, #tpu.memory_space<vmem>>, vector<1x1x64xf32>,
    %256 = vector.extract_strided_slice %171 {offsets = [28, 0], sizes = [1, 64], strides = [1, 1]} : vector<60x64xf32> to vector<1x64xf32>
    %257 = vector.extract_strided_slice %171 {offsets = [29, 0], sizes = [1, 64], strides = [1, 1]} : vector<60x64xf32> to vector<1x64xf32>
    %258 = arith.maximumf %256, %257 : vector<1x64xf32>
    %c0_154 = arith.constant 0 : index
    %c14 = arith.constant 14 : index
    %c0_155 = arith.constant 0 : index
    %259 = vector.load %arg25[%c0_154, %c14, %c0_155] : memref<2x30x64xf32, #tpu.memory_space<vmem>>, vector<1x1x64xf32>
    %260 = vector.shape_cast %259 : vector<1x1x64xf32> to vector<1x64xf32>
    %261 = vector.shape_cast %258 : vector<1x64xf32> to vector<1x1x64xf32>
    tpu.vector_store %arg25[%c0_154, %c14, %c0_155], %261 {strides = array<i32>} : memref<2x30x64xf32, #tpu.memory_space<vmem>>, vector<1x1x64xf32>,
    %262 = vector.extract_strided_slice %171 {offsets = [30, 0], sizes = [1, 64], strides = [1, 1]} : vector<60x64xf32> to vector<1x64xf32>
    %263 = vector.extract_strided_slice %171 {offsets = [31, 0], sizes = [1, 64], strides = [1, 1]} : vector<60x64xf32> to vector<1x64xf32>
    %264 = arith.maximumf %262, %263 : vector<1x64xf32>
    %c0_156 = arith.constant 0 : index
    %c15 = arith.constant 15 : index
    %c0_157 = arith.constant 0 : index
    %265 = vector.load %arg25[%c0_156, %c15, %c0_157] : memref<2x30x64xf32, #tpu.memory_space<vmem>>, vector<1x1x64xf32>
    %266 = vector.shape_cast %265 : vector<1x1x64xf32> to vector<1x64xf32>
    %267 = vector.shape_cast %264 : vector<1x64xf32> to vector<1x1x64xf32>
    tpu.vector_store %arg25[%c0_156, %c15, %c0_157], %267 {strides = array<i32>} : memref<2x30x64xf32, #tpu.memory_space<vmem>>, vector<1x1x64xf32>,
    %268 = vector.extract_strided_slice %171 {offsets = [32, 0], sizes = [1, 64], strides = [1, 1]} : vector<60x64xf32> to vector<1x64xf32>
    %269 = vector.extract_strided_slice %171 {offsets = [33, 0], sizes = [1, 64], strides = [1, 1]} : vector<60x64xf32> to vector<1x64xf32>
    %270 = arith.maximumf %268, %269 : vector<1x64xf32>
    %c0_158 = arith.constant 0 : index
    %c16 = arith.constant 16 : index
    %c0_159 = arith.constant 0 : index
    %271 = vector.load %arg25[%c0_158, %c16, %c0_159] : memref<2x30x64xf32, #tpu.memory_space<vmem>>, vector<1x1x64xf32>
    %272 = vector.shape_cast %271 : vector<1x1x64xf32> to vector<1x64xf32>
    %273 = vector.shape_cast %270 : vector<1x64xf32> to vector<1x1x64xf32>
    tpu.vector_store %arg25[%c0_158, %c16, %c0_159], %273 {strides = array<i32>} : memref<2x30x64xf32, #tpu.memory_space<vmem>>, vector<1x1x64xf32>,
    %274 = vector.extract_strided_slice %171 {offsets = [34, 0], sizes = [1, 64], strides = [1, 1]} : vector<60x64xf32> to vector<1x64xf32>
    %275 = vector.extract_strided_slice %171 {offsets = [35, 0], sizes = [1, 64], strides = [1, 1]} : vector<60x64xf32> to vector<1x64xf32>
    %276 = arith.maximumf %274, %275 : vector<1x64xf32>
    %c0_160 = arith.constant 0 : index
    %c17 = arith.constant 17 : index
    %c0_161 = arith.constant 0 : index
    %277 = vector.load %arg25[%c0_160, %c17, %c0_161] : memref<2x30x64xf32, #tpu.memory_space<vmem>>, vector<1x1x64xf32>
    %278 = vector.shape_cast %277 : vector<1x1x64xf32> to vector<1x64xf32>
    %279 = vector.shape_cast %276 : vector<1x64xf32> to vector<1x1x64xf32>
    tpu.vector_store %arg25[%c0_160, %c17, %c0_161], %279 {strides = array<i32>} : memref<2x30x64xf32, #tpu.memory_space<vmem>>, vector<1x1x64xf32>,
    %280 = vector.extract_strided_slice %171 {offsets = [36, 0], sizes = [1, 64], strides = [1, 1]} : vector<60x64xf32> to vector<1x64xf32>
    %281 = vector.extract_strided_slice %171 {offsets = [37, 0], sizes = [1, 64], strides = [1, 1]} : vector<60x64xf32> to vector<1x64xf32>
    %282 = arith.maximumf %280, %281 : vector<1x64xf32>
    %c0_162 = arith.constant 0 : index
    %c18 = arith.constant 18 : index
    %c0_163 = arith.constant 0 : index
    %283 = vector.load %arg25[%c0_162, %c18, %c0_163] : memref<2x30x64xf32, #tpu.memory_space<vmem>>, vector<1x1x64xf32>
    %284 = vector.shape_cast %283 : vector<1x1x64xf32> to vector<1x64xf32>
    %285 = vector.shape_cast %282 : vector<1x64xf32> to vector<1x1x64xf32>
    tpu.vector_store %arg25[%c0_162, %c18, %c0_163], %285 {strides = array<i32>} : memref<2x30x64xf32, #tpu.memory_space<vmem>>, vector<1x1x64xf32>,
    %286 = vector.extract_strided_slice %171 {offsets = [38, 0], sizes = [1, 64], strides = [1, 1]} : vector<60x64xf32> to vector<1x64xf32>
    %287 = vector.extract_strided_slice %171 {offsets = [39, 0], sizes = [1, 64], strides = [1, 1]} : vector<60x64xf32> to vector<1x64xf32>
    %288 = arith.maximumf %286, %287 : vector<1x64xf32>
    %c0_164 = arith.constant 0 : index
    %c19 = arith.constant 19 : index
    %c0_165 = arith.constant 0 : index
    %289 = vector.load %arg25[%c0_164, %c19, %c0_165] : memref<2x30x64xf32, #tpu.memory_space<vmem>>, vector<1x1x64xf32>
    %290 = vector.shape_cast %289 : vector<1x1x64xf32> to vector<1x64xf32>
    %291 = vector.shape_cast %288 : vector<1x64xf32> to vector<1x1x64xf32>
    tpu.vector_store %arg25[%c0_164, %c19, %c0_165], %291 {strides = array<i32>} : memref<2x30x64xf32, #tpu.memory_space<vmem>>, vector<1x1x64xf32>,
    %292 = vector.extract_strided_slice %171 {offsets = [40, 0], sizes = [1, 64], strides = [1, 1]} : vector<60x64xf32> to vector<1x64xf32>
    %293 = vector.extract_strided_slice %171 {offsets = [41, 0], sizes = [1, 64], strides = [1, 1]} : vector<60x64xf32> to vector<1x64xf32>
    %294 = arith.maximumf %292, %293 : vector<1x64xf32>
    %c0_166 = arith.constant 0 : index
    %c20 = arith.constant 20 : index
    %c0_167 = arith.constant 0 : index
    %295 = vector.load %arg25[%c0_166, %c20, %c0_167] : memref<2x30x64xf32, #tpu.memory_space<vmem>>, vector<1x1x64xf32>
    %296 = vector.shape_cast %295 : vector<1x1x64xf32> to vector<1x64xf32>
    %297 = vector.shape_cast %294 : vector<1x64xf32> to vector<1x1x64xf32>
    tpu.vector_store %arg25[%c0_166, %c20, %c0_167], %297 {strides = array<i32>} : memref<2x30x64xf32, #tpu.memory_space<vmem>>, vector<1x1x64xf32>,
    %298 = vector.extract_strided_slice %171 {offsets = [42, 0], sizes = [1, 64], strides = [1, 1]} : vector<60x64xf32> to vector<1x64xf32>
    %299 = vector.extract_strided_slice %171 {offsets = [43, 0], sizes = [1, 64], strides = [1, 1]} : vector<60x64xf32> to vector<1x64xf32>
    %300 = arith.maximumf %298, %299 : vector<1x64xf32>
    %c0_168 = arith.constant 0 : index
    %c21 = arith.constant 21 : index
    %c0_169 = arith.constant 0 : index
    %301 = vector.load %arg25[%c0_168, %c21, %c0_169] : memref<2x30x64xf32, #tpu.memory_space<vmem>>, vector<1x1x64xf32>
    %302 = vector.shape_cast %301 : vector<1x1x64xf32> to vector<1x64xf32>
    %303 = vector.shape_cast %300 : vector<1x64xf32> to vector<1x1x64xf32>
    tpu.vector_store %arg25[%c0_168, %c21, %c0_169], %303 {strides = array<i32>} : memref<2x30x64xf32, #tpu.memory_space<vmem>>, vector<1x1x64xf32>,
    %304 = vector.extract_strided_slice %171 {offsets = [44, 0], sizes = [1, 64], strides = [1, 1]} : vector<60x64xf32> to vector<1x64xf32>
    %305 = vector.extract_strided_slice %171 {offsets = [45, 0], sizes = [1, 64], strides = [1, 1]} : vector<60x64xf32> to vector<1x64xf32>
    %306 = arith.maximumf %304, %305 : vector<1x64xf32>
    %c0_170 = arith.constant 0 : index
    %c22 = arith.constant 22 : index
    %c0_171 = arith.constant 0 : index
    %307 = vector.load %arg25[%c0_170, %c22, %c0_171] : memref<2x30x64xf32, #tpu.memory_space<vmem>>, vector<1x1x64xf32>
    %308 = vector.shape_cast %307 : vector<1x1x64xf32> to vector<1x64xf32>
    %309 = vector.shape_cast %306 : vector<1x64xf32> to vector<1x1x64xf32>
    tpu.vector_store %arg25[%c0_170, %c22, %c0_171], %309 {strides = array<i32>} : memref<2x30x64xf32, #tpu.memory_space<vmem>>, vector<1x1x64xf32>,
    %310 = vector.extract_strided_slice %171 {offsets = [46, 0], sizes = [1, 64], strides = [1, 1]} : vector<60x64xf32> to vector<1x64xf32>
    %311 = vector.extract_strided_slice %171 {offsets = [47, 0], sizes = [1, 64], strides = [1, 1]} : vector<60x64xf32> to vector<1x64xf32>
    %312 = arith.maximumf %310, %311 : vector<1x64xf32>
    %c0_172 = arith.constant 0 : index
    %c23 = arith.constant 23 : index
    %c0_173 = arith.constant 0 : index
    %313 = vector.load %arg25[%c0_172, %c23, %c0_173] : memref<2x30x64xf32, #tpu.memory_space<vmem>>, vector<1x1x64xf32>
    %314 = vector.shape_cast %313 : vector<1x1x64xf32> to vector<1x64xf32>
    %315 = vector.shape_cast %312 : vector<1x64xf32> to vector<1x1x64xf32>
    tpu.vector_store %arg25[%c0_172, %c23, %c0_173], %315 {strides = array<i32>} : memref<2x30x64xf32, #tpu.memory_space<vmem>>, vector<1x1x64xf32>,
    %316 = vector.extract_strided_slice %171 {offsets = [48, 0], sizes = [1, 64], strides = [1, 1]} : vector<60x64xf32> to vector<1x64xf32>
    %317 = vector.extract_strided_slice %171 {offsets = [49, 0], sizes = [1, 64], strides = [1, 1]} : vector<60x64xf32> to vector<1x64xf32>
    %318 = arith.maximumf %316, %317 : vector<1x64xf32>
    %c0_174 = arith.constant 0 : index
    %c24 = arith.constant 24 : index
    %c0_175 = arith.constant 0 : index
    %319 = vector.load %arg25[%c0_174, %c24, %c0_175] : memref<2x30x64xf32, #tpu.memory_space<vmem>>, vector<1x1x64xf32>
    %320 = vector.shape_cast %319 : vector<1x1x64xf32> to vector<1x64xf32>
    %321 = vector.shape_cast %318 : vector<1x64xf32> to vector<1x1x64xf32>
    tpu.vector_store %arg25[%c0_174, %c24, %c0_175], %321 {strides = array<i32>} : memref<2x30x64xf32, #tpu.memory_space<vmem>>, vector<1x1x64xf32>,
    %322 = vector.extract_strided_slice %171 {offsets = [50, 0], sizes = [1, 64], strides = [1, 1]} : vector<60x64xf32> to vector<1x64xf32>
    %323 = vector.extract_strided_slice %171 {offsets = [51, 0], sizes = [1, 64], strides = [1, 1]} : vector<60x64xf32> to vector<1x64xf32>
    %324 = arith.maximumf %322, %323 : vector<1x64xf32>
    %c0_176 = arith.constant 0 : index
    %c25 = arith.constant 25 : index
    %c0_177 = arith.constant 0 : index
    %325 = vector.load %arg25[%c0_176, %c25, %c0_177] : memref<2x30x64xf32, #tpu.memory_space<vmem>>, vector<1x1x64xf32>
    %326 = vector.shape_cast %325 : vector<1x1x64xf32> to vector<1x64xf32>
    %327 = vector.shape_cast %324 : vector<1x64xf32> to vector<1x1x64xf32>
    tpu.vector_store %arg25[%c0_176, %c25, %c0_177], %327 {strides = array<i32>} : memref<2x30x64xf32, #tpu.memory_space<vmem>>, vector<1x1x64xf32>,
    %328 = vector.extract_strided_slice %171 {offsets = [52, 0], sizes = [1, 64], strides = [1, 1]} : vector<60x64xf32> to vector<1x64xf32>
    %329 = vector.extract_strided_slice %171 {offsets = [53, 0], sizes = [1, 64], strides = [1, 1]} : vector<60x64xf32> to vector<1x64xf32>
    %330 = arith.maximumf %328, %329 : vector<1x64xf32>
    %c0_178 = arith.constant 0 : index
    %c26 = arith.constant 26 : index
    %c0_179 = arith.constant 0 : index
    %331 = vector.load %arg25[%c0_178, %c26, %c0_179] : memref<2x30x64xf32, #tpu.memory_space<vmem>>, vector<1x1x64xf32>
    %332 = vector.shape_cast %331 : vector<1x1x64xf32> to vector<1x64xf32>
    %333 = vector.shape_cast %330 : vector<1x64xf32> to vector<1x1x64xf32>
    tpu.vector_store %arg25[%c0_178, %c26, %c0_179], %333 {strides = array<i32>} : memref<2x30x64xf32, #tpu.memory_space<vmem>>, vector<1x1x64xf32>,
    %334 = vector.extract_strided_slice %171 {offsets = [54, 0], sizes = [1, 64], strides = [1, 1]} : vector<60x64xf32> to vector<1x64xf32>
    %335 = vector.extract_strided_slice %171 {offsets = [55, 0], sizes = [1, 64], strides = [1, 1]} : vector<60x64xf32> to vector<1x64xf32>
    %336 = arith.maximumf %334, %335 : vector<1x64xf32>
    %c0_180 = arith.constant 0 : index
    %c27 = arith.constant 27 : index
    %c0_181 = arith.constant 0 : index
    %337 = vector.load %arg25[%c0_180, %c27, %c0_181] : memref<2x30x64xf32, #tpu.memory_space<vmem>>, vector<1x1x64xf32>
    %338 = vector.shape_cast %337 : vector<1x1x64xf32> to vector<1x64xf32>
    %339 = vector.shape_cast %336 : vector<1x64xf32> to vector<1x1x64xf32>
    tpu.vector_store %arg25[%c0_180, %c27, %c0_181], %339 {strides = array<i32>} : memref<2x30x64xf32, #tpu.memory_space<vmem>>, vector<1x1x64xf32>,
    %340 = vector.extract_strided_slice %171 {offsets = [56, 0], sizes = [1, 64], strides = [1, 1]} : vector<60x64xf32> to vector<1x64xf32>
    %341 = vector.extract_strided_slice %171 {offsets = [57, 0], sizes = [1, 64], strides = [1, 1]} : vector<60x64xf32> to vector<1x64xf32>
    %342 = arith.maximumf %340, %341 : vector<1x64xf32>
    %c0_182 = arith.constant 0 : index
    %c28 = arith.constant 28 : index
    %c0_183 = arith.constant 0 : index
    %343 = vector.load %arg25[%c0_182, %c28, %c0_183] : memref<2x30x64xf32, #tpu.memory_space<vmem>>, vector<1x1x64xf32>
    %344 = vector.shape_cast %343 : vector<1x1x64xf32> to vector<1x64xf32>
    %345 = vector.shape_cast %342 : vector<1x64xf32> to vector<1x1x64xf32>
    tpu.vector_store %arg25[%c0_182, %c28, %c0_183], %345 {strides = array<i32>} : memref<2x30x64xf32, #tpu.memory_space<vmem>>, vector<1x1x64xf32>,
    %346 = vector.extract_strided_slice %171 {offsets = [58, 0], sizes = [1, 64], strides = [1, 1]} : vector<60x64xf32> to vector<1x64xf32>
    %347 = vector.extract_strided_slice %171 {offsets = [59, 0], sizes = [1, 64], strides = [1, 1]} : vector<60x64xf32> to vector<1x64xf32>
    %348 = arith.maximumf %346, %347 : vector<1x64xf32>
    %c0_184 = arith.constant 0 : index
    %c29 = arith.constant 29 : index
    %c0_185 = arith.constant 0 : index
    %349 = vector.load %arg25[%c0_184, %c29, %c0_185] : memref<2x30x64xf32, #tpu.memory_space<vmem>>, vector<1x1x64xf32>
    %350 = vector.shape_cast %349 : vector<1x1x64xf32> to vector<1x64xf32>
    %351 = vector.shape_cast %348 : vector<1x64xf32> to vector<1x1x64xf32>
    tpu.vector_store %arg25[%c0_184, %c29, %c0_185], %351 {strides = array<i32>} : memref<2x30x64xf32, #tpu.memory_space<vmem>>, vector<1x1x64xf32>,
    %352 = vector.broadcast %162 : vector<1x64xf32> to vector<60x64xf32>
    %353 = arith.mulf %137, %352 : vector<60x64xf32>
    %354 = vector.broadcast %165 : vector<1x64xf32> to vector<60x64xf32>
    %355 = arith.addf %353, %354 : vector<60x64xf32>
    %cst_186 = arith.constant 0.000000e+00 : f32
    %356 = vector.broadcast %cst_186 : f32 to vector<60x64xf32>
    %357 = arith.maximumf %355, %356 : vector<60x64xf32>
    %358 = vector.extract_strided_slice %357 {offsets = [0, 0], sizes = [1, 64], strides = [1, 1]} : vector<60x64xf32> to vector<1x64xf32>
    %359 = vector.extract_strided_slice %357 {offsets = [1, 0], sizes = [1, 64], strides = [1, 1]} : vector<60x64xf32> to vector<1x64xf32>
    %360 = arith.maximumf %358, %359 : vector<1x64xf32>
    %c1_187 = arith.constant 1 : index
    %c0_188 = arith.constant 0 : index
    %c0_189 = arith.constant 0 : index
    %361 = vector.load %arg25[%c1_187, %c0_188, %c0_189] : memref<2x30x64xf32, #tpu.memory_space<vmem>>, vector<1x1x64xf32>
    %362 = vector.shape_cast %361 : vector<1x1x64xf32> to vector<1x64xf32>
    %363 = vector.shape_cast %360 : vector<1x64xf32> to vector<1x1x64xf32>
    tpu.vector_store %arg25[%c1_187, %c0_188, %c0_189], %363 {strides = array<i32>} : memref<2x30x64xf32, #tpu.memory_space<vmem>>, vector<1x1x64xf32>,
    %364 = vector.extract_strided_slice %357 {offsets = [2, 0], sizes = [1, 64], strides = [1, 1]} : vector<60x64xf32> to vector<1x64xf32>
    %365 = vector.extract_strided_slice %357 {offsets = [3, 0], sizes = [1, 64], strides = [1, 1]} : vector<60x64xf32> to vector<1x64xf32>
    %366 = arith.maximumf %364, %365 : vector<1x64xf32>
    %c1_190 = arith.constant 1 : index
    %c1_191 = arith.constant 1 : index
    %c0_192 = arith.constant 0 : index
    %367 = vector.load %arg25[%c1_190, %c1_191, %c0_192] : memref<2x30x64xf32, #tpu.memory_space<vmem>>, vector<1x1x64xf32>
    %368 = vector.shape_cast %367 : vector<1x1x64xf32> to vector<1x64xf32>
    %369 = vector.shape_cast %366 : vector<1x64xf32> to vector<1x1x64xf32>
    tpu.vector_store %arg25[%c1_190, %c1_191, %c0_192], %369 {strides = array<i32>} : memref<2x30x64xf32, #tpu.memory_space<vmem>>, vector<1x1x64xf32>,
    %370 = vector.extract_strided_slice %357 {offsets = [4, 0], sizes = [1, 64], strides = [1, 1]} : vector<60x64xf32> to vector<1x64xf32>
    %371 = vector.extract_strided_slice %357 {offsets = [5, 0], sizes = [1, 64], strides = [1, 1]} : vector<60x64xf32> to vector<1x64xf32>
    %372 = arith.maximumf %370, %371 : vector<1x64xf32>
    %c1_193 = arith.constant 1 : index
    %c2_194 = arith.constant 2 : index
    %c0_195 = arith.constant 0 : index
    %373 = vector.load %arg25[%c1_193, %c2_194, %c0_195] : memref<2x30x64xf32, #tpu.memory_space<vmem>>, vector<1x1x64xf32>
    %374 = vector.shape_cast %373 : vector<1x1x64xf32> to vector<1x64xf32>
    %375 = vector.shape_cast %372 : vector<1x64xf32> to vector<1x1x64xf32>
    tpu.vector_store %arg25[%c1_193, %c2_194, %c0_195], %375 {strides = array<i32>} : memref<2x30x64xf32, #tpu.memory_space<vmem>>, vector<1x1x64xf32>,
    %376 = vector.extract_strided_slice %357 {offsets = [6, 0], sizes = [1, 64], strides = [1, 1]} : vector<60x64xf32> to vector<1x64xf32>
    %377 = vector.extract_strided_slice %357 {offsets = [7, 0], sizes = [1, 64], strides = [1, 1]} : vector<60x64xf32> to vector<1x64xf32>
    %378 = arith.maximumf %376, %377 : vector<1x64xf32>
    %c1_196 = arith.constant 1 : index
    %c3_197 = arith.constant 3 : index
    %c0_198 = arith.constant 0 : index
    %379 = vector.load %arg25[%c1_196, %c3_197, %c0_198] : memref<2x30x64xf32, #tpu.memory_space<vmem>>, vector<1x1x64xf32>
    %380 = vector.shape_cast %379 : vector<1x1x64xf32> to vector<1x64xf32>
    %381 = vector.shape_cast %378 : vector<1x64xf32> to vector<1x1x64xf32>
    tpu.vector_store %arg25[%c1_196, %c3_197, %c0_198], %381 {strides = array<i32>} : memref<2x30x64xf32, #tpu.memory_space<vmem>>, vector<1x1x64xf32>,
    %382 = vector.extract_strided_slice %357 {offsets = [8, 0], sizes = [1, 64], strides = [1, 1]} : vector<60x64xf32> to vector<1x64xf32>
    %383 = vector.extract_strided_slice %357 {offsets = [9, 0], sizes = [1, 64], strides = [1, 1]} : vector<60x64xf32> to vector<1x64xf32>
    %384 = arith.maximumf %382, %383 : vector<1x64xf32>
    %c1_199 = arith.constant 1 : index
    %c4_200 = arith.constant 4 : index
    %c0_201 = arith.constant 0 : index
    %385 = vector.load %arg25[%c1_199, %c4_200, %c0_201] : memref<2x30x64xf32, #tpu.memory_space<vmem>>, vector<1x1x64xf32>
    %386 = vector.shape_cast %385 : vector<1x1x64xf32> to vector<1x64xf32>
    %387 = vector.shape_cast %384 : vector<1x64xf32> to vector<1x1x64xf32>
    tpu.vector_store %arg25[%c1_199, %c4_200, %c0_201], %387 {strides = array<i32>} : memref<2x30x64xf32, #tpu.memory_space<vmem>>, vector<1x1x64xf32>,
    %388 = vector.extract_strided_slice %357 {offsets = [10, 0], sizes = [1, 64], strides = [1, 1]} : vector<60x64xf32> to vector<1x64xf32>
    %389 = vector.extract_strided_slice %357 {offsets = [11, 0], sizes = [1, 64], strides = [1, 1]} : vector<60x64xf32> to vector<1x64xf32>
    %390 = arith.maximumf %388, %389 : vector<1x64xf32>
    %c1_202 = arith.constant 1 : index
    %c5_203 = arith.constant 5 : index
    %c0_204 = arith.constant 0 : index
    %391 = vector.load %arg25[%c1_202, %c5_203, %c0_204] : memref<2x30x64xf32, #tpu.memory_space<vmem>>, vector<1x1x64xf32>
    %392 = vector.shape_cast %391 : vector<1x1x64xf32> to vector<1x64xf32>
    %393 = vector.shape_cast %390 : vector<1x64xf32> to vector<1x1x64xf32>
    tpu.vector_store %arg25[%c1_202, %c5_203, %c0_204], %393 {strides = array<i32>} : memref<2x30x64xf32, #tpu.memory_space<vmem>>, vector<1x1x64xf32>,
    %394 = vector.extract_strided_slice %357 {offsets = [12, 0], sizes = [1, 64], strides = [1, 1]} : vector<60x64xf32> to vector<1x64xf32>
    %395 = vector.extract_strided_slice %357 {offsets = [13, 0], sizes = [1, 64], strides = [1, 1]} : vector<60x64xf32> to vector<1x64xf32>
    %396 = arith.maximumf %394, %395 : vector<1x64xf32>
    %c1_205 = arith.constant 1 : index
    %c6_206 = arith.constant 6 : index
    %c0_207 = arith.constant 0 : index
    %397 = vector.load %arg25[%c1_205, %c6_206, %c0_207] : memref<2x30x64xf32, #tpu.memory_space<vmem>>, vector<1x1x64xf32>
    %398 = vector.shape_cast %397 : vector<1x1x64xf32> to vector<1x64xf32>
    %399 = vector.shape_cast %396 : vector<1x64xf32> to vector<1x1x64xf32>
    tpu.vector_store %arg25[%c1_205, %c6_206, %c0_207], %399 {strides = array<i32>} : memref<2x30x64xf32, #tpu.memory_space<vmem>>, vector<1x1x64xf32>,
    %400 = vector.extract_strided_slice %357 {offsets = [14, 0], sizes = [1, 64], strides = [1, 1]} : vector<60x64xf32> to vector<1x64xf32>
    %401 = vector.extract_strided_slice %357 {offsets = [15, 0], sizes = [1, 64], strides = [1, 1]} : vector<60x64xf32> to vector<1x64xf32>
    %402 = arith.maximumf %400, %401 : vector<1x64xf32>
    %c1_208 = arith.constant 1 : index
    %c7_209 = arith.constant 7 : index
    %c0_210 = arith.constant 0 : index
    %403 = vector.load %arg25[%c1_208, %c7_209, %c0_210] : memref<2x30x64xf32, #tpu.memory_space<vmem>>, vector<1x1x64xf32>
    %404 = vector.shape_cast %403 : vector<1x1x64xf32> to vector<1x64xf32>
    %405 = vector.shape_cast %402 : vector<1x64xf32> to vector<1x1x64xf32>
    tpu.vector_store %arg25[%c1_208, %c7_209, %c0_210], %405 {strides = array<i32>} : memref<2x30x64xf32, #tpu.memory_space<vmem>>, vector<1x1x64xf32>,
    %406 = vector.extract_strided_slice %357 {offsets = [16, 0], sizes = [1, 64], strides = [1, 1]} : vector<60x64xf32> to vector<1x64xf32>
    %407 = vector.extract_strided_slice %357 {offsets = [17, 0], sizes = [1, 64], strides = [1, 1]} : vector<60x64xf32> to vector<1x64xf32>
    %408 = arith.maximumf %406, %407 : vector<1x64xf32>
    %c1_211 = arith.constant 1 : index
    %c8_212 = arith.constant 8 : index
    %c0_213 = arith.constant 0 : index
    %409 = vector.load %arg25[%c1_211, %c8_212, %c0_213] : memref<2x30x64xf32, #tpu.memory_space<vmem>>, vector<1x1x64xf32>
    %410 = vector.shape_cast %409 : vector<1x1x64xf32> to vector<1x64xf32>
    %411 = vector.shape_cast %408 : vector<1x64xf32> to vector<1x1x64xf32>
    tpu.vector_store %arg25[%c1_211, %c8_212, %c0_213], %411 {strides = array<i32>} : memref<2x30x64xf32, #tpu.memory_space<vmem>>, vector<1x1x64xf32>,
    %412 = vector.extract_strided_slice %357 {offsets = [18, 0], sizes = [1, 64], strides = [1, 1]} : vector<60x64xf32> to vector<1x64xf32>
    %413 = vector.extract_strided_slice %357 {offsets = [19, 0], sizes = [1, 64], strides = [1, 1]} : vector<60x64xf32> to vector<1x64xf32>
    %414 = arith.maximumf %412, %413 : vector<1x64xf32>
    %c1_214 = arith.constant 1 : index
    %c9_215 = arith.constant 9 : index
    %c0_216 = arith.constant 0 : index
    %415 = vector.load %arg25[%c1_214, %c9_215, %c0_216] : memref<2x30x64xf32, #tpu.memory_space<vmem>>, vector<1x1x64xf32>
    %416 = vector.shape_cast %415 : vector<1x1x64xf32> to vector<1x64xf32>
    %417 = vector.shape_cast %414 : vector<1x64xf32> to vector<1x1x64xf32>
    tpu.vector_store %arg25[%c1_214, %c9_215, %c0_216], %417 {strides = array<i32>} : memref<2x30x64xf32, #tpu.memory_space<vmem>>, vector<1x1x64xf32>,
    %418 = vector.extract_strided_slice %357 {offsets = [20, 0], sizes = [1, 64], strides = [1, 1]} : vector<60x64xf32> to vector<1x64xf32>
    %419 = vector.extract_strided_slice %357 {offsets = [21, 0], sizes = [1, 64], strides = [1, 1]} : vector<60x64xf32> to vector<1x64xf32>
    %420 = arith.maximumf %418, %419 : vector<1x64xf32>
    %c1_217 = arith.constant 1 : index
    %c10_218 = arith.constant 10 : index
    %c0_219 = arith.constant 0 : index
    %421 = vector.load %arg25[%c1_217, %c10_218, %c0_219] : memref<2x30x64xf32, #tpu.memory_space<vmem>>, vector<1x1x64xf32>
    %422 = vector.shape_cast %421 : vector<1x1x64xf32> to vector<1x64xf32>
    %423 = vector.shape_cast %420 : vector<1x64xf32> to vector<1x1x64xf32>
    tpu.vector_store %arg25[%c1_217, %c10_218, %c0_219], %423 {strides = array<i32>} : memref<2x30x64xf32, #tpu.memory_space<vmem>>, vector<1x1x64xf32>,
    %424 = vector.extract_strided_slice %357 {offsets = [22, 0], sizes = [1, 64], strides = [1, 1]} : vector<60x64xf32> to vector<1x64xf32>
    %425 = vector.extract_strided_slice %357 {offsets = [23, 0], sizes = [1, 64], strides = [1, 1]} : vector<60x64xf32> to vector<1x64xf32>
    %426 = arith.maximumf %424, %425 : vector<1x64xf32>
    %c1_220 = arith.constant 1 : index
    %c11_221 = arith.constant 11 : index
    %c0_222 = arith.constant 0 : index
    %427 = vector.load %arg25[%c1_220, %c11_221, %c0_222] : memref<2x30x64xf32, #tpu.memory_space<vmem>>, vector<1x1x64xf32>
    %428 = vector.shape_cast %427 : vector<1x1x64xf32> to vector<1x64xf32>
    %429 = vector.shape_cast %426 : vector<1x64xf32> to vector<1x1x64xf32>
    tpu.vector_store %arg25[%c1_220, %c11_221, %c0_222], %429 {strides = array<i32>} : memref<2x30x64xf32, #tpu.memory_space<vmem>>, vector<1x1x64xf32>,
    %430 = vector.extract_strided_slice %357 {offsets = [24, 0], sizes = [1, 64], strides = [1, 1]} : vector<60x64xf32> to vector<1x64xf32>
    %431 = vector.extract_strided_slice %357 {offsets = [25, 0], sizes = [1, 64], strides = [1, 1]} : vector<60x64xf32> to vector<1x64xf32>
    %432 = arith.maximumf %430, %431 : vector<1x64xf32>
    %c1_223 = arith.constant 1 : index
    %c12_224 = arith.constant 12 : index
    %c0_225 = arith.constant 0 : index
    %433 = vector.load %arg25[%c1_223, %c12_224, %c0_225] : memref<2x30x64xf32, #tpu.memory_space<vmem>>, vector<1x1x64xf32>
    %434 = vector.shape_cast %433 : vector<1x1x64xf32> to vector<1x64xf32>
    %435 = vector.shape_cast %432 : vector<1x64xf32> to vector<1x1x64xf32>
    tpu.vector_store %arg25[%c1_223, %c12_224, %c0_225], %435 {strides = array<i32>} : memref<2x30x64xf32, #tpu.memory_space<vmem>>, vector<1x1x64xf32>,
    %436 = vector.extract_strided_slice %357 {offsets = [26, 0], sizes = [1, 64], strides = [1, 1]} : vector<60x64xf32> to vector<1x64xf32>
    %437 = vector.extract_strided_slice %357 {offsets = [27, 0], sizes = [1, 64], strides = [1, 1]} : vector<60x64xf32> to vector<1x64xf32>
    %438 = arith.maximumf %436, %437 : vector<1x64xf32>
    %c1_226 = arith.constant 1 : index
    %c13_227 = arith.constant 13 : index
    %c0_228 = arith.constant 0 : index
    %439 = vector.load %arg25[%c1_226, %c13_227, %c0_228] : memref<2x30x64xf32, #tpu.memory_space<vmem>>, vector<1x1x64xf32>
    %440 = vector.shape_cast %439 : vector<1x1x64xf32> to vector<1x64xf32>
    %441 = vector.shape_cast %438 : vector<1x64xf32> to vector<1x1x64xf32>
    tpu.vector_store %arg25[%c1_226, %c13_227, %c0_228], %441 {strides = array<i32>} : memref<2x30x64xf32, #tpu.memory_space<vmem>>, vector<1x1x64xf32>,
    %442 = vector.extract_strided_slice %357 {offsets = [28, 0], sizes = [1, 64], strides = [1, 1]} : vector<60x64xf32> to vector<1x64xf32>
    %443 = vector.extract_strided_slice %357 {offsets = [29, 0], sizes = [1, 64], strides = [1, 1]} : vector<60x64xf32> to vector<1x64xf32>
    %444 = arith.maximumf %442, %443 : vector<1x64xf32>
    %c1_229 = arith.constant 1 : index
    %c14_230 = arith.constant 14 : index
    %c0_231 = arith.constant 0 : index
    %445 = vector.load %arg25[%c1_229, %c14_230, %c0_231] : memref<2x30x64xf32, #tpu.memory_space<vmem>>, vector<1x1x64xf32>
    %446 = vector.shape_cast %445 : vector<1x1x64xf32> to vector<1x64xf32>
    %447 = vector.shape_cast %444 : vector<1x64xf32> to vector<1x1x64xf32>
    tpu.vector_store %arg25[%c1_229, %c14_230, %c0_231], %447 {strides = array<i32>} : memref<2x30x64xf32, #tpu.memory_space<vmem>>, vector<1x1x64xf32>,
    %448 = vector.extract_strided_slice %357 {offsets = [30, 0], sizes = [1, 64], strides = [1, 1]} : vector<60x64xf32> to vector<1x64xf32>
    %449 = vector.extract_strided_slice %357 {offsets = [31, 0], sizes = [1, 64], strides = [1, 1]} : vector<60x64xf32> to vector<1x64xf32>
    %450 = arith.maximumf %448, %449 : vector<1x64xf32>
    %c1_232 = arith.constant 1 : index
    %c15_233 = arith.constant 15 : index
    %c0_234 = arith.constant 0 : index
    %451 = vector.load %arg25[%c1_232, %c15_233, %c0_234] : memref<2x30x64xf32, #tpu.memory_space<vmem>>, vector<1x1x64xf32>
    %452 = vector.shape_cast %451 : vector<1x1x64xf32> to vector<1x64xf32>
    %453 = vector.shape_cast %450 : vector<1x64xf32> to vector<1x1x64xf32>
    tpu.vector_store %arg25[%c1_232, %c15_233, %c0_234], %453 {strides = array<i32>} : memref<2x30x64xf32, #tpu.memory_space<vmem>>, vector<1x1x64xf32>,
    %454 = vector.extract_strided_slice %357 {offsets = [32, 0], sizes = [1, 64], strides = [1, 1]} : vector<60x64xf32> to vector<1x64xf32>
    %455 = vector.extract_strided_slice %357 {offsets = [33, 0], sizes = [1, 64], strides = [1, 1]} : vector<60x64xf32> to vector<1x64xf32>
    %456 = arith.maximumf %454, %455 : vector<1x64xf32>
    %c1_235 = arith.constant 1 : index
    %c16_236 = arith.constant 16 : index
    %c0_237 = arith.constant 0 : index
    %457 = vector.load %arg25[%c1_235, %c16_236, %c0_237] : memref<2x30x64xf32, #tpu.memory_space<vmem>>, vector<1x1x64xf32>
    %458 = vector.shape_cast %457 : vector<1x1x64xf32> to vector<1x64xf32>
    %459 = vector.shape_cast %456 : vector<1x64xf32> to vector<1x1x64xf32>
    tpu.vector_store %arg25[%c1_235, %c16_236, %c0_237], %459 {strides = array<i32>} : memref<2x30x64xf32, #tpu.memory_space<vmem>>, vector<1x1x64xf32>,
    %460 = vector.extract_strided_slice %357 {offsets = [34, 0], sizes = [1, 64], strides = [1, 1]} : vector<60x64xf32> to vector<1x64xf32>
    %461 = vector.extract_strided_slice %357 {offsets = [35, 0], sizes = [1, 64], strides = [1, 1]} : vector<60x64xf32> to vector<1x64xf32>
    %462 = arith.maximumf %460, %461 : vector<1x64xf32>
    %c1_238 = arith.constant 1 : index
    %c17_239 = arith.constant 17 : index
    %c0_240 = arith.constant 0 : index
    %463 = vector.load %arg25[%c1_238, %c17_239, %c0_240] : memref<2x30x64xf32, #tpu.memory_space<vmem>>, vector<1x1x64xf32>
    %464 = vector.shape_cast %463 : vector<1x1x64xf32> to vector<1x64xf32>
    %465 = vector.shape_cast %462 : vector<1x64xf32> to vector<1x1x64xf32>
    tpu.vector_store %arg25[%c1_238, %c17_239, %c0_240], %465 {strides = array<i32>} : memref<2x30x64xf32, #tpu.memory_space<vmem>>, vector<1x1x64xf32>,
    %466 = vector.extract_strided_slice %357 {offsets = [36, 0], sizes = [1, 64], strides = [1, 1]} : vector<60x64xf32> to vector<1x64xf32>
    %467 = vector.extract_strided_slice %357 {offsets = [37, 0], sizes = [1, 64], strides = [1, 1]} : vector<60x64xf32> to vector<1x64xf32>
    %468 = arith.maximumf %466, %467 : vector<1x64xf32>
    %c1_241 = arith.constant 1 : index
    %c18_242 = arith.constant 18 : index
    %c0_243 = arith.constant 0 : index
    %469 = vector.load %arg25[%c1_241, %c18_242, %c0_243] : memref<2x30x64xf32, #tpu.memory_space<vmem>>, vector<1x1x64xf32>
    %470 = vector.shape_cast %469 : vector<1x1x64xf32> to vector<1x64xf32>
    %471 = vector.shape_cast %468 : vector<1x64xf32> to vector<1x1x64xf32>
    tpu.vector_store %arg25[%c1_241, %c18_242, %c0_243], %471 {strides = array<i32>} : memref<2x30x64xf32, #tpu.memory_space<vmem>>, vector<1x1x64xf32>,
    %472 = vector.extract_strided_slice %357 {offsets = [38, 0], sizes = [1, 64], strides = [1, 1]} : vector<60x64xf32> to vector<1x64xf32>
    %473 = vector.extract_strided_slice %357 {offsets = [39, 0], sizes = [1, 64], strides = [1, 1]} : vector<60x64xf32> to vector<1x64xf32>
    %474 = arith.maximumf %472, %473 : vector<1x64xf32>
    %c1_244 = arith.constant 1 : index
    %c19_245 = arith.constant 19 : index
    %c0_246 = arith.constant 0 : index
    %475 = vector.load %arg25[%c1_244, %c19_245, %c0_246] : memref<2x30x64xf32, #tpu.memory_space<vmem>>, vector<1x1x64xf32>
    %476 = vector.shape_cast %475 : vector<1x1x64xf32> to vector<1x64xf32>
    %477 = vector.shape_cast %474 : vector<1x64xf32> to vector<1x1x64xf32>
    tpu.vector_store %arg25[%c1_244, %c19_245, %c0_246], %477 {strides = array<i32>} : memref<2x30x64xf32, #tpu.memory_space<vmem>>, vector<1x1x64xf32>,
    %478 = vector.extract_strided_slice %357 {offsets = [40, 0], sizes = [1, 64], strides = [1, 1]} : vector<60x64xf32> to vector<1x64xf32>
    %479 = vector.extract_strided_slice %357 {offsets = [41, 0], sizes = [1, 64], strides = [1, 1]} : vector<60x64xf32> to vector<1x64xf32>
    %480 = arith.maximumf %478, %479 : vector<1x64xf32>
    %c1_247 = arith.constant 1 : index
    %c20_248 = arith.constant 20 : index
    %c0_249 = arith.constant 0 : index
    %481 = vector.load %arg25[%c1_247, %c20_248, %c0_249] : memref<2x30x64xf32, #tpu.memory_space<vmem>>, vector<1x1x64xf32>
    %482 = vector.shape_cast %481 : vector<1x1x64xf32> to vector<1x64xf32>
    %483 = vector.shape_cast %480 : vector<1x64xf32> to vector<1x1x64xf32>
    tpu.vector_store %arg25[%c1_247, %c20_248, %c0_249], %483 {strides = array<i32>} : memref<2x30x64xf32, #tpu.memory_space<vmem>>, vector<1x1x64xf32>,
    %484 = vector.extract_strided_slice %357 {offsets = [42, 0], sizes = [1, 64], strides = [1, 1]} : vector<60x64xf32> to vector<1x64xf32>
    %485 = vector.extract_strided_slice %357 {offsets = [43, 0], sizes = [1, 64], strides = [1, 1]} : vector<60x64xf32> to vector<1x64xf32>
    %486 = arith.maximumf %484, %485 : vector<1x64xf32>
    %c1_250 = arith.constant 1 : index
    %c21_251 = arith.constant 21 : index
    %c0_252 = arith.constant 0 : index
    %487 = vector.load %arg25[%c1_250, %c21_251, %c0_252] : memref<2x30x64xf32, #tpu.memory_space<vmem>>, vector<1x1x64xf32>
    %488 = vector.shape_cast %487 : vector<1x1x64xf32> to vector<1x64xf32>
    %489 = vector.shape_cast %486 : vector<1x64xf32> to vector<1x1x64xf32>
    tpu.vector_store %arg25[%c1_250, %c21_251, %c0_252], %489 {strides = array<i32>} : memref<2x30x64xf32, #tpu.memory_space<vmem>>, vector<1x1x64xf32>,
    %490 = vector.extract_strided_slice %357 {offsets = [44, 0], sizes = [1, 64], strides = [1, 1]} : vector<60x64xf32> to vector<1x64xf32>
    %491 = vector.extract_strided_slice %357 {offsets = [45, 0], sizes = [1, 64], strides = [1, 1]} : vector<60x64xf32> to vector<1x64xf32>
    %492 = arith.maximumf %490, %491 : vector<1x64xf32>
    %c1_253 = arith.constant 1 : index
    %c22_254 = arith.constant 22 : index
    %c0_255 = arith.constant 0 : index
    %493 = vector.load %arg25[%c1_253, %c22_254, %c0_255] : memref<2x30x64xf32, #tpu.memory_space<vmem>>, vector<1x1x64xf32>
    %494 = vector.shape_cast %493 : vector<1x1x64xf32> to vector<1x64xf32>
    %495 = vector.shape_cast %492 : vector<1x64xf32> to vector<1x1x64xf32>
    tpu.vector_store %arg25[%c1_253, %c22_254, %c0_255], %495 {strides = array<i32>} : memref<2x30x64xf32, #tpu.memory_space<vmem>>, vector<1x1x64xf32>,
    %496 = vector.extract_strided_slice %357 {offsets = [46, 0], sizes = [1, 64], strides = [1, 1]} : vector<60x64xf32> to vector<1x64xf32>
    %497 = vector.extract_strided_slice %357 {offsets = [47, 0], sizes = [1, 64], strides = [1, 1]} : vector<60x64xf32> to vector<1x64xf32>
    %498 = arith.maximumf %496, %497 : vector<1x64xf32>
    %c1_256 = arith.constant 1 : index
    %c23_257 = arith.constant 23 : index
    %c0_258 = arith.constant 0 : index
    %499 = vector.load %arg25[%c1_256, %c23_257, %c0_258] : memref<2x30x64xf32, #tpu.memory_space<vmem>>, vector<1x1x64xf32>
    %500 = vector.shape_cast %499 : vector<1x1x64xf32> to vector<1x64xf32>
    %501 = vector.shape_cast %498 : vector<1x64xf32> to vector<1x1x64xf32>
    tpu.vector_store %arg25[%c1_256, %c23_257, %c0_258], %501 {strides = array<i32>} : memref<2x30x64xf32, #tpu.memory_space<vmem>>, vector<1x1x64xf32>,
    %502 = vector.extract_strided_slice %357 {offsets = [48, 0], sizes = [1, 64], strides = [1, 1]} : vector<60x64xf32> to vector<1x64xf32>
    %503 = vector.extract_strided_slice %357 {offsets = [49, 0], sizes = [1, 64], strides = [1, 1]} : vector<60x64xf32> to vector<1x64xf32>
    %504 = arith.maximumf %502, %503 : vector<1x64xf32>
    %c1_259 = arith.constant 1 : index
    %c24_260 = arith.constant 24 : index
    %c0_261 = arith.constant 0 : index
    %505 = vector.load %arg25[%c1_259, %c24_260, %c0_261] : memref<2x30x64xf32, #tpu.memory_space<vmem>>, vector<1x1x64xf32>
    %506 = vector.shape_cast %505 : vector<1x1x64xf32> to vector<1x64xf32>
    %507 = vector.shape_cast %504 : vector<1x64xf32> to vector<1x1x64xf32>
    tpu.vector_store %arg25[%c1_259, %c24_260, %c0_261], %507 {strides = array<i32>} : memref<2x30x64xf32, #tpu.memory_space<vmem>>, vector<1x1x64xf32>,
    %508 = vector.extract_strided_slice %357 {offsets = [50, 0], sizes = [1, 64], strides = [1, 1]} : vector<60x64xf32> to vector<1x64xf32>
    %509 = vector.extract_strided_slice %357 {offsets = [51, 0], sizes = [1, 64], strides = [1, 1]} : vector<60x64xf32> to vector<1x64xf32>
    %510 = arith.maximumf %508, %509 : vector<1x64xf32>
    %c1_262 = arith.constant 1 : index
    %c25_263 = arith.constant 25 : index
    %c0_264 = arith.constant 0 : index
    %511 = vector.load %arg25[%c1_262, %c25_263, %c0_264] : memref<2x30x64xf32, #tpu.memory_space<vmem>>, vector<1x1x64xf32>
    %512 = vector.shape_cast %511 : vector<1x1x64xf32> to vector<1x64xf32>
    %513 = vector.shape_cast %510 : vector<1x64xf32> to vector<1x1x64xf32>
    tpu.vector_store %arg25[%c1_262, %c25_263, %c0_264], %513 {strides = array<i32>} : memref<2x30x64xf32, #tpu.memory_space<vmem>>, vector<1x1x64xf32>,
    %514 = vector.extract_strided_slice %357 {offsets = [52, 0], sizes = [1, 64], strides = [1, 1]} : vector<60x64xf32> to vector<1x64xf32>
    %515 = vector.extract_strided_slice %357 {offsets = [53, 0], sizes = [1, 64], strides = [1, 1]} : vector<60x64xf32> to vector<1x64xf32>
    %516 = arith.maximumf %514, %515 : vector<1x64xf32>
    %c1_265 = arith.constant 1 : index
    %c26_266 = arith.constant 26 : index
    %c0_267 = arith.constant 0 : index
    %517 = vector.load %arg25[%c1_265, %c26_266, %c0_267] : memref<2x30x64xf32, #tpu.memory_space<vmem>>, vector<1x1x64xf32>
    %518 = vector.shape_cast %517 : vector<1x1x64xf32> to vector<1x64xf32>
    %519 = vector.shape_cast %516 : vector<1x64xf32> to vector<1x1x64xf32>
    tpu.vector_store %arg25[%c1_265, %c26_266, %c0_267], %519 {strides = array<i32>} : memref<2x30x64xf32, #tpu.memory_space<vmem>>, vector<1x1x64xf32>,
    %520 = vector.extract_strided_slice %357 {offsets = [54, 0], sizes = [1, 64], strides = [1, 1]} : vector<60x64xf32> to vector<1x64xf32>
    %521 = vector.extract_strided_slice %357 {offsets = [55, 0], sizes = [1, 64], strides = [1, 1]} : vector<60x64xf32> to vector<1x64xf32>
    %522 = arith.maximumf %520, %521 : vector<1x64xf32>
    %c1_268 = arith.constant 1 : index
    %c27_269 = arith.constant 27 : index
    %c0_270 = arith.constant 0 : index
    %523 = vector.load %arg25[%c1_268, %c27_269, %c0_270] : memref<2x30x64xf32, #tpu.memory_space<vmem>>, vector<1x1x64xf32>
    %524 = vector.shape_cast %523 : vector<1x1x64xf32> to vector<1x64xf32>
    %525 = vector.shape_cast %522 : vector<1x64xf32> to vector<1x1x64xf32>
    tpu.vector_store %arg25[%c1_268, %c27_269, %c0_270], %525 {strides = array<i32>} : memref<2x30x64xf32, #tpu.memory_space<vmem>>, vector<1x1x64xf32>,
    %526 = vector.extract_strided_slice %357 {offsets = [56, 0], sizes = [1, 64], strides = [1, 1]} : vector<60x64xf32> to vector<1x64xf32>
    %527 = vector.extract_strided_slice %357 {offsets = [57, 0], sizes = [1, 64], strides = [1, 1]} : vector<60x64xf32> to vector<1x64xf32>
    %528 = arith.maximumf %526, %527 : vector<1x64xf32>
    %c1_271 = arith.constant 1 : index
    %c28_272 = arith.constant 28 : index
    %c0_273 = arith.constant 0 : index
    %529 = vector.load %arg25[%c1_271, %c28_272, %c0_273] : memref<2x30x64xf32, #tpu.memory_space<vmem>>, vector<1x1x64xf32>
    %530 = vector.shape_cast %529 : vector<1x1x64xf32> to vector<1x64xf32>
    %531 = vector.shape_cast %528 : vector<1x64xf32> to vector<1x1x64xf32>
    tpu.vector_store %arg25[%c1_271, %c28_272, %c0_273], %531 {strides = array<i32>} : memref<2x30x64xf32, #tpu.memory_space<vmem>>, vector<1x1x64xf32>,
    %532 = vector.extract_strided_slice %357 {offsets = [58, 0], sizes = [1, 64], strides = [1, 1]} : vector<60x64xf32> to vector<1x64xf32>
    %533 = vector.extract_strided_slice %357 {offsets = [59, 0], sizes = [1, 64], strides = [1, 1]} : vector<60x64xf32> to vector<1x64xf32>
    %534 = arith.maximumf %532, %533 : vector<1x64xf32>
    %c1_274 = arith.constant 1 : index
    %c29_275 = arith.constant 29 : index
    %c0_276 = arith.constant 0 : index
    %535 = vector.load %arg25[%c1_274, %c29_275, %c0_276] : memref<2x30x64xf32, #tpu.memory_space<vmem>>, vector<1x1x64xf32>
    %536 = vector.shape_cast %535 : vector<1x1x64xf32> to vector<1x64xf32>
    %537 = vector.shape_cast %534 : vector<1x64xf32> to vector<1x1x64xf32>
    tpu.vector_store %arg25[%c1_274, %c29_275, %c0_276], %537 {strides = array<i32>} : memref<2x30x64xf32, #tpu.memory_space<vmem>>, vector<1x1x64xf32>,
    %cst_277 = arith.constant 0.000000e+00 : f32
    %538 = vector.broadcast %cst_277 : f32 to vector<28x64xf32>
    %c0_278 = arith.constant 0 : index
    %c0_279 = arith.constant 0 : index
    %c0_280 = arith.constant 0 : index
    %539 = vector.load %arg25[%c0_278, %c0_279, %c0_280] : memref<2x30x64xf32, #tpu.memory_space<vmem>>, vector<1x28x64xf32>
    %540 = vector.shape_cast %539 : vector<1x28x64xf32> to vector<28x64xf32>
    %541 = arith.truncf %540 : vector<28x64xf32> to vector<28x64xbf16>
    %c0_281 = arith.constant 0 : index
    %c0_282 = arith.constant 0 : index
    %c0_283 = arith.constant 0 : index
    %542 = vector.load %arg8[%c0_281, %c0_282, %c0_283] : memref<3x64x64xbf16, #tpu.memory_space<vmem>>, vector<1x64x64xbf16>
    %543 = vector.shape_cast %542 : vector<1x64x64xbf16> to vector<64x64xbf16>
    %cst_284 = arith.constant dense<0.000000e+00> : vector<28x64xf32>
    %544 = tpu.matmul %541, %543, %cst_284 {dimension_numbers = #tpu.dot_dimension_numbers<[1], [0], [0], [1], [0, 0, 1, 1], [], []>} : vector<28x64xbf16>, vector<64x64xbf16>, vector<28x64xf32> -> vector<28x64xf32>
    %545 = arith.addf %538, %544 : vector<28x64xf32>
    %c0_285 = arith.constant 0 : index
    %c1_286 = arith.constant 1 : index
    %c0_287 = arith.constant 0 : index
    %546 = vector.load %arg25[%c0_285, %c1_286, %c0_287] : memref<2x30x64xf32, #tpu.memory_space<vmem>>, vector<1x28x64xf32>
    %547 = vector.shape_cast %546 : vector<1x28x64xf32> to vector<28x64xf32>
    %548 = arith.truncf %547 : vector<28x64xf32> to vector<28x64xbf16>
    %c1_288 = arith.constant 1 : index
    %c0_289 = arith.constant 0 : index
    %c0_290 = arith.constant 0 : index
    %549 = vector.load %arg8[%c1_288, %c0_289, %c0_290] : memref<3x64x64xbf16, #tpu.memory_space<vmem>>, vector<1x64x64xbf16>
    %550 = vector.shape_cast %549 : vector<1x64x64xbf16> to vector<64x64xbf16>
    %cst_291 = arith.constant dense<0.000000e+00> : vector<28x64xf32>
    %551 = tpu.matmul %548, %550, %cst_291 {dimension_numbers = #tpu.dot_dimension_numbers<[1], [0], [0], [1], [0, 0, 1, 1], [], []>} : vector<28x64xbf16>, vector<64x64xbf16>, vector<28x64xf32> -> vector<28x64xf32>
    %552 = arith.addf %545, %551 : vector<28x64xf32>
    %c0_292 = arith.constant 0 : index
    %c2_293 = arith.constant 2 : index
    %c0_294 = arith.constant 0 : index
    %553 = vector.load %arg25[%c0_292, %c2_293, %c0_294] : memref<2x30x64xf32, #tpu.memory_space<vmem>>, vector<1x28x64xf32>
    %554 = vector.shape_cast %553 : vector<1x28x64xf32> to vector<28x64xf32>
    %555 = arith.truncf %554 : vector<28x64xf32> to vector<28x64xbf16>
    %c2_295 = arith.constant 2 : index
    %c0_296 = arith.constant 0 : index
    %c0_297 = arith.constant 0 : index
    %556 = vector.load %arg8[%c2_295, %c0_296, %c0_297] : memref<3x64x64xbf16, #tpu.memory_space<vmem>>, vector<1x64x64xbf16>
    %557 = vector.shape_cast %556 : vector<1x64x64xbf16> to vector<64x64xbf16>
    %cst_298 = arith.constant dense<0.000000e+00> : vector<28x64xf32>
    %558 = tpu.matmul %555, %557, %cst_298 {dimension_numbers = #tpu.dot_dimension_numbers<[1], [0], [0], [1], [0, 0, 1, 1], [], []>} : vector<28x64xbf16>, vector<64x64xbf16>, vector<28x64xf32> -> vector<28x64xf32>
    %559 = arith.addf %552, %558 : vector<28x64xf32>
    %cst_299 = arith.constant 0.000000e+00 : f32
    %560 = vector.broadcast %cst_299 : f32 to vector<28x64xf32>
    %c1_300 = arith.constant 1 : index
    %c0_301 = arith.constant 0 : index
    %c0_302 = arith.constant 0 : index
    %561 = vector.load %arg25[%c1_300, %c0_301, %c0_302] : memref<2x30x64xf32, #tpu.memory_space<vmem>>, vector<1x28x64xf32>
    %562 = vector.shape_cast %561 : vector<1x28x64xf32> to vector<28x64xf32>
    %563 = arith.truncf %562 : vector<28x64xf32> to vector<28x64xbf16>
    %c0_303 = arith.constant 0 : index
    %c0_304 = arith.constant 0 : index
    %c0_305 = arith.constant 0 : index
    %564 = vector.load %arg8[%c0_303, %c0_304, %c0_305] : memref<3x64x64xbf16, #tpu.memory_space<vmem>>, vector<1x64x64xbf16>
    %565 = vector.shape_cast %564 : vector<1x64x64xbf16> to vector<64x64xbf16>
    %cst_306 = arith.constant dense<0.000000e+00> : vector<28x64xf32>
    %566 = tpu.matmul %563, %565, %cst_306 {dimension_numbers = #tpu.dot_dimension_numbers<[1], [0], [0], [1], [0, 0, 1, 1], [], []>} : vector<28x64xbf16>, vector<64x64xbf16>, vector<28x64xf32> -> vector<28x64xf32>
    %567 = arith.addf %560, %566 : vector<28x64xf32>
    %c1_307 = arith.constant 1 : index
    %c1_308 = arith.constant 1 : index
    %c0_309 = arith.constant 0 : index
    %568 = vector.load %arg25[%c1_307, %c1_308, %c0_309] : memref<2x30x64xf32, #tpu.memory_space<vmem>>, vector<1x28x64xf32>
    %569 = vector.shape_cast %568 : vector<1x28x64xf32> to vector<28x64xf32>
    %570 = arith.truncf %569 : vector<28x64xf32> to vector<28x64xbf16>
    %c1_310 = arith.constant 1 : index
    %c0_311 = arith.constant 0 : index
    %c0_312 = arith.constant 0 : index
    %571 = vector.load %arg8[%c1_310, %c0_311, %c0_312] : memref<3x64x64xbf16, #tpu.memory_space<vmem>>, vector<1x64x64xbf16>
    %572 = vector.shape_cast %571 : vector<1x64x64xbf16> to vector<64x64xbf16>
    %cst_313 = arith.constant dense<0.000000e+00> : vector<28x64xf32>
    %573 = tpu.matmul %570, %572, %cst_313 {dimension_numbers = #tpu.dot_dimension_numbers<[1], [0], [0], [1], [0, 0, 1, 1], [], []>} : vector<28x64xbf16>, vector<64x64xbf16>, vector<28x64xf32> -> vector<28x64xf32>
    %574 = arith.addf %567, %573 : vector<28x64xf32>
    %c1_314 = arith.constant 1 : index
    %c2_315 = arith.constant 2 : index
    %c0_316 = arith.constant 0 : index
    %575 = vector.load %arg25[%c1_314, %c2_315, %c0_316] : memref<2x30x64xf32, #tpu.memory_space<vmem>>, vector<1x28x64xf32>
    %576 = vector.shape_cast %575 : vector<1x28x64xf32> to vector<28x64xf32>
    %577 = arith.truncf %576 : vector<28x64xf32> to vector<28x64xbf16>
    %c2_317 = arith.constant 2 : index
    %c0_318 = arith.constant 0 : index
    %c0_319 = arith.constant 0 : index
    %578 = vector.load %arg8[%c2_317, %c0_318, %c0_319] : memref<3x64x64xbf16, #tpu.memory_space<vmem>>, vector<1x64x64xbf16>
    %579 = vector.shape_cast %578 : vector<1x64x64xbf16> to vector<64x64xbf16>
    %cst_320 = arith.constant dense<0.000000e+00> : vector<28x64xf32>
    %580 = tpu.matmul %577, %579, %cst_320 {dimension_numbers = #tpu.dot_dimension_numbers<[1], [0], [0], [1], [0, 0, 1, 1], [], []>} : vector<28x64xbf16>, vector<64x64xbf16>, vector<28x64xf32> -> vector<28x64xf32>
    %581 = arith.addf %574, %580 : vector<28x64xf32>
    %cst_321 = arith.constant dense<0.000000e+00> : vector<64xf32>
    %582 = vector.multi_reduction <add>, %559, %cst_321 [0] : vector<28x64xf32> to vector<64xf32>
    %583 = vector.shape_cast %582 : vector<64xf32> to vector<1x64xf32>
    %cst_322 = arith.constant dense<0.000000e+00> : vector<64xf32>
    %584 = vector.multi_reduction <add>, %581, %cst_322 [0] : vector<28x64xf32> to vector<64xf32>
    %585 = vector.shape_cast %584 : vector<64xf32> to vector<1x64xf32>
    %586 = arith.addf %583, %585 : vector<1x64xf32>
    %cst_323 = arith.constant 5.600000e+01 : f32
    %587 = vector.broadcast %cst_323 : f32 to vector<1x64xf32>
    %588 = arith.divf %586, %587 : vector<1x64xf32>
    %589 = vector.broadcast %588 : vector<1x64xf32> to vector<28x64xf32>
    %590 = arith.subf %559, %589 : vector<28x64xf32>
    %591 = arith.mulf %590, %590 : vector<28x64xf32>
    %cst_324 = arith.constant dense<0.000000e+00> : vector<64xf32>
    %592 = vector.multi_reduction <add>, %591, %cst_324 [0] : vector<28x64xf32> to vector<64xf32>
    %593 = vector.shape_cast %592 : vector<64xf32> to vector<1x64xf32>
    %594 = vector.broadcast %588 : vector<1x64xf32> to vector<28x64xf32>
    %595 = arith.subf %581, %594 : vector<28x64xf32>
    %596 = arith.mulf %595, %595 : vector<28x64xf32>
    %cst_325 = arith.constant dense<0.000000e+00> : vector<64xf32>
    %597 = vector.multi_reduction <add>, %596, %cst_325 [0] : vector<28x64xf32> to vector<64xf32>
    %598 = vector.shape_cast %597 : vector<64xf32> to vector<1x64xf32>
    %599 = arith.addf %593, %598 : vector<1x64xf32>
    %cst_326 = arith.constant 5.600000e+01 : f32
    %600 = vector.broadcast %cst_326 : f32 to vector<1x64xf32>
    %601 = arith.divf %599, %600 : vector<1x64xf32>
    %cst_327 = arith.constant 9.99999974E-6 : f32
    %602 = vector.broadcast %cst_327 : f32 to vector<1x64xf32>
    %603 = arith.addf %601, %602 : vector<1x64xf32>
    %604 = math.rsqrt %603 : vector<1x64xf32>
    %c0_328 = arith.constant 0 : index
    %c0_329 = arith.constant 0 : index
    %605 = vector.load %arg9[%c0_328, %c0_329] : memref<1x64xf32, #tpu.memory_space<vmem>>, vector<1x64xf32>
    %606 = arith.mulf %604, %605 : vector<1x64xf32>
    %c0_330 = arith.constant 0 : index
    %c0_331 = arith.constant 0 : index
    %607 = vector.load %arg10[%c0_330, %c0_331] : memref<1x64xf32, #tpu.memory_space<vmem>>, vector<1x64xf32>
    %608 = arith.mulf %588, %606 : vector<1x64xf32>
    %609 = arith.subf %607, %608 : vector<1x64xf32>
    %610 = vector.broadcast %606 : vector<1x64xf32> to vector<28x64xf32>
    %611 = arith.mulf %559, %610 : vector<28x64xf32>
    %612 = vector.broadcast %609 : vector<1x64xf32> to vector<28x64xf32>
    %613 = arith.addf %611, %612 : vector<28x64xf32>
    %cst_332 = arith.constant 0.000000e+00 : f32
    %614 = vector.broadcast %cst_332 : f32 to vector<28x64xf32>
    %615 = arith.maximumf %613, %614 : vector<28x64xf32>
    %616 = vector.extract_strided_slice %615 {offsets = [0, 0], sizes = [1, 64], strides = [1, 1]} : vector<28x64xf32> to vector<1x64xf32>
    %617 = vector.extract_strided_slice %615 {offsets = [1, 0], sizes = [1, 64], strides = [1, 1]} : vector<28x64xf32> to vector<1x64xf32>
    %618 = arith.maximumf %616, %617 : vector<1x64xf32>
    %c0_333 = arith.constant 0 : index
    %c1_334 = arith.constant 1 : index
    %c0_335 = arith.constant 0 : index
    %619 = vector.load %arg26[%c0_333, %c1_334, %c0_335] : memref<2x16x64xf32, #tpu.memory_space<vmem>>, vector<1x1x64xf32>
    %620 = vector.shape_cast %619 : vector<1x1x64xf32> to vector<1x64xf32>
    %621 = vector.shape_cast %618 : vector<1x64xf32> to vector<1x1x64xf32>
    tpu.vector_store %arg26[%c0_333, %c1_334, %c0_335], %621 {strides = array<i32>} : memref<2x16x64xf32, #tpu.memory_space<vmem>>, vector<1x1x64xf32>,
    %622 = vector.extract_strided_slice %615 {offsets = [2, 0], sizes = [1, 64], strides = [1, 1]} : vector<28x64xf32> to vector<1x64xf32>
    %623 = vector.extract_strided_slice %615 {offsets = [3, 0], sizes = [1, 64], strides = [1, 1]} : vector<28x64xf32> to vector<1x64xf32>
    %624 = arith.maximumf %622, %623 : vector<1x64xf32>
    %c0_336 = arith.constant 0 : index
    %c2_337 = arith.constant 2 : index
    %c0_338 = arith.constant 0 : index
    %625 = vector.load %arg26[%c0_336, %c2_337, %c0_338] : memref<2x16x64xf32, #tpu.memory_space<vmem>>, vector<1x1x64xf32>
    %626 = vector.shape_cast %625 : vector<1x1x64xf32> to vector<1x64xf32>
    %627 = vector.shape_cast %624 : vector<1x64xf32> to vector<1x1x64xf32>
    tpu.vector_store %arg26[%c0_336, %c2_337, %c0_338], %627 {strides = array<i32>} : memref<2x16x64xf32, #tpu.memory_space<vmem>>, vector<1x1x64xf32>,
    %628 = vector.extract_strided_slice %615 {offsets = [4, 0], sizes = [1, 64], strides = [1, 1]} : vector<28x64xf32> to vector<1x64xf32>
    %629 = vector.extract_strided_slice %615 {offsets = [5, 0], sizes = [1, 64], strides = [1, 1]} : vector<28x64xf32> to vector<1x64xf32>
    %630 = arith.maximumf %628, %629 : vector<1x64xf32>
    %c0_339 = arith.constant 0 : index
    %c3_340 = arith.constant 3 : index
    %c0_341 = arith.constant 0 : index
    %631 = vector.load %arg26[%c0_339, %c3_340, %c0_341] : memref<2x16x64xf32, #tpu.memory_space<vmem>>, vector<1x1x64xf32>
    %632 = vector.shape_cast %631 : vector<1x1x64xf32> to vector<1x64xf32>
    %633 = vector.shape_cast %630 : vector<1x64xf32> to vector<1x1x64xf32>
    tpu.vector_store %arg26[%c0_339, %c3_340, %c0_341], %633 {strides = array<i32>} : memref<2x16x64xf32, #tpu.memory_space<vmem>>, vector<1x1x64xf32>,
    %634 = vector.extract_strided_slice %615 {offsets = [6, 0], sizes = [1, 64], strides = [1, 1]} : vector<28x64xf32> to vector<1x64xf32>
    %635 = vector.extract_strided_slice %615 {offsets = [7, 0], sizes = [1, 64], strides = [1, 1]} : vector<28x64xf32> to vector<1x64xf32>
    %636 = arith.maximumf %634, %635 : vector<1x64xf32>
    %c0_342 = arith.constant 0 : index
    %c4_343 = arith.constant 4 : index
    %c0_344 = arith.constant 0 : index
    %637 = vector.load %arg26[%c0_342, %c4_343, %c0_344] : memref<2x16x64xf32, #tpu.memory_space<vmem>>, vector<1x1x64xf32>
    %638 = vector.shape_cast %637 : vector<1x1x64xf32> to vector<1x64xf32>
    %639 = vector.shape_cast %636 : vector<1x64xf32> to vector<1x1x64xf32>
    tpu.vector_store %arg26[%c0_342, %c4_343, %c0_344], %639 {strides = array<i32>} : memref<2x16x64xf32, #tpu.memory_space<vmem>>, vector<1x1x64xf32>,
    %640 = vector.extract_strided_slice %615 {offsets = [8, 0], sizes = [1, 64], strides = [1, 1]} : vector<28x64xf32> to vector<1x64xf32>
    %641 = vector.extract_strided_slice %615 {offsets = [9, 0], sizes = [1, 64], strides = [1, 1]} : vector<28x64xf32> to vector<1x64xf32>
    %642 = arith.maximumf %640, %641 : vector<1x64xf32>
    %c0_345 = arith.constant 0 : index
    %c5_346 = arith.constant 5 : index
    %c0_347 = arith.constant 0 : index
    %643 = vector.load %arg26[%c0_345, %c5_346, %c0_347] : memref<2x16x64xf32, #tpu.memory_space<vmem>>, vector<1x1x64xf32>
    %644 = vector.shape_cast %643 : vector<1x1x64xf32> to vector<1x64xf32>
    %645 = vector.shape_cast %642 : vector<1x64xf32> to vector<1x1x64xf32>
    tpu.vector_store %arg26[%c0_345, %c5_346, %c0_347], %645 {strides = array<i32>} : memref<2x16x64xf32, #tpu.memory_space<vmem>>, vector<1x1x64xf32>,
    %646 = vector.extract_strided_slice %615 {offsets = [10, 0], sizes = [1, 64], strides = [1, 1]} : vector<28x64xf32> to vector<1x64xf32>
    %647 = vector.extract_strided_slice %615 {offsets = [11, 0], sizes = [1, 64], strides = [1, 1]} : vector<28x64xf32> to vector<1x64xf32>
    %648 = arith.maximumf %646, %647 : vector<1x64xf32>
    %c0_348 = arith.constant 0 : index
    %c6_349 = arith.constant 6 : index
    %c0_350 = arith.constant 0 : index
    %649 = vector.load %arg26[%c0_348, %c6_349, %c0_350] : memref<2x16x64xf32, #tpu.memory_space<vmem>>, vector<1x1x64xf32>
    %650 = vector.shape_cast %649 : vector<1x1x64xf32> to vector<1x64xf32>
    %651 = vector.shape_cast %648 : vector<1x64xf32> to vector<1x1x64xf32>
    tpu.vector_store %arg26[%c0_348, %c6_349, %c0_350], %651 {strides = array<i32>} : memref<2x16x64xf32, #tpu.memory_space<vmem>>, vector<1x1x64xf32>,
    %652 = vector.extract_strided_slice %615 {offsets = [12, 0], sizes = [1, 64], strides = [1, 1]} : vector<28x64xf32> to vector<1x64xf32>
    %653 = vector.extract_strided_slice %615 {offsets = [13, 0], sizes = [1, 64], strides = [1, 1]} : vector<28x64xf32> to vector<1x64xf32>
    %654 = arith.maximumf %652, %653 : vector<1x64xf32>
    %c0_351 = arith.constant 0 : index
    %c7_352 = arith.constant 7 : index
    %c0_353 = arith.constant 0 : index
    %655 = vector.load %arg26[%c0_351, %c7_352, %c0_353] : memref<2x16x64xf32, #tpu.memory_space<vmem>>, vector<1x1x64xf32>
    %656 = vector.shape_cast %655 : vector<1x1x64xf32> to vector<1x64xf32>
    %657 = vector.shape_cast %654 : vector<1x64xf32> to vector<1x1x64xf32>
    tpu.vector_store %arg26[%c0_351, %c7_352, %c0_353], %657 {strides = array<i32>} : memref<2x16x64xf32, #tpu.memory_space<vmem>>, vector<1x1x64xf32>,
    %658 = vector.extract_strided_slice %615 {offsets = [14, 0], sizes = [1, 64], strides = [1, 1]} : vector<28x64xf32> to vector<1x64xf32>
    %659 = vector.extract_strided_slice %615 {offsets = [15, 0], sizes = [1, 64], strides = [1, 1]} : vector<28x64xf32> to vector<1x64xf32>
    %660 = arith.maximumf %658, %659 : vector<1x64xf32>
    %c0_354 = arith.constant 0 : index
    %c8_355 = arith.constant 8 : index
    %c0_356 = arith.constant 0 : index
    %661 = vector.load %arg26[%c0_354, %c8_355, %c0_356] : memref<2x16x64xf32, #tpu.memory_space<vmem>>, vector<1x1x64xf32>
    %662 = vector.shape_cast %661 : vector<1x1x64xf32> to vector<1x64xf32>
    %663 = vector.shape_cast %660 : vector<1x64xf32> to vector<1x1x64xf32>
    tpu.vector_store %arg26[%c0_354, %c8_355, %c0_356], %663 {strides = array<i32>} : memref<2x16x64xf32, #tpu.memory_space<vmem>>, vector<1x1x64xf32>,
    %664 = vector.extract_strided_slice %615 {offsets = [16, 0], sizes = [1, 64], strides = [1, 1]} : vector<28x64xf32> to vector<1x64xf32>
    %665 = vector.extract_strided_slice %615 {offsets = [17, 0], sizes = [1, 64], strides = [1, 1]} : vector<28x64xf32> to vector<1x64xf32>
    %666 = arith.maximumf %664, %665 : vector<1x64xf32>
    %c0_357 = arith.constant 0 : index
    %c9_358 = arith.constant 9 : index
    %c0_359 = arith.constant 0 : index
    %667 = vector.load %arg26[%c0_357, %c9_358, %c0_359] : memref<2x16x64xf32, #tpu.memory_space<vmem>>, vector<1x1x64xf32>
    %668 = vector.shape_cast %667 : vector<1x1x64xf32> to vector<1x64xf32>
    %669 = vector.shape_cast %666 : vector<1x64xf32> to vector<1x1x64xf32>
    tpu.vector_store %arg26[%c0_357, %c9_358, %c0_359], %669 {strides = array<i32>} : memref<2x16x64xf32, #tpu.memory_space<vmem>>, vector<1x1x64xf32>,
    %670 = vector.extract_strided_slice %615 {offsets = [18, 0], sizes = [1, 64], strides = [1, 1]} : vector<28x64xf32> to vector<1x64xf32>
    %671 = vector.extract_strided_slice %615 {offsets = [19, 0], sizes = [1, 64], strides = [1, 1]} : vector<28x64xf32> to vector<1x64xf32>
    %672 = arith.maximumf %670, %671 : vector<1x64xf32>
    %c0_360 = arith.constant 0 : index
    %c10_361 = arith.constant 10 : index
    %c0_362 = arith.constant 0 : index
    %673 = vector.load %arg26[%c0_360, %c10_361, %c0_362] : memref<2x16x64xf32, #tpu.memory_space<vmem>>, vector<1x1x64xf32>
    %674 = vector.shape_cast %673 : vector<1x1x64xf32> to vector<1x64xf32>
    %675 = vector.shape_cast %672 : vector<1x64xf32> to vector<1x1x64xf32>
    tpu.vector_store %arg26[%c0_360, %c10_361, %c0_362], %675 {strides = array<i32>} : memref<2x16x64xf32, #tpu.memory_space<vmem>>, vector<1x1x64xf32>,
    %676 = vector.extract_strided_slice %615 {offsets = [20, 0], sizes = [1, 64], strides = [1, 1]} : vector<28x64xf32> to vector<1x64xf32>
    %677 = vector.extract_strided_slice %615 {offsets = [21, 0], sizes = [1, 64], strides = [1, 1]} : vector<28x64xf32> to vector<1x64xf32>
    %678 = arith.maximumf %676, %677 : vector<1x64xf32>
    %c0_363 = arith.constant 0 : index
    %c11_364 = arith.constant 11 : index
    %c0_365 = arith.constant 0 : index
    %679 = vector.load %arg26[%c0_363, %c11_364, %c0_365] : memref<2x16x64xf32, #tpu.memory_space<vmem>>, vector<1x1x64xf32>
    %680 = vector.shape_cast %679 : vector<1x1x64xf32> to vector<1x64xf32>
    %681 = vector.shape_cast %678 : vector<1x64xf32> to vector<1x1x64xf32>
    tpu.vector_store %arg26[%c0_363, %c11_364, %c0_365], %681 {strides = array<i32>} : memref<2x16x64xf32, #tpu.memory_space<vmem>>, vector<1x1x64xf32>,
    %682 = vector.extract_strided_slice %615 {offsets = [22, 0], sizes = [1, 64], strides = [1, 1]} : vector<28x64xf32> to vector<1x64xf32>
    %683 = vector.extract_strided_slice %615 {offsets = [23, 0], sizes = [1, 64], strides = [1, 1]} : vector<28x64xf32> to vector<1x64xf32>
    %684 = arith.maximumf %682, %683 : vector<1x64xf32>
    %c0_366 = arith.constant 0 : index
    %c12_367 = arith.constant 12 : index
    %c0_368 = arith.constant 0 : index
    %685 = vector.load %arg26[%c0_366, %c12_367, %c0_368] : memref<2x16x64xf32, #tpu.memory_space<vmem>>, vector<1x1x64xf32>
    %686 = vector.shape_cast %685 : vector<1x1x64xf32> to vector<1x64xf32>
    %687 = vector.shape_cast %684 : vector<1x64xf32> to vector<1x1x64xf32>
    tpu.vector_store %arg26[%c0_366, %c12_367, %c0_368], %687 {strides = array<i32>} : memref<2x16x64xf32, #tpu.memory_space<vmem>>, vector<1x1x64xf32>,
    %688 = vector.extract_strided_slice %615 {offsets = [24, 0], sizes = [1, 64], strides = [1, 1]} : vector<28x64xf32> to vector<1x64xf32>
    %689 = vector.extract_strided_slice %615 {offsets = [25, 0], sizes = [1, 64], strides = [1, 1]} : vector<28x64xf32> to vector<1x64xf32>
    %690 = arith.maximumf %688, %689 : vector<1x64xf32>
    %c0_369 = arith.constant 0 : index
    %c13_370 = arith.constant 13 : index
    %c0_371 = arith.constant 0 : index
    %691 = vector.load %arg26[%c0_369, %c13_370, %c0_371] : memref<2x16x64xf32, #tpu.memory_space<vmem>>, vector<1x1x64xf32>
    %692 = vector.shape_cast %691 : vector<1x1x64xf32> to vector<1x64xf32>
    %693 = vector.shape_cast %690 : vector<1x64xf32> to vector<1x1x64xf32>
    tpu.vector_store %arg26[%c0_369, %c13_370, %c0_371], %693 {strides = array<i32>} : memref<2x16x64xf32, #tpu.memory_space<vmem>>, vector<1x1x64xf32>,
    %694 = vector.extract_strided_slice %615 {offsets = [26, 0], sizes = [1, 64], strides = [1, 1]} : vector<28x64xf32> to vector<1x64xf32>
    %695 = vector.extract_strided_slice %615 {offsets = [27, 0], sizes = [1, 64], strides = [1, 1]} : vector<28x64xf32> to vector<1x64xf32>
    %696 = arith.maximumf %694, %695 : vector<1x64xf32>
    %c0_372 = arith.constant 0 : index
    %c14_373 = arith.constant 14 : index
    %c0_374 = arith.constant 0 : index
    %697 = vector.load %arg26[%c0_372, %c14_373, %c0_374] : memref<2x16x64xf32, #tpu.memory_space<vmem>>, vector<1x1x64xf32>
    %698 = vector.shape_cast %697 : vector<1x1x64xf32> to vector<1x64xf32>
    %699 = vector.shape_cast %696 : vector<1x64xf32> to vector<1x1x64xf32>
    tpu.vector_store %arg26[%c0_372, %c14_373, %c0_374], %699 {strides = array<i32>} : memref<2x16x64xf32, #tpu.memory_space<vmem>>, vector<1x1x64xf32>,
    %700 = vector.broadcast %606 : vector<1x64xf32> to vector<28x64xf32>
    %701 = arith.mulf %581, %700 : vector<28x64xf32>
    %702 = vector.broadcast %609 : vector<1x64xf32> to vector<28x64xf32>
    %703 = arith.addf %701, %702 : vector<28x64xf32>
    %cst_375 = arith.constant 0.000000e+00 : f32
    %704 = vector.broadcast %cst_375 : f32 to vector<28x64xf32>
    %705 = arith.maximumf %703, %704 : vector<28x64xf32>
    %706 = vector.extract_strided_slice %705 {offsets = [0, 0], sizes = [1, 64], strides = [1, 1]} : vector<28x64xf32> to vector<1x64xf32>
    %707 = vector.extract_strided_slice %705 {offsets = [1, 0], sizes = [1, 64], strides = [1, 1]} : vector<28x64xf32> to vector<1x64xf32>
    %708 = arith.maximumf %706, %707 : vector<1x64xf32>
    %c1_376 = arith.constant 1 : index
    %c1_377 = arith.constant 1 : index
    %c0_378 = arith.constant 0 : index
    %709 = vector.load %arg26[%c1_376, %c1_377, %c0_378] : memref<2x16x64xf32, #tpu.memory_space<vmem>>, vector<1x1x64xf32>
    %710 = vector.shape_cast %709 : vector<1x1x64xf32> to vector<1x64xf32>
    %711 = vector.shape_cast %708 : vector<1x64xf32> to vector<1x1x64xf32>
    tpu.vector_store %arg26[%c1_376, %c1_377, %c0_378], %711 {strides = array<i32>} : memref<2x16x64xf32, #tpu.memory_space<vmem>>, vector<1x1x64xf32>,
    %712 = vector.extract_strided_slice %705 {offsets = [2, 0], sizes = [1, 64], strides = [1, 1]} : vector<28x64xf32> to vector<1x64xf32>
    %713 = vector.extract_strided_slice %705 {offsets = [3, 0], sizes = [1, 64], strides = [1, 1]} : vector<28x64xf32> to vector<1x64xf32>
    %714 = arith.maximumf %712, %713 : vector<1x64xf32>
    %c1_379 = arith.constant 1 : index
    %c2_380 = arith.constant 2 : index
    %c0_381 = arith.constant 0 : index
    %715 = vector.load %arg26[%c1_379, %c2_380, %c0_381] : memref<2x16x64xf32, #tpu.memory_space<vmem>>, vector<1x1x64xf32>
    %716 = vector.shape_cast %715 : vector<1x1x64xf32> to vector<1x64xf32>
    %717 = vector.shape_cast %714 : vector<1x64xf32> to vector<1x1x64xf32>
    tpu.vector_store %arg26[%c1_379, %c2_380, %c0_381], %717 {strides = array<i32>} : memref<2x16x64xf32, #tpu.memory_space<vmem>>, vector<1x1x64xf32>,
    %718 = vector.extract_strided_slice %705 {offsets = [4, 0], sizes = [1, 64], strides = [1, 1]} : vector<28x64xf32> to vector<1x64xf32>
    %719 = vector.extract_strided_slice %705 {offsets = [5, 0], sizes = [1, 64], strides = [1, 1]} : vector<28x64xf32> to vector<1x64xf32>
    %720 = arith.maximumf %718, %719 : vector<1x64xf32>
    %c1_382 = arith.constant 1 : index
    %c3_383 = arith.constant 3 : index
    %c0_384 = arith.constant 0 : index
    %721 = vector.load %arg26[%c1_382, %c3_383, %c0_384] : memref<2x16x64xf32, #tpu.memory_space<vmem>>, vector<1x1x64xf32>
    %722 = vector.shape_cast %721 : vector<1x1x64xf32> to vector<1x64xf32>
    %723 = vector.shape_cast %720 : vector<1x64xf32> to vector<1x1x64xf32>
    tpu.vector_store %arg26[%c1_382, %c3_383, %c0_384], %723 {strides = array<i32>} : memref<2x16x64xf32, #tpu.memory_space<vmem>>, vector<1x1x64xf32>,
    %724 = vector.extract_strided_slice %705 {offsets = [6, 0], sizes = [1, 64], strides = [1, 1]} : vector<28x64xf32> to vector<1x64xf32>
    %725 = vector.extract_strided_slice %705 {offsets = [7, 0], sizes = [1, 64], strides = [1, 1]} : vector<28x64xf32> to vector<1x64xf32>
    %726 = arith.maximumf %724, %725 : vector<1x64xf32>
    %c1_385 = arith.constant 1 : index
    %c4_386 = arith.constant 4 : index
    %c0_387 = arith.constant 0 : index
    %727 = vector.load %arg26[%c1_385, %c4_386, %c0_387] : memref<2x16x64xf32, #tpu.memory_space<vmem>>, vector<1x1x64xf32>
    %728 = vector.shape_cast %727 : vector<1x1x64xf32> to vector<1x64xf32>
    %729 = vector.shape_cast %726 : vector<1x64xf32> to vector<1x1x64xf32>
    tpu.vector_store %arg26[%c1_385, %c4_386, %c0_387], %729 {strides = array<i32>} : memref<2x16x64xf32, #tpu.memory_space<vmem>>, vector<1x1x64xf32>,
    %730 = vector.extract_strided_slice %705 {offsets = [8, 0], sizes = [1, 64], strides = [1, 1]} : vector<28x64xf32> to vector<1x64xf32>
    %731 = vector.extract_strided_slice %705 {offsets = [9, 0], sizes = [1, 64], strides = [1, 1]} : vector<28x64xf32> to vector<1x64xf32>
    %732 = arith.maximumf %730, %731 : vector<1x64xf32>
    %c1_388 = arith.constant 1 : index
    %c5_389 = arith.constant 5 : index
    %c0_390 = arith.constant 0 : index
    %733 = vector.load %arg26[%c1_388, %c5_389, %c0_390] : memref<2x16x64xf32, #tpu.memory_space<vmem>>, vector<1x1x64xf32>
    %734 = vector.shape_cast %733 : vector<1x1x64xf32> to vector<1x64xf32>
    %735 = vector.shape_cast %732 : vector<1x64xf32> to vector<1x1x64xf32>
    tpu.vector_store %arg26[%c1_388, %c5_389, %c0_390], %735 {strides = array<i32>} : memref<2x16x64xf32, #tpu.memory_space<vmem>>, vector<1x1x64xf32>,
    %736 = vector.extract_strided_slice %705 {offsets = [10, 0], sizes = [1, 64], strides = [1, 1]} : vector<28x64xf32> to vector<1x64xf32>
    %737 = vector.extract_strided_slice %705 {offsets = [11, 0], sizes = [1, 64], strides = [1, 1]} : vector<28x64xf32> to vector<1x64xf32>
    %738 = arith.maximumf %736, %737 : vector<1x64xf32>
    %c1_391 = arith.constant 1 : index
    %c6_392 = arith.constant 6 : index
    %c0_393 = arith.constant 0 : index
    %739 = vector.load %arg26[%c1_391, %c6_392, %c0_393] : memref<2x16x64xf32, #tpu.memory_space<vmem>>, vector<1x1x64xf32>
    %740 = vector.shape_cast %739 : vector<1x1x64xf32> to vector<1x64xf32>
    %741 = vector.shape_cast %738 : vector<1x64xf32> to vector<1x1x64xf32>
    tpu.vector_store %arg26[%c1_391, %c6_392, %c0_393], %741 {strides = array<i32>} : memref<2x16x64xf32, #tpu.memory_space<vmem>>, vector<1x1x64xf32>,
    %742 = vector.extract_strided_slice %705 {offsets = [12, 0], sizes = [1, 64], strides = [1, 1]} : vector<28x64xf32> to vector<1x64xf32>
    %743 = vector.extract_strided_slice %705 {offsets = [13, 0], sizes = [1, 64], strides = [1, 1]} : vector<28x64xf32> to vector<1x64xf32>
    %744 = arith.maximumf %742, %743 : vector<1x64xf32>
    %c1_394 = arith.constant 1 : index
    %c7_395 = arith.constant 7 : index
    %c0_396 = arith.constant 0 : index
    %745 = vector.load %arg26[%c1_394, %c7_395, %c0_396] : memref<2x16x64xf32, #tpu.memory_space<vmem>>, vector<1x1x64xf32>
    %746 = vector.shape_cast %745 : vector<1x1x64xf32> to vector<1x64xf32>
    %747 = vector.shape_cast %744 : vector<1x64xf32> to vector<1x1x64xf32>
    tpu.vector_store %arg26[%c1_394, %c7_395, %c0_396], %747 {strides = array<i32>} : memref<2x16x64xf32, #tpu.memory_space<vmem>>, vector<1x1x64xf32>,
    %748 = vector.extract_strided_slice %705 {offsets = [14, 0], sizes = [1, 64], strides = [1, 1]} : vector<28x64xf32> to vector<1x64xf32>
    %749 = vector.extract_strided_slice %705 {offsets = [15, 0], sizes = [1, 64], strides = [1, 1]} : vector<28x64xf32> to vector<1x64xf32>
    %750 = arith.maximumf %748, %749 : vector<1x64xf32>
    %c1_397 = arith.constant 1 : index
    %c8_398 = arith.constant 8 : index
    %c0_399 = arith.constant 0 : index
    %751 = vector.load %arg26[%c1_397, %c8_398, %c0_399] : memref<2x16x64xf32, #tpu.memory_space<vmem>>, vector<1x1x64xf32>
    %752 = vector.shape_cast %751 : vector<1x1x64xf32> to vector<1x64xf32>
    %753 = vector.shape_cast %750 : vector<1x64xf32> to vector<1x1x64xf32>
    tpu.vector_store %arg26[%c1_397, %c8_398, %c0_399], %753 {strides = array<i32>} : memref<2x16x64xf32, #tpu.memory_space<vmem>>, vector<1x1x64xf32>,
    %754 = vector.extract_strided_slice %705 {offsets = [16, 0], sizes = [1, 64], strides = [1, 1]} : vector<28x64xf32> to vector<1x64xf32>
    %755 = vector.extract_strided_slice %705 {offsets = [17, 0], sizes = [1, 64], strides = [1, 1]} : vector<28x64xf32> to vector<1x64xf32>
    %756 = arith.maximumf %754, %755 : vector<1x64xf32>
    %c1_400 = arith.constant 1 : index
    %c9_401 = arith.constant 9 : index
    %c0_402 = arith.constant 0 : index
    %757 = vector.load %arg26[%c1_400, %c9_401, %c0_402] : memref<2x16x64xf32, #tpu.memory_space<vmem>>, vector<1x1x64xf32>
    %758 = vector.shape_cast %757 : vector<1x1x64xf32> to vector<1x64xf32>
    %759 = vector.shape_cast %756 : vector<1x64xf32> to vector<1x1x64xf32>
    tpu.vector_store %arg26[%c1_400, %c9_401, %c0_402], %759 {strides = array<i32>} : memref<2x16x64xf32, #tpu.memory_space<vmem>>, vector<1x1x64xf32>,
    %760 = vector.extract_strided_slice %705 {offsets = [18, 0], sizes = [1, 64], strides = [1, 1]} : vector<28x64xf32> to vector<1x64xf32>
    %761 = vector.extract_strided_slice %705 {offsets = [19, 0], sizes = [1, 64], strides = [1, 1]} : vector<28x64xf32> to vector<1x64xf32>
    %762 = arith.maximumf %760, %761 : vector<1x64xf32>
    %c1_403 = arith.constant 1 : index
    %c10_404 = arith.constant 10 : index
    %c0_405 = arith.constant 0 : index
    %763 = vector.load %arg26[%c1_403, %c10_404, %c0_405] : memref<2x16x64xf32, #tpu.memory_space<vmem>>, vector<1x1x64xf32>
    %764 = vector.shape_cast %763 : vector<1x1x64xf32> to vector<1x64xf32>
    %765 = vector.shape_cast %762 : vector<1x64xf32> to vector<1x1x64xf32>
    tpu.vector_store %arg26[%c1_403, %c10_404, %c0_405], %765 {strides = array<i32>} : memref<2x16x64xf32, #tpu.memory_space<vmem>>, vector<1x1x64xf32>,
    %766 = vector.extract_strided_slice %705 {offsets = [20, 0], sizes = [1, 64], strides = [1, 1]} : vector<28x64xf32> to vector<1x64xf32>
    %767 = vector.extract_strided_slice %705 {offsets = [21, 0], sizes = [1, 64], strides = [1, 1]} : vector<28x64xf32> to vector<1x64xf32>
    %768 = arith.maximumf %766, %767 : vector<1x64xf32>
    %c1_406 = arith.constant 1 : index
    %c11_407 = arith.constant 11 : index
    %c0_408 = arith.constant 0 : index
    %769 = vector.load %arg26[%c1_406, %c11_407, %c0_408] : memref<2x16x64xf32, #tpu.memory_space<vmem>>, vector<1x1x64xf32>
    %770 = vector.shape_cast %769 : vector<1x1x64xf32> to vector<1x64xf32>
    %771 = vector.shape_cast %768 : vector<1x64xf32> to vector<1x1x64xf32>
    tpu.vector_store %arg26[%c1_406, %c11_407, %c0_408], %771 {strides = array<i32>} : memref<2x16x64xf32, #tpu.memory_space<vmem>>, vector<1x1x64xf32>,
    %772 = vector.extract_strided_slice %705 {offsets = [22, 0], sizes = [1, 64], strides = [1, 1]} : vector<28x64xf32> to vector<1x64xf32>
    %773 = vector.extract_strided_slice %705 {offsets = [23, 0], sizes = [1, 64], strides = [1, 1]} : vector<28x64xf32> to vector<1x64xf32>
    %774 = arith.maximumf %772, %773 : vector<1x64xf32>
    %c1_409 = arith.constant 1 : index
    %c12_410 = arith.constant 12 : index
    %c0_411 = arith.constant 0 : index
    %775 = vector.load %arg26[%c1_409, %c12_410, %c0_411] : memref<2x16x64xf32, #tpu.memory_space<vmem>>, vector<1x1x64xf32>
    %776 = vector.shape_cast %775 : vector<1x1x64xf32> to vector<1x64xf32>
    %777 = vector.shape_cast %774 : vector<1x64xf32> to vector<1x1x64xf32>
    tpu.vector_store %arg26[%c1_409, %c12_410, %c0_411], %777 {strides = array<i32>} : memref<2x16x64xf32, #tpu.memory_space<vmem>>, vector<1x1x64xf32>,
    %778 = vector.extract_strided_slice %705 {offsets = [24, 0], sizes = [1, 64], strides = [1, 1]} : vector<28x64xf32> to vector<1x64xf32>
    %779 = vector.extract_strided_slice %705 {offsets = [25, 0], sizes = [1, 64], strides = [1, 1]} : vector<28x64xf32> to vector<1x64xf32>
    %780 = arith.maximumf %778, %779 : vector<1x64xf32>
    %c1_412 = arith.constant 1 : index
    %c13_413 = arith.constant 13 : index
    %c0_414 = arith.constant 0 : index
    %781 = vector.load %arg26[%c1_412, %c13_413, %c0_414] : memref<2x16x64xf32, #tpu.memory_space<vmem>>, vector<1x1x64xf32>
    %782 = vector.shape_cast %781 : vector<1x1x64xf32> to vector<1x64xf32>
    %783 = vector.shape_cast %780 : vector<1x64xf32> to vector<1x1x64xf32>
    tpu.vector_store %arg26[%c1_412, %c13_413, %c0_414], %783 {strides = array<i32>} : memref<2x16x64xf32, #tpu.memory_space<vmem>>, vector<1x1x64xf32>,
    %784 = vector.extract_strided_slice %705 {offsets = [26, 0], sizes = [1, 64], strides = [1, 1]} : vector<28x64xf32> to vector<1x64xf32>
    %785 = vector.extract_strided_slice %705 {offsets = [27, 0], sizes = [1, 64], strides = [1, 1]} : vector<28x64xf32> to vector<1x64xf32>
    %786 = arith.maximumf %784, %785 : vector<1x64xf32>
    %c1_415 = arith.constant 1 : index
    %c14_416 = arith.constant 14 : index
    %c0_417 = arith.constant 0 : index
    %787 = vector.load %arg26[%c1_415, %c14_416, %c0_417] : memref<2x16x64xf32, #tpu.memory_space<vmem>>, vector<1x1x64xf32>
    %788 = vector.shape_cast %787 : vector<1x1x64xf32> to vector<1x64xf32>
    %789 = vector.shape_cast %786 : vector<1x64xf32> to vector<1x1x64xf32>
    tpu.vector_store %arg26[%c1_415, %c14_416, %c0_417], %789 {strides = array<i32>} : memref<2x16x64xf32, #tpu.memory_space<vmem>>, vector<1x1x64xf32>,
    %cst_418 = arith.constant 0.000000e+00 : f32
    %790 = vector.broadcast %cst_418 : f32 to vector<14x128xf32>
    %c0_419 = arith.constant 0 : index
    %c0_420 = arith.constant 0 : index
    %c0_421 = arith.constant 0 : index
    %791 = vector.load %arg26[%c0_419, %c0_420, %c0_421] : memref<2x16x64xf32, #tpu.memory_space<vmem>>, vector<1x14x64xf32>
    %792 = vector.shape_cast %791 : vector<1x14x64xf32> to vector<14x64xf32>
    %793 = arith.truncf %792 : vector<14x64xf32> to vector<14x64xbf16>
    %c0_422 = arith.constant 0 : index
    %c0_423 = arith.constant 0 : index
    %c0_424 = arith.constant 0 : index
    %794 = vector.load %arg11[%c0_422, %c0_423, %c0_424] : memref<3x64x128xbf16, #tpu.memory_space<vmem>>, vector<1x64x128xbf16>
    %795 = vector.shape_cast %794 : vector<1x64x128xbf16> to vector<64x128xbf16>
    %cst_425 = arith.constant dense<0.000000e+00> : vector<14x128xf32>
    %796 = tpu.matmul %793, %795, %cst_425 {dimension_numbers = #tpu.dot_dimension_numbers<[1], [0], [0], [1], [0, 0, 1, 1], [], []>} : vector<14x64xbf16>, vector<64x128xbf16>, vector<14x128xf32> -> vector<14x128xf32>
    %797 = arith.addf %790, %796 : vector<14x128xf32>
    %c0_426 = arith.constant 0 : index
    %c1_427 = arith.constant 1 : index
    %c0_428 = arith.constant 0 : index
    %798 = vector.load %arg26[%c0_426, %c1_427, %c0_428] : memref<2x16x64xf32, #tpu.memory_space<vmem>>, vector<1x14x64xf32>
    %799 = vector.shape_cast %798 : vector<1x14x64xf32> to vector<14x64xf32>
    %800 = arith.truncf %799 : vector<14x64xf32> to vector<14x64xbf16>
    %c1_429 = arith.constant 1 : index
    %c0_430 = arith.constant 0 : index
    %c0_431 = arith.constant 0 : index
    %801 = vector.load %arg11[%c1_429, %c0_430, %c0_431] : memref<3x64x128xbf16, #tpu.memory_space<vmem>>, vector<1x64x128xbf16>
    %802 = vector.shape_cast %801 : vector<1x64x128xbf16> to vector<64x128xbf16>
    %cst_432 = arith.constant dense<0.000000e+00> : vector<14x128xf32>
    %803 = tpu.matmul %800, %802, %cst_432 {dimension_numbers = #tpu.dot_dimension_numbers<[1], [0], [0], [1], [0, 0, 1, 1], [], []>} : vector<14x64xbf16>, vector<64x128xbf16>, vector<14x128xf32> -> vector<14x128xf32>
    %804 = arith.addf %797, %803 : vector<14x128xf32>
    %c0_433 = arith.constant 0 : index
    %c2_434 = arith.constant 2 : index
    %c0_435 = arith.constant 0 : index
    %805 = vector.load %arg26[%c0_433, %c2_434, %c0_435] : memref<2x16x64xf32, #tpu.memory_space<vmem>>, vector<1x14x64xf32>
    %806 = vector.shape_cast %805 : vector<1x14x64xf32> to vector<14x64xf32>
    %807 = arith.truncf %806 : vector<14x64xf32> to vector<14x64xbf16>
    %c2_436 = arith.constant 2 : index
    %c0_437 = arith.constant 0 : index
    %c0_438 = arith.constant 0 : index
    %808 = vector.load %arg11[%c2_436, %c0_437, %c0_438] : memref<3x64x128xbf16, #tpu.memory_space<vmem>>, vector<1x64x128xbf16>
    %809 = vector.shape_cast %808 : vector<1x64x128xbf16> to vector<64x128xbf16>
    %cst_439 = arith.constant dense<0.000000e+00> : vector<14x128xf32>
    %810 = tpu.matmul %807, %809, %cst_439 {dimension_numbers = #tpu.dot_dimension_numbers<[1], [0], [0], [1], [0, 0, 1, 1], [], []>} : vector<14x64xbf16>, vector<64x128xbf16>, vector<14x128xf32> -> vector<14x128xf32>
    %811 = arith.addf %804, %810 : vector<14x128xf32>
    %cst_440 = arith.constant 0.000000e+00 : f32
    %812 = vector.broadcast %cst_440 : f32 to vector<14x128xf32>
    %c1_441 = arith.constant 1 : index
    %c0_442 = arith.constant 0 : index
    %c0_443 = arith.constant 0 : index
    %813 = vector.load %arg26[%c1_441, %c0_442, %c0_443] : memref<2x16x64xf32, #tpu.memory_space<vmem>>, vector<1x14x64xf32>
    %814 = vector.shape_cast %813 : vector<1x14x64xf32> to vector<14x64xf32>
    %815 = arith.truncf %814 : vector<14x64xf32> to vector<14x64xbf16>
    %c0_444 = arith.constant 0 : index
    %c0_445 = arith.constant 0 : index
    %c0_446 = arith.constant 0 : index
    %816 = vector.load %arg11[%c0_444, %c0_445, %c0_446] : memref<3x64x128xbf16, #tpu.memory_space<vmem>>, vector<1x64x128xbf16>
    %817 = vector.shape_cast %816 : vector<1x64x128xbf16> to vector<64x128xbf16>
    %cst_447 = arith.constant dense<0.000000e+00> : vector<14x128xf32>
    %818 = tpu.matmul %815, %817, %cst_447 {dimension_numbers = #tpu.dot_dimension_numbers<[1], [0], [0], [1], [0, 0, 1, 1], [], []>} : vector<14x64xbf16>, vector<64x128xbf16>, vector<14x128xf32> -> vector<14x128xf32>
    %819 = arith.addf %812, %818 : vector<14x128xf32>
    %c1_448 = arith.constant 1 : index
    %c1_449 = arith.constant 1 : index
    %c0_450 = arith.constant 0 : index
    %820 = vector.load %arg26[%c1_448, %c1_449, %c0_450] : memref<2x16x64xf32, #tpu.memory_space<vmem>>, vector<1x14x64xf32>
    %821 = vector.shape_cast %820 : vector<1x14x64xf32> to vector<14x64xf32>
    %822 = arith.truncf %821 : vector<14x64xf32> to vector<14x64xbf16>
    %c1_451 = arith.constant 1 : index
    %c0_452 = arith.constant 0 : index
    %c0_453 = arith.constant 0 : index
    %823 = vector.load %arg11[%c1_451, %c0_452, %c0_453] : memref<3x64x128xbf16, #tpu.memory_space<vmem>>, vector<1x64x128xbf16>
    %824 = vector.shape_cast %823 : vector<1x64x128xbf16> to vector<64x128xbf16>
    %cst_454 = arith.constant dense<0.000000e+00> : vector<14x128xf32>
    %825 = tpu.matmul %822, %824, %cst_454 {dimension_numbers = #tpu.dot_dimension_numbers<[1], [0], [0], [1], [0, 0, 1, 1], [], []>} : vector<14x64xbf16>, vector<64x128xbf16>, vector<14x128xf32> -> vector<14x128xf32>
    %826 = arith.addf %819, %825 : vector<14x128xf32>
    %c1_455 = arith.constant 1 : index
    %c2_456 = arith.constant 2 : index
    %c0_457 = arith.constant 0 : index
    %827 = vector.load %arg26[%c1_455, %c2_456, %c0_457] : memref<2x16x64xf32, #tpu.memory_space<vmem>>, vector<1x14x64xf32>
    %828 = vector.shape_cast %827 : vector<1x14x64xf32> to vector<14x64xf32>
    %829 = arith.truncf %828 : vector<14x64xf32> to vector<14x64xbf16>
    %c2_458 = arith.constant 2 : index
    %c0_459 = arith.constant 0 : index
    %c0_460 = arith.constant 0 : index
    %830 = vector.load %arg11[%c2_458, %c0_459, %c0_460] : memref<3x64x128xbf16, #tpu.memory_space<vmem>>, vector<1x64x128xbf16>
    %831 = vector.shape_cast %830 : vector<1x64x128xbf16> to vector<64x128xbf16>
    %cst_461 = arith.constant dense<0.000000e+00> : vector<14x128xf32>
    %832 = tpu.matmul %829, %831, %cst_461 {dimension_numbers = #tpu.dot_dimension_numbers<[1], [0], [0], [1], [0, 0, 1, 1], [], []>} : vector<14x64xbf16>, vector<64x128xbf16>, vector<14x128xf32> -> vector<14x128xf32>
    %833 = arith.addf %826, %832 : vector<14x128xf32>
    %cst_462 = arith.constant dense<0.000000e+00> : vector<128xf32>
    %834 = vector.multi_reduction <add>, %811, %cst_462 [0] : vector<14x128xf32> to vector<128xf32>
    %835 = vector.shape_cast %834 : vector<128xf32> to vector<1x128xf32>
    %cst_463 = arith.constant dense<0.000000e+00> : vector<128xf32>
    %836 = vector.multi_reduction <add>, %833, %cst_463 [0] : vector<14x128xf32> to vector<128xf32>
    %837 = vector.shape_cast %836 : vector<128xf32> to vector<1x128xf32>
    %838 = arith.addf %835, %837 : vector<1x128xf32>
    %cst_464 = arith.constant 2.800000e+01 : f32
    %839 = vector.broadcast %cst_464 : f32 to vector<1x128xf32>
    %840 = arith.divf %838, %839 : vector<1x128xf32>
    %841 = vector.broadcast %840 : vector<1x128xf32> to vector<14x128xf32>
    %842 = arith.subf %811, %841 : vector<14x128xf32>
    %843 = arith.mulf %842, %842 : vector<14x128xf32>
    %cst_465 = arith.constant dense<0.000000e+00> : vector<128xf32>
    %844 = vector.multi_reduction <add>, %843, %cst_465 [0] : vector<14x128xf32> to vector<128xf32>
    %845 = vector.shape_cast %844 : vector<128xf32> to vector<1x128xf32>
    %846 = vector.broadcast %840 : vector<1x128xf32> to vector<14x128xf32>
    %847 = arith.subf %833, %846 : vector<14x128xf32>
    %848 = arith.mulf %847, %847 : vector<14x128xf32>
    %cst_466 = arith.constant dense<0.000000e+00> : vector<128xf32>
    %849 = vector.multi_reduction <add>, %848, %cst_466 [0] : vector<14x128xf32> to vector<128xf32>
    %850 = vector.shape_cast %849 : vector<128xf32> to vector<1x128xf32>
    %851 = arith.addf %845, %850 : vector<1x128xf32>
    %cst_467 = arith.constant 2.800000e+01 : f32
    %852 = vector.broadcast %cst_467 : f32 to vector<1x128xf32>
    %853 = arith.divf %851, %852 : vector<1x128xf32>
    %cst_468 = arith.constant 9.99999974E-6 : f32
    %854 = vector.broadcast %cst_468 : f32 to vector<1x128xf32>
    %855 = arith.addf %853, %854 : vector<1x128xf32>
    %856 = math.rsqrt %855 : vector<1x128xf32>
    %c0_469 = arith.constant 0 : index
    %c0_470 = arith.constant 0 : index
    %857 = vector.load %arg12[%c0_469, %c0_470] : memref<1x128xf32, #tpu.memory_space<vmem>>, vector<1x128xf32>
    %858 = arith.mulf %856, %857 : vector<1x128xf32>
    %c0_471 = arith.constant 0 : index
    %c0_472 = arith.constant 0 : index
    %859 = vector.load %arg13[%c0_471, %c0_472] : memref<1x128xf32, #tpu.memory_space<vmem>>, vector<1x128xf32>
    %860 = arith.mulf %840, %858 : vector<1x128xf32>
    %861 = arith.subf %859, %860 : vector<1x128xf32>
    %862 = vector.broadcast %858 : vector<1x128xf32> to vector<14x128xf32>
    %863 = arith.mulf %811, %862 : vector<14x128xf32>
    %864 = vector.broadcast %861 : vector<1x128xf32> to vector<14x128xf32>
    %865 = arith.addf %863, %864 : vector<14x128xf32>
    %cst_473 = arith.constant 0.000000e+00 : f32
    %866 = vector.broadcast %cst_473 : f32 to vector<14x128xf32>
    %867 = arith.maximumf %865, %866 : vector<14x128xf32>
    %c0_474 = arith.constant 0 : index
    %c1_475 = arith.constant 1 : index
    %c0_476 = arith.constant 0 : index
    %868 = vector.load %arg27[%c0_474, %c1_475, %c0_476] : memref<2x16x128xf32, #tpu.memory_space<vmem>>, vector<1x14x128xf32>
    %869 = vector.shape_cast %868 : vector<1x14x128xf32> to vector<14x128xf32>
    %870 = vector.shape_cast %867 : vector<14x128xf32> to vector<1x14x128xf32>
    tpu.vector_store %arg27[%c0_474, %c1_475, %c0_476], %870 {strides = array<i32>} : memref<2x16x128xf32, #tpu.memory_space<vmem>>, vector<1x14x128xf32>,
    %871 = vector.broadcast %858 : vector<1x128xf32> to vector<14x128xf32>
    %872 = arith.mulf %833, %871 : vector<14x128xf32>
    %873 = vector.broadcast %861 : vector<1x128xf32> to vector<14x128xf32>
    %874 = arith.addf %872, %873 : vector<14x128xf32>
    %cst_477 = arith.constant 0.000000e+00 : f32
    %875 = vector.broadcast %cst_477 : f32 to vector<14x128xf32>
    %876 = arith.maximumf %874, %875 : vector<14x128xf32>
    %c1_478 = arith.constant 1 : index
    %c1_479 = arith.constant 1 : index
    %c0_480 = arith.constant 0 : index
    %877 = vector.load %arg27[%c1_478, %c1_479, %c0_480] : memref<2x16x128xf32, #tpu.memory_space<vmem>>, vector<1x14x128xf32>
    %878 = vector.shape_cast %877 : vector<1x14x128xf32> to vector<14x128xf32>
    %879 = vector.shape_cast %876 : vector<14x128xf32> to vector<1x14x128xf32>
    tpu.vector_store %arg27[%c1_478, %c1_479, %c0_480], %879 {strides = array<i32>} : memref<2x16x128xf32, #tpu.memory_space<vmem>>, vector<1x14x128xf32>,
    %cst_481 = arith.constant 0.000000e+00 : f32
    %880 = vector.broadcast %cst_481 : f32 to vector<14x128xf32>
    %c0_482 = arith.constant 0 : index
    %c0_483 = arith.constant 0 : index
    %c0_484 = arith.constant 0 : index
    %881 = vector.load %arg27[%c0_482, %c0_483, %c0_484] : memref<2x16x128xf32, #tpu.memory_space<vmem>>, vector<1x14x128xf32>
    %882 = vector.shape_cast %881 : vector<1x14x128xf32> to vector<14x128xf32>
    %883 = arith.truncf %882 : vector<14x128xf32> to vector<14x128xbf16>
    %c0_485 = arith.constant 0 : index
    %c0_486 = arith.constant 0 : index
    %c0_487 = arith.constant 0 : index
    %884 = vector.load %arg14[%c0_485, %c0_486, %c0_487] : memref<3x128x128xbf16, #tpu.memory_space<vmem>>, vector<1x128x128xbf16>
    %885 = vector.shape_cast %884 : vector<1x128x128xbf16> to vector<128x128xbf16>
    %cst_488 = arith.constant dense<0.000000e+00> : vector<14x128xf32>
    %886 = tpu.matmul %883, %885, %cst_488 {dimension_numbers = #tpu.dot_dimension_numbers<[1], [0], [0], [1], [0, 0, 1, 1], [], []>} : vector<14x128xbf16>, vector<128x128xbf16>, vector<14x128xf32> -> vector<14x128xf32>
    %887 = arith.addf %880, %886 : vector<14x128xf32>
    %c0_489 = arith.constant 0 : index
    %c1_490 = arith.constant 1 : index
    %c0_491 = arith.constant 0 : index
    %888 = vector.load %arg27[%c0_489, %c1_490, %c0_491] : memref<2x16x128xf32, #tpu.memory_space<vmem>>, vector<1x14x128xf32>
    %889 = vector.shape_cast %888 : vector<1x14x128xf32> to vector<14x128xf32>
    %890 = arith.truncf %889 : vector<14x128xf32> to vector<14x128xbf16>
    %c1_492 = arith.constant 1 : index
    %c0_493 = arith.constant 0 : index
    %c0_494 = arith.constant 0 : index
    %891 = vector.load %arg14[%c1_492, %c0_493, %c0_494] : memref<3x128x128xbf16, #tpu.memory_space<vmem>>, vector<1x128x128xbf16>
    %892 = vector.shape_cast %891 : vector<1x128x128xbf16> to vector<128x128xbf16>
    %cst_495 = arith.constant dense<0.000000e+00> : vector<14x128xf32>
    %893 = tpu.matmul %890, %892, %cst_495 {dimension_numbers = #tpu.dot_dimension_numbers<[1], [0], [0], [1], [0, 0, 1, 1], [], []>} : vector<14x128xbf16>, vector<128x128xbf16>, vector<14x128xf32> -> vector<14x128xf32>
    %894 = arith.addf %887, %893 : vector<14x128xf32>
    %c0_496 = arith.constant 0 : index
    %c2_497 = arith.constant 2 : index
    %c0_498 = arith.constant 0 : index
    %895 = vector.load %arg27[%c0_496, %c2_497, %c0_498] : memref<2x16x128xf32, #tpu.memory_space<vmem>>, vector<1x14x128xf32>
    %896 = vector.shape_cast %895 : vector<1x14x128xf32> to vector<14x128xf32>
    %897 = arith.truncf %896 : vector<14x128xf32> to vector<14x128xbf16>
    %c2_499 = arith.constant 2 : index
    %c0_500 = arith.constant 0 : index
    %c0_501 = arith.constant 0 : index
    %898 = vector.load %arg14[%c2_499, %c0_500, %c0_501] : memref<3x128x128xbf16, #tpu.memory_space<vmem>>, vector<1x128x128xbf16>
    %899 = vector.shape_cast %898 : vector<1x128x128xbf16> to vector<128x128xbf16>
    %cst_502 = arith.constant dense<0.000000e+00> : vector<14x128xf32>
    %900 = tpu.matmul %897, %899, %cst_502 {dimension_numbers = #tpu.dot_dimension_numbers<[1], [0], [0], [1], [0, 0, 1, 1], [], []>} : vector<14x128xbf16>, vector<128x128xbf16>, vector<14x128xf32> -> vector<14x128xf32>
    %901 = arith.addf %894, %900 : vector<14x128xf32>
    %cst_503 = arith.constant 0.000000e+00 : f32
    %902 = vector.broadcast %cst_503 : f32 to vector<14x128xf32>
    %c1_504 = arith.constant 1 : index
    %c0_505 = arith.constant 0 : index
    %c0_506 = arith.constant 0 : index
    %903 = vector.load %arg27[%c1_504, %c0_505, %c0_506] : memref<2x16x128xf32, #tpu.memory_space<vmem>>, vector<1x14x128xf32>
    %904 = vector.shape_cast %903 : vector<1x14x128xf32> to vector<14x128xf32>
    %905 = arith.truncf %904 : vector<14x128xf32> to vector<14x128xbf16>
    %c0_507 = arith.constant 0 : index
    %c0_508 = arith.constant 0 : index
    %c0_509 = arith.constant 0 : index
    %906 = vector.load %arg14[%c0_507, %c0_508, %c0_509] : memref<3x128x128xbf16, #tpu.memory_space<vmem>>, vector<1x128x128xbf16>
    %907 = vector.shape_cast %906 : vector<1x128x128xbf16> to vector<128x128xbf16>
    %cst_510 = arith.constant dense<0.000000e+00> : vector<14x128xf32>
    %908 = tpu.matmul %905, %907, %cst_510 {dimension_numbers = #tpu.dot_dimension_numbers<[1], [0], [0], [1], [0, 0, 1, 1], [], []>} : vector<14x128xbf16>, vector<128x128xbf16>, vector<14x128xf32> -> vector<14x128xf32>
    %909 = arith.addf %902, %908 : vector<14x128xf32>
    %c1_511 = arith.constant 1 : index
    %c1_512 = arith.constant 1 : index
    %c0_513 = arith.constant 0 : index
    %910 = vector.load %arg27[%c1_511, %c1_512, %c0_513] : memref<2x16x128xf32, #tpu.memory_space<vmem>>, vector<1x14x128xf32>
    %911 = vector.shape_cast %910 : vector<1x14x128xf32> to vector<14x128xf32>
    %912 = arith.truncf %911 : vector<14x128xf32> to vector<14x128xbf16>
    %c1_514 = arith.constant 1 : index
    %c0_515 = arith.constant 0 : index
    %c0_516 = arith.constant 0 : index
    %913 = vector.load %arg14[%c1_514, %c0_515, %c0_516] : memref<3x128x128xbf16, #tpu.memory_space<vmem>>, vector<1x128x128xbf16>
    %914 = vector.shape_cast %913 : vector<1x128x128xbf16> to vector<128x128xbf16>
    %cst_517 = arith.constant dense<0.000000e+00> : vector<14x128xf32>
    %915 = tpu.matmul %912, %914, %cst_517 {dimension_numbers = #tpu.dot_dimension_numbers<[1], [0], [0], [1], [0, 0, 1, 1], [], []>} : vector<14x128xbf16>, vector<128x128xbf16>, vector<14x128xf32> -> vector<14x128xf32>
    %916 = arith.addf %909, %915 : vector<14x128xf32>
    %c1_518 = arith.constant 1 : index
    %c2_519 = arith.constant 2 : index
    %c0_520 = arith.constant 0 : index
    %917 = vector.load %arg27[%c1_518, %c2_519, %c0_520] : memref<2x16x128xf32, #tpu.memory_space<vmem>>, vector<1x14x128xf32>
    %918 = vector.shape_cast %917 : vector<1x14x128xf32> to vector<14x128xf32>
    %919 = arith.truncf %918 : vector<14x128xf32> to vector<14x128xbf16>
    %c2_521 = arith.constant 2 : index
    %c0_522 = arith.constant 0 : index
    %c0_523 = arith.constant 0 : index
    %920 = vector.load %arg14[%c2_521, %c0_522, %c0_523] : memref<3x128x128xbf16, #tpu.memory_space<vmem>>, vector<1x128x128xbf16>
    %921 = vector.shape_cast %920 : vector<1x128x128xbf16> to vector<128x128xbf16>
    %cst_524 = arith.constant dense<0.000000e+00> : vector<14x128xf32>
    %922 = tpu.matmul %919, %921, %cst_524 {dimension_numbers = #tpu.dot_dimension_numbers<[1], [0], [0], [1], [0, 0, 1, 1], [], []>} : vector<14x128xbf16>, vector<128x128xbf16>, vector<14x128xf32> -> vector<14x128xf32>
    %923 = arith.addf %916, %922 : vector<14x128xf32>
    %cst_525 = arith.constant dense<0.000000e+00> : vector<128xf32>
    %924 = vector.multi_reduction <add>, %901, %cst_525 [0] : vector<14x128xf32> to vector<128xf32>
    %925 = vector.shape_cast %924 : vector<128xf32> to vector<1x128xf32>
    %cst_526 = arith.constant dense<0.000000e+00> : vector<128xf32>
    %926 = vector.multi_reduction <add>, %923, %cst_526 [0] : vector<14x128xf32> to vector<128xf32>
    %927 = vector.shape_cast %926 : vector<128xf32> to vector<1x128xf32>
    %928 = arith.addf %925, %927 : vector<1x128xf32>
    %cst_527 = arith.constant 2.800000e+01 : f32
    %929 = vector.broadcast %cst_527 : f32 to vector<1x128xf32>
    %930 = arith.divf %928, %929 : vector<1x128xf32>
    %931 = vector.broadcast %930 : vector<1x128xf32> to vector<14x128xf32>
    %932 = arith.subf %901, %931 : vector<14x128xf32>
    %933 = arith.mulf %932, %932 : vector<14x128xf32>
    %cst_528 = arith.constant dense<0.000000e+00> : vector<128xf32>
    %934 = vector.multi_reduction <add>, %933, %cst_528 [0] : vector<14x128xf32> to vector<128xf32>
    %935 = vector.shape_cast %934 : vector<128xf32> to vector<1x128xf32>
    %936 = vector.broadcast %930 : vector<1x128xf32> to vector<14x128xf32>
    %937 = arith.subf %923, %936 : vector<14x128xf32>
    %938 = arith.mulf %937, %937 : vector<14x128xf32>
    %cst_529 = arith.constant dense<0.000000e+00> : vector<128xf32>
    %939 = vector.multi_reduction <add>, %938, %cst_529 [0] : vector<14x128xf32> to vector<128xf32>
    %940 = vector.shape_cast %939 : vector<128xf32> to vector<1x128xf32>
    %941 = arith.addf %935, %940 : vector<1x128xf32>
    %cst_530 = arith.constant 2.800000e+01 : f32
    %942 = vector.broadcast %cst_530 : f32 to vector<1x128xf32>
    %943 = arith.divf %941, %942 : vector<1x128xf32>
    %cst_531 = arith.constant 9.99999974E-6 : f32
    %944 = vector.broadcast %cst_531 : f32 to vector<1x128xf32>
    %945 = arith.addf %943, %944 : vector<1x128xf32>
    %946 = math.rsqrt %945 : vector<1x128xf32>
    %c0_532 = arith.constant 0 : index
    %c0_533 = arith.constant 0 : index
    %947 = vector.load %arg15[%c0_532, %c0_533] : memref<1x128xf32, #tpu.memory_space<vmem>>, vector<1x128xf32>
    %948 = arith.mulf %946, %947 : vector<1x128xf32>
    %c0_534 = arith.constant 0 : index
    %c0_535 = arith.constant 0 : index
    %949 = vector.load %arg16[%c0_534, %c0_535] : memref<1x128xf32, #tpu.memory_space<vmem>>, vector<1x128xf32>
    %950 = arith.mulf %930, %948 : vector<1x128xf32>
    %951 = arith.subf %949, %950 : vector<1x128xf32>
    %952 = vector.broadcast %948 : vector<1x128xf32> to vector<14x128xf32>
    %953 = arith.mulf %901, %952 : vector<14x128xf32>
    %954 = vector.broadcast %951 : vector<1x128xf32> to vector<14x128xf32>
    %955 = arith.addf %953, %954 : vector<14x128xf32>
    %cst_536 = arith.constant 0.000000e+00 : f32
    %956 = vector.broadcast %cst_536 : f32 to vector<14x128xf32>
    %957 = arith.maximumf %955, %956 : vector<14x128xf32>
    %958 = vector.extract_strided_slice %957 {offsets = [0, 0], sizes = [1, 128], strides = [1, 1]} : vector<14x128xf32> to vector<1x128xf32>
    %959 = vector.extract_strided_slice %957 {offsets = [1, 0], sizes = [1, 128], strides = [1, 1]} : vector<14x128xf32> to vector<1x128xf32>
    %960 = arith.maximumf %958, %959 : vector<1x128xf32>
    %c0_537 = arith.constant 0 : index
    %c0_538 = arith.constant 0 : index
    %c0_539 = arith.constant 0 : index
    %961 = vector.load %arg28[%c0_537, %c0_538, %c0_539] : memref<2x7x128xf32, #tpu.memory_space<vmem>>, vector<1x1x128xf32>
    %962 = vector.shape_cast %961 : vector<1x1x128xf32> to vector<1x128xf32>
    %963 = vector.shape_cast %960 : vector<1x128xf32> to vector<1x1x128xf32>
    tpu.vector_store %arg28[%c0_537, %c0_538, %c0_539], %963 {strides = array<i32>} : memref<2x7x128xf32, #tpu.memory_space<vmem>>, vector<1x1x128xf32>,
    %964 = vector.extract_strided_slice %957 {offsets = [2, 0], sizes = [1, 128], strides = [1, 1]} : vector<14x128xf32> to vector<1x128xf32>
    %965 = vector.extract_strided_slice %957 {offsets = [3, 0], sizes = [1, 128], strides = [1, 1]} : vector<14x128xf32> to vector<1x128xf32>
    %966 = arith.maximumf %964, %965 : vector<1x128xf32>
    %c0_540 = arith.constant 0 : index
    %c1_541 = arith.constant 1 : index
    %c0_542 = arith.constant 0 : index
    %967 = vector.load %arg28[%c0_540, %c1_541, %c0_542] : memref<2x7x128xf32, #tpu.memory_space<vmem>>, vector<1x1x128xf32>
    %968 = vector.shape_cast %967 : vector<1x1x128xf32> to vector<1x128xf32>
    %969 = vector.shape_cast %966 : vector<1x128xf32> to vector<1x1x128xf32>
    tpu.vector_store %arg28[%c0_540, %c1_541, %c0_542], %969 {strides = array<i32>} : memref<2x7x128xf32, #tpu.memory_space<vmem>>, vector<1x1x128xf32>,
    %970 = vector.extract_strided_slice %957 {offsets = [4, 0], sizes = [1, 128], strides = [1, 1]} : vector<14x128xf32> to vector<1x128xf32>
    %971 = vector.extract_strided_slice %957 {offsets = [5, 0], sizes = [1, 128], strides = [1, 1]} : vector<14x128xf32> to vector<1x128xf32>
    %972 = arith.maximumf %970, %971 : vector<1x128xf32>
    %c0_543 = arith.constant 0 : index
    %c2_544 = arith.constant 2 : index
    %c0_545 = arith.constant 0 : index
    %973 = vector.load %arg28[%c0_543, %c2_544, %c0_545] : memref<2x7x128xf32, #tpu.memory_space<vmem>>, vector<1x1x128xf32>
    %974 = vector.shape_cast %973 : vector<1x1x128xf32> to vector<1x128xf32>
    %975 = vector.shape_cast %972 : vector<1x128xf32> to vector<1x1x128xf32>
    tpu.vector_store %arg28[%c0_543, %c2_544, %c0_545], %975 {strides = array<i32>} : memref<2x7x128xf32, #tpu.memory_space<vmem>>, vector<1x1x128xf32>,
    %976 = vector.extract_strided_slice %957 {offsets = [6, 0], sizes = [1, 128], strides = [1, 1]} : vector<14x128xf32> to vector<1x128xf32>
    %977 = vector.extract_strided_slice %957 {offsets = [7, 0], sizes = [1, 128], strides = [1, 1]} : vector<14x128xf32> to vector<1x128xf32>
    %978 = arith.maximumf %976, %977 : vector<1x128xf32>
    %c0_546 = arith.constant 0 : index
    %c3_547 = arith.constant 3 : index
    %c0_548 = arith.constant 0 : index
    %979 = vector.load %arg28[%c0_546, %c3_547, %c0_548] : memref<2x7x128xf32, #tpu.memory_space<vmem>>, vector<1x1x128xf32>
    %980 = vector.shape_cast %979 : vector<1x1x128xf32> to vector<1x128xf32>
    %981 = vector.shape_cast %978 : vector<1x128xf32> to vector<1x1x128xf32>
    tpu.vector_store %arg28[%c0_546, %c3_547, %c0_548], %981 {strides = array<i32>} : memref<2x7x128xf32, #tpu.memory_space<vmem>>, vector<1x1x128xf32>,
    %982 = vector.extract_strided_slice %957 {offsets = [8, 0], sizes = [1, 128], strides = [1, 1]} : vector<14x128xf32> to vector<1x128xf32>
    %983 = vector.extract_strided_slice %957 {offsets = [9, 0], sizes = [1, 128], strides = [1, 1]} : vector<14x128xf32> to vector<1x128xf32>
    %984 = arith.maximumf %982, %983 : vector<1x128xf32>
    %c0_549 = arith.constant 0 : index
    %c4_550 = arith.constant 4 : index
    %c0_551 = arith.constant 0 : index
    %985 = vector.load %arg28[%c0_549, %c4_550, %c0_551] : memref<2x7x128xf32, #tpu.memory_space<vmem>>, vector<1x1x128xf32>
    %986 = vector.shape_cast %985 : vector<1x1x128xf32> to vector<1x128xf32>
    %987 = vector.shape_cast %984 : vector<1x128xf32> to vector<1x1x128xf32>
    tpu.vector_store %arg28[%c0_549, %c4_550, %c0_551], %987 {strides = array<i32>} : memref<2x7x128xf32, #tpu.memory_space<vmem>>, vector<1x1x128xf32>,
    %988 = vector.extract_strided_slice %957 {offsets = [10, 0], sizes = [1, 128], strides = [1, 1]} : vector<14x128xf32> to vector<1x128xf32>
    %989 = vector.extract_strided_slice %957 {offsets = [11, 0], sizes = [1, 128], strides = [1, 1]} : vector<14x128xf32> to vector<1x128xf32>
    %990 = arith.maximumf %988, %989 : vector<1x128xf32>
    %c0_552 = arith.constant 0 : index
    %c5_553 = arith.constant 5 : index
    %c0_554 = arith.constant 0 : index
    %991 = vector.load %arg28[%c0_552, %c5_553, %c0_554] : memref<2x7x128xf32, #tpu.memory_space<vmem>>, vector<1x1x128xf32>
    %992 = vector.shape_cast %991 : vector<1x1x128xf32> to vector<1x128xf32>
    %993 = vector.shape_cast %990 : vector<1x128xf32> to vector<1x1x128xf32>
    tpu.vector_store %arg28[%c0_552, %c5_553, %c0_554], %993 {strides = array<i32>} : memref<2x7x128xf32, #tpu.memory_space<vmem>>, vector<1x1x128xf32>,
    %994 = vector.extract_strided_slice %957 {offsets = [12, 0], sizes = [1, 128], strides = [1, 1]} : vector<14x128xf32> to vector<1x128xf32>
    %995 = vector.extract_strided_slice %957 {offsets = [13, 0], sizes = [1, 128], strides = [1, 1]} : vector<14x128xf32> to vector<1x128xf32>
    %996 = arith.maximumf %994, %995 : vector<1x128xf32>
    %c0_555 = arith.constant 0 : index
    %c6_556 = arith.constant 6 : index
    %c0_557 = arith.constant 0 : index
    %997 = vector.load %arg28[%c0_555, %c6_556, %c0_557] : memref<2x7x128xf32, #tpu.memory_space<vmem>>, vector<1x1x128xf32>
    %998 = vector.shape_cast %997 : vector<1x1x128xf32> to vector<1x128xf32>
    %999 = vector.shape_cast %996 : vector<1x128xf32> to vector<1x1x128xf32>
    tpu.vector_store %arg28[%c0_555, %c6_556, %c0_557], %999 {strides = array<i32>} : memref<2x7x128xf32, #tpu.memory_space<vmem>>, vector<1x1x128xf32>,
    %1000 = vector.broadcast %948 : vector<1x128xf32> to vector<14x128xf32>
    %1001 = arith.mulf %923, %1000 : vector<14x128xf32>
    %1002 = vector.broadcast %951 : vector<1x128xf32> to vector<14x128xf32>
    %1003 = arith.addf %1001, %1002 : vector<14x128xf32>
    %cst_558 = arith.constant 0.000000e+00 : f32
    %1004 = vector.broadcast %cst_558 : f32 to vector<14x128xf32>
    %1005 = arith.maximumf %1003, %1004 : vector<14x128xf32>
    %1006 = vector.extract_strided_slice %1005 {offsets = [0, 0], sizes = [1, 128], strides = [1, 1]} : vector<14x128xf32> to vector<1x128xf32>
    %1007 = vector.extract_strided_slice %1005 {offsets = [1, 0], sizes = [1, 128], strides = [1, 1]} : vector<14x128xf32> to vector<1x128xf32>
    %1008 = arith.maximumf %1006, %1007 : vector<1x128xf32>
    %c1_559 = arith.constant 1 : index
    %c0_560 = arith.constant 0 : index
    %c0_561 = arith.constant 0 : index
    %1009 = vector.load %arg28[%c1_559, %c0_560, %c0_561] : memref<2x7x128xf32, #tpu.memory_space<vmem>>, vector<1x1x128xf32>
    %1010 = vector.shape_cast %1009 : vector<1x1x128xf32> to vector<1x128xf32>
    %1011 = vector.shape_cast %1008 : vector<1x128xf32> to vector<1x1x128xf32>
    tpu.vector_store %arg28[%c1_559, %c0_560, %c0_561], %1011 {strides = array<i32>} : memref<2x7x128xf32, #tpu.memory_space<vmem>>, vector<1x1x128xf32>,
    %1012 = vector.extract_strided_slice %1005 {offsets = [2, 0], sizes = [1, 128], strides = [1, 1]} : vector<14x128xf32> to vector<1x128xf32>
    %1013 = vector.extract_strided_slice %1005 {offsets = [3, 0], sizes = [1, 128], strides = [1, 1]} : vector<14x128xf32> to vector<1x128xf32>
    %1014 = arith.maximumf %1012, %1013 : vector<1x128xf32>
    %c1_562 = arith.constant 1 : index
    %c1_563 = arith.constant 1 : index
    %c0_564 = arith.constant 0 : index
    %1015 = vector.load %arg28[%c1_562, %c1_563, %c0_564] : memref<2x7x128xf32, #tpu.memory_space<vmem>>, vector<1x1x128xf32>
    %1016 = vector.shape_cast %1015 : vector<1x1x128xf32> to vector<1x128xf32>
    %1017 = vector.shape_cast %1014 : vector<1x128xf32> to vector<1x1x128xf32>
    tpu.vector_store %arg28[%c1_562, %c1_563, %c0_564], %1017 {strides = array<i32>} : memref<2x7x128xf32, #tpu.memory_space<vmem>>, vector<1x1x128xf32>,
    %1018 = vector.extract_strided_slice %1005 {offsets = [4, 0], sizes = [1, 128], strides = [1, 1]} : vector<14x128xf32> to vector<1x128xf32>
    %1019 = vector.extract_strided_slice %1005 {offsets = [5, 0], sizes = [1, 128], strides = [1, 1]} : vector<14x128xf32> to vector<1x128xf32>
    %1020 = arith.maximumf %1018, %1019 : vector<1x128xf32>
    %c1_565 = arith.constant 1 : index
    %c2_566 = arith.constant 2 : index
    %c0_567 = arith.constant 0 : index
    %1021 = vector.load %arg28[%c1_565, %c2_566, %c0_567] : memref<2x7x128xf32, #tpu.memory_space<vmem>>, vector<1x1x128xf32>
    %1022 = vector.shape_cast %1021 : vector<1x1x128xf32> to vector<1x128xf32>
    %1023 = vector.shape_cast %1020 : vector<1x128xf32> to vector<1x1x128xf32>
    tpu.vector_store %arg28[%c1_565, %c2_566, %c0_567], %1023 {strides = array<i32>} : memref<2x7x128xf32, #tpu.memory_space<vmem>>, vector<1x1x128xf32>,
    %1024 = vector.extract_strided_slice %1005 {offsets = [6, 0], sizes = [1, 128], strides = [1, 1]} : vector<14x128xf32> to vector<1x128xf32>
    %1025 = vector.extract_strided_slice %1005 {offsets = [7, 0], sizes = [1, 128], strides = [1, 1]} : vector<14x128xf32> to vector<1x128xf32>
    %1026 = arith.maximumf %1024, %1025 : vector<1x128xf32>
    %c1_568 = arith.constant 1 : index
    %c3_569 = arith.constant 3 : index
    %c0_570 = arith.constant 0 : index
    %1027 = vector.load %arg28[%c1_568, %c3_569, %c0_570] : memref<2x7x128xf32, #tpu.memory_space<vmem>>, vector<1x1x128xf32>
    %1028 = vector.shape_cast %1027 : vector<1x1x128xf32> to vector<1x128xf32>
    %1029 = vector.shape_cast %1026 : vector<1x128xf32> to vector<1x1x128xf32>
    tpu.vector_store %arg28[%c1_568, %c3_569, %c0_570], %1029 {strides = array<i32>} : memref<2x7x128xf32, #tpu.memory_space<vmem>>, vector<1x1x128xf32>,
    %1030 = vector.extract_strided_slice %1005 {offsets = [8, 0], sizes = [1, 128], strides = [1, 1]} : vector<14x128xf32> to vector<1x128xf32>
    %1031 = vector.extract_strided_slice %1005 {offsets = [9, 0], sizes = [1, 128], strides = [1, 1]} : vector<14x128xf32> to vector<1x128xf32>
    %1032 = arith.maximumf %1030, %1031 : vector<1x128xf32>
    %c1_571 = arith.constant 1 : index
    %c4_572 = arith.constant 4 : index
    %c0_573 = arith.constant 0 : index
    %1033 = vector.load %arg28[%c1_571, %c4_572, %c0_573] : memref<2x7x128xf32, #tpu.memory_space<vmem>>, vector<1x1x128xf32>
    %1034 = vector.shape_cast %1033 : vector<1x1x128xf32> to vector<1x128xf32>
    %1035 = vector.shape_cast %1032 : vector<1x128xf32> to vector<1x1x128xf32>
    tpu.vector_store %arg28[%c1_571, %c4_572, %c0_573], %1035 {strides = array<i32>} : memref<2x7x128xf32, #tpu.memory_space<vmem>>, vector<1x1x128xf32>,
    %1036 = vector.extract_strided_slice %1005 {offsets = [10, 0], sizes = [1, 128], strides = [1, 1]} : vector<14x128xf32> to vector<1x128xf32>
    %1037 = vector.extract_strided_slice %1005 {offsets = [11, 0], sizes = [1, 128], strides = [1, 1]} : vector<14x128xf32> to vector<1x128xf32>
    %1038 = arith.maximumf %1036, %1037 : vector<1x128xf32>
    %c1_574 = arith.constant 1 : index
    %c5_575 = arith.constant 5 : index
    %c0_576 = arith.constant 0 : index
    %1039 = vector.load %arg28[%c1_574, %c5_575, %c0_576] : memref<2x7x128xf32, #tpu.memory_space<vmem>>, vector<1x1x128xf32>
    %1040 = vector.shape_cast %1039 : vector<1x1x128xf32> to vector<1x128xf32>
    %1041 = vector.shape_cast %1038 : vector<1x128xf32> to vector<1x1x128xf32>
    tpu.vector_store %arg28[%c1_574, %c5_575, %c0_576], %1041 {strides = array<i32>} : memref<2x7x128xf32, #tpu.memory_space<vmem>>, vector<1x1x128xf32>,
    %1042 = vector.extract_strided_slice %1005 {offsets = [12, 0], sizes = [1, 128], strides = [1, 1]} : vector<14x128xf32> to vector<1x128xf32>
    %1043 = vector.extract_strided_slice %1005 {offsets = [13, 0], sizes = [1, 128], strides = [1, 1]} : vector<14x128xf32> to vector<1x128xf32>
    %1044 = arith.maximumf %1042, %1043 : vector<1x128xf32>
    %c1_577 = arith.constant 1 : index
    %c6_578 = arith.constant 6 : index
    %c0_579 = arith.constant 0 : index
    %1045 = vector.load %arg28[%c1_577, %c6_578, %c0_579] : memref<2x7x128xf32, #tpu.memory_space<vmem>>, vector<1x1x128xf32>
    %1046 = vector.shape_cast %1045 : vector<1x1x128xf32> to vector<1x128xf32>
    %1047 = vector.shape_cast %1044 : vector<1x128xf32> to vector<1x1x128xf32>
    tpu.vector_store %arg28[%c1_577, %c6_578, %c0_579], %1047 {strides = array<i32>} : memref<2x7x128xf32, #tpu.memory_space<vmem>>, vector<1x1x128xf32>,
    %cst_580 = arith.constant 0.000000e+00 : f32
    %1048 = vector.broadcast %cst_580 : f32 to vector<2x64xf32>
    %c0_581 = arith.constant 0 : index
    %c0_582 = arith.constant 0 : index
    %c0_583 = arith.constant 0 : index
    %1049 = vector.load %arg28[%c0_581, %c0_582, %c0_583] : memref<2x7x128xf32, #tpu.memory_space<vmem>>, vector<2x1x128xf32>
    %1050 = vector.shape_cast %1049 : vector<2x1x128xf32> to vector<2x128xf32>
    %1051 = arith.truncf %1050 : vector<2x128xf32> to vector<2x128xbf16>
    %c0_584 = arith.constant 0 : index
    %c0_585 = arith.constant 0 : index
    %c0_586 = arith.constant 0 : index
    %1052 = vector.load %arg17[%c0_584, %c0_585, %c0_586] : memref<7x128x64xbf16, #tpu.memory_space<vmem>>, vector<1x128x64xbf16>
    %1053 = vector.shape_cast %1052 : vector<1x128x64xbf16> to vector<128x64xbf16>
    %cst_587 = arith.constant dense<0.000000e+00> : vector<2x64xf32>
    %1054 = tpu.matmul %1051, %1053, %cst_587 {dimension_numbers = #tpu.dot_dimension_numbers<[1], [0], [0], [1], [0, 0, 1, 1], [], []>} : vector<2x128xbf16>, vector<128x64xbf16>, vector<2x64xf32> -> vector<2x64xf32>
    %1055 = arith.addf %1048, %1054 : vector<2x64xf32>
    %c0_588 = arith.constant 0 : index
    %c1_589 = arith.constant 1 : index
    %c0_590 = arith.constant 0 : index
    %1056 = vector.load %arg28[%c0_588, %c1_589, %c0_590] : memref<2x7x128xf32, #tpu.memory_space<vmem>>, vector<2x1x128xf32>
    %1057 = vector.shape_cast %1056 : vector<2x1x128xf32> to vector<2x128xf32>
    %1058 = arith.truncf %1057 : vector<2x128xf32> to vector<2x128xbf16>
    %c1_591 = arith.constant 1 : index
    %c0_592 = arith.constant 0 : index
    %c0_593 = arith.constant 0 : index
    %1059 = vector.load %arg17[%c1_591, %c0_592, %c0_593] : memref<7x128x64xbf16, #tpu.memory_space<vmem>>, vector<1x128x64xbf16>
    %1060 = vector.shape_cast %1059 : vector<1x128x64xbf16> to vector<128x64xbf16>
    %cst_594 = arith.constant dense<0.000000e+00> : vector<2x64xf32>
    %1061 = tpu.matmul %1058, %1060, %cst_594 {dimension_numbers = #tpu.dot_dimension_numbers<[1], [0], [0], [1], [0, 0, 1, 1], [], []>} : vector<2x128xbf16>, vector<128x64xbf16>, vector<2x64xf32> -> vector<2x64xf32>
    %1062 = arith.addf %1055, %1061 : vector<2x64xf32>
    %c0_595 = arith.constant 0 : index
    %c2_596 = arith.constant 2 : index
    %c0_597 = arith.constant 0 : index
    %1063 = vector.load %arg28[%c0_595, %c2_596, %c0_597] : memref<2x7x128xf32, #tpu.memory_space<vmem>>, vector<2x1x128xf32>
    %1064 = vector.shape_cast %1063 : vector<2x1x128xf32> to vector<2x128xf32>
    %1065 = arith.truncf %1064 : vector<2x128xf32> to vector<2x128xbf16>
    %c2_598 = arith.constant 2 : index
    %c0_599 = arith.constant 0 : index
    %c0_600 = arith.constant 0 : index
    %1066 = vector.load %arg17[%c2_598, %c0_599, %c0_600] : memref<7x128x64xbf16, #tpu.memory_space<vmem>>, vector<1x128x64xbf16>
    %1067 = vector.shape_cast %1066 : vector<1x128x64xbf16> to vector<128x64xbf16>
    %cst_601 = arith.constant dense<0.000000e+00> : vector<2x64xf32>
    %1068 = tpu.matmul %1065, %1067, %cst_601 {dimension_numbers = #tpu.dot_dimension_numbers<[1], [0], [0], [1], [0, 0, 1, 1], [], []>} : vector<2x128xbf16>, vector<128x64xbf16>, vector<2x64xf32> -> vector<2x64xf32>
    %1069 = arith.addf %1062, %1068 : vector<2x64xf32>
    %c0_602 = arith.constant 0 : index
    %c3_603 = arith.constant 3 : index
    %c0_604 = arith.constant 0 : index
    %1070 = vector.load %arg28[%c0_602, %c3_603, %c0_604] : memref<2x7x128xf32, #tpu.memory_space<vmem>>, vector<2x1x128xf32>
    %1071 = vector.shape_cast %1070 : vector<2x1x128xf32> to vector<2x128xf32>
    %1072 = arith.truncf %1071 : vector<2x128xf32> to vector<2x128xbf16>
    %c3_605 = arith.constant 3 : index
    %c0_606 = arith.constant 0 : index
    %c0_607 = arith.constant 0 : index
    %1073 = vector.load %arg17[%c3_605, %c0_606, %c0_607] : memref<7x128x64xbf16, #tpu.memory_space<vmem>>, vector<1x128x64xbf16>
    %1074 = vector.shape_cast %1073 : vector<1x128x64xbf16> to vector<128x64xbf16>
    %cst_608 = arith.constant dense<0.000000e+00> : vector<2x64xf32>
    %1075 = tpu.matmul %1072, %1074, %cst_608 {dimension_numbers = #tpu.dot_dimension_numbers<[1], [0], [0], [1], [0, 0, 1, 1], [], []>} : vector<2x128xbf16>, vector<128x64xbf16>, vector<2x64xf32> -> vector<2x64xf32>
    %1076 = arith.addf %1069, %1075 : vector<2x64xf32>
    %c0_609 = arith.constant 0 : index
    %c4_610 = arith.constant 4 : index
    %c0_611 = arith.constant 0 : index
    %1077 = vector.load %arg28[%c0_609, %c4_610, %c0_611] : memref<2x7x128xf32, #tpu.memory_space<vmem>>, vector<2x1x128xf32>
    %1078 = vector.shape_cast %1077 : vector<2x1x128xf32> to vector<2x128xf32>
    %1079 = arith.truncf %1078 : vector<2x128xf32> to vector<2x128xbf16>
    %c4_612 = arith.constant 4 : index
    %c0_613 = arith.constant 0 : index
    %c0_614 = arith.constant 0 : index
    %1080 = vector.load %arg17[%c4_612, %c0_613, %c0_614] : memref<7x128x64xbf16, #tpu.memory_space<vmem>>, vector<1x128x64xbf16>
    %1081 = vector.shape_cast %1080 : vector<1x128x64xbf16> to vector<128x64xbf16>
    %cst_615 = arith.constant dense<0.000000e+00> : vector<2x64xf32>
    %1082 = tpu.matmul %1079, %1081, %cst_615 {dimension_numbers = #tpu.dot_dimension_numbers<[1], [0], [0], [1], [0, 0, 1, 1], [], []>} : vector<2x128xbf16>, vector<128x64xbf16>, vector<2x64xf32> -> vector<2x64xf32>
    %1083 = arith.addf %1076, %1082 : vector<2x64xf32>
    %c0_616 = arith.constant 0 : index
    %c5_617 = arith.constant 5 : index
    %c0_618 = arith.constant 0 : index
    %1084 = vector.load %arg28[%c0_616, %c5_617, %c0_618] : memref<2x7x128xf32, #tpu.memory_space<vmem>>, vector<2x1x128xf32>
    %1085 = vector.shape_cast %1084 : vector<2x1x128xf32> to vector<2x128xf32>
    %1086 = arith.truncf %1085 : vector<2x128xf32> to vector<2x128xbf16>
    %c5_619 = arith.constant 5 : index
    %c0_620 = arith.constant 0 : index
    %c0_621 = arith.constant 0 : index
    %1087 = vector.load %arg17[%c5_619, %c0_620, %c0_621] : memref<7x128x64xbf16, #tpu.memory_space<vmem>>, vector<1x128x64xbf16>
    %1088 = vector.shape_cast %1087 : vector<1x128x64xbf16> to vector<128x64xbf16>
    %cst_622 = arith.constant dense<0.000000e+00> : vector<2x64xf32>
    %1089 = tpu.matmul %1086, %1088, %cst_622 {dimension_numbers = #tpu.dot_dimension_numbers<[1], [0], [0], [1], [0, 0, 1, 1], [], []>} : vector<2x128xbf16>, vector<128x64xbf16>, vector<2x64xf32> -> vector<2x64xf32>
    %1090 = arith.addf %1083, %1089 : vector<2x64xf32>
    %c0_623 = arith.constant 0 : index
    %c6_624 = arith.constant 6 : index
    %c0_625 = arith.constant 0 : index
    %1091 = vector.load %arg28[%c0_623, %c6_624, %c0_625] : memref<2x7x128xf32, #tpu.memory_space<vmem>>, vector<2x1x128xf32>
    %1092 = vector.shape_cast %1091 : vector<2x1x128xf32> to vector<2x128xf32>
    %1093 = arith.truncf %1092 : vector<2x128xf32> to vector<2x128xbf16>
    %c6_626 = arith.constant 6 : index
    %c0_627 = arith.constant 0 : index
    %c0_628 = arith.constant 0 : index
    %1094 = vector.load %arg17[%c6_626, %c0_627, %c0_628] : memref<7x128x64xbf16, #tpu.memory_space<vmem>>, vector<1x128x64xbf16>
    %1095 = vector.shape_cast %1094 : vector<1x128x64xbf16> to vector<128x64xbf16>
    %cst_629 = arith.constant dense<0.000000e+00> : vector<2x64xf32>
    %1096 = tpu.matmul %1093, %1095, %cst_629 {dimension_numbers = #tpu.dot_dimension_numbers<[1], [0], [0], [1], [0, 0, 1, 1], [], []>} : vector<2x128xbf16>, vector<128x64xbf16>, vector<2x64xf32> -> vector<2x64xf32>
    %1097 = arith.addf %1090, %1096 : vector<2x64xf32>
    %c0_630 = arith.constant 0 : index
    %c0_631 = arith.constant 0 : index
    %1098 = vector.load %arg18[%c0_630, %c0_631] : memref<1x64xf32, #tpu.memory_space<vmem>>, vector<1x64xf32>
    %1099 = vector.broadcast %1098 : vector<1x64xf32> to vector<2x64xf32>
    %1100 = arith.addf %1097, %1099 : vector<2x64xf32>
    %cst_632 = arith.constant 0.000000e+00 : f32
    %1101 = vector.broadcast %cst_632 : f32 to vector<2x64xf32>
    %1102 = arith.maximumf %1100, %1101 : vector<2x64xf32>
    %1103 = arith.truncf %1102 : vector<2x64xf32> to vector<2x64xbf16>
    %c0_633 = arith.constant 0 : index
    %c0_634 = arith.constant 0 : index
    %1104 = vector.load %arg19[%c0_633, %c0_634] : memref<64x32xbf16, #tpu.memory_space<vmem>>, vector<64x32xbf16>
    %cst_635 = arith.constant dense<0.000000e+00> : vector<2x32xf32>
    %1105 = tpu.matmul %1103, %1104, %cst_635 {dimension_numbers = #tpu.dot_dimension_numbers<[1], [0], [0], [1], [0, 0, 1, 1], [], []>} : vector<2x64xbf16>, vector<64x32xbf16>, vector<2x32xf32> -> vector<2x32xf32>
    %c0_636 = arith.constant 0 : index
    %c0_637 = arith.constant 0 : index
    %1106 = vector.load %arg20[%c0_636, %c0_637] : memref<1x32xf32, #tpu.memory_space<vmem>>, vector<1x32xf32>
    %1107 = vector.broadcast %1106 : vector<1x32xf32> to vector<2x32xf32>
    %1108 = arith.addf %1105, %1107 : vector<2x32xf32>
    %cst_638 = arith.constant 0.000000e+00 : f32
    %1109 = vector.broadcast %cst_638 : f32 to vector<2x32xf32>
    %1110 = arith.maximumf %1108, %1109 : vector<2x32xf32>
    %1111 = arith.truncf %1110 : vector<2x32xf32> to vector<2x32xbf16>
    %c0_639 = arith.constant 0 : index
    %c0_640 = arith.constant 0 : index
    %1112 = vector.load %arg21[%c0_639, %c0_640] : memref<32x10xbf16, #tpu.memory_space<vmem>>, vector<32x10xbf16>
    %cst_641 = arith.constant dense<0.000000e+00> : vector<2x10xf32>
    %1113 = tpu.matmul %1111, %1112, %cst_641 {dimension_numbers = #tpu.dot_dimension_numbers<[1], [0], [0], [1], [0, 0, 1, 1], [], []>} : vector<2x32xbf16>, vector<32x10xbf16>, vector<2x10xf32> -> vector<2x10xf32>
    %c0_642 = arith.constant 0 : index
    %c0_643 = arith.constant 0 : index
    %1114 = vector.load %arg22[%c0_642, %c0_643] : memref<1x10xf32, #tpu.memory_space<vmem>>, vector<1x10xf32>
    %1115 = vector.broadcast %1114 : vector<1x10xf32> to vector<2x10xf32>
    %1116 = arith.addf %1113, %1115 : vector<2x10xf32>
    %c0_644 = arith.constant 0 : index
    %c0_645 = arith.constant 0 : index
    %1117 = vector.load %arg23[%c0_644, %c0_645] : memref<2x10xf32, #tpu.memory_space<vmem>>, vector<2x10xf32>
    tpu.vector_store %arg23[%c0_644, %c0_645], %1116 {strides = array<i32>} : memref<2x10xf32, #tpu.memory_space<vmem>>, vector<2x10xf32>,
    return
  }
  func.func @transform_0(%arg0: i32) -> (i32, i32, i32) {
    %c0_i32 = arith.constant 0 : i32
    %c0_i32_0 = arith.constant 0 : i32
    %c0_i32_1 = arith.constant 0 : i32
    %c0_i32_2 = arith.constant 0 : i32
    return %c0_i32, %c0_i32_0, %c0_i32_1 : i32, i32, i32
  }
  func.func @transform_1(%arg0: i32) -> (i32, i32, i32) {
    %c0_i32 = arith.constant 0 : i32
    %c0_i32_0 = arith.constant 0 : i32
    %c0_i32_1 = arith.constant 0 : i32
    %c0_i32_2 = arith.constant 0 : i32
    return %c0_i32, %c0_i32_0, %c0_i32_1 : i32, i32, i32
  }
  func.func @transform_2(%arg0: i32) -> (i32, i32) {
    %c0_i32 = arith.constant 0 : i32
    %c0_i32_0 = arith.constant 0 : i32
    %c0_i32_1 = arith.constant 0 : i32
    return %c0_i32, %c0_i32_0 : i32, i32
  }
  func.func @transform_3(%arg0: i32) -> (i32, i32) {
    %c0_i32 = arith.constant 0 : i32
    %c0_i32_0 = arith.constant 0 : i32
    %c0_i32_1 = arith.constant 0 : i32
    return %c0_i32, %c0_i32_0 : i32, i32
  }
  func.func @transform_4(%arg0: i32) -> (i32, i32, i32) {
    %c0_i32 = arith.constant 0 : i32
    %c0_i32_0 = arith.constant 0 : i32
    %c0_i32_1 = arith.constant 0 : i32
    %c0_i32_2 = arith.constant 0 : i32
    return %c0_i32, %c0_i32_0, %c0_i32_1 : i32, i32, i32
  }
  func.func @transform_5(%arg0: i32) -> (i32, i32) {
    %c0_i32 = arith.constant 0 : i32
    %c0_i32_0 = arith.constant 0 : i32
    %c0_i32_1 = arith.constant 0 : i32
    return %c0_i32, %c0_i32_0 : i32, i32
  }
  func.func @transform_6(%arg0: i32) -> (i32, i32) {
    %c0_i32 = arith.constant 0 : i32
    %c0_i32_0 = arith.constant 0 : i32
    %c0_i32_1 = arith.constant 0 : i32
    return %c0_i32, %c0_i32_0 : i32, i32
  }
  func.func @transform_7(%arg0: i32) -> (i32, i32, i32) {
    %c0_i32 = arith.constant 0 : i32
    %c0_i32_0 = arith.constant 0 : i32
    %c0_i32_1 = arith.constant 0 : i32
    %c0_i32_2 = arith.constant 0 : i32
    return %c0_i32, %c0_i32_0, %c0_i32_1 : i32, i32, i32
  }
  func.func @transform_8(%arg0: i32) -> (i32, i32) {
    %c0_i32 = arith.constant 0 : i32
    %c0_i32_0 = arith.constant 0 : i32
    %c0_i32_1 = arith.constant 0 : i32
    return %c0_i32, %c0_i32_0 : i32, i32
  }
  func.func @transform_9(%arg0: i32) -> (i32, i32) {
    %c0_i32 = arith.constant 0 : i32
    %c0_i32_0 = arith.constant 0 : i32
    %c0_i32_1 = arith.constant 0 : i32
    return %c0_i32, %c0_i32_0 : i32, i32
  }
  func.func @transform_10(%arg0: i32) -> (i32, i32, i32) {
    %c0_i32 = arith.constant 0 : i32
    %c0_i32_0 = arith.constant 0 : i32
    %c0_i32_1 = arith.constant 0 : i32
    %c0_i32_2 = arith.constant 0 : i32
    return %c0_i32, %c0_i32_0, %c0_i32_1 : i32, i32, i32
  }
  func.func @transform_11(%arg0: i32) -> (i32, i32) {
    %c0_i32 = arith.constant 0 : i32
    %c0_i32_0 = arith.constant 0 : i32
    %c0_i32_1 = arith.constant 0 : i32
    return %c0_i32, %c0_i32_0 : i32, i32
  }
  func.func @transform_12(%arg0: i32) -> (i32, i32) {
    %c0_i32 = arith.constant 0 : i32
    %c0_i32_0 = arith.constant 0 : i32
    %c0_i32_1 = arith.constant 0 : i32
    return %c0_i32, %c0_i32_0 : i32, i32
  }
  func.func @transform_13(%arg0: i32) -> (i32, i32, i32) {
    %c0_i32 = arith.constant 0 : i32
    %c0_i32_0 = arith.constant 0 : i32
    %c0_i32_1 = arith.constant 0 : i32
    %c0_i32_2 = arith.constant 0 : i32
    return %c0_i32, %c0_i32_0, %c0_i32_1 : i32, i32, i32
  }
  func.func @transform_14(%arg0: i32) -> (i32, i32) {
    %c0_i32 = arith.constant 0 : i32
    %c0_i32_0 = arith.constant 0 : i32
    %c0_i32_1 = arith.constant 0 : i32
    return %c0_i32, %c0_i32_0 : i32, i32
  }
  func.func @transform_15(%arg0: i32) -> (i32, i32) {
    %c0_i32 = arith.constant 0 : i32
    %c0_i32_0 = arith.constant 0 : i32
    %c0_i32_1 = arith.constant 0 : i32
    return %c0_i32, %c0_i32_0 : i32, i32
  }
  func.func @transform_16(%arg0: i32) -> (i32, i32, i32) {
    %c0_i32 = arith.constant 0 : i32
    %c0_i32_0 = arith.constant 0 : i32
    %c0_i32_1 = arith.constant 0 : i32
    %c0_i32_2 = arith.constant 0 : i32
    return %c0_i32, %c0_i32_0, %c0_i32_1 : i32, i32, i32
  }
  func.func @transform_17(%arg0: i32) -> (i32, i32) {
    %c0_i32 = arith.constant 0 : i32
    %c0_i32_0 = arith.constant 0 : i32
    %c0_i32_1 = arith.constant 0 : i32
    return %c0_i32, %c0_i32_0 : i32, i32
  }
  func.func @transform_18(%arg0: i32) -> (i32, i32) {
    %c0_i32 = arith.constant 0 : i32
    %c0_i32_0 = arith.constant 0 : i32
    %c0_i32_1 = arith.constant 0 : i32
    return %c0_i32, %c0_i32_0 : i32, i32
  }
  func.func @transform_19(%arg0: i32) -> (i32, i32) {
    %c0_i32 = arith.constant 0 : i32
    %c0_i32_0 = arith.constant 0 : i32
    %c0_i32_1 = arith.constant 0 : i32
    return %c0_i32, %c0_i32_0 : i32, i32
  }
  func.func @transform_20(%arg0: i32) -> (i32, i32) {
    %c0_i32 = arith.constant 0 : i32
    %c0_i32_0 = arith.constant 0 : i32
    %c0_i32_1 = arith.constant 0 : i32
    return %c0_i32, %c0_i32_0 : i32, i32
  }
  func.func @transform_21(%arg0: i32) -> (i32, i32) {
    %c0_i32 = arith.constant 0 : i32
    %c0_i32_0 = arith.constant 0 : i32
    %c0_i32_1 = arith.constant 0 : i32
    return %c0_i32, %c0_i32_0 : i32, i32
  }
  func.func @transform_22(%arg0: i32) -> (i32, i32) {
    %c0_i32 = arith.constant 0 : i32
    %c0_i32_0 = arith.constant 0 : i32
    %c0_i32_1 = arith.constant 0 : i32
    return %c0_i32, %c0_i32_0 : i32, i32
  }
}

</mosaic_0001>

<bundles_post_ra>
// kernel: net_forward.1
= control target key start
LH: loop header
LB: loop body
LE: loop exit
PB: predicated region body
PF: predicated region fallthrough
CT: control target
= control target key end

     0   :  { %s7624_s0 = inlined_call_operand.vmem [shape: f32[2,64,16], index: 0, kind: input, shape index: {}]   ;;  %s7625_s1 = inlined_call_operand.vmem [shape: bf16[3,16,64], index: 1, kind: input, shape index: {}]   ;;  %s7626_s2 = inlined_call_operand.vmem [shape: f32[1,64], index: 2, kind: input, shape index: {}]   ;;  %s7627_s3 = inlined_call_operand.vmem [shape: f32[1,64], index: 3, kind: input, shape index: {}]   ;;  %s7628_s4 = inlined_call_operand.vmem [shape: bf16[3,64,64], index: 4, kind: input, shape index: {}]   ;;  %s7629_s5 = inlined_call_operand.vmem [shape: f32[1,64], index: 5, kind: input, shape index: {}]   ;;  %s7630_s6 = inlined_call_operand.vmem [shape: f32[1,64], index: 6, kind: input, shape index: {}]   ;;  %s7631_s7 = inlined_call_operand.vmem [shape: bf16[3,64,64], index: 7, kind: input, shape index: {}]   ;;  %s7632_s8 = inlined_call_operand.vmem [shape: f32[1,64], index: 8, kind: input, shape index: {}]   ;;  %s7633_s9 = inlined_call_operand.vmem [shape: f32[1,64], index: 9, kind: input, shape index: {}]   ;;  %s7634_s10 = inlined_call_operand.vmem [shape: bf16[3,64,128], index: 10, kind: input, shape index: {}]   ;;  %s7635_s11 = inlined_call_operand.vmem [shape: f32[1,128], index: 11, kind: input, shape index: {}]   ;;  %s7636_s12 = inlined_call_operand.vmem [shape: f32[1,128], index: 12, kind: input, shape index: {}]   ;;  %s7637_s13 = inlined_call_operand.vmem [shape: bf16[3,128,128], index: 13, kind: input, shape index: {}]   ;;  %s7638_s14 = inlined_call_operand.vmem [shape: f32[1,128], index: 14, kind: input, shape index: {}]   ;;  %s7639_s15 = inlined_call_operand.vmem [shape: f32[1,128], index: 15, kind: input, shape index: {}]   ;;  %s7640_s16 = inlined_call_operand.vmem [shape: bf16[7,128,64], index: 16, kind: input, shape index: {}]   ;;  %s7641_s17 = inlined_call_operand.vmem [shape: f32[1,64], index: 17, kind: input, shape index: {}]   ;;  %s7642_s18 = inlined_call_operand.vmem [shape: bf16[64,32], index: 18, kind: input, shape index: {}]   ;;  %s7643_s19 = inlined_call_operand.vmem [shape: f32[1,32], index: 19, kind: input, shape index: {}]   ;;  %s7644_s20 = inlined_call_operand.vmem [shape: bf16[32,10], index: 20, kind: input, shape index: {}]   ;;  %s7645_s21 = inlined_call_operand.vmem [shape: f32[1,10], index: 21, kind: input, shape index: {}]   ;;  %s7646_s22 = inlined_call_operand.hbm [shape: f32[2,10], index: 22, kind: output, shape index: {}]  }
   0x1   :  { %7650 = sst [smem:[#allocation10_spill]] %s7624_s0 }
   0x2   :  { %7651 = sst [smem:[#allocation11_spill]] %s7625_s1 }
   0x3   :  { %7652 = sst [smem:[#allocation12_spill]] %s7626_s2 }
   0x4   :  { %7653 = sst [smem:[#allocation13_spill]] %s7627_s3 }
   0x5   :  { %7654 = sst [smem:[#allocation14_spill]] %s7628_s4 }
   0x6   :  { %7655 = sst [smem:[#allocation15_spill]] %s7629_s5 }
   0x7   :  { %7656 = sst [smem:[#allocation16_spill]] %s7630_s6 }
   0x8   :  { %s7657_s29 = sld [smem:[#allocation11_spill]]  ;;  %vm117_vm0 = vcmask 130048  }
   0x9   :  { %s7658_s1 = sld [smem:[#allocation10_spill]] }
   0xe   :  { %v5758_v0 = vld [vmem:[%s7657_s29 + $0x8] sm:$0xff]   ;;  %v6039_v1 = vld [vmem:[%s7657_s29] sm:$0xff]   ;;  %v5760_v14 = vld [vmem:[%s7657_s29 + $0x10] sm:$0xff]  }
   0xf   :  { %5175 = vmatprep.subr.bf16.mxu0 %v5758_v0  ;;  %v96_v2 = vld [vmem:[%s7658_s1 + $0x1] sm:$0xff]  ;;  %v97_v3 = vld [vmem:[%s7658_s1 + $0x9] sm:$0xff]  ;;  %5185 = vmatprep.subr.bf16.mxu1 %v6039_v1  ;;  %v98_v7 = vld [vmem:[%s7658_s1 + $0x11] sm:$0xff] }
  0x10   :  { %v82_v4 = vld [vmem:[%s7658_s1] sm:$0xff]  ;;  %5176 = vmatpush3.bf16.msra.mxu0 %v5758_v0  ;;  %v104_v5 = vpack.c.bf16 %v97_v3, %v96_v2  ;;  %v83_v6 = vld [vmem:[%s7658_s1 + $0x8] sm:$0xff]  ;;  %5186 = vmatpush3.bf16.msra.mxu1 %v6039_v1  ;;  %v84_v11 = vld [vmem:[%s7658_s1 + $0x10] sm:$0xff] }
  0x11   :  { %v99_v8 = vld [vmem:[%s7658_s1 + $0x19] sm:$0xff]  ;;  %v90_v9 = vpack.c.bf16 %v83_v6, %v82_v4  ;;  %5205 = vmatprep.subr.bf16.mxu1 %v5758_v0  ;;  %v100_v15 = vld [vmem:[%s7658_s1 + $0x21] sm:$0xff]  ;;  %v101_v16 = vld [vmem:[%s7658_s1 + $0x29] sm:$0xff]  ;;  %5195 = vmatprep.subr.bf16.mxu0 %v5760_v14 }
  0x12   :  { %v105_v10 = vpack.c.bf16 %v99_v8, %v98_v7  ;;  %v85_v12 = vld [vmem:[%s7658_s1 + $0x18] sm:$0xff]  ;;  %5177 = vmatprep.mubr.msk.bf16.mxu0 %vm117_vm0, %v104_v5  ;;  %v86_v17 = vld [vmem:[%s7658_s1 + $0x20] sm:$0xff]  ;;  %v87_v18 = vld [vmem:[%s7658_s1 + $0x28] sm:$0xff]  ;;  %v106_v19 = vpack.c.bf16 %v101_v16, %v100_v15 }
  0x13   :  { %v91_v13 = vpack.c.bf16 %v85_v12, %v84_v11  ;;  %5187 = vmatprep.mubr.msk.bf16.mxu1 %vm117_vm0, %v90_v9  ;;  %v92_v20 = vpack.c.bf16 %v87_v18, %v86_v17  ;;  %v102_v21 = vld [vmem:[%s7658_s1 + $0x31] sm:$0xff]  ;;  %v103_v22 = vld [vmem:[%s7658_s1 + $0x39] sm:$0x3f]  ;;  %v278_v25 = vld [vmem:[%s7658_s1 + $0x2] sm:$0xff] }
  0x14   :  { %5178 = vmatmul.mubr.msk.bf16.vlgmr.msra.gmra.mxu0 %vm117_vm0, %v105_v10  ;;  %v88_v23 = vld [vmem:[%s7658_s1 + $0x30] sm:$0xff]  ;;  %v89_v24 = vld [vmem:[%s7658_s1 + $0x38] sm:$0x3f]  ;;  %v4533_v27 = vld [vmem:[%s7658_s1 + $0x41] sm:$0xff]  ;;  %v107_v29 = vpack.c.bf16 %v103_v22, %v102_v21 }
  0x15   :  { %5188 = vmatmul.mubr.msk.bf16.vlgmr.msra.gmra.mxu1 %vm117_vm0, %v91_v13  ;;  %5196 = vmatpush3.bf16.msra.mxu0 %v5760_v14  ;;  %v279_v26 = vld [vmem:[%s7658_s1 + $0xa] sm:$0xff]  ;;  %v93_v30 = vpack.c.bf16 %v89_v24, %v88_v23  ;;  %v280_v33 = vld [vmem:[%s7658_s1 + $0x12] sm:$0xff]  ;;  %v281_v34 = vld [vmem:[%s7658_s1 + $0x1a] sm:$0xff] }
  0x16   :  { %5206 = vmatpush3.bf16.msra.mxu1 %v5758_v0  ;;  %5181 = vmatprep.mubr.msk.bf16.mxu0 %vm117_vm0, %v106_v19  ;;  %v4534_v28 = vld [vmem:[%s7658_s1 + $0x49] sm:$0xff]  ;;  %v286_v31 = vpack.c.bf16 %v279_v26, %v278_v25  ;;  %v4535_v35 = vld [vmem:[%s7658_s1 + $0x51] sm:$0xff]  ;;  %v4536_v36 = vld [vmem:[%s7658_s1 + $0x59] sm:$0xff]  ;;  %v287_v39 = vpack.c.bf16 %v281_v34, %v280_v33 }
  0x17   :  { %5191 = vmatprep.mubr.msk.bf16.mxu1 %vm117_vm0, %v92_v20  ;;  %5215 = vmatprep.subr.bf16.mxu0 %v6039_v1  ;;  %v405_v32 = vpack.c.bf16 %v4534_v28, %v4533_v27  ;;  %v282_v37 = vld [vmem:[%s7658_s1 + $0x22] sm:$0xff]  ;;  %v283_v38 = vld [vmem:[%s7658_s1 + $0x2a] sm:$0xff]  ;;  %v406_v42 = vpack.c.bf16 %v4536_v36, %v4535_v35  ;;  %v284_v45 = vld [vmem:[%s7658_s1 + $0x32] sm:$0xff] }
  0x18   :  { %5225 = vmatprep.subr.bf16.mxu1 %v5760_v14  ;;  %v4537_v40 = vld [vmem:[%s7658_s1 + $0x61] sm:$0xff]  ;;  %v4538_v41 = vld [vmem:[%s7658_s1 + $0x69] sm:$0xff]  ;;  %v288_v43 = vpack.c.bf16 %v283_v38, %v282_v37  ;;  %v285_v46 = vld [vmem:[%s7658_s1 + $0x3a] sm:$0x3f] }
  0x19   :  { %v407_v44 = vpack.c.bf16 %v4538_v41, %v4537_v40  ;;  %v4539_v47 = vld [vmem:[%s7658_s1 + $0x71] sm:$0xff]  ;;  %v4540_v48 = vld [vmem:[%s7658_s1 + $0x79] sm:$0x3f]  ;;  %v4525_v49 = vld [vmem:[%s7658_s1 + $0x40] sm:$0xff]  ;;  %v289_v53 = vpack.c.bf16 %v285_v46, %v284_v45 }
  0x1a   :  { %v4526_v50 = vld [vmem:[%s7658_s1 + $0x48] sm:$0xff]  ;;  %v408_v54 = vpack.c.bf16 %v4540_v48, %v4539_v47  ;;  %v4527_v57 = vld [vmem:[%s7658_s1 + $0x50] sm:$0xff]  ;;  %v4528_v58 = vld [vmem:[%s7658_s1 + $0x58] sm:$0xff] }
  0x1b   :  { %v4549_v51 = vld [vmem:[%s7658_s1 + $0x42] sm:$0xff]  ;;  %v4550_v52 = vld [vmem:[%s7658_s1 + $0x4a] sm:$0xff]  ;;  %v393_v55 = vpack.c.bf16 %v4526_v50, %v4525_v49  ;;  %v4551_v59 = vld [vmem:[%s7658_s1 + $0x52] sm:$0xff] }
  0x1c   :  { %5182 = vmatmul.mubr.msk.bf16.gmra.mxu0 %vm117_vm0, %v107_v29  ;;  %v571_v56 = vpack.c.bf16 %v4550_v52, %v4549_v51  ;;  %v4552_v60 = vld [vmem:[%s7658_s1 + $0x5a] sm:$0xff]  ;;  %v4530_v62 = vld [vmem:[%s7658_s1 + $0x68] sm:$0xff]  ;;  %v4531_v5 = vld [vmem:[%s7658_s1 + $0x70] sm:$0xff] }
  0x1d   :  { %5192 = vmatmul.mubr.msk.bf16.gmra.mxu1 %vm117_vm0, %v93_v30  ;;  %5197 = vmatprep.mubr.msk.bf16.mxu0 %vm117_vm0, %v286_v31  ;;  %v4529_v61 = vld [vmem:[%s7658_s1 + $0x60] sm:$0xff]  ;;  %v4554_v0 = vld [vmem:[%s7658_s1 + $0x6a] sm:$0xff]  ;;  %v572_v2 = vpack.c.bf16 %v4552_v60, %v4551_v59  ;;  %v4532_v6 = vld [vmem:[%s7658_s1 + $0x78] sm:$0x3f] }
  0x1e   :  { %5207 = vmatprep.mubr.msk.bf16.mxu1 %vm117_vm0, %v405_v32  ;;  %v4553_v63 = vld [vmem:[%s7658_s1 + $0x62] sm:$0xff]  ;;  %v395_v3 = vpack.c.bf16 %v4530_v62, %v4529_v61  ;;  %v4555_v7 = vld [vmem:[%s7658_s1 + $0x72] sm:$0xff]  ;;  %v4556_v8 = vld [vmem:[%s7658_s1 + $0x7a] sm:$0x3f]  ;;  %v396_v9 = vpack.c.bf16 %v4532_v6, %v4531_v5 }
  0x1f   :  { %v573_v4 = vpack.c.bf16 %v4554_v0, %v4553_v63  ;;  %v574_v10 = vpack.c.bf16 %v4556_v8, %v4555_v7 }
  0x24   :  { %5198 = vmatmul.mubr.msk.bf16.vlgmr.msra.gmra.mxu0 %vm117_vm0, %v287_v39 }
  0x25   :  { %5208 = vmatmul.mubr.msk.bf16.vlgmr.msra.gmra.mxu1 %vm117_vm0, %v406_v42  ;;  %5216 = vmatpush3.bf16.msra.mxu0 %v6039_v1  ;;  %v394_v1 = vpack.c.bf16 %v4528_v58, %v4527_v57 }
  0x26   :  { %5226 = vmatpush3.bf16.msra.mxu1 %v5760_v14  ;;  %5201 = vmatprep.mubr.msk.bf16.mxu0 %vm117_vm0, %v288_v43 }
  0x27   :  { %5211 = vmatprep.mubr.msk.bf16.mxu1 %vm117_vm0, %v407_v44 }
  0x2c   :  { %5202 = vmatmul.mubr.msk.bf16.gmra.mxu0 %vm117_vm0, %v289_v53 }
  0x2d   :  { %5212 = vmatmul.mubr.msk.bf16.gmra.mxu1 %vm117_vm0, %v408_v54  ;;  %5217 = vmatprep.mubr.msk.bf16.mxu0 %vm117_vm0, %v393_v55 }
  0x2e   :  { %5227 = vmatprep.mubr.msk.bf16.mxu1 %vm117_vm0, %v571_v56 }
  0x34   :  { %5218 = vmatmul.mubr.msk.bf16.vlgmr.msra.gmra.mxu0 %vm117_vm0, %v394_v1 }
  0x35   :  { %5228 = vmatmul.mubr.msk.bf16.vlgmr.msra.gmra.mxu1 %vm117_vm0, %v572_v2  ;;  %5221 = vmatprep.mubr.msk.bf16.mxu0 %vm117_vm0, %v395_v3 }
  0x36   :  { %5231 = vmatprep.mubr.msk.bf16.mxu1 %vm117_vm0, %v573_v4 }
  0x3c   :  { %5222 = vmatmul.mubr.msk.bf16.gmra.mxu0 %vm117_vm0, %v396_v9 }
  0x3d   :  { %5232 = vmatmul.mubr.msk.bf16.gmra.mxu1 %vm117_vm0, %v574_v10 }
  0x3e   :  { %27 = vsyncpa [#allocation8], 0  ;;  %s7659_s5 = sld [smem:[#allocation14_spill]]  ;;  %vm73_vm1 = vcmask 523264   ;;  %vm673_vm2 = vcmask 521216   ;;  %vm1525_vm3 = vcmask 519168  }
  0x3f   :  { %s7660_s2 = sld [smem:[#allocation12_spill]]  ;;  %vm1679_vm4 = vcmask 516096   ;;  %vm1681_vm5 = vcmask 518146   ;;  %vm1683_vm6 = vcmask 520196   ;;  %vm1685_vm7 = vcmask 522246  }
  0x40   :  { %s7661_s28 = sld [smem:[#allocation13_spill]]  ;;  %vm5916_vm8 = vmmov 0   ;;  %vm2859_vm9 = vcmask 1045504   ;;  %vm3551_vm10 = vcmask 1041409   ;;  %vm4446_vm11 = vcmask 261120  }
  0x41   :  { %vm4490_vm12 = vcmask 74752  }
  0x44   :  { %v6223_v23 = vld [vmem:[%s7659_s5 + $0x38] sm:$0xff]   ;;  %v6241_v29 = vld [vmem:[%s7659_s5 + $0x30] sm:$0xff]   ;;  %v6251_v32 = vld [vmem:[%s7659_s5 + $0x28] sm:$0xff]  }
  0x45   :  { %v6228_v24 = vld [vmem:[%s7659_s5 + $0x18] sm:$0xff]   ;;  %5235 = vmatprep.subr.bf16.mxu0 %v6223_v23  ;;  %v6246_v30 = vld [vmem:[%s7659_s5 + $0x10] sm:$0xff]   ;;  %v6256_v33 = vld [vmem:[%s7659_s5 + $0x8] sm:$0xff]  }
  0x46   :  { %5251 = vmatprep.subr.bf16.mxu1 %v6228_v24  ;;  %5236 = vmatpush3.bf16.msra.mxu0 %v6223_v23  ;;  %v6269_v38 = vld [vmem:[%s7659_s5 + $0x20] sm:$0xff]   ;;  %v6301_v61 = vld [vmem:[%s7659_s5 + $0x58] sm:$0xff]  }
  0x47   :  { %5252 = vmatpush3.bf16.msra.mxu1 %v6228_v24  ;;  %5237 = vmatprep.subr.bf16.mxu0 %v6241_v29  ;;  %v6274_v39 = vld [vmem:[%s7659_s5] sm:$0xff]  }
  0x48   :  { %5253 = vmatprep.subr.bf16.mxu1 %v6246_v30 }
  0x4a   :  { %5238 = vmatpush3.bf16.msra.mxu0 %v6241_v29 }
  0x4b   :  { %5254 = vmatpush3.bf16.msra.mxu1 %v6246_v30  ;;  %5239 = vmatprep.subr.bf16.mxu0 %v6251_v32 }
  0x4c   :  { %5255 = vmatprep.subr.bf16.mxu1 %v6256_v33 }
  0x4e   :  { %5240 = vmatpush3.bf16.msra.mxu0 %v6251_v32 }
  0x4f   :  { %5256 = vmatpush3.bf16.msra.mxu1 %v6256_v33  ;;  %5241 = vmatprep.subr.bf16.mxu0 %v6269_v38 }
  0x50   :  { %5257 = vmatprep.subr.bf16.mxu1 %v6274_v39 }
  0x52   :  { %5242 = vmatpush3.bf16.msra.mxu0 %v6269_v38 }
  0x53   :  { %5258 = vmatpush3.bf16.msra.mxu1 %v6274_v39  ;;  %5267 = vmatprep.subr.bf16.mxu0 %v6301_v61 }
  0x54   :  { %5283 = vmatprep.subr.bf16.mxu1 %v6223_v23 }
  0xd4   :  { %v5179_v11 = vpop.f32.mrf.mxu0 }
  0xd5   :  { %v5189_v12 = vpop.f32.mrf.mxu1 }
  0xd6   :  { %v164_v13 = vpop.f32.mrf.mxu0  ;;  %v256_v41 = vadd.f32 %v5189_v12, %v5179_v11 }
  0xd7   :  { %v247_v14 = vpop.f32.mrf.mxu1 }
  0xd8   :  { %v5180_v15 = vpop.f32.mrf.mxu0  ;;  %v248_v36 = vadd.f32 %v247_v14, %v164_v13 }
  0xd9   :  { %v5190_v16 = vpop.f32.mrf.mxu1 }
  0xda   :  { %v167_v17 = vpop.f32.mrf.mxu0  ;;  %v259_v46 = vadd.f32 %v5190_v16, %v5180_v15 }
  0xdb   :  { %v250_v18 = vpop.f32.mrf.mxu1 }
  0xdc   :  { %v6216_v19 = vpop.f32.mrf.mxu0  ;;  %v251_v42 = vadd.f32 %v250_v18, %v167_v17 }
  0xdd   :  { %v6218_v20 = vpop.f32.mrf.mxu1 }
  0xde   :  { %v180_v21 = vpop.f32.mrf.mxu0  ;;  %v272_v10 = vadd.f32 %v6218_v20, %v6216_v19 }
  0xdf   :  { %v263_v22 = vpop.f32.mrf.mxu1 }
  0xe0   :  { %v6230_v25 = vpop.f32.mrf.mxu0  ;;  %v264_v51 = vadd.f32 %v263_v22, %v180_v21 }
  0xe1   :  { %v6232_v26 = vpop.f32.mrf.mxu1 }
  0xe2   :  { %v183_v27 = vpop.f32.mrf.mxu0  ;;  %v275_v17 = vadd.f32 %v6232_v26, %v6230_v25 }
  0xe3   :  { %v266_v28 = vpop.f32.mrf.mxu1 }
  0xe4   :  { %v5199_v31 = vpop.f32.mrf.mxu0  ;;  %v267_v0 = vadd.f32 %v266_v28, %v183_v27 }
  0xe5   :  { %v6258_v34 = vpop.f32.mrf.mxu1  ;;  %v6280_v47 = vadd.f32 %v5199_v31, %v256_v41 }
  0xe6   :  { %v345_v35 = vpop.f32.mrf.mxu0 }
  0xe7   :  { %v455_v37 = vpop.f32.mrf.mxu1  ;;  %v6276_v43 = vadd.f32 %v345_v35, %v248_v36  ;;  %v663_v58 = vsel %vm73_vm1, %v6280_v47, 0.0 }
  0xe8   :  { %v5200_v40 = vpop.f32.mrf.mxu0 }
  0xe9   :  { %v5210_v44 = vpop.f32.mrf.mxu1  ;;  %v660_v52 = vsel %vm73_vm1, %v6276_v43, 0.0  ;;  %v6288_v53 = vadd.f32 %v5200_v40, %v259_v46 }
  0xea   :  { %v348_v45 = vpop.f32.mrf.mxu0 }
  0xeb   :  { %v6282_v48 = vadd.f32 %v348_v45, %v251_v42  ;;  %v458_v49 = vpop.f32.mrf.mxu1  ;;  %v665_v1 = vsel %vm73_vm1, %v6288_v53, 0.0 }
  0xec   :  { %v5203_v50 = vpop.f32.mrf.mxu0 }
  0xed   :  { %v661_v54 = vsel %vm73_vm1, %v6282_v48, 0.0  ;;  %v5213_v55 = vpop.f32.mrf.mxu1  ;;  %v6315_v14 = vadd.f32 %v5203_v50, %v272_v10 }
  0xee   :  { %v662_v56 = vadd.f32 %v661_v54, %v660_v52  ;;  %v361_v57 = vpop.f32.mrf.mxu0 }
  0xef   :  { %v6296_v59 = vadd.f32 %v361_v57, %v264_v51  ;;  %v471_v60 = vpop.f32.mrf.mxu1  ;;  %v671_v20 = vsel %vm73_vm1, %v6315_v14, 0.0 }
  0xf0   :  { %v664_v62 = vadd.f32 %v663_v58, %v662_v56  ;;  %v5204_v63 = vpop.f32.mrf.mxu0 }
  0xf1   :  { %v5214_v2 = vpop.f32.mrf.mxu1  ;;  %v667_v5 = vsel %vm73_vm1, %v6296_v59, 0.0  ;;  %v6320_v28 = vadd.f32 %v5204_v63, %v275_v17 }
  0xf2   :  { %v666_v3 = vadd.f32 %v665_v1, %v664_v62  ;;  %v364_v4 = vpop.f32.mrf.mxu0 }
  0xf3   :  { %v6309_v6 = vadd.f32 %v364_v4, %v267_v0  ;;  %v474_v7 = vpop.f32.mrf.mxu1  ;;  %v674_v42 = vsel %vm673_vm2, %v6320_v28, 0.0 }
  0xf4   :  { %v668_v8 = vadd.f32 %v667_v5, %v666_v3  ;;  %v5219_v9 = vpop.f32.mrf.mxu0 }
  0xf5   :  { %v669_v11 = vsel %vm73_vm1, %v6309_v6, 0.0  ;;  %v5229_v12 = vpop.f32.mrf.mxu1  ;;  %v541_v22 = vadd.f32 %v5219_v9, %v6258_v34 }
  0xf6   :  { %v532_v13 = vpop.f32.mrf.mxu0  ;;  %v670_v18 = vadd.f32 %v669_v11, %v668_v8 }
  0xf7   :  { %v533_v15 = vadd.f32 %v532_v13, %v455_v37  ;;  %v621_v16 = vpop.f32.mrf.mxu1  ;;  %v6326_v25 = vadd.f32 %v5229_v12, %v541_v22 }
  0xf8   :  { %v5220_v21 = vpop.f32.mrf.mxu0  ;;  %v672_v40 = vadd.f32 %v671_v20, %v670_v18 }
  0xf9   :  { %v5230_v27 = vpop.f32.mrf.mxu1  ;;  %v6324_v31 = vadd.f32 %v621_v16, %v533_v15  ;;  %v544_v35 = vadd.f32 %v5220_v21, %v5210_v44  ;;  %v685_v57 = vsel %vm73_vm1, %v6326_v25, 0.0 }
  0xfa   :  { %v535_v19 = vpop.f32.mrf.mxu0  ;;  %v675_v52 = vadd.f32 %v674_v42, %v672_v40 }
  0xfb   :  { %v536_v36 = vadd.f32 %v535_v19, %v458_v49  ;;  %v624_v37 = vpop.f32.mrf.mxu1  ;;  %v682_v46 = vsel %vm73_vm1, %v6324_v31, 0.0  ;;  %v6334_v50 = vadd.f32 %v5230_v27, %v544_v35 }
  0xfc   :  { %v5223_v41 = vpop.f32.mrf.mxu0  ;;  %v676_v8 = vrot.slane %v675_v52, 4 }
  0xfd   :  { %v6328_v26 = vadd.f32 %v624_v37, %v536_v36  ;;  %v5233_v34 = vpop.f32.mrf.mxu1  ;;  %v557_v58 = vadd.f32 %v5223_v41, %v5213_v55  ;;  %v687_v3 = vsel %vm73_vm1, %v6334_v50, 0.0 }
  0xfe   :  { %v548_v45 = vpop.f32.mrf.mxu0  ;;  %v677_v16 = vadd.f32 %v676_v8, %v675_v52 }
  0xff   :  { %v683_v44 = vsel %vm73_vm1, %v6328_v26, 0.0  ;;  %v549_v49 = vadd.f32 %v548_v45, %v471_v60  ;;  %v637_v51 = vpop.f32.mrf.mxu1  ;;  %v6344_v10 = vadd.f32 %v5233_v34, %v557_v58 }
 0x100   :  { %v684_v54 = vadd.f32 %v683_v44, %v682_v46  ;;  %v5224_v56 = vpop.f32.mrf.mxu0  ;;  %v678_v21 = vrot.slane %v677_v16, 2 }
 0x101   :  { %v6340_v62 = vadd.f32 %v637_v51, %v549_v49  ;;  %v5234_v63 = vpop.f32.mrf.mxu1  ;;  %v560_v4 = vadd.f32 %v5224_v56, %v5214_v2  ;;  %v693_v2 = vsel %vm73_vm1, %v6344_v10, 0.0 }
 0x102   :  { %v686_v0 = vadd.f32 %v685_v57, %v684_v54  ;;  %v551_v1 = vpop.f32.mrf.mxu0  ;;  %v679_v19 = vadd.f32 %v678_v21, %v677_v16 }
 0x103   :  { %v552_v5 = vadd.f32 %v551_v1, %v474_v7  ;;  %v640_v9 = vpop.f32.mrf.mxu1  ;;  %v689_v11 = vsel %vm73_vm1, %v6340_v62, 0.0  ;;  %v6350_v13 = vadd.f32 %v5234_v63, %v560_v4 }
 0x104   :  { %v688_v60 = vadd.f32 %v687_v3, %v686_v0  ;;  %v680_v36 = vrot.slane %v679_v19, 1 }
 0x105   :  { %v6348_v12 = vadd.f32 %v640_v9, %v552_v5  ;;  %v695_v18 = vsel %vm673_vm2, %v6350_v13, 0.0 }
 0x106   :  { %v690_v55 = vadd.f32 %v689_v11, %v688_v60  ;;  %v681_v41 = vadd.f32 %v680_v36, %v679_v19 }
 0x107   :  { %v691_v15 = vsel %vm73_vm1, %v6348_v12, 0.0 }
 0x108   :  { %v692_v17 = vadd.f32 %v691_v15, %v690_v55 }
 0x10a   :  { %v694_v7 = vadd.f32 %v693_v2, %v692_v17 }
 0x10c   :  { %v696_v22 = vadd.f32 %v695_v18, %v694_v7 }
 0x10e   :  { %v697_v27 = vrot.slane %v696_v22, 4 }
 0x110   :  { %v698_v20 = vadd.f32 %v697_v27, %v696_v22 }
 0x112   :  { %v699_v35 = vrot.slane %v698_v20, 2 }
 0x114   :  { %v700_v37 = vadd.f32 %v699_v35, %v698_v20 }
 0x116   :  { %v701_v40 = vrot.slane %v700_v37, 1 }
 0x118   :  { %v702_v34 = vadd.f32 %v701_v40, %v700_v37 }
 0x11a   :  { %v703_v42 = vadd.f32 %v702_v34, %v681_v41 }
 0x11c   :  { %v6358_v45 = vmul.f32 0.008064516, %v703_v42 }
 0x11e   :  { %v706_v46 = vsub.f32 %v6276_v43, %v6358_v45  ;;  %v707_v44 = vsub.f32 %v6282_v48, %v6358_v45  ;;  %v708_v49 = vsub.f32 %v6280_v47, %v6358_v45  ;;  %v709_v51 = vsub.f32 %v6288_v53, %v6358_v45 }
 0x11f   :  { %v710_v52 = vsub.f32 %v6296_v59, %v6358_v45  ;;  %v711_v58 = vsub.f32 %v6309_v6, %v6358_v45  ;;  %v712_v3 = vsub.f32 %v6315_v14, %v6358_v45  ;;  %v743_v60 = vsub.f32 %v6324_v31, %v6358_v45 }
 0x120   :  { %v714_v54 = vmul.f32 %v706_v46, %v706_v46  ;;  %v715_v56 = vmul.f32 %v707_v44, %v707_v44  ;;  %v716_v57 = vmul.f32 %v708_v49, %v708_v49  ;;  %v717_v63 = vmul.f32 %v709_v51, %v709_v51 }
 0x121   :  { %v718_v4 = vmul.f32 %v710_v52, %v710_v52  ;;  %v744_v9 = vsub.f32 %v6328_v26, %v6358_v45  ;;  %v745_v11 = vsub.f32 %v6326_v25, %v6358_v45  ;;  %v713_v55 = vsub.f32 %v6320_v28, %v6358_v45 }
 0x122   :  { %v722_v0 = vsel %vm73_vm1, %v714_v54, 0.0  ;;  %v723_v1 = vsel %vm73_vm1, %v715_v56, 0.0  ;;  %v725_v8 = vsel %vm73_vm1, %v716_v57, 0.0  ;;  %v746_v16 = vsub.f32 %v6334_v50, %v6358_v45 }
 0x123   :  { %v724_v5 = vadd.f32 %v723_v1, %v722_v0  ;;  %v719_v17 = vmul.f32 %v711_v58, %v711_v58  ;;  %v727_v2 = vsel %vm73_vm1, %v717_v63, 0.0  ;;  %v751_v7 = vmul.f32 %v743_v60, %v743_v60 }
 0x124   :  { %v752_v18 = vmul.f32 %v744_v9, %v744_v9  ;;  %v747_v22 = vsub.f32 %v6340_v62, %v6358_v45  ;;  %v753_v27 = vmul.f32 %v745_v11, %v745_v11  ;;  %v720_v19 = vmul.f32 %v712_v3, %v712_v3 }
 0x125   :  { %v726_v15 = vadd.f32 %v725_v8, %v724_v5  ;;  %v729_v20 = vsel %vm73_vm1, %v718_v4, 0.0  ;;  %v759_v35 = vsel %vm73_vm1, %v751_v7, 0.0  ;;  %v748_v37 = vsub.f32 %v6348_v12, %v6358_v45 }
 0x126   :  { %v754_v40 = vmul.f32 %v746_v16, %v746_v16  ;;  %v760_v41 = vsel %vm73_vm1, %v752_v18, 0.0  ;;  %v721_v34 = vmul.f32 %v713_v55, %v713_v55  ;;  %v731_v42 = vsel %vm73_vm1, %v719_v17, 0.0 }
 0x127   :  { %v728_v21 = vadd.f32 %v727_v2, %v726_v15  ;;  %v761_v46 = vadd.f32 %v760_v41, %v759_v35  ;;  %v749_v49 = vsub.f32 %v6344_v10, %v6358_v45  ;;  %v755_v51 = vmul.f32 %v747_v22, %v747_v22 }
 0x128   :  { %v762_v52 = vsel %vm73_vm1, %v753_v27, 0.0  ;;  %v733_v54 = vsel %vm73_vm1, %v720_v19, 0.0  ;;  %v750_v58 = vsub.f32 %v6350_v13, %v6358_v45  ;;  %v756_v63 = vmul.f32 %v748_v37, %v748_v37 }
 0x129   :  { %v730_v36 = vadd.f32 %v729_v20, %v728_v21  ;;  %v763_v56 = vadd.f32 %v762_v52, %v761_v46  ;;  %v764_v0 = vsel %vm73_vm1, %v754_v40, 0.0  ;;  %v735_v1 = vsel %vm673_vm2, %v721_v34, 0.0 }
 0x12a   :  { %v757_v5 = vmul.f32 %v749_v49, %v749_v49  ;;  %v766_v8 = vsel %vm73_vm1, %v755_v51, 0.0  ;;  %v758_v11 = vmul.f32 %v750_v58, %v750_v58  ;;  %v768_v55 = vsel %vm73_vm1, %v756_v63, 0.0  ;;  %v784_v51 = vld [vmem:[%s7660_s2] sm:$0x1]  ;;  %s7662_s2 = sld [smem:[#allocation15_spill]] }
 0x12b   :  { %v732_v44 = vadd.f32 %v731_v42, %v730_v36  ;;  %v765_v3 = vadd.f32 %v764_v0, %v763_v56 }
 0x12c   :  { %v770_v17 = vsel %vm73_vm1, %v757_v5, 0.0  ;;  %v772_v18 = vsel %vm673_vm2, %v758_v11, 0.0 }
 0x12d   :  { %v734_v57 = vadd.f32 %v733_v54, %v732_v44  ;;  %v767_v60 = vadd.f32 %v766_v8, %v765_v3  ;;  %v789_v44 = vlaneseq }
 0x12f   :  { %v736_v4 = vadd.f32 %v735_v1, %v734_v57  ;;  %v769_v15 = vadd.f32 %v768_v55, %v767_v60  ;;  %v790_v49 = vshrl.u32 %v789_v44, 7  ;;  %v786_v57 = vld [vmem:[%s7661_s28] sm:$0x1]  ;;  %s7663_s28 = sld [smem:[#allocation16_spill]] }
 0x131   :  { %v737_v9 = vrot.slane %v736_v4, 4  ;;  %v771_v2 = vadd.f32 %v770_v17, %v769_v15  ;;  %v6411_v52 = vsub.s32 0, %v790_v49 }
 0x133   :  { %v738_v16 = vadd.f32 %v737_v9, %v736_v4  ;;  %v773_v21 = vadd.f32 %v772_v18, %v771_v2 }
 0x135   :  { %v739_v7 = vrot.slane %v738_v16, 2  ;;  %v774_v27 = vrot.slane %v773_v21, 4 }
 0x137   :  { %v740_v22 = vadd.f32 %v739_v7, %v738_v16  ;;  %v775_v19 = vadd.f32 %v774_v27, %v773_v21 }
 0x139   :  { %v741_v20 = vrot.slane %v740_v22, 1  ;;  %v776_v35 = vrot.slane %v775_v19, 2 }
 0x13b   :  { %v777_v36 = vadd.f32 %v776_v35, %v775_v19  ;;  %v742_v37 = vadd.f32 %v741_v20, %v740_v22 }
 0x13d   :  { %v778_v40 = vrot.slane %v777_v36, 1 }
 0x13f   :  { %v779_v41 = vadd.f32 %v778_v40, %v777_v36 }
 0x141   :  { %v780_v34 = vadd.f32 %v779_v41, %v742_v37 }
 0x143   :  { %v781_v42 = vmul.f32 0.008064516, %v780_v34 }
 0x145   :  { %v782_v46 = vadd.f32 1e-05, %v781_v42 }
 0x147   :  { %5883 = vrsqrt.f32 %v782_v46 }
 0x154   :  { %v5884_v54 = vpop.eup %5883 }
 0x155   :  { %v785_v56 = vmul.f32 %v5884_v54, %v784_v51 }
 0x157   :  { %v787_v58 = vmul.f32 %v785_v56, %v6358_v45  ;;  %v792_v63 = vrot.slane %v785_v56, %v6411_v52 }
 0x159   :  { %v788_v0 = vsub.f32 %v786_v57, %v787_v58  ;;  %v836_v1 = vmul.f32 %v792_v63, %v6348_v12  ;;  %v793_v3 = vmul.f32 %v792_v63, %v6276_v43  ;;  %v794_v4 = vmul.f32 %v792_v63, %v6282_v48 }
 0x15a   :  { %v795_v5 = vmul.f32 %v792_v63, %v6280_v47  ;;  %v796_v8 = vmul.f32 %v792_v63, %v6288_v53  ;;  %v797_v60 = vmul.f32 %v792_v63, %v6296_v59  ;;  %v798_v9 = vmul.f32 %v792_v63, %v6309_v6 }
 0x15b   :  { %v805_v11 = vrot.slane %v788_v0, %v6411_v52  ;;  %v799_v45 = vmul.f32 %v792_v63, %v6315_v14  ;;  %v800_v55 = vmul.f32 %v792_v63, %v6320_v28  ;;  %v831_v12 = vmul.f32 %v792_v63, %v6324_v31 }
 0x15c   :  { %v832_v43 = vmul.f32 %v792_v63, %v6328_v26  ;;  %v833_v48 = vmul.f32 %v792_v63, %v6326_v25  ;;  %v834_v47 = vmul.f32 %v792_v63, %v6334_v50  ;;  %v835_v53 = vmul.f32 %v792_v63, %v6340_v62 }
 0x15d   :  { %v844_v15 = vadd.f32 %v836_v1, %v805_v11  ;;  %v807_v59 = vadd.f32 %v805_v11, %v793_v3  ;;  %v808_v16 = vadd.f32 %v805_v11, %v794_v4  ;;  %v809_v6 = vadd.f32 %v805_v11, %v795_v5  ;;  %v6454_v4 = vld [vmem:[%s7659_s5 + $0x50] sm:$0xff]  }
 0x15e   :  { %v810_v17 = vadd.f32 %v805_v11, %v796_v8  ;;  %v811_v2 = vadd.f32 %v805_v11, %v797_v60  ;;  %v812_v7 = vadd.f32 %v805_v11, %v798_v9  ;;  %v813_v14 = vadd.f32 %v805_v11, %v799_v45 }
 0x15f   :  { %v852_v18 = vmax.f32 %v844_v15, 0.0  ;;  %v815_v28 = vmax.f32 %v807_v59, 0.0  ;;  %v816_v21 = vmax.f32 %v808_v16, 0.0  ;;  %v817_v31 = vmax.f32 %v809_v6, 0.0 }
 0x160   :  { %v818_v22 = vmax.f32 %v810_v17, 0.0  ;;  %v819_v26 = vmax.f32 %v811_v2, 0.0  ;;  %v820_v27 = vmax.f32 %v812_v7, 0.0  ;;  %v821_v25 = vmax.f32 %v813_v14, 0.0 }
 0x161   :  { %861 = vst.msk [vmem:[#allocation2 + $0x68] sm:$0xff] %vm73_vm1, %v852_v18  ;;  %823 = vst.msk [vmem:[#allocation2] sm:$0xff] %vm73_vm1, %v815_v28  ;;  %v814_v50 = vadd.f32 %v805_v11, %v800_v55  ;;  %v839_v62 = vadd.f32 %v831_v12, %v805_v11  ;;  %v840_v19 = vadd.f32 %v832_v43, %v805_v11  ;;  %v6477_v28 = vld [vmem:[%s7659_s5 + $0x40] sm:$0xff]  }
 0x162   :  { %824 = vst.msk [vmem:[#allocation2 + $0x8] sm:$0xff] %vm73_vm1, %v816_v21  ;;  %825 = vst.msk [vmem:[#allocation2 + $0x10] sm:$0xff] %vm73_vm1, %v817_v31  ;;  %v841_v20 = vadd.f32 %v833_v48, %v805_v11  ;;  %v842_v35 = vadd.f32 %v834_v47, %v805_v11  ;;  %v843_v36 = vadd.f32 %v835_v53, %v805_v11  ;;  %v6466_v53 = vld [vmem:[%s7659_s5 + $0x48] sm:$0xff]  }
 0x163   :  { %826 = vst.msk [vmem:[#allocation2 + $0x18] sm:$0xff] %vm73_vm1, %v818_v22  ;;  %827 = vst.msk [vmem:[#allocation2 + $0x20] sm:$0xff] %vm73_vm1, %v819_v26  ;;  %v837_v37 = vmul.f32 %v792_v63, %v6344_v10  ;;  %v838_v40 = vmul.f32 %v792_v63, %v6350_v13  ;;  %v822_v41 = vmax.f32 %v814_v50, 0.0  ;;  %v847_v34 = vmax.f32 %v839_v62, 0.0 }
 0x164   :  { %828 = vst.msk [vmem:[#allocation2 + $0x28] sm:$0xff] %vm73_vm1, %v820_v27  ;;  %829 = vst.msk [vmem:[#allocation2 + $0x30] sm:$0xff] %vm73_vm1, %v821_v25  ;;  %v848_v42 = vmax.f32 %v840_v19, 0.0  ;;  %v849_v46 = vmax.f32 %v841_v20, 0.0  ;;  %v850_v44 = vmax.f32 %v842_v35, 0.0  ;;  %v851_v49 = vmax.f32 %v843_v36, 0.0 }
 0x165   :  { %v845_v51 = vadd.f32 %v837_v37, %v805_v11  ;;  %v846_v54 = vadd.f32 %v838_v40, %v805_v11  ;;  %830 = vst.msk [vmem:[#allocation2 + $0x38] sm:$0x3f] %vm673_vm2, %v822_v41 }
 0x166   :  { %856 = vst.msk [vmem:[#allocation2 + $0x40] sm:$0xff] %vm73_vm1, %v847_v34  ;;  %857 = vst.msk [vmem:[#allocation2 + $0x48] sm:$0xff] %vm73_vm1, %v848_v42 }
 0x167   :  { %858 = vst.msk [vmem:[#allocation2 + $0x50] sm:$0xff] %vm73_vm1, %v849_v46  ;;  %859 = vst.msk [vmem:[#allocation2 + $0x58] sm:$0xff] %vm73_vm1, %v850_v44  ;;  %v853_v10 = vmax.f32 %v845_v51, 0.0  ;;  %v854_v13 = vmax.f32 %v846_v54, 0.0 }
 0x168   :  { %860 = vst.msk [vmem:[#allocation2 + $0x60] sm:$0xff] %vm73_vm1, %v851_v49  ;;  %v864_v58 = vld [vmem:[#allocation2] sm:$0xff] }
 0x169   :  { %v884_v56 = vld [vmem:[#allocation2 + $0x1] sm:$0xff]  ;;  %v885_v57 = vld [vmem:[#allocation2 + $0x9] sm:$0xff]  ;;  %862 = vst.msk [vmem:[#allocation2 + $0x70] sm:$0xff] %vm73_vm1, %v853_v10 }
 0x16a   :  { %863 = vst.msk [vmem:[#allocation2 + $0x78] sm:$0x3f] %vm673_vm2, %v854_v13  ;;  %v892_v63 = vpack.c.bf16 %v885_v57, %v884_v56  ;;  %v865_v0 = vld [vmem:[#allocation2 + $0x8] sm:$0xff]  ;;  %v886_v1 = vld [vmem:[#allocation2 + $0x11] sm:$0xff]  ;;  %v887_v3 = vld [vmem:[#allocation2 + $0x19] sm:$0xff] }
 0x16b   :  { %v872_v5 = vpack.c.bf16 %v865_v0, %v864_v58  ;;  %v893_v8 = vpack.c.bf16 %v887_v3, %v886_v1  ;;  %v866_v60 = vld [vmem:[#allocation2 + $0x10] sm:$0xff]  ;;  %v867_v9 = vld [vmem:[#allocation2 + $0x18] sm:$0xff]  ;;  %v888_v11 = vld [vmem:[#allocation2 + $0x21] sm:$0xff] }
 0x16c   :  { %5243 = vmatprep.mubr.msk.bf16.mxu0 %vm73_vm1, %v892_v63  ;;  %v873_v45 = vpack.c.bf16 %v867_v9, %v866_v60  ;;  %v889_v55 = vld [vmem:[#allocation2 + $0x29] sm:$0xff]  ;;  %v868_v12 = vld [vmem:[#allocation2 + $0x20] sm:$0xff]  ;;  %v890_v15 = vld [vmem:[#allocation2 + $0x31] sm:$0xff] }
 0x16d   :  { %v869_v43 = vld [vmem:[#allocation2 + $0x28] sm:$0xff]  ;;  %5259 = vmatprep.mubr.msk.bf16.mxu1 %vm73_vm1, %v872_v5  ;;  %5244 = vmatmul.mubr.msk.bf16.vlgmr.msra.gmra.mxu0 %vm73_vm1, %v893_v8  ;;  %v894_v48 = vpack.c.bf16 %v889_v55, %v888_v11  ;;  %v891_v59 = vld [vmem:[#allocation2 + $0x39] sm:$0xf]  ;;  %v870_v16 = vld [vmem:[#allocation2 + $0x30] sm:$0xff] }
 0x16e   :  { %v874_v47 = vpack.c.bf16 %v869_v43, %v868_v12  ;;  %5260 = vmatmul.mubr.msk.bf16.vlgmr.msra.gmra.mxu1 %vm73_vm1, %v873_v45  ;;  %5268 = vmatpush3.bf16.msra.mxu0 %v6301_v61  ;;  %v871_v6 = vld [vmem:[#allocation2 + $0x38] sm:$0xf]  ;;  %v1107_v17 = vld [vmem:[#allocation2 + $0x2] sm:$0xff]  ;;  %v1108_v2 = vld [vmem:[#allocation2 + $0xa] sm:$0xff]  ;;  %v895_v18 = vpack.c.bf16 %v891_v59, %v890_v15 }
 0x16f   :  { %5247 = vmatprep.mubr.msk.bf16.mxu0 %vm73_vm1, %v894_v48  ;;  %5284 = vmatpush3.bf16.msra.mxu1 %v6223_v23  ;;  %v1249_v7 = vld [vmem:[#allocation2 + $0x41] sm:$0xff]  ;;  %v1250_v14 = vld [vmem:[#allocation2 + $0x49] sm:$0xff]  ;;  %v875_v23 = vpack.c.bf16 %v871_v6, %v870_v16  ;;  %v1115_v21 = vpack.c.bf16 %v1108_v2, %v1107_v17  ;;  %v1251_v25 = vld [vmem:[#allocation2 + $0x51] sm:$0xff] }
 0x170   :  { %5263 = vmatprep.mubr.msk.bf16.mxu1 %vm73_vm1, %v874_v47  ;;  %5269 = vmatprep.subr.bf16.mxu0 %v6454_v4  ;;  %v1257_v31 = vpack.c.bf16 %v1250_v14, %v1249_v7  ;;  %v1110_v22 = vld [vmem:[#allocation2 + $0x1a] sm:$0xff]  ;;  %v1111_v26 = vld [vmem:[#allocation2 + $0x22] sm:$0xff]  ;;  %v1112_v27 = vld [vmem:[#allocation2 + $0x2a] sm:$0xff] }
 0x171   :  { %5285 = vmatprep.subr.bf16.mxu1 %v6241_v29  ;;  %v1252_v50 = vld [vmem:[#allocation2 + $0x59] sm:$0xff]  ;;  %v1253_v19 = vld [vmem:[#allocation2 + $0x61] sm:$0xff]  ;;  %v1254_v20 = vld [vmem:[#allocation2 + $0x69] sm:$0xff] }
 0x172   :  { %5270 = vmatpush3.bf16.msra.mxu0 %v6454_v4  ;;  %v1258_v35 = vpack.c.bf16 %v1252_v50, %v1251_v25  ;;  %v1259_v36 = vpack.c.bf16 %v1254_v20, %v1253_v19  ;;  %v1114_v37 = vld [vmem:[#allocation2 + $0x3a] sm:$0xf]  ;;  %v1237_v40 = vld [vmem:[#allocation2 + $0x40] sm:$0xff]  ;;  %v1238_v41 = vld [vmem:[#allocation2 + $0x48] sm:$0xff] }
 0x173   :  { %5271 = vmatprep.subr.bf16.mxu0 %v6466_v53  ;;  %5286 = vmatpush3.bf16.msra.mxu1 %v6241_v29  ;;  %v1109_v29 = vld [vmem:[#allocation2 + $0x12] sm:$0xff]  ;;  %v1416_v44 = vld [vmem:[#allocation2 + $0x4a] sm:$0xff]  ;;  %v1245_v49 = vpack.c.bf16 %v1238_v41, %v1237_v40  ;;  %v1241_v10 = vld [vmem:[#allocation2 + $0x60] sm:$0xff] }
 0x174   :  { %5287 = vmatprep.subr.bf16.mxu1 %v6251_v32  ;;  %v1116_v62 = vpack.c.bf16 %v1110_v22, %v1109_v29  ;;  %v1255_v34 = vld [vmem:[#allocation2 + $0x71] sm:$0xff]  ;;  %v1256_v42 = vld [vmem:[#allocation2 + $0x79] sm:$0xf]  ;;  %v1242_v13 = vld [vmem:[#allocation2 + $0x68] sm:$0xff] }
 0x175   :  { %5248 = vmatmul.mubr.msk.bf16.gmra.mxu0 %vm73_vm1, %v895_v18  ;;  %v1239_v51 = vld [vmem:[#allocation2 + $0x50] sm:$0xff]  ;;  %v1240_v54 = vld [vmem:[#allocation2 + $0x58] sm:$0xff]  ;;  %v1419_v58 = vld [vmem:[#allocation2 + $0x62] sm:$0xff]  ;;  %v1247_v0 = vpack.c.bf16 %v1242_v13, %v1241_v10 }
 0x176   :  { %5264 = vmatmul.mubr.msk.bf16.gmra.mxu1 %vm73_vm1, %v875_v23  ;;  %5272 = vmatpush3.bf16.msra.mxu0 %v6466_v53  ;;  %v1418_v56 = vld [vmem:[#allocation2 + $0x5a] sm:$0xff]  ;;  %v1246_v57 = vpack.c.bf16 %v1240_v54, %v1239_v51  ;;  %v1420_v63 = vld [vmem:[#allocation2 + $0x6a] sm:$0xff]  ;;  %v1421_v5 = vld [vmem:[#allocation2 + $0x72] sm:$0xff] }
 0x177   :  { %5275 = vmatprep.mubr.msk.bf16.mxu0 %vm73_vm1, %v1115_v21  ;;  %5291 = vmatprep.mubr.msk.bf16.mxu1 %vm73_vm1, %v1257_v31  ;;  %v1425_v3 = vpack.c.bf16 %v1420_v63, %v1419_v58  ;;  %v1422_v8 = vld [vmem:[#allocation2 + $0x7a] sm:$0xf]  ;;  %v6550_v19 = vld [vmem:[%s7631_s7 + $0x10] sm:$0xff]   ;;  %v6567_v41 = vld [vmem:[%s7631_s7 + $0x28] sm:$0xff]  }
 0x178   :  { %5288 = vmatpush3.bf16.msra.mxu1 %v6251_v32  ;;  %5273 = vmatprep.subr.bf16.mxu0 %v6477_v28  ;;  %v1117_v32 = vpack.c.bf16 %v1112_v27, %v1111_v26  ;;  %v1426_v9 = vpack.c.bf16 %v1422_v8, %v1421_v5  ;;  %v6533_v22 = vld [vmem:[%s7631_s7 + $0x38] sm:$0xff]   ;;  %v6543_v27 = vld [vmem:[%s7631_s7 + $0x30] sm:$0xff]  }
 0x179   :  { %5289 = vmatprep.subr.bf16.mxu1 %v6269_v38  ;;  %v6538_v26 = vld [vmem:[%s7631_s7 + $0x18] sm:$0xff]  }
 0x17a   :  { %5274 = vmatpush3.bf16.msra.mxu0 %v6477_v28 }
 0x17b   :  { %5299 = vmatprep.subr.bf16.mxu0 %v6228_v24 }
 0x17c   :  { %5290 = vmatpush3.bf16.msra.mxu1 %v6269_v38  ;;  %v1113_v38 = vld [vmem:[#allocation2 + $0x32] sm:$0xff] }
 0x17d   :  { %5276 = vmatmul.mubr.msk.bf16.vlgmr.msra.gmra.mxu0 %vm73_vm1, %v1116_v62  ;;  %5315 = vmatprep.subr.bf16.mxu1 %v6301_v61  ;;  %v1118_v46 = vpack.c.bf16 %v1114_v37, %v1113_v38 }
 0x17e   :  { %5279 = vmatprep.mubr.msk.bf16.mxu0 %vm73_vm1, %v1117_v32  ;;  %5300 = vmatpush3.bf16.msra.mxu0 %v6228_v24  ;;  %v1415_v24 = vld [vmem:[#allocation2 + $0x42] sm:$0xff] }
 0x17f   :  { %5292 = vmatmul.mubr.msk.bf16.vlgmr.msra.gmra.mxu1 %vm73_vm1, %v1258_v35  ;;  %5301 = vmatprep.subr.bf16.mxu0 %v6246_v30 }
 0x180   :  { %5295 = vmatprep.mubr.msk.bf16.mxu1 %vm73_vm1, %v1259_v36  ;;  %5316 = vmatpush3.bf16.msra.mxu1 %v6301_v61  ;;  %v1260_v61 = vpack.c.bf16 %v1256_v42, %v1255_v34  ;;  %v6572_v34 = vld [vmem:[%s7631_s7 + $0x8] sm:$0xff]  }
 0x181   :  { %5317 = vmatprep.subr.bf16.mxu1 %v6454_v4 }
 0x182   :  { %5302 = vmatpush3.bf16.msra.mxu0 %v6246_v30  ;;  %v1423_v30 = vpack.c.bf16 %v1416_v44, %v1415_v24 }
 0x183   :  { %5303 = vmatprep.subr.bf16.mxu0 %v6256_v33 }
 0x184   :  { %5318 = vmatpush3.bf16.msra.mxu1 %v6454_v4  ;;  %v1243_v4 = vld [vmem:[#allocation2 + $0x70] sm:$0xff] }
 0x185   :  { %5280 = vmatmul.mubr.msk.bf16.gmra.mxu0 %vm73_vm1, %v1118_v46  ;;  %5319 = vmatprep.subr.bf16.mxu1 %v6466_v53 }
 0x186   :  { %5304 = vmatpush3.bf16.msra.mxu0 %v6256_v33  ;;  %5307 = vmatprep.mubr.msk.bf16.mxu0 %vm73_vm1, %v1245_v49  ;;  %v1417_v33 = vld [vmem:[#allocation2 + $0x52] sm:$0xff] }
 0x187   :  { %5296 = vmatmul.mubr.msk.bf16.gmra.mxu1 %vm73_vm1, %v1260_v61  ;;  %5305 = vmatprep.subr.bf16.mxu0 %v6274_v39  ;;  %v1424_v1 = vpack.c.bf16 %v1418_v56, %v1417_v33  ;;  %v6593_v56 = vld [vmem:[%s7631_s7 + $0x20] sm:$0xff]  }
 0x188   :  { %5320 = vmatpush3.bf16.msra.mxu1 %v6466_v53  ;;  %5323 = vmatprep.mubr.msk.bf16.mxu1 %vm73_vm1, %v1423_v30 }
 0x189   :  { %5321 = vmatprep.subr.bf16.mxu1 %v6477_v28 }
 0x18a   :  { %5306 = vmatpush3.bf16.msra.mxu0 %v6274_v39  ;;  %v1244_v39 = vld [vmem:[#allocation2 + $0x78] sm:$0xf] }
 0x18b   :  { %v1248_v60 = vpack.c.bf16 %v1244_v39, %v1243_v4  ;;  %5331 = vmatprep.subr.bf16.mxu0 %v6533_v22 }
 0x18c   :  { %5322 = vmatpush3.bf16.msra.mxu1 %v6477_v28 }
 0x18d   :  { %5308 = vmatmul.mubr.msk.bf16.vlgmr.msra.gmra.mxu0 %vm73_vm1, %v1246_v57  ;;  %5343 = vmatprep.subr.bf16.mxu1 %v6538_v26  ;;  %v6598_v57 = vld [vmem:[%s7631_s7] sm:$0xff]  }
 0x18e   :  { %5311 = vmatprep.mubr.msk.bf16.mxu0 %vm73_vm1, %v1247_v0  ;;  %5332 = vmatpush3.bf16.msra.mxu0 %v6533_v22 }
 0x18f   :  { %5324 = vmatmul.mubr.msk.bf16.vlgmr.msra.gmra.mxu1 %vm73_vm1, %v1424_v1  ;;  %5333 = vmatprep.subr.bf16.mxu0 %v6543_v27 }
 0x190   :  { %5327 = vmatprep.mubr.msk.bf16.mxu1 %vm73_vm1, %v1425_v3  ;;  %5344 = vmatpush3.bf16.msra.mxu1 %v6538_v26 }
 0x191   :  { %5345 = vmatprep.subr.bf16.mxu1 %v6550_v19 }
 0x192   :  { %5334 = vmatpush3.bf16.msra.mxu0 %v6543_v27 }
 0x193   :  { %5335 = vmatprep.subr.bf16.mxu0 %v6567_v41 }
 0x194   :  { %5346 = vmatpush3.bf16.msra.mxu1 %v6550_v19 }
 0x195   :  { %5312 = vmatmul.mubr.msk.bf16.gmra.mxu0 %vm73_vm1, %v1248_v60  ;;  %5347 = vmatprep.subr.bf16.mxu1 %v6572_v34 }
 0x196   :  { %5336 = vmatpush3.bf16.msra.mxu0 %v6567_v41 }
 0x197   :  { %5328 = vmatmul.mubr.msk.bf16.gmra.mxu1 %vm73_vm1, %v1426_v9  ;;  %5337 = vmatprep.subr.bf16.mxu0 %v6593_v56  ;;  %v6613_v9 = vld [vmem:[%s7631_s7 + $0x58] sm:$0xff]  }
 0x198   :  { %5348 = vmatpush3.bf16.msra.mxu1 %v6572_v34 }
 0x199   :  { %5349 = vmatprep.subr.bf16.mxu1 %v6598_v57 }
 0x19a   :  { %5338 = vmatpush3.bf16.msra.mxu0 %v6593_v56 }
 0x19b   :  { %5355 = vmatprep.subr.bf16.mxu0 %v6613_v9 }
 0x19c   :  { %5350 = vmatpush3.bf16.msra.mxu1 %v6598_v57 }
 0x19d   :  { %5367 = vmatprep.subr.bf16.mxu1 %v6533_v22 }
 0x22d   :  { %v5245_v11 = vpop.f32.mrf.mxu0 }
 0x22e   :  { %v5261_v45 = vpop.f32.mrf.mxu1 }
 0x22f   :  { %v975_v55 = vpop.f32.mrf.mxu0  ;;  %v1085_v25 = vadd.f32 %v5261_v45, %v5245_v11 }
 0x230   :  { %v1076_v12 = vpop.f32.mrf.mxu1 }
 0x231   :  { %v5246_v43 = vpop.f32.mrf.mxu0  ;;  %v1077_v21 = vadd.f32 %v1076_v12, %v975_v55 }
 0x232   :  { %v5262_v48 = vpop.f32.mrf.mxu1 }
 0x233   :  { %v978_v47 = vpop.f32.mrf.mxu0  ;;  %v1088_v35 = vadd.f32 %v5262_v48, %v5246_v43 }
 0x234   :  { %v1079_v53 = vpop.f32.mrf.mxu1 }
 0x235   :  { %v6520_v15 = vpop.f32.mrf.mxu0  ;;  %v1080_v50 = vadd.f32 %v1079_v53, %v978_v47 }
 0x236   :  { %v6522_v59 = vpop.f32.mrf.mxu1 }
 0x237   :  { %v991_v16 = vpop.f32.mrf.mxu0  ;;  %v1101_v11 = vadd.f32 %v6522_v59, %v6520_v15 }
 0x238   :  { %v1092_v6 = vpop.f32.mrf.mxu1 }
 0x239   :  { %v6524_v17 = vpop.f32.mrf.mxu0  ;;  %v1093_v42 = vadd.f32 %v1092_v6, %v991_v16 }
 0x23a   :  { %v6526_v2 = vpop.f32.mrf.mxu1 }
 0x23b   :  { %v994_v7 = vpop.f32.mrf.mxu0  ;;  %v1104_v47 = vadd.f32 %v6526_v2, %v6524_v17 }
 0x23c   :  { %v1095_v14 = vpop.f32.mrf.mxu1 }
 0x23d   :  { %v5277_v18 = vpop.f32.mrf.mxu0  ;;  %v1096_v58 = vadd.f32 %v1095_v14, %v994_v7 }
 0x23e   :  { %v6556_v36 = vadd.f32 %v5277_v18, %v1085_v25 }
 0x23f   :  { %v6528_v23 = vpop.f32.mrf.mxu1  ;;  %v1198_v28 = vpop.f32.mrf.mxu0 }
 0x240   :  { %v6545_v62 = vadd.f32 %v1198_v28, %v1077_v21  ;;  %v1515_v51 = vsel %vm73_vm1, %v6556_v36, 0.0 }
 0x241   :  { %v1307_v31 = vpop.f32.mrf.mxu1  ;;  %v5278_v29 = vpop.f32.mrf.mxu0 }
 0x242   :  { %v1512_v46 = vsel %vm73_vm1, %v6545_v62, 0.0  ;;  %v6576_v24 = vadd.f32 %v5278_v29, %v1088_v35 }
 0x243   :  { %v6552_v20 = vpop.f32.mrf.mxu1  ;;  %v1201_v32 = vpop.f32.mrf.mxu0 }
 0x244   :  { %v6558_v38 = vadd.f32 %v1201_v32, %v1080_v50  ;;  %v1517_v63 = vsel %vm73_vm1, %v6576_v24, 0.0 }
 0x245   :  { %v1310_v37 = vpop.f32.mrf.mxu1  ;;  %v5281_v40 = vpop.f32.mrf.mxu0 }
 0x246   :  { %v1513_v44 = vsel %vm73_vm1, %v6558_v38, 0.0  ;;  %v6619_v43 = vadd.f32 %v5281_v40, %v1101_v11 }
 0x247   :  { %v1514_v49 = vadd.f32 %v1513_v44, %v1512_v46  ;;  %v6580_v61 = vpop.f32.mrf.mxu1  ;;  %v1214_v30 = vpop.f32.mrf.mxu0 }
 0x248   :  { %v6584_v54 = vadd.f32 %v1214_v30, %v1093_v42  ;;  %v1523_v18 = vsel %vm73_vm1, %v6619_v43, 0.0 }
 0x249   :  { %v1516_v10 = vadd.f32 %v1515_v51, %v1514_v49  ;;  %v1323_v13 = vpop.f32.mrf.mxu1  ;;  %v5282_v33 = vpop.f32.mrf.mxu0 }
 0x24a   :  { %v1519_v4 = vsel %vm73_vm1, %v6584_v54, 0.0  ;;  %v6628_v59 = vadd.f32 %v5282_v33, %v1104_v47 }
 0x24b   :  { %v1518_v0 = vadd.f32 %v1517_v63, %v1516_v10  ;;  %v5298_v1 = vpop.f32.mrf.mxu1  ;;  %v1217_v3 = vpop.f32.mrf.mxu0 }
 0x24c   :  { %v6604_v39 = vadd.f32 %v1217_v3, %v1096_v58 }
 0x24d   :  { %v1520_v5 = vadd.f32 %v1519_v4, %v1518_v0  ;;  %v1326_v8 = vpop.f32.mrf.mxu1  ;;  %v5309_v60 = vpop.f32.mrf.mxu0 }
 0x24e   :  { %v1521_v45 = vsel %vm73_vm1, %v6604_v39, 0.0  ;;  %v1393_v15 = vadd.f32 %v5309_v60, %v6528_v23  ;;  %v1526_v23 = vsel %vm1525_vm3, %v6628_v59, 0.0 }
 0x24f   :  { %v5325_v55 = vpop.f32.mrf.mxu1  ;;  %v1384_v12 = vpop.f32.mrf.mxu0  ;;  %v1522_v53 = vadd.f32 %v1521_v45, %v1520_v5 }
 0x250   :  { %v1385_v48 = vadd.f32 %v1384_v12, %v1307_v31  ;;  %v6635_v25 = vadd.f32 %v5325_v55, %v1393_v15 }
 0x251   :  { %v1473_v16 = vpop.f32.mrf.mxu1  ;;  %v5310_v6 = vpop.f32.mrf.mxu0  ;;  %v1524_v21 = vadd.f32 %v1523_v18, %v1522_v53 }
 0x252   :  { %v6632_v28 = vadd.f32 %v1473_v16, %v1385_v48  ;;  %v1396_v17 = vadd.f32 %v5310_v6, %v6552_v20  ;;  %v1537_v51 = vsel %vm73_vm1, %v6635_v25, 0.0 }
 0x253   :  { %v5326_v7 = vpop.f32.mrf.mxu1  ;;  %v1387_v14 = vpop.f32.mrf.mxu0  ;;  %v1527_v46 = vadd.f32 %v1526_v23, %v1524_v21 }
 0x254   :  { %v1388_v2 = vadd.f32 %v1387_v14, %v1310_v37  ;;  %v1534_v40 = vsel %vm73_vm1, %v6632_v28, 0.0  ;;  %v6643_v42 = vadd.f32 %v5326_v7, %v1396_v17 }
 0x255   :  { %v1476_v31 = vpop.f32.mrf.mxu1  ;;  %v5313_v29 = vpop.f32.mrf.mxu0 }
 0x256   :  { %v6637_v50 = vadd.f32 %v1476_v31, %v1388_v2  ;;  %v1409_v10 = vadd.f32 %v5313_v29, %v6580_v61  ;;  %v1539_v3 = vsel %vm73_vm1, %v6643_v42, 0.0 }
 0x257   :  { %v5329_v32 = vpop.f32.mrf.mxu1  ;;  %v1400_v35 = vpop.f32.mrf.mxu0 }
 0x258   :  { %v1535_v20 = vsel %vm73_vm1, %v6637_v50, 0.0  ;;  %v1401_v37 = vadd.f32 %v1400_v35, %v1323_v13  ;;  %v1528_v13 = vrot.slane %v1527_v46, 4  ;;  %v6654_v45 = vadd.f32 %v5329_v32, %v1409_v10 }
 0x259   :  { %v1536_v44 = vadd.f32 %v1535_v20, %v1534_v40  ;;  %v1489_v49 = vpop.f32.mrf.mxu1  ;;  %v5314_v30 = vpop.f32.mrf.mxu0 }
 0x25a   :  { %v6650_v33 = vadd.f32 %v1489_v49, %v1401_v37  ;;  %v1412_v4 = vadd.f32 %v5314_v30, %v5298_v1  ;;  %v1529_v53 = vadd.f32 %v1528_v13, %v1527_v46  ;;  %v1545_v1 = vsel %vm73_vm1, %v6654_v45, 0.0 }
 0x25b   :  { %v1538_v58 = vadd.f32 %v1537_v51, %v1536_v44  ;;  %v5330_v63 = vpop.f32.mrf.mxu1  ;;  %v1403_v0 = vpop.f32.mrf.mxu0 }
 0x25c   :  { %v1404_v5 = vadd.f32 %v1403_v0, %v1326_v8  ;;  %v1541_v55 = vsel %vm73_vm1, %v6650_v33, 0.0  ;;  %v6660_v48 = vadd.f32 %v5330_v63, %v1412_v4  ;;  %v1530_v15 = vrot.slane %v1529_v53, 2 }
 0x25d   :  { %v1540_v60 = vadd.f32 %v1539_v3, %v1538_v58  ;;  %v1492_v11 = vpop.f32.mrf.mxu1 }
 0x25e   :  { %v6658_v12 = vadd.f32 %v1492_v11, %v1404_v5  ;;  %v1547_v6 = vsel %vm1525_vm3, %v6660_v48, 0.0  ;;  %v1531_v18 = vadd.f32 %v1530_v15, %v1529_v53 }
 0x25f   :  { %v1542_v61 = vadd.f32 %v1541_v55, %v1540_v60 }
 0x260   :  { %v1543_v47 = vsel %vm73_vm1, %v6658_v12, 0.0  ;;  %v1532_v21 = vrot.slane %v1531_v18, 1 }
 0x261   :  { %v1544_v16 = vadd.f32 %v1543_v47, %v1542_v61 }
 0x262   :  { %v1533_v23 = vadd.f32 %v1532_v21, %v1531_v18 }
 0x263   :  { %v1546_v8 = vadd.f32 %v1545_v1, %v1544_v16 }
 0x265   :  { %v1548_v7 = vadd.f32 %v1547_v6, %v1546_v8 }
 0x267   :  { %v1549_v14 = vrot.slane %v1548_v7, 4 }
 0x269   :  { %v1550_v17 = vadd.f32 %v1549_v14, %v1548_v7 }
 0x26b   :  { %v1551_v2 = vrot.slane %v1550_v17, 2 }
 0x26d   :  { %v1552_v31 = vadd.f32 %v1551_v2, %v1550_v17 }
 0x26f   :  { %v1553_v29 = vrot.slane %v1552_v31, 1 }
 0x271   :  { %v1554_v32 = vadd.f32 %v1553_v29, %v1552_v31 }
 0x273   :  { %v1555_v35 = vadd.f32 %v1554_v32, %v1533_v23 }
 0x275   :  { %v6668_v40 = vmul.f32 0.008333334, %v1555_v35 }
 0x277   :  { %v1558_v20 = vsub.f32 %v6545_v62, %v6668_v40  ;;  %v1559_v37 = vsub.f32 %v6558_v38, %v6668_v40  ;;  %v1560_v46 = vsub.f32 %v6556_v36, %v6668_v40  ;;  %v1561_v44 = vsub.f32 %v6576_v24, %v6668_v40 }
 0x278   :  { %v1562_v49 = vsub.f32 %v6584_v54, %v6668_v40  ;;  %v1563_v58 = vsub.f32 %v6604_v39, %v6668_v40  ;;  %v1564_v4 = vsub.f32 %v6619_v43, %v6668_v40  ;;  %v1595_v11 = vsub.f32 %v6632_v28, %v6668_v40 }
 0x279   :  { %v1566_v30 = vmul.f32 %v1558_v20, %v1558_v20  ;;  %v1567_v51 = vmul.f32 %v1559_v37, %v1559_v37  ;;  %v1568_v10 = vmul.f32 %v1560_v46, %v1560_v46  ;;  %v1569_v63 = vmul.f32 %v1561_v44, %v1561_v44 }
 0x27a   :  { %v1570_v5 = vmul.f32 %v1562_v49, %v1562_v49  ;;  %v1596_v55 = vsub.f32 %v6637_v50, %v6668_v40  ;;  %v1597_v61 = vsub.f32 %v6635_v25, %v6668_v40  ;;  %v1565_v47 = vsub.f32 %v6628_v59, %v6668_v40 }
 0x27b   :  { %v1574_v0 = vsel %vm73_vm1, %v1566_v30, 0.0  ;;  %v1575_v3 = vsel %vm73_vm1, %v1567_v51, 0.0  ;;  %v1577_v60 = vsel %vm73_vm1, %v1568_v10, 0.0  ;;  %v1598_v16 = vsub.f32 %v6643_v42, %v6668_v40 }
 0x27c   :  { %v1576_v13 = vadd.f32 %v1575_v3, %v1574_v0  ;;  %v1571_v1 = vmul.f32 %v1563_v58, %v1563_v58  ;;  %v1579_v8 = vsel %vm73_vm1, %v1569_v63, 0.0  ;;  %v1603_v6 = vmul.f32 %v1595_v11, %v1595_v11 }
 0x27d   :  { %v1604_v15 = vmul.f32 %v1596_v55, %v1596_v55  ;;  %v1599_v14 = vsub.f32 %v6650_v33, %v6668_v40  ;;  %v1605_v18 = vmul.f32 %v1597_v61, %v1597_v61  ;;  %v1572_v17 = vmul.f32 %v1564_v4, %v1564_v4 }
 0x27e   :  { %v1578_v53 = vadd.f32 %v1577_v60, %v1576_v13  ;;  %v1581_v2 = vsel %vm73_vm1, %v1570_v5, 0.0  ;;  %v1611_v21 = vsel %vm73_vm1, %v1603_v6, 0.0  ;;  %v1600_v29 = vsub.f32 %v6658_v12, %v6668_v40 }
 0x27f   :  { %v1606_v23 = vmul.f32 %v1598_v16, %v1598_v16  ;;  %v1612_v32 = vsel %vm73_vm1, %v1604_v15, 0.0  ;;  %v1573_v35 = vmul.f32 %v1565_v47, %v1565_v47  ;;  %v1583_v20 = vsel %vm73_vm1, %v1571_v1, 0.0 }
 0x280   :  { %v1580_v7 = vadd.f32 %v1579_v8, %v1578_v53  ;;  %v1613_v37 = vadd.f32 %v1612_v32, %v1611_v21  ;;  %v1601_v44 = vsub.f32 %v6654_v45, %v6668_v40  ;;  %v1607_v49 = vmul.f32 %v1599_v14, %v1599_v14 }
 0x281   :  { %v1614_v30 = vsel %vm73_vm1, %v1605_v18, 0.0  ;;  %v1585_v51 = vsel %vm73_vm1, %v1572_v17, 0.0  ;;  %v1602_v63 = vsub.f32 %v6660_v48, %v6668_v40  ;;  %v1608_v0 = vmul.f32 %v1600_v29, %v1600_v29 }
 0x282   :  { %v1582_v31 = vadd.f32 %v1581_v2, %v1580_v7  ;;  %v1615_v10 = vadd.f32 %v1614_v30, %v1613_v37  ;;  %v1616_v3 = vsel %vm73_vm1, %v1606_v23, 0.0  ;;  %v1587_v4 = vsel %vm1525_vm3, %v1573_v35, 0.0 }
 0x283   :  { %v1609_v60 = vmul.f32 %v1601_v44, %v1601_v44  ;;  %v1618_v11 = vsel %vm73_vm1, %v1607_v49, 0.0  ;;  %v1610_v47 = vmul.f32 %v1602_v63, %v1602_v63  ;;  %v1620_v53 = vsel %vm73_vm1, %v1608_v0, 0.0  ;;  %v1636_v44 = vld [vmem:[%s7662_s2] sm:$0x1] }
 0x284   :  { %v1584_v46 = vadd.f32 %v1583_v20, %v1582_v31  ;;  %v1617_v5 = vadd.f32 %v1616_v3, %v1615_v10 }
 0x285   :  { %v1622_v8 = vsel %vm73_vm1, %v1609_v60, 0.0  ;;  %v1624_v7 = vsel %vm1525_vm3, %v1610_v47, 0.0 }
 0x286   :  { %v1586_v58 = vadd.f32 %v1585_v51, %v1584_v46  ;;  %v1619_v55 = vadd.f32 %v1618_v11, %v1617_v5  ;;  %v1638_v51 = vld [vmem:[%s7663_s28] sm:$0x1] }
 0x288   :  { %v1588_v13 = vadd.f32 %v1587_v4, %v1586_v58  ;;  %v1621_v16 = vadd.f32 %v1620_v53, %v1619_v55 }
 0x28a   :  { %v1589_v61 = vrot.slane %v1588_v13, 4  ;;  %v1623_v6 = vadd.f32 %v1622_v8, %v1621_v16 }
 0x28c   :  { %v1590_v1 = vadd.f32 %v1589_v61, %v1588_v13  ;;  %v1625_v14 = vadd.f32 %v1624_v7, %v1623_v6 }
 0x28e   :  { %v1591_v15 = vrot.slane %v1590_v1, 2  ;;  %v1626_v17 = vrot.slane %v1625_v14, 4 }
 0x290   :  { %v1592_v18 = vadd.f32 %v1591_v15, %v1590_v1  ;;  %v1627_v2 = vadd.f32 %v1626_v17, %v1625_v14 }
 0x292   :  { %v1593_v21 = vrot.slane %v1592_v18, 1  ;;  %v1628_v31 = vrot.slane %v1627_v2, 2 }
 0x294   :  { %v1629_v29 = vadd.f32 %v1628_v31, %v1627_v2  ;;  %v1594_v23 = vadd.f32 %v1593_v21, %v1592_v18 }
 0x296   :  { %v1630_v32 = vrot.slane %v1629_v29, 1 }
 0x298   :  { %v1631_v35 = vadd.f32 %v1630_v32, %v1629_v29 }
 0x29a   :  { %v1632_v20 = vadd.f32 %v1631_v35, %v1594_v23 }
 0x29c   :  { %v1633_v37 = vmul.f32 0.008333334, %v1632_v20 }
 0x29e   :  { %v1634_v46 = vadd.f32 1e-05, %v1633_v37 }
 0x2a0   :  { %5885 = vrsqrt.f32 %v1634_v46 }
 0x2ad   :  { %v5886_v49 = vpop.eup %5885 }
 0x2ae   :  { %v1637_v30 = vmul.f32 %v5886_v49, %v1636_v44 }
 0x2b0   :  { %v1639_v10 = vmul.f32 %v1637_v30, %v6668_v40  ;;  %v6726_v58 = vrot.slane %v1637_v30, %v6411_v52 }
 0x2b2   :  { %v1640_v63 = vsub.f32 %v1638_v51, %v1639_v10  ;;  %v1746_v0 = vmul.f32 %v6726_v58, %v6658_v12  ;;  %v1645_v3 = vmul.f32 %v6726_v58, %v6545_v62  ;;  %v1646_v4 = vmul.f32 %v6726_v58, %v6558_v38 }
 0x2b3   :  { %v1647_v40 = vmul.f32 %v6726_v58, %v6556_v36  ;;  %v1648_v5 = vmul.f32 %v6726_v58, %v6576_v24  ;;  %v1649_v13 = vmul.f32 %v6726_v58, %v6584_v54  ;;  %v1650_v12 = vmul.f32 %v6726_v58, %v6604_v39 }
 0x2b4   :  { %v6743_v62 = vrot.slane %v1640_v63, %v6411_v52  ;;  %v1651_v38 = vmul.f32 %v6726_v58, %v6619_v43  ;;  %v1652_v60 = vmul.f32 %v6726_v58, %v6628_v59  ;;  %v1741_v36 = vmul.f32 %v6726_v58, %v6632_v28 }
 0x2b5   :  { %v1742_v24 = vmul.f32 %v6726_v58, %v6637_v50  ;;  %v1743_v54 = vmul.f32 %v6726_v58, %v6635_v25  ;;  %v6757_v39 = vmul.f32 %v6726_v58, %v6643_v42  ;;  %v6761_v11 = vmul.f32 %v6726_v58, %v6650_v33 }
 0x2b6   :  { %v1754_v43 = vadd.f32 %v1746_v0, %v6743_v62  ;;  %v1659_v59 = vadd.f32 %v6743_v62, %v1645_v3  ;;  %v1660_v28 = vadd.f32 %v6743_v62, %v1646_v4  ;;  %v1661_v55 = vadd.f32 %v6743_v62, %v1647_v40 }
 0x2b7   :  { %v1662_v50 = vadd.f32 %v6743_v62, %v1648_v5  ;;  %v1663_v25 = vadd.f32 %v6743_v62, %v1649_v13  ;;  %v1664_v61 = vadd.f32 %v6743_v62, %v1650_v12  ;;  %v1665_v42 = vadd.f32 %v6743_v62, %v1651_v38 }
 0x2b8   :  { %v1762_v47 = vmax.f32 %v1754_v43, 0.0  ;;  %v1667_v53 = vmax.f32 %v1659_v59, 0.0  ;;  %v1668_v33 = vmax.f32 %v1660_v28, 0.0  ;;  %v1669_v16 = vmax.f32 %v1661_v55, 0.0 }
 0x2b9   :  { %v1670_v1 = vmax.f32 %v1662_v50, 0.0  ;;  %v1671_v8 = vmax.f32 %v1663_v25, 0.0  ;;  %v1666_v6 = vadd.f32 %v6743_v62, %v1652_v60  ;;  %v1672_v15 = vmax.f32 %v1664_v61, 0.0 }
 0x2ba   :  { %v1807_v7 = vrot.slane %v1762_v47, 1  ;;  %v1676_v14 = vrot.slane %v1667_v53, 1  ;;  %v1688_v18 = vrot.slane %v1668_v33, 1  ;;  %v1696_v17 = vrot.slane %v1669_v16, 1 }
 0x2bb   :  { %v1704_v2 = vrot.slane %v1670_v1, 1  ;;  %v1712_v21 = vrot.slane %v1671_v8, 1  ;;  %v1673_v31 = vmax.f32 %v1665_v42, 0.0  ;;  %v1674_v29 = vmax.f32 %v1666_v6, 0.0 }
 0x2bc   :  { %v1809_v23 = vmax.f32 %v1762_v47, %v1807_v7  ;;  %v1678_v32 = vmax.f32 %v1667_v53, %v1676_v14  ;;  %v1690_v35 = vmax.f32 %v1668_v33, %v1688_v18  ;;  %v1698_v20 = vmax.f32 %v1669_v16, %v1696_v17 }
 0x2bd   :  { %v1706_v37 = vmax.f32 %v1670_v1, %v1704_v2  ;;  %v1714_v46 = vmax.f32 %v1671_v8, %v1712_v21  ;;  %v1720_v44 = vrot.slane %v1672_v15, 1  ;;  %v1728_v49 = vrot.slane %v1673_v31, 1 }
 0x2be   :  { %1810 = vst.msk [vmem:[#allocation3 + $0x34] sm:$0x1] %vm1679_vm4, %v1809_v23  ;;  %1691 = vst.msk [vmem:[#allocation3 + $0x4] sm:$0x1] %vm1679_vm4, %v1690_v35  ;;  %v1736_v30 = vrot.slane %v1674_v29, 1  ;;  %v1749_v51 = vadd.f32 %v1741_v36, %v6743_v62  ;;  %v1750_v10 = vadd.f32 %v1742_v24, %v6743_v62  ;;  %v1751_v63 = vadd.f32 %v1743_v54, %v6743_v62 }
 0x2bf   :  { %1811 = vst.msk [vmem:[#allocation3 + $0x33] sm:$0x4] %vm1681_vm5, %v1809_v23  ;;  %1682 = vst.msk [vmem:[#allocation3 - $0x1] sm:$0x4] %vm1681_vm5, %v1678_v32  ;;  %v1722_v0 = vmax.f32 %v1672_v15, %v1720_v44  ;;  %v1730_v3 = vmax.f32 %v1673_v31, %v1728_v49  ;;  %v1752_v4 = vadd.f32 %v6757_v39, %v6743_v62  ;;  %v5783_v44 = vld [vmem:[%s7631_s7 + $0x48] sm:$0xff]  }
 0x2c0   :  { %1812 = vst.msk [vmem:[#allocation3 + $0x32] sm:$0x10] %vm1683_vm6, %v1809_v23  ;;  %1684 = vst.msk [vmem:[#allocation3 - $0x2] sm:$0x10] %vm1683_vm6, %v1678_v32  ;;  %v1753_v40 = vadd.f32 %v6761_v11, %v6743_v62  ;;  %v1738_v5 = vmax.f32 %v1674_v29, %v1736_v30  ;;  %v1757_v13 = vmax.f32 %v1749_v51, 0.0  ;;  %v1758_v12 = vmax.f32 %v1750_v10, 0.0 }
 0x2c1   :  { %1813 = vst.msk [vmem:[#allocation3 + $0x31] sm:$0x40] %vm1685_vm7, %v1809_v23  ;;  %1686 = vst.msk [vmem:[#allocation3 - $0x3] sm:$0x40] %vm1685_vm7, %v1678_v32  ;;  %v1759_v38 = vmax.f32 %v1751_v63, 0.0  ;;  %v1760_v60 = vmax.f32 %v1752_v4, 0.0  ;;  %v1747_v24 = vmul.f32 %v6726_v58, %v6654_v45  ;;  %v1748_v54 = vmul.f32 %v6726_v58, %v6660_v48 }
 0x2c2   :  { %1692 = vst.msk [vmem:[#allocation3 + $0x3] sm:$0x4] %vm1681_vm5, %v1690_v35  ;;  %1700 = vst.msk [vmem:[#allocation3 + $0x7] sm:$0x4] %vm1681_vm5, %v1698_v20  ;;  %v1761_v36 = vmax.f32 %v1753_v40, 0.0  ;;  %v1766_v39 = vrot.slane %v1757_v13, 1 }
 0x2c3   :  { %1693 = vst.msk [vmem:[#allocation3 + $0x2] sm:$0x10] %vm1683_vm6, %v1690_v35  ;;  %1701 = vst.msk [vmem:[#allocation3 + $0x6] sm:$0x10] %vm1683_vm6, %v1698_v20  ;;  %v1775_v11 = vrot.slane %v1758_v12, 1  ;;  %v1783_v43 = vrot.slane %v1759_v38, 1  ;;  %v1755_v55 = vadd.f32 %v1747_v24, %v6743_v62  ;;  %v1756_v50 = vadd.f32 %v1748_v54, %v6743_v62 }
 0x2c4   :  { %1694 = vst.msk [vmem:[#allocation3 + $0x1] sm:$0x40] %vm1685_vm7, %v1690_v35  ;;  %1702 = vst.msk [vmem:[#allocation3 + $0x5] sm:$0x40] %vm1685_vm7, %v1698_v20  ;;  %v1791_v59 = vrot.slane %v1760_v60, 1  ;;  %v1799_v28 = vrot.slane %v1761_v36, 1  ;;  %v1768_v25 = vmax.f32 %v1757_v13, %v1766_v39 }
 0x2c5   :  { %1699 = vst.msk [vmem:[#allocation3 + $0x8] sm:$0x1] %vm1679_vm4, %v1698_v20  ;;  %1680 = vst.msk [vmem:[#allocation3] sm:$0x1] %vm1679_vm4, %v1678_v32  ;;  %v1777_v61 = vmax.f32 %v1758_v12, %v1775_v11  ;;  %v1785_v42 = vmax.f32 %v1759_v38, %v1783_v43  ;;  %v1763_v58 = vmax.f32 %v1755_v55, 0.0  ;;  %v1764_v33 = vmax.f32 %v1756_v50, 0.0 }
 0x2c6   :  { %1707 = vst.msk [vmem:[#allocation3 + $0xc] sm:$0x1] %vm1679_vm4, %v1706_v37  ;;  %1715 = vst.msk [vmem:[#allocation3 + $0x10] sm:$0x1] %vm1679_vm4, %v1714_v46  ;;  %v1793_v53 = vmax.f32 %v1760_v60, %v1791_v59  ;;  %v1801_v48 = vmax.f32 %v1761_v36, %v1799_v28  ;;  %v5782_v32 = vld [vmem:[%s7631_s7 + $0x50] sm:$0xff]   ;;  %v6931_v11 = vld [vmem:[%s7634_s10 + $0x28] sm:$0xff]  }
 0x2c7   :  { %1708 = vst.msk [vmem:[#allocation3 + $0xb] sm:$0x4] %vm1681_vm5, %v1706_v37  ;;  %1716 = vst.msk [vmem:[#allocation3 + $0xf] sm:$0x4] %vm1681_vm5, %v1714_v46  ;;  %v1815_v7 = vrot.slane %v1763_v58, 1  ;;  %v1823_v2 = vrot.slane %v1764_v33, 1 }
 0x2c8   :  { %1709 = vst.msk [vmem:[#allocation3 + $0xa] sm:$0x10] %vm1683_vm6, %v1706_v37  ;;  %1717 = vst.msk [vmem:[#allocation3 + $0xe] sm:$0x10] %vm1683_vm6, %v1714_v46  ;;  %v6917_v36 = vld [vmem:[%s7634_s10 + $0x30] sm:$0xff]   ;;  %v6936_v43 = vld [vmem:[%s7634_s10 + $0x8] sm:$0xff]  }
 0x2c9   :  { %1710 = vst.msk [vmem:[#allocation3 + $0x9] sm:$0x40] %vm1685_vm7, %v1706_v37  ;;  %1718 = vst.msk [vmem:[#allocation3 + $0xd] sm:$0x40] %vm1685_vm7, %v1714_v46  ;;  %v1817_v29 = vmax.f32 %v1763_v58, %v1815_v7  ;;  %v1825_v35 = vmax.f32 %v1764_v33, %v1823_v2  ;;  %v6922_v24 = vld [vmem:[%s7634_s10 + $0x10] sm:$0xff]   ;;  %v6945_v55 = vld [vmem:[%s7634_s10 + $0x20] sm:$0xff]  }
 0x2ca   :  { %1723 = vst.msk [vmem:[#allocation3 + $0x14] sm:$0x1] %vm1679_vm4, %v1722_v0  ;;  %1731 = vst.msk [vmem:[#allocation3 + $0x18] sm:$0x1] %vm1679_vm4, %v1730_v3  ;;  %v6950_v50 = vld [vmem:[%s7634_s10] sm:$0xff]  }
 0x2cb   :  { %1724 = vst.msk [vmem:[#allocation3 + $0x13] sm:$0x4] %vm1681_vm5, %v1722_v0  ;;  %1732 = vst.msk [vmem:[#allocation3 + $0x17] sm:$0x4] %vm1681_vm5, %v1730_v3 }
 0x2cc   :  { %1725 = vst.msk [vmem:[#allocation3 + $0x12] sm:$0x10] %vm1683_vm6, %v1722_v0  ;;  %1733 = vst.msk [vmem:[#allocation3 + $0x16] sm:$0x10] %vm1683_vm6, %v1730_v3  ;;  %v1842_v45 = vld [vmem:[#allocation3 + $0x1] sm:$0xff] }
 0x2cd   :  { %1726 = vst.msk [vmem:[#allocation3 + $0x11] sm:$0x40] %vm1685_vm7, %v1722_v0  ;;  %1734 = vst.msk [vmem:[#allocation3 + $0x15] sm:$0x40] %vm1685_vm7, %v1730_v3  ;;  %v1828_v47 = vld [vmem:[#allocation3] sm:$0xff] }
 0x2ce   :  { %1739 = vst.msk [vmem:[#allocation3 + $0x1c] sm:$0x1] %vm1679_vm4, %v1738_v5  ;;  %1778 = vst.msk [vmem:[#allocation3 + $0x24] sm:$0x1] %vm1679_vm4, %v1777_v61  ;;  %v2015_v6 = vld [vmem:[#allocation3 + $0x2] sm:$0xff] }
 0x2cf   :  { %1740 = vst.msk [vmem:[#allocation3 + $0x1b] sm:$0x4] %vm1681_vm5, %v1738_v5  ;;  %1771 = vst.msk [vmem:[#allocation3 + $0x1f] sm:$0x4] %vm1681_vm5, %v1768_v25 }
 0x2d0   :  { %v1843_v16 = vld [vmem:[#allocation3 + $0x9] sm:$0xff]  ;;  %1772 = vst.msk [vmem:[#allocation3 + $0x1e] sm:$0x10] %vm1683_vm6, %v1768_v25  ;;  %1780 = vst.msk [vmem:[#allocation3 + $0x22] sm:$0x10] %vm1683_vm6, %v1777_v61 }
 0x2d1   :  { %v1829_v1 = vld [vmem:[#allocation3 + $0x8] sm:$0xff]  ;;  %1773 = vst.msk [vmem:[#allocation3 + $0x1d] sm:$0x40] %vm1685_vm7, %v1768_v25  ;;  %1781 = vst.msk [vmem:[#allocation3 + $0x21] sm:$0x40] %vm1685_vm7, %v1777_v61  ;;  %v1846_v62 = vpack.c.bf16 %v1843_v16, %v1842_v45 }
 0x2d2   :  { %1779 = vst.msk [vmem:[#allocation3 + $0x23] sm:$0x4] %vm1681_vm5, %v1777_v61  ;;  %1787 = vst.msk [vmem:[#allocation3 + $0x27] sm:$0x4] %vm1681_vm5, %v1785_v42  ;;  %v1832_v8 = vpack.c.bf16 %v1829_v1, %v1828_v47  ;;  %v2016_v15 = vld [vmem:[#allocation3 + $0xa] sm:$0xff] }
 0x2d3   :  { %1786 = vst.msk [vmem:[#allocation3 + $0x28] sm:$0x1] %vm1679_vm4, %v1785_v42  ;;  %1770 = vst.msk [vmem:[#allocation3 + $0x20] sm:$0x1] %vm1679_vm4, %v1768_v25  ;;  %5339 = vmatprep.mubr.msk.bf16.mxu0 %vm73_vm1, %v1846_v62  ;;  %v2019_v20 = vpack.c.bf16 %v2016_v15, %v2015_v6 }
 0x2d4   :  { %1788 = vst.msk [vmem:[#allocation3 + $0x26] sm:$0x10] %vm1683_vm6, %v1785_v42  ;;  %1796 = vst.msk [vmem:[#allocation3 + $0x2a] sm:$0x10] %vm1683_vm6, %v1793_v53  ;;  %v1844_v14 = vld [vmem:[#allocation3 + $0x11] sm:$0xff]  ;;  %5351 = vmatprep.mubr.msk.bf16.mxu1 %vm73_vm1, %v1832_v8 }
 0x2d5   :  { %1789 = vst.msk [vmem:[#allocation3 + $0x25] sm:$0x40] %vm1685_vm7, %v1785_v42  ;;  %1797 = vst.msk [vmem:[#allocation3 + $0x29] sm:$0x40] %vm1685_vm7, %v1793_v53  ;;  %v1830_v18 = vld [vmem:[#allocation3 + $0x10] sm:$0xff] }
 0x2d6   :  { %1794 = vst.msk [vmem:[#allocation3 + $0x2c] sm:$0x1] %vm1679_vm4, %v1793_v53  ;;  %1802 = vst.msk [vmem:[#allocation3 + $0x30] sm:$0x1] %vm1679_vm4, %v1801_v48  ;;  %v1831_v17 = vld [vmem:[#allocation3 + $0x18] sm:$0xf] }
 0x2d7   :  { %1795 = vst.msk [vmem:[#allocation3 + $0x2b] sm:$0x4] %vm1681_vm5, %v1793_v53  ;;  %1803 = vst.msk [vmem:[#allocation3 + $0x2f] sm:$0x4] %vm1681_vm5, %v1801_v48  ;;  %v1845_v21 = vld [vmem:[#allocation3 + $0x19] sm:$0xf]  ;;  %v1833_v31 = vpack.c.bf16 %v1831_v17, %v1830_v18 }
 0x2d8   :  { %1804 = vst.msk [vmem:[#allocation3 + $0x2e] sm:$0x10] %vm1683_vm6, %v1801_v48  ;;  %v1847_v23 = vpack.c.bf16 %v1845_v21, %v1844_v14  ;;  %1820 = vst.msk [vmem:[#allocation3 + $0x36] sm:$0x10] %vm1683_vm6, %v1817_v29  ;;  %v2017_v10 = vld [vmem:[#allocation3 + $0x12] sm:$0xff] }
 0x2d9   :  { %1805 = vst.msk [vmem:[#allocation3 + $0x2d] sm:$0x40] %vm1685_vm7, %v1801_v48  ;;  %5352 = vmatmul.mubr.msk.bf16.vlgmr.msra.gmra.mxu1 %vm73_vm1, %v1833_v31  ;;  %1821 = vst.msk [vmem:[#allocation3 + $0x35] sm:$0x40] %vm1685_vm7, %v1817_v29 }
 0x2da   :  { %1818 = vst.msk [vmem:[#allocation3 + $0x38] sm:$0x1] %vm1679_vm4, %v1817_v29  ;;  %5340 = vmatmul.mubr.msk.bf16.vlgmr.msra.gmra.mxu0 %vm73_vm1, %v1847_v23  ;;  %5368 = vmatpush3.bf16.msra.mxu1 %v6533_v22  ;;  %1826 = vst.msk [vmem:[#allocation3 + $0x3c] sm:$0x1] %vm1679_vm4, %v1825_v35  ;;  %v2119_v37 = vld [vmem:[#allocation3 + $0x21] sm:$0xff] }
 0x2db   :  { %1819 = vst.msk [vmem:[#allocation3 + $0x37] sm:$0x4] %vm1681_vm5, %v1817_v29  ;;  %1827 = vst.msk [vmem:[#allocation3 + $0x3b] sm:$0x4] %vm1681_vm5, %v1825_v35  ;;  %5356 = vmatpush3.bf16.msra.mxu0 %v6613_v9  ;;  %5363 = vmatprep.mubr.msk.bf16.mxu0 %vm73_vm1, %v2019_v20  ;;  %v5784_v22 = vld [vmem:[%s7631_s7 + $0x40] sm:$0xff]  }
 0x2dc   :  { %5357 = vmatprep.subr.bf16.mxu0 %v5782_v32  ;;  %5369 = vmatprep.subr.bf16.mxu1 %v6543_v27  ;;  %v2113_v63 = vld [vmem:[#allocation3 + $0x20] sm:$0xff] }
 0x2dd   :  { %v2235_v4 = vld [vmem:[#allocation3 + $0x22] sm:$0xff] }
 0x2de   :  { %v2120_v46 = vld [vmem:[#allocation3 + $0x29] sm:$0xff]  ;;  %5370 = vmatpush3.bf16.msra.mxu1 %v6543_v27  ;;  %v2018_v27 = vld [vmem:[#allocation3 + $0x1a] sm:$0xf] }
 0x2df   :  { %v2123_v49 = vpack.c.bf16 %v2120_v46, %v2119_v37  ;;  %5358 = vmatpush3.bf16.msra.mxu0 %v5782_v32  ;;  %5371 = vmatprep.subr.bf16.mxu1 %v6567_v41  ;;  %v2114_v0 = vld [vmem:[#allocation3 + $0x28] sm:$0xff]  ;;  %v2020_v5 = vpack.c.bf16 %v2018_v27, %v2017_v10 }
 0x2e0   :  { %5359 = vmatprep.subr.bf16.mxu0 %v5783_v44  ;;  %v2236_v40 = vld [vmem:[#allocation3 + $0x2a] sm:$0xff] }
 0x2e1   :  { %5375 = vmatprep.mubr.msk.bf16.mxu1 %vm73_vm1, %v2123_v49  ;;  %v2121_v30 = vld [vmem:[#allocation3 + $0x31] sm:$0xff]  ;;  %v2239_v13 = vpack.c.bf16 %v2236_v40, %v2235_v4 }
 0x2e2   :  { %5372 = vmatpush3.bf16.msra.mxu1 %v6567_v41  ;;  %v2122_v51 = vld [vmem:[#allocation3 + $0x39] sm:$0xf]  ;;  %v2117_v41 = vpack.c.bf16 %v2114_v0, %v2113_v63 }
 0x2e3   :  { %5360 = vmatpush3.bf16.msra.mxu0 %v5783_v44  ;;  %5373 = vmatprep.subr.bf16.mxu1 %v6593_v56  ;;  %v2124_v3 = vpack.c.bf16 %v2122_v51, %v2121_v30  ;;  %v2116_v12 = vld [vmem:[#allocation3 + $0x38] sm:$0xf] }
 0x2e4   :  { %5361 = vmatprep.subr.bf16.mxu0 %v5784_v22 }
 0x2e6   :  { %5374 = vmatpush3.bf16.msra.mxu1 %v6593_v56  ;;  %v2238_v56 = vld [vmem:[#allocation3 + $0x3a] sm:$0xf] }
 0x2e7   :  { %5362 = vmatpush3.bf16.msra.mxu0 %v5784_v22  ;;  %5391 = vmatprep.subr.bf16.mxu1 %v6613_v9 }
 0x2e8   :  { %5379 = vmatprep.subr.bf16.mxu0 %v6538_v26 }
 0x2e9   :  { %5376 = vmatmul.mubr.msk.bf16.vlgmr.msra.gmra.mxu1 %vm73_vm1, %v2124_v3 }
 0x2ea   :  { %5364 = vmatmul.mubr.msk.bf16.vlgmr.msra.gmra.mxu0 %vm73_vm1, %v2020_v5  ;;  %5392 = vmatpush3.bf16.msra.mxu1 %v6613_v9  ;;  %v2115_v9 = vld [vmem:[#allocation3 + $0x30] sm:$0xff] }
 0x2eb   :  { %5380 = vmatpush3.bf16.msra.mxu0 %v6538_v26  ;;  %5387 = vmatprep.mubr.msk.bf16.mxu0 %vm73_vm1, %v2117_v41  ;;  %v2237_v26 = vld [vmem:[#allocation3 + $0x32] sm:$0xff]  ;;  %v2118_v60 = vpack.c.bf16 %v2116_v12, %v2115_v9 }
 0x2ec   :  { %5399 = vmatprep.mubr.msk.bf16.mxu1 %vm73_vm1, %v2239_v13  ;;  %5381 = vmatprep.subr.bf16.mxu0 %v6550_v19  ;;  %v2240_v38 = vpack.c.bf16 %v2238_v56, %v2237_v26 }
 0x2ed   :  { %5393 = vmatprep.subr.bf16.mxu1 %v5782_v32 }
 0x2ee   :  { %5394 = vmatpush3.bf16.msra.mxu1 %v5782_v32 }
 0x2ef   :  { %5382 = vmatpush3.bf16.msra.mxu0 %v6550_v19  ;;  %5395 = vmatprep.subr.bf16.mxu1 %v5783_v44  ;;  %v5915_v19 = vmov 0.0  }
 0x2f0   :  { %5383 = vmatprep.subr.bf16.mxu0 %v6572_v34  ;;  %76 = vst.msk [vmem:[#allocation4 + $0x10] sm:$0xff] %vm73_vm1, %v5915_v19  ;;  %77 = vst.msk [vmem:[#allocation4 + $0x18] sm:$0xff] %vm73_vm1, %v5915_v19 }
 0x2f1   :  { %74 = vst.msk [vmem:[#allocation4] sm:$0xff] %vm73_vm1, %v5915_v19  ;;  %75 = vst.msk [vmem:[#allocation4 + $0x8] sm:$0xff] %vm73_vm1, %v5915_v19 }
 0x2f2   :  { %5396 = vmatpush3.bf16.msra.mxu1 %v5783_v44  ;;  %78 = vst [vmem:[#allocation5] sm:$0xff] %v5915_v19  ;;  %79 = vst [vmem:[#allocation5 + $0x8] sm:$0xff] %v5915_v19 }
 0x2f3   :  { %5384 = vmatpush3.bf16.msra.mxu0 %v6572_v34  ;;  %5397 = vmatprep.subr.bf16.mxu1 %v5784_v22  ;;  %80 = vst [vmem:[#allocation5 + $0x10] sm:$0xff] %v5915_v19  ;;  %81 = vst [vmem:[#allocation5 + $0x18] sm:$0xff] %v5915_v19  ;;  %v6901_v34 = vld [vmem:[%s7634_s10 + $0x38] sm:$0xff]  }
 0x2f4   :  { %5385 = vmatprep.subr.bf16.mxu0 %v6598_v57 }
 0x2f6   :  { %5398 = vmatpush3.bf16.msra.mxu1 %v5784_v22 }
 0x2f7   :  { %5386 = vmatpush3.bf16.msra.mxu0 %v6598_v57  ;;  %5415 = vmatprep.subr.bf16.mxu1 %v5915_v19  ;;  %v6906_v57 = vld [vmem:[%s7634_s10 + $0x18] sm:$0xff]  }
 0x2f8   :  { %5403 = vmatprep.subr.bf16.mxu0 %v5915_v19 }
 0x2f9   :  { %5400 = vmatmul.mubr.msk.bf16.vlgmr.msra.gmra.mxu1 %vm73_vm1, %v2240_v38 }
 0x2fa   :  { %5388 = vmatmul.mubr.msk.bf16.vlgmr.msra.gmra.mxu0 %vm73_vm1, %v2118_v60  ;;  %5423 = vmatprep.mubr.msk.bf16.mxu1 %vm5916_vm8, %v5915_v19 }
 0x2fb   :  { %5411 = vmatprep.mubr.msk.bf16.mxu0 %vm5916_vm8, %v5915_v19  ;;  %5404 = vmatpush3.bf16.msra.mxu0 %v6901_v34 }
 0x2fc   :  { %5416 = vmatpush3.bf16.msra.mxu1 %v6906_v57  ;;  %5405 = vmatprep.subr.bf16.mxu0 %v5915_v19 }
 0x2fd   :  { %5417 = vmatprep.subr.bf16.mxu1 %v5915_v19 }
 0x2ff   :  { %5406 = vmatpush3.bf16.msra.mxu0 %v6917_v36 }
 0x300   :  { %5418 = vmatpush3.bf16.msra.mxu1 %v6922_v24  ;;  %5407 = vmatprep.subr.bf16.mxu0 %v5915_v19 }
 0x301   :  { %5419 = vmatprep.subr.bf16.mxu1 %v5915_v19 }
 0x303   :  { %5408 = vmatpush3.bf16.msra.mxu0 %v6931_v11 }
 0x304   :  { %5420 = vmatpush3.bf16.msra.mxu1 %v6936_v43  ;;  %5409 = vmatprep.subr.bf16.mxu0 %v5915_v19 }
 0x305   :  { %5421 = vmatprep.subr.bf16.mxu1 %v5915_v19 }
 0x307   :  { %5410 = vmatpush3.bf16.msra.mxu0 %v6945_v55 }
 0x308   :  { %5422 = vmatpush3.bf16.msra.mxu1 %v6950_v50  ;;  %5427 = vmatprep.subr.bf16.mxu0 %v5915_v19 }
 0x309   :  { %5439 = vmatprep.subr.bf16.mxu1 %v5915_v19 }
 0x399   :  { %v5353_v39 = vpop.f32.mrf.mxu1 }
 0x39a   :  { %v5341_v54 = vpop.f32.mrf.mxu0 }
 0x39b   :  { %v2000_v28 = vpop.f32.mrf.mxu1  ;;  %v2009_v15 = vadd.f32 %v5353_v39, %v5341_v54 }
 0x39c   :  { %v1921_v59 = vpop.f32.mrf.mxu0 }
 0x39d   :  { %v5354_v61 = vpop.f32.mrf.mxu1  ;;  %v2001_v33 = vadd.f32 %v2000_v28, %v1921_v59 }
 0x39e   :  { %v5342_v25 = vpop.f32.mrf.mxu0 }
 0x39f   :  { %v2003_v45 = vpop.f32.mrf.mxu1  ;;  %v2012_v21 = vadd.f32 %v5354_v61, %v5342_v25 }
 0x3a0   :  { %v1924_v42 = vpop.f32.mrf.mxu0 }
 0x3a1   :  { %v2004_v16 = vadd.f32 %v2003_v45, %v1924_v42 }
 0x3a9   :  { %v5377_v53 = vpop.f32.mrf.mxu1 }
 0x3aa   :  { %v5365_v47 = vpop.f32.mrf.mxu0 }
 0x3ab   :  { %v2165_v1 = vpop.f32.mrf.mxu1  ;;  %v6964_v18 = vadd.f32 %v5365_v47, %v2009_v15 }
 0x3ac   :  { %v2094_v48 = vpop.f32.mrf.mxu0 }
 0x3ad   :  { %v6958_v8 = vadd.f32 %v2094_v48, %v2001_v33  ;;  %v5378_v7 = vpop.f32.mrf.mxu1  ;;  %v2303_v29 = vsel %vm73_vm1, %v6964_v18, 0.0 }
 0x3ae   :  { %v5366_v58 = vpop.f32.mrf.mxu0 }
 0x3af   :  { %v2300_v17 = vsel %vm73_vm1, %v6958_v8, 0.0  ;;  %v2168_v31 = vpop.f32.mrf.mxu1  ;;  %v6970_v23 = vadd.f32 %v5366_v58, %v2012_v21 }
 0x3b0   :  { %v2097_v62 = vpop.f32.mrf.mxu0 }
 0x3b1   :  { %v6960_v6 = vadd.f32 %v2097_v62, %v2004_v16  ;;  %v2305_v44 = vsel %vm1525_vm3, %v6970_v23, 0.0 }
 0x3b3   :  { %v2301_v14 = vsel %vm73_vm1, %v6960_v6, 0.0 }
 0x3b4   :  { %v2302_v2 = vadd.f32 %v2301_v14, %v2300_v17 }
 0x3b6   :  { %v2304_v35 = vadd.f32 %v2303_v29, %v2302_v2 }
 0x3b8   :  { %v2306_v22 = vadd.f32 %v2305_v44, %v2304_v35 }
 0x3b9   :  { %v5401_v32 = vpop.f32.mrf.mxu1 }
 0x3ba   :  { %v5389_v20 = vpop.f32.mrf.mxu0  ;;  %v2307_v4 = vrot.slane %v2306_v22, 4 }
 0x3bb   :  { %v2281_v37 = vpop.f32.mrf.mxu1  ;;  %v2229_v10 = vadd.f32 %v5389_v20, %v5377_v53 }
 0x3bc   :  { %v2220_v46 = vpop.f32.mrf.mxu0  ;;  %v2308_v9 = vadd.f32 %v2307_v4, %v2306_v22 }
 0x3bd   :  { %v2221_v49 = vadd.f32 %v2220_v46, %v2165_v1  ;;  %v5402_v51 = vpop.f32.mrf.mxu1  ;;  %v6976_v5 = vadd.f32 %v5401_v32, %v2229_v10 }
 0x3be   :  { %v5390_v30 = vpop.f32.mrf.mxu0  ;;  %v2309_v39 = vrot.slane %v2308_v9, 2 }
 0x3bf   :  { %v6974_v63 = vadd.f32 %v2281_v37, %v2221_v49  ;;  %v2232_v0 = vadd.f32 %v5390_v30, %v5378_v7  ;;  %v2284_v40 = vpop.f32.mrf.mxu1  ;;  %v2316_v38 = vsel %vm73_vm1, %v6976_v5, 0.0 }
 0x3c0   :  { %v2223_v27 = vpop.f32.mrf.mxu0  ;;  %v2310_v25 = vadd.f32 %v2309_v39, %v2308_v9 }
 0x3c1   :  { %v2224_v3 = vadd.f32 %v2223_v27, %v2168_v31  ;;  %v2313_v13 = vsel %vm73_vm1, %v6974_v63, 0.0  ;;  %v6982_v26 = vadd.f32 %v5402_v51, %v2232_v0 }
 0x3c2   :  { %v2311_v45 = vrot.slane %v2310_v25, 1 }
 0x3c3   :  { %v6978_v41 = vadd.f32 %v2284_v40, %v2224_v3  ;;  %v2318_v54 = vsel %vm1525_vm3, %v6982_v26, 0.0 }
 0x3c4   :  { %v2312_v48 = vadd.f32 %v2311_v45, %v2310_v25 }
 0x3c5   :  { %v2314_v56 = vsel %vm73_vm1, %v6978_v41, 0.0 }
 0x3c6   :  { %v2315_v12 = vadd.f32 %v2314_v56, %v2313_v13 }
 0x3c8   :  { %v2317_v60 = vadd.f32 %v2316_v38, %v2315_v12 }
 0x3ca   :  { %v2319_v59 = vadd.f32 %v2318_v54, %v2317_v60 }
 0x3cc   :  { %v2320_v28 = vrot.slane %v2319_v59, 4 }
 0x3ce   :  { %v2321_v61 = vadd.f32 %v2320_v28, %v2319_v59 }
 0x3d0   :  { %v2322_v42 = vrot.slane %v2321_v61, 2 }
 0x3d2   :  { %v2323_v47 = vadd.f32 %v2322_v42, %v2321_v61 }
 0x3d4   :  { %v2324_v53 = vrot.slane %v2323_v47, 1 }
 0x3d6   :  { %v2325_v58 = vadd.f32 %v2324_v53, %v2323_v47 }
 0x3d8   :  { %v2326_v33 = vadd.f32 %v2325_v58, %v2312_v48 }
 0x3da   :  { %v2328_v16 = vmul.f32 0.017857144, %v2326_v33 }
 0x3dc   :  { %v2329_v1 = vsub.f32 %v6958_v8, %v2328_v16  ;;  %v2330_v62 = vsub.f32 %v6960_v6, %v2328_v16  ;;  %v2331_v15 = vsub.f32 %v6964_v18, %v2328_v16  ;;  %v2332_v7 = vsub.f32 %v6970_v23, %v2328_v16 }
 0x3dd   :  { %v2350_v14 = vsub.f32 %v6974_v63, %v2328_v16  ;;  %v2351_v17 = vsub.f32 %v6978_v41, %v2328_v16  ;;  %v2352_v2 = vsub.f32 %v6976_v5, %v2328_v16  ;;  %v2353_v21 = vsub.f32 %v6982_v26, %v2328_v16 }
 0x3de   :  { %v2333_v31 = vmul.f32 %v2329_v1, %v2329_v1  ;;  %v2334_v29 = vmul.f32 %v2330_v62, %v2330_v62  ;;  %v2335_v32 = vmul.f32 %v2331_v15, %v2331_v15  ;;  %v2336_v46 = vmul.f32 %v2332_v7, %v2332_v7  ;;  %v2375_v1 = vld [vmem:[%s7632_s8] sm:$0x1] }
 0x3df   :  { %v2354_v35 = vmul.f32 %v2350_v14, %v2350_v14  ;;  %v2355_v20 = vmul.f32 %v2351_v17, %v2351_v17  ;;  %v2356_v37 = vmul.f32 %v2352_v2, %v2352_v2  ;;  %v2357_v30 = vmul.f32 %v2353_v21, %v2353_v21  ;;  %v2377_v7 = vld [vmem:[%s7633_s9] sm:$0x1] }
 0x3e0   :  { %v2337_v44 = vsel %vm73_vm1, %v2333_v31, 0.0  ;;  %v2338_v49 = vsel %vm73_vm1, %v2334_v29, 0.0  ;;  %v2340_v27 = vsel %vm73_vm1, %v2335_v32, 0.0  ;;  %v2342_v40 = vsel %vm1525_vm3, %v2336_v46, 0.0 }
 0x3e1   :  { %v2339_v22 = vadd.f32 %v2338_v49, %v2337_v44  ;;  %v2358_v51 = vsel %vm73_vm1, %v2354_v35, 0.0  ;;  %v2359_v10 = vsel %vm73_vm1, %v2355_v20, 0.0  ;;  %v2361_v4 = vsel %vm73_vm1, %v2356_v37, 0.0 }
 0x3e2   :  { %v2360_v0 = vadd.f32 %v2359_v10, %v2358_v51  ;;  %v2363_v9 = vsel %vm1525_vm3, %v2357_v30, 0.0 }
 0x3e3   :  { %v2341_v3 = vadd.f32 %v2340_v27, %v2339_v22 }
 0x3e4   :  { %v2362_v13 = vadd.f32 %v2361_v4, %v2360_v0 }
 0x3e5   :  { %v2343_v56 = vadd.f32 %v2342_v40, %v2341_v3 }
 0x3e6   :  { %v2364_v12 = vadd.f32 %v2363_v9, %v2362_v13 }
 0x3e7   :  { %v2344_v38 = vrot.slane %v2343_v56, 4 }
 0x3e8   :  { %v2365_v60 = vrot.slane %v2364_v12, 4 }
 0x3e9   :  { %v2345_v54 = vadd.f32 %v2344_v38, %v2343_v56 }
 0x3ea   :  { %v2366_v39 = vadd.f32 %v2365_v60, %v2364_v12 }
 0x3eb   :  { %v2346_v59 = vrot.slane %v2345_v54, 2 }
 0x3ec   :  { %v2367_v28 = vrot.slane %v2366_v39, 2 }
 0x3ed   :  { %v2347_v25 = vadd.f32 %v2346_v59, %v2345_v54 }
 0x3ee   :  { %v2368_v61 = vadd.f32 %v2367_v28, %v2366_v39 }
 0x3ef   :  { %v2348_v42 = vrot.slane %v2347_v25, 1 }
 0x3f0   :  { %v2369_v45 = vrot.slane %v2368_v61, 1 }
 0x3f1   :  { %v2349_v47 = vadd.f32 %v2348_v42, %v2347_v25 }
 0x3f2   :  { %v2370_v53 = vadd.f32 %v2369_v45, %v2368_v61 }
 0x3f4   :  { %v2371_v48 = vadd.f32 %v2370_v53, %v2349_v47 }
 0x3f6   :  { %v2372_v58 = vmul.f32 0.017857144, %v2371_v48 }
 0x3f8   :  { %v2373_v33 = vadd.f32 1e-05, %v2372_v58  ;;  %v5793_v58 = vld [vmem:[%s7634_s10 + $0x58] sm:$0xff]  }
 0x3fa   :  { %5887 = vrsqrt.f32 %v2373_v33 }
 0x407   :  { %v5888_v62 = vpop.eup %5887 }
 0x408   :  { %v2376_v15 = vmul.f32 %v5888_v62, %v2375_v1  ;;  %v5794_v62 = vld [vmem:[%s7634_s10 + $0x50] sm:$0xff]  }
 0x40a   :  { %v2378_v14 = vmul.f32 %v2376_v15, %v2328_v16  ;;  %v2383_v17 = vrot.slane %v2376_v15, %v6411_v52  ;;  %v5796_v15 = vld [vmem:[%s7634_s10 + $0x40] sm:$0xff]  }
 0x40c   :  { %v2379_v2 = vsub.f32 %v2377_v7, %v2378_v14  ;;  %v2433_v21 = vmul.f32 %v2383_v17, %v6978_v41  ;;  %v2384_v29 = vmul.f32 %v2383_v17, %v6958_v8  ;;  %v2385_v32 = vmul.f32 %v2383_v17, %v6960_v6 }
 0x40d   :  { %v2386_v35 = vmul.f32 %v2383_v17, %v6964_v18  ;;  %v2387_v20 = vmul.f32 %v2383_v17, %v6970_v23  ;;  %v2432_v37 = vmul.f32 %v2383_v17, %v6974_v63  ;;  %v2434_v46 = vmul.f32 %v2383_v17, %v6976_v5 }
 0x40e   :  { %v2392_v31 = vrot.slane %v2379_v2, %v6411_v52  ;;  %v2435_v16 = vmul.f32 %v2383_v17, %v6982_v26 }
 0x410   :  { %v2437_v44 = vadd.f32 %v2433_v21, %v2392_v31  ;;  %v2394_v49 = vadd.f32 %v2392_v31, %v2384_v29  ;;  %v2395_v22 = vadd.f32 %v2392_v31, %v2385_v32  ;;  %v2396_v41 = vadd.f32 %v2392_v31, %v2386_v35  ;;  %v7121_v32 = vld [vmem:[%s7637_s13 + $0x70] sm:$0xff]  }
 0x411   :  { %v2397_v30 = vadd.f32 %v2392_v31, %v2387_v20  ;;  %v2436_v51 = vadd.f32 %v2432_v37, %v2392_v31  ;;  %v2438_v10 = vadd.f32 %v2434_v46, %v2392_v31  ;;  %v2439_v8 = vadd.f32 %v2435_v16, %v2392_v31  ;;  %v7126_v35 = vld [vmem:[%s7637_s13 + $0x30] sm:$0xff]   ;;  %v7135_v20 = vld [vmem:[%s7637_s13 + $0x68] sm:$0xff]   ;;  %v7149_v46 = vld [vmem:[%s7637_s13 + $0x60] sm:$0xff]  }
 0x412   :  { %v2441_v27 = vmax.f32 %v2437_v44, 0.0  ;;  %v2398_v6 = vmax.f32 %v2394_v49, 0.0  ;;  %v2399_v0 = vmax.f32 %v2395_v22, 0.0  ;;  %v2400_v18 = vmax.f32 %v2396_v41, 0.0  ;;  %v7140_v37 = vld [vmem:[%s7637_s13 + $0x28] sm:$0xff]   ;;  %v7154_v16 = vld [vmem:[%s7637_s13 + $0x20] sm:$0xff]  }
 0x413   :  { %v2401_v3 = vmax.f32 %v2397_v30, 0.0  ;;  %v2440_v23 = vmax.f32 %v2436_v51, 0.0  ;;  %v2442_v4 = vmax.f32 %v2438_v10, 0.0  ;;  %v2443_v63 = vmax.f32 %v2439_v8, 0.0  ;;  %v7163_v44 = vld [vmem:[%s7637_s13 + $0x58] sm:$0xff]   ;;  %v7175_v22 = vld [vmem:[%s7637_s13 + $0x50] sm:$0xff]  }
 0x414   :  { %v2454_v40 = vrot.slane %v2441_v27, 1  ;;  %v2403_v5 = vrot.slane %v2398_v6, 1  ;;  %v2411_v13 = vrot.slane %v2399_v0, 1  ;;  %v2419_v26 = vrot.slane %v2400_v18, 1  ;;  %v7168_v49 = vld [vmem:[%s7637_s13 + $0x18] sm:$0xff]   ;;  %v7180_v41 = vld [vmem:[%s7637_s13 + $0x10] sm:$0xff]  }
 0x415   :  { %v2427_v56 = vrot.slane %v2401_v3, 1  ;;  %v2445_v9 = vrot.slane %v2440_v23, 1  ;;  %v2462_v12 = vrot.slane %v2442_v4, 1  ;;  %v2470_v38 = vrot.slane %v2443_v63, 1  ;;  %v7189_v30 = vld [vmem:[%s7637_s13 + $0x48] sm:$0xff]   ;;  %v7203_v10 = vld [vmem:[%s7637_s13 + $0x40] sm:$0xff]  }
 0x416   :  { %v2456_v60 = vmax.f32 %v2441_v27, %v2454_v40  ;;  %v2405_v54 = vmax.f32 %v2398_v6, %v2403_v5  ;;  %v2413_v39 = vmax.f32 %v2399_v0, %v2411_v13  ;;  %v2421_v59 = vmax.f32 %v2400_v18, %v2419_v26  ;;  %v7194_v51 = vld [vmem:[%s7637_s13 + $0x8] sm:$0xff]   ;;  %v7208_v8 = vld [vmem:[%s7637_s13] sm:$0xff]  }
 0x417   :  { %v2429_v28 = vmax.f32 %v2401_v3, %v2427_v56  ;;  %v2447_v25 = vmax.f32 %v2440_v23, %v2445_v9  ;;  %v2464_v61 = vmax.f32 %v2442_v4, %v2462_v12  ;;  %v2472_v42 = vmax.f32 %v2443_v63, %v2470_v38 }
 0x418   :  { %2457 = vst.msk [vmem:[#allocation4 + $0x15] sm:$0x1] %vm1679_vm4, %v2456_v60  ;;  %2406 = vst.msk [vmem:[#allocation4 + $0x1] sm:$0x1] %vm1679_vm4, %v2405_v54 }
 0x419   :  { %2458 = vst.msk [vmem:[#allocation4 + $0x14] sm:$0x4] %vm1681_vm5, %v2456_v60  ;;  %2407 = vst.msk [vmem:[#allocation4] sm:$0x4] %vm1681_vm5, %v2405_v54 }
 0x41a   :  { %2459 = vst.msk [vmem:[#allocation4 + $0x13] sm:$0x10] %vm1683_vm6, %v2456_v60  ;;  %2408 = vst.msk [vmem:[#allocation4 - $0x1] sm:$0x10] %vm1683_vm6, %v2405_v54 }
 0x41b   :  { %2460 = vst.msk [vmem:[#allocation4 + $0x12] sm:$0x40] %vm1685_vm7, %v2456_v60  ;;  %2409 = vst.msk [vmem:[#allocation4 - $0x2] sm:$0x40] %vm1685_vm7, %v2405_v54 }
 0x41c   :  { %2414 = vst.msk [vmem:[#allocation4 + $0x5] sm:$0x1] %vm1679_vm4, %v2413_v39  ;;  %2422 = vst.msk [vmem:[#allocation4 + $0x9] sm:$0x1] %vm1679_vm4, %v2421_v59 }
 0x41d   :  { %2415 = vst.msk [vmem:[#allocation4 + $0x4] sm:$0x4] %vm1681_vm5, %v2413_v39  ;;  %2423 = vst.msk [vmem:[#allocation4 + $0x8] sm:$0x4] %vm1681_vm5, %v2421_v59 }
 0x41e   :  { %2416 = vst.msk [vmem:[#allocation4 + $0x3] sm:$0x10] %vm1683_vm6, %v2413_v39  ;;  %2424 = vst.msk [vmem:[#allocation4 + $0x7] sm:$0x10] %vm1683_vm6, %v2421_v59 }
 0x41f   :  { %2417 = vst.msk [vmem:[#allocation4 + $0x2] sm:$0x40] %vm1685_vm7, %v2413_v39  ;;  %2425 = vst.msk [vmem:[#allocation4 + $0x6] sm:$0x40] %vm1685_vm7, %v2421_v59 }
 0x420   :  { %2430 = vst.msk [vmem:[#allocation4 + $0xd] sm:$0x1] %vm1679_vm4, %v2429_v28  ;;  %2449 = vst.msk [vmem:[#allocation4 + $0x11] sm:$0x1] %vm1679_vm4, %v2447_v25 }
 0x421   :  { %2431 = vst.msk [vmem:[#allocation4 + $0xc] sm:$0x4] %vm1681_vm5, %v2429_v28  ;;  %2450 = vst.msk [vmem:[#allocation4 + $0x10] sm:$0x4] %vm1681_vm5, %v2447_v25 }
 0x422   :  { %2451 = vst.msk [vmem:[#allocation4 + $0xf] sm:$0x10] %vm1683_vm6, %v2447_v25  ;;  %2467 = vst.msk [vmem:[#allocation4 + $0x17] sm:$0x10] %vm1683_vm6, %v2464_v61 }
 0x423   :  { %2452 = vst.msk [vmem:[#allocation4 + $0xe] sm:$0x40] %vm1685_vm7, %v2447_v25  ;;  %2468 = vst.msk [vmem:[#allocation4 + $0x16] sm:$0x40] %vm1685_vm7, %v2464_v61 }
 0x424   :  { %2465 = vst.msk [vmem:[#allocation4 + $0x19] sm:$0x1] %vm1679_vm4, %v2464_v61  ;;  %2473 = vst.msk [vmem:[#allocation4 + $0x1d] sm:$0x1] %vm1679_vm4, %v2472_v42 }
 0x425   :  { %2466 = vst.msk [vmem:[#allocation4 + $0x18] sm:$0x4] %vm1681_vm5, %v2464_v61  ;;  %2474 = vst.msk [vmem:[#allocation4 + $0x1c] sm:$0x4] %vm1681_vm5, %v2472_v42  ;;  %v2475_v47 = vld [vmem:[#allocation4] sm:$0xff] }
 0x426   :  { %v2486_v45 = vld [vmem:[#allocation4 + $0x1] sm:$0xff] }
 0x427   :  { %v2476_v48 = vld [vmem:[#allocation4 + $0x8] sm:$0x3f] }
 0x428   :  { %v2487_v53 = vld [vmem:[#allocation4 + $0x9] sm:$0x3f]  ;;  %v2477_v1 = vpack.c.bf16 %v2476_v48, %v2475_v47 }
 0x429   :  { %v2488_v33 = vpack.c.bf16 %v2487_v53, %v2486_v45  ;;  %v2635_v7 = vld [vmem:[#allocation4 + $0xa] sm:$0x3f] }
 0x42a   :  { %5424 = vmatmul.mubr.msk.bf16.vlgmr.msra.gmra.mxu1 %vm73_vm1, %v2477_v1  ;;  %v2719_v14 = vld [vmem:[#allocation4 + $0x11] sm:$0xff] }
 0x42b   :  { %5412 = vmatmul.mubr.msk.bf16.vlgmr.msra.gmra.mxu0 %vm73_vm1, %v2488_v33  ;;  %5440 = vmatpush3.bf16.msra.mxu1 %v6901_v34  ;;  %v5795_v34 = vld [vmem:[%s7634_s10 + $0x48] sm:$0xff]  }
 0x42c   :  { %5428 = vmatpush3.bf16.msra.mxu0 %v5793_v58  ;;  %5441 = vmatprep.subr.bf16.mxu1 %v5915_v19  ;;  %v2720_v17 = vld [vmem:[#allocation4 + $0x19] sm:$0x3f] }
 0x42d   :  { %5429 = vmatprep.subr.bf16.mxu0 %v5915_v19  ;;  %5435 = vmatprep.mubr.msk.bf16.mxu0 %vm5916_vm8, %v5915_v19  ;;  %v2721_v21 = vpack.c.bf16 %v2720_v17, %v2719_v14  ;;  %v2811_v31 = vld [vmem:[#allocation4 + $0x1a] sm:$0x3f] }
 0x42e   :  { %5447 = vmatprep.mubr.msk.bf16.mxu1 %vm5916_vm8, %v5915_v19 }
 0x42f   :  { %5442 = vmatpush3.bf16.msra.mxu1 %v6917_v36  ;;  %v2634_v36 = vld [vmem:[#allocation4 + $0x2] sm:$0xff] }
 0x430   :  { %5430 = vmatpush3.bf16.msra.mxu0 %v5794_v62  ;;  %5443 = vmatprep.subr.bf16.mxu1 %v5915_v19  ;;  %v2636_v2 = vpack.c.bf16 %v2635_v7, %v2634_v36 }
 0x431   :  { %5431 = vmatprep.subr.bf16.mxu0 %v5915_v19 }
 0x433   :  { %5444 = vmatpush3.bf16.msra.mxu1 %v6931_v11  ;;  %v2717_v11 = vld [vmem:[#allocation4 + $0x18] sm:$0x3f] }
 0x434   :  { %5432 = vmatpush3.bf16.msra.mxu0 %v5795_v34  ;;  %5445 = vmatprep.subr.bf16.mxu1 %v5915_v19 }
 0x435   :  { %5433 = vmatprep.subr.bf16.mxu0 %v5915_v19 }
 0x437   :  { %5446 = vmatpush3.bf16.msra.mxu1 %v6945_v55  ;;  %v2810_v55 = vld [vmem:[#allocation4 + $0x12] sm:$0xff] }
 0x438   :  { %5434 = vmatpush3.bf16.msra.mxu0 %v5796_v15  ;;  %5463 = vmatprep.subr.bf16.mxu1 %v5915_v19  ;;  %v2812_v29 = vpack.c.bf16 %v2811_v31, %v2810_v55 }
 0x439   :  { %5451 = vmatprep.subr.bf16.mxu0 %v5915_v19 }
 0x43a   :  { %5448 = vmatmul.mubr.msk.bf16.vlgmr.msra.gmra.mxu1 %vm73_vm1, %v2721_v21 }
 0x43b   :  { %5436 = vmatmul.mubr.msk.bf16.vlgmr.msra.gmra.mxu0 %vm73_vm1, %v2636_v2  ;;  %5464 = vmatpush3.bf16.msra.mxu1 %v5793_v58 }
 0x43c   :  { %5452 = vmatpush3.bf16.msra.mxu0 %v6906_v57  ;;  %5465 = vmatprep.subr.bf16.mxu1 %v5915_v19  ;;  %v2716_v57 = vld [vmem:[#allocation4 + $0x10] sm:$0xff] }
 0x43d   :  { %5453 = vmatprep.subr.bf16.mxu0 %v5915_v19  ;;  %5459 = vmatprep.mubr.msk.bf16.mxu0 %vm5916_vm8, %v5915_v19 }
 0x43e   :  { %5471 = vmatprep.mubr.msk.bf16.mxu1 %vm5916_vm8, %v5915_v19 }
 0x43f   :  { %5466 = vmatpush3.bf16.msra.mxu1 %v5794_v62 }
 0x440   :  { %5454 = vmatpush3.bf16.msra.mxu0 %v6922_v24  ;;  %5467 = vmatprep.subr.bf16.mxu1 %v5915_v19  ;;  %v2718_v24 = vpack.c.bf16 %v2717_v11, %v2716_v57 }
 0x441   :  { %5455 = vmatprep.subr.bf16.mxu0 %v5915_v19 }
 0x443   :  { %5468 = vmatpush3.bf16.msra.mxu1 %v5795_v34 }
 0x444   :  { %5456 = vmatpush3.bf16.msra.mxu0 %v6936_v43  ;;  %5469 = vmatprep.subr.bf16.mxu1 %v5915_v19  ;;  %v7107_v43 = vld [vmem:[%s7637_s13 + $0x78] sm:$0xff]  }
 0x445   :  { %5457 = vmatprep.subr.bf16.mxu0 %v5915_v19 }
 0x447   :  { %5470 = vmatpush3.bf16.msra.mxu1 %v5796_v15 }
 0x448   :  { %5458 = vmatpush3.bf16.msra.mxu0 %v6950_v50  ;;  %5495 = vmatprep.subr.bf16.mxu1 %v5915_v19  ;;  %v7112_v50 = vld [vmem:[%s7637_s13 + $0x38] sm:$0xff]  }
 0x449   :  { %5475 = vmatprep.subr.bf16.mxu0 %v5915_v19 }
 0x44a   :  { %5472 = vmatmul.mubr.msk.bf16.vlgmr.msra.gmra.mxu1 %vm73_vm1, %v2812_v29 }
 0x44b   :  { %5460 = vmatmul.mubr.msk.bf16.vlgmr.msra.gmra.mxu0 %vm73_vm1, %v2718_v24  ;;  %5511 = vmatprep.mubr.msk.bf16.mxu1 %vm5916_vm8, %v5915_v19 }
 0x44c   :  { %5491 = vmatprep.mubr.msk.bf16.mxu0 %vm5916_vm8, %v5915_v19  ;;  %5476 = vmatpush3.bf16.msra.mxu0 %v7107_v43 }
 0x44d   :  { %5496 = vmatpush3.bf16.msra.mxu1 %v7112_v50  ;;  %5477 = vmatprep.subr.bf16.mxu0 %v5915_v19 }
 0x44e   :  { %5497 = vmatprep.subr.bf16.mxu1 %v5915_v19 }
 0x450   :  { %5478 = vmatpush3.bf16.msra.mxu0 %v7121_v32 }
 0x451   :  { %5498 = vmatpush3.bf16.msra.mxu1 %v7126_v35  ;;  %5479 = vmatprep.subr.bf16.mxu0 %v5915_v19 }
 0x452   :  { %5499 = vmatprep.subr.bf16.mxu1 %v5915_v19 }
 0x454   :  { %5480 = vmatpush3.bf16.msra.mxu0 %v7135_v20 }
 0x455   :  { %5500 = vmatpush3.bf16.msra.mxu1 %v7140_v37  ;;  %5481 = vmatprep.subr.bf16.mxu0 %v5915_v19 }
 0x456   :  { %5501 = vmatprep.subr.bf16.mxu1 %v5915_v19 }
 0x458   :  { %5482 = vmatpush3.bf16.msra.mxu0 %v7149_v46 }
 0x459   :  { %5502 = vmatpush3.bf16.msra.mxu1 %v7154_v16  ;;  %5483 = vmatprep.subr.bf16.mxu0 %v5915_v19 }
 0x45a   :  { %5503 = vmatprep.subr.bf16.mxu1 %v5915_v19 }
 0x45c   :  { %5484 = vmatpush3.bf16.msra.mxu0 %v7163_v44 }
 0x45d   :  { %5504 = vmatpush3.bf16.msra.mxu1 %v7168_v49  ;;  %5485 = vmatprep.subr.bf16.mxu0 %v5915_v19 }
 0x45e   :  { %5505 = vmatprep.subr.bf16.mxu1 %v5915_v19 }
 0x460   :  { %5486 = vmatpush3.bf16.msra.mxu0 %v7175_v22 }
 0x461   :  { %5506 = vmatpush3.bf16.msra.mxu1 %v7180_v41  ;;  %5487 = vmatprep.subr.bf16.mxu0 %v5915_v19 }
 0x462   :  { %5507 = vmatprep.subr.bf16.mxu1 %v5915_v19 }
 0x464   :  { %5488 = vmatpush3.bf16.msra.mxu0 %v7189_v30 }
 0x465   :  { %5508 = vmatpush3.bf16.msra.mxu1 %v7194_v51  ;;  %5489 = vmatprep.subr.bf16.mxu0 %v5915_v19 }
 0x466   :  { %5509 = vmatprep.subr.bf16.mxu1 %v5915_v19 }
 0x468   :  { %5490 = vmatpush3.bf16.msra.mxu0 %v7203_v10 }
 0x469   :  { %5510 = vmatpush3.bf16.msra.mxu1 %v7208_v8  ;;  %5515 = vmatprep.subr.bf16.mxu0 %v5915_v19 }
 0x46a   :  { %5535 = vmatprep.subr.bf16.mxu1 %v5915_v19 }
 0x4ea   :  { %v2627_v6 = vpop.f32.mrf.mxu1 }
 0x4eb   :  { %v2559_v27 = vpop.f32.mrf.mxu0 }
 0x4ec   :  { %v5425_v18 = vpop.f32.mrf.mxu1  ;;  %v2628_v39 = vadd.f32 %v2627_v6, %v2559_v27 }
 0x4ed   :  { %v5413_v0 = vpop.f32.mrf.mxu0 }
 0x4ee   :  { %v2630_v23 = vpop.f32.mrf.mxu1 }
 0x4ef   :  { %v2562_v3 = vpop.f32.mrf.mxu0 }
 0x4f0   :  { %v5426_v63 = vpop.f32.mrf.mxu1  ;;  %v2631_v12 = vadd.f32 %v2630_v23, %v2562_v3 }
 0x4f1   :  { %v5414_v4 = vpop.f32.mrf.mxu0 }
 0x4fa   :  { %v2759_v5 = vpop.f32.mrf.mxu1 }
 0x4fb   :  { %v2707_v40 = vpop.f32.mrf.mxu0 }
 0x4fc   :  { %v5449_v26 = vpop.f32.mrf.mxu1  ;;  %v7220_v28 = vadd.f32 %v2707_v40, %v2628_v39 }
 0x4fd   :  { %v5437_v13 = vpop.f32.mrf.mxu0 }
 0x4fe   :  { %v2762_v9 = vpop.f32.mrf.mxu1 }
 0x4ff   :  { %v2710_v56 = vpop.f32.mrf.mxu0 }
 0x500   :  { %v5450_v60 = vpop.f32.mrf.mxu1  ;;  %v7216_v54 = vadd.f32 %v2710_v56, %v2631_v12 }
 0x501   :  { %v5438_v38 = vpop.f32.mrf.mxu0 }
 0x502   :  { %v2860_v59 = vsel %vm2859_vm9, %v7216_v54, 0.0 }
 0x503   :  { %v2861_v25 = vadd.f32 %v2860_v59, %v7220_v28 }
 0x505   :  { %v2862_v45 = vrot.slane %v2861_v25, 4 }
 0x507   :  { %v2863_v62 = vadd.f32 %v2862_v45, %v2861_v25 }
 0x509   :  { %v2864_v17 = vrot.slane %v2863_v62, 2 }
 0x50a   :  { %v2850_v42 = vpop.f32.mrf.mxu1 }
 0x50b   :  { %v2803_v61 = vpop.f32.mrf.mxu0  ;;  %v2865_v57 = vadd.f32 %v2864_v17, %v2863_v62 }
 0x50c   :  { %v5473_v53 = vpop.f32.mrf.mxu1  ;;  %v2804_v48 = vadd.f32 %v2803_v61, %v2759_v5 }
 0x50d   :  { %v5461_v47 = vpop.f32.mrf.mxu0  ;;  %v2866_v31 = vrot.slane %v2865_v57, 1 }
 0x50e   :  { %v2853_v33 = vpop.f32.mrf.mxu1  ;;  %v2857_v7 = vadd.f32 %v2850_v42, %v2804_v48 }
 0x50f   :  { %v2806_v58 = vpop.f32.mrf.mxu0  ;;  %v2867_v27 = vadd.f32 %v2866_v31, %v2865_v57 }
 0x510   :  { %v2807_v1 = vadd.f32 %v2806_v58, %v2762_v9  ;;  %v5474_v15 = vpop.f32.mrf.mxu1 }
 0x511   :  { %v5462_v34 = vpop.f32.mrf.mxu0  ;;  %v2907_v15 = vld [vmem:[%s7635_s11] sm:$0x1] }
 0x512   :  { %v2858_v36 = vadd.f32 %v2853_v33, %v2807_v1 }
 0x514   :  { %v2868_v14 = vsel %vm2859_vm9, %v2858_v36, 0.0 }
 0x515   :  { %v2869_v2 = vadd.f32 %v2868_v14, %v2857_v7 }
 0x517   :  { %v2870_v21 = vrot.slane %v2869_v2, 4 }
 0x519   :  { %v2871_v11 = vadd.f32 %v2870_v21, %v2869_v2  ;;  %v2909_v2 = vld [vmem:[%s7636_s12] sm:$0x1] }
 0x51b   :  { %v2872_v55 = vrot.slane %v2871_v11, 2 }
 0x51d   :  { %v2873_v24 = vadd.f32 %v2872_v55, %v2871_v11 }
 0x51f   :  { %v2874_v29 = vrot.slane %v2873_v24, 1 }
 0x521   :  { %v2875_v6 = vadd.f32 %v2874_v29, %v2873_v24 }
 0x523   :  { %v2876_v0 = vadd.f32 %v2875_v6, %v2867_v27 }
 0x525   :  { %v2878_v18 = vmul.f32 0.035714287, %v2876_v0 }
 0x527   :  { %v2879_v3 = vsub.f32 %v7220_v28, %v2878_v18  ;;  %v2880_v23 = vsub.f32 %v7216_v54, %v2878_v18  ;;  %v2891_v4 = vsub.f32 %v2857_v7, %v2878_v18  ;;  %v2892_v63 = vsub.f32 %v2858_v36, %v2878_v18 }
 0x529   :  { %v2881_v40 = vmul.f32 %v2879_v3, %v2879_v3  ;;  %v2882_v5 = vmul.f32 %v2880_v23, %v2880_v23  ;;  %v2893_v13 = vmul.f32 %v2891_v4, %v2891_v4  ;;  %v2894_v26 = vmul.f32 %v2892_v63, %v2892_v63 }
 0x52b   :  { %v2883_v56 = vsel %vm2859_vm9, %v2882_v5, 0.0  ;;  %v2895_v9 = vsel %vm2859_vm9, %v2894_v26, 0.0  ;;  %v5814_v26 = vld [vmem:[%s7637_s13 + $0xb0] sm:$0xff]  }
 0x52c   :  { %v2884_v12 = vadd.f32 %v2883_v56, %v2881_v40  ;;  %v2896_v38 = vadd.f32 %v2895_v9, %v2893_v13  ;;  %v5816_v56 = vld [vmem:[%s7637_s13 + $0xa0] sm:$0xff]  }
 0x52e   :  { %v2885_v60 = vrot.slane %v2884_v12, 4  ;;  %v2897_v39 = vrot.slane %v2896_v38, 4 }
 0x530   :  { %v2886_v59 = vadd.f32 %v2885_v60, %v2884_v12  ;;  %v2898_v25 = vadd.f32 %v2897_v39, %v2896_v38 }
 0x532   :  { %v2887_v61 = vrot.slane %v2886_v59, 2  ;;  %v2899_v42 = vrot.slane %v2898_v25, 2 }
 0x534   :  { %v2888_v45 = vadd.f32 %v2887_v61, %v2886_v59  ;;  %v2900_v47 = vadd.f32 %v2899_v42, %v2898_v25 }
 0x536   :  { %v2889_v53 = vrot.slane %v2888_v45, 1  ;;  %v2901_v48 = vrot.slane %v2900_v47, 1 }
 0x538   :  { %v2890_v58 = vadd.f32 %v2889_v53, %v2888_v45  ;;  %v2902_v33 = vadd.f32 %v2901_v48, %v2900_v47  ;;  %v5821_v47 = vld [vmem:[%s7640_s16 + $0x78] sm:$0xff]   ;;  %v5823_v48 = vld [vmem:[%s7640_s16 + $0x70] sm:$0xff]  }
 0x539   :  { %v5822_v53 = vld [vmem:[%s7640_s16 + $0x38] sm:$0xff]  }
 0x53a   :  { %v2903_v1 = vadd.f32 %v2902_v33, %v2890_v58  ;;  %v5824_v58 = vld [vmem:[%s7640_s16 + $0x30] sm:$0xff]   ;;  %v5825_v33 = vld [vmem:[%s7640_s16 + $0x68] sm:$0xff]  }
 0x53c   :  { %v2904_v62 = vmul.f32 0.035714287, %v2903_v1  ;;  %v5826_v1 = vld [vmem:[%s7640_s16 + $0x28] sm:$0xff]  }
 0x53e   :  { %v2905_v34 = vadd.f32 1e-05, %v2904_v62  ;;  %v5827_v62 = vld [vmem:[%s7640_s16 + $0x60] sm:$0xff]  }
 0x540   :  { %5889 = vrsqrt.f32 %v2905_v34  ;;  %v5828_v34 = vld [vmem:[%s7640_s16 + $0x20] sm:$0xff]  }
 0x54d   :  { %v5890_v14 = vpop.eup %5889 }
 0x54e   :  { %v2908_v17 = vmul.f32 %v5890_v14, %v2907_v15  ;;  %v5829_v15 = vld [vmem:[%s7640_s16 + $0x58] sm:$0xff]  }
 0x54f   :  { %v5830_v14 = vld [vmem:[%s7640_s16 + $0x18] sm:$0xff]  }
 0x550   :  { %v2910_v21 = vmul.f32 %v2908_v17, %v2878_v18  ;;  %v2915_v57 = vrot.slane %v2908_v17, %v6411_v52  ;;  %v5831_v17 = vld [vmem:[%s7640_s16 + $0x50] sm:$0xff]  }
 0x552   :  { %v2911_v11 = vsub.f32 %v2909_v2, %v2910_v21  ;;  %v2916_v55 = vmul.f32 %v2915_v57, %v7220_v28  ;;  %v2917_v31 = vmul.f32 %v2915_v57, %v7216_v54  ;;  %v2930_v29 = vmul.f32 %v2915_v57, %v2857_v7  ;;  %v5813_v54 = vld [vmem:[%s7637_s13 + $0xb8] sm:$0xff]   ;;  %v5832_v2 = vld [vmem:[%s7640_s16 + $0x10] sm:$0xff]   ;;  %v5833_v21 = vld [vmem:[%s7640_s16 + $0x48] sm:$0xff]  }
 0x553   :  { %v2931_v27 = vmul.f32 %v2915_v57, %v2858_v36  ;;  %v5834_v57 = vld [vmem:[%s7640_s16 + $0x8] sm:$0xff]  }
 0x554   :  { %v2922_v24 = vrot.slane %v2911_v11, %v6411_v52 }
 0x556   :  { %v2924_v6 = vadd.f32 %v2922_v24, %v2916_v55  ;;  %v2925_v0 = vadd.f32 %v2922_v24, %v2917_v31  ;;  %v2932_v3 = vadd.f32 %v2930_v29, %v2922_v24  ;;  %v2933_v23 = vadd.f32 %v2931_v27, %v2922_v24  ;;  %v5835_v29 = vld [vmem:[%s7640_s16 + $0x40] sm:$0xff]  }
 0x557   :  { %v5836_v27 = vld [vmem:[%s7640_s16] sm:$0xff]  }
 0x558   :  { %v2926_v4 = vmax.f32 %v2924_v6, 0.0  ;;  %v2927_v63 = vmax.f32 %v2925_v0, 0.0  ;;  %v2934_v40 = vmax.f32 %v2932_v3, 0.0  ;;  %v2935_v5 = vmax.f32 %v2933_v23, 0.0 }
 0x55a   :  { %2928 = vst [vmem:[#allocation5 + $0x1] sm:$0xff] %v2926_v4  ;;  %2929 = vst [vmem:[#allocation5 + $0x9] sm:$0x3f] %v2927_v63 }
 0x55b   :  { %2937 = vst [vmem:[#allocation5 + $0x11] sm:$0xff] %v2934_v40  ;;  %2938 = vst [vmem:[#allocation5 + $0x19] sm:$0x3f] %v2935_v5 }
 0x561   :  { %v2959_v28 = vld [vmem:[#allocation5 + $0x9] sm:$0x3f]  ;;  %v2939_v18 = vld [vmem:[#allocation5] sm:$0xff] }
 0x562   :  { %v2940_v7 = vld [vmem:[#allocation5 + $0x8] sm:$0x3f]  ;;  %v2960_v36 = vpack.c.bf16 %v2959_v28, %v2926_v4  ;;  %v3271_v12 = vld [vmem:[#allocation5 + $0x19] sm:$0x3f] }
 0x563   :  { %v2941_v13 = vpack.c.bf16 %v2940_v7, %v2939_v18  ;;  %v3157_v9 = vld [vmem:[#allocation5 + $0xa] sm:$0x3f]  ;;  %v3272_v60 = vpack.c.bf16 %v3271_v12, %v2934_v40 }
 0x564   :  { %5492 = vmatmul.mubr.bf16.vlgmr.msra.gmra.mxu0 %v2960_v36 }
 0x565   :  { %5512 = vmatmul.mubr.bf16.vlgmr.msra.gmra.mxu1 %v2941_v13  ;;  %5516 = vmatpush3.bf16.msra.mxu0 %v5813_v54 }
 0x566   :  { %5536 = vmatpush3.bf16.msra.mxu1 %v7107_v43  ;;  %5517 = vmatprep.subr.bf16.mxu0 %v5915_v19  ;;  %v5815_v43 = vld [vmem:[%s7637_s13 + $0xa8] sm:$0xff]  }
 0x567   :  { %5537 = vmatprep.subr.bf16.mxu1 %v5915_v19  ;;  %5531 = vmatprep.mubr.msk.bf16.mxu0 %vm5916_vm8, %v5915_v19 }
 0x568   :  { %5551 = vmatprep.mubr.msk.bf16.mxu1 %vm5916_vm8, %v5915_v19 }
 0x569   :  { %5518 = vmatpush3.bf16.msra.mxu0 %v5814_v26 }
 0x56a   :  { %5538 = vmatpush3.bf16.msra.mxu1 %v7121_v32  ;;  %5519 = vmatprep.subr.bf16.mxu0 %v5915_v19  ;;  %v5817_v32 = vld [vmem:[%s7637_s13 + $0x98] sm:$0xff]  }
 0x56b   :  { %5539 = vmatprep.subr.bf16.mxu1 %v5915_v19 }
 0x56d   :  { %5520 = vmatpush3.bf16.msra.mxu0 %v5815_v43 }
 0x56e   :  { %5540 = vmatpush3.bf16.msra.mxu1 %v7135_v20  ;;  %5521 = vmatprep.subr.bf16.mxu0 %v5915_v19  ;;  %v5818_v20 = vld [vmem:[%s7637_s13 + $0x90] sm:$0xff]  }
 0x56f   :  { %5541 = vmatprep.subr.bf16.mxu1 %v5915_v19 }
 0x571   :  { %5522 = vmatpush3.bf16.msra.mxu0 %v5816_v56 }
 0x572   :  { %5542 = vmatpush3.bf16.msra.mxu1 %v7149_v46  ;;  %5523 = vmatprep.subr.bf16.mxu0 %v5915_v19  ;;  %v5819_v46 = vld [vmem:[%s7637_s13 + $0x88] sm:$0xff]  }
 0x573   :  { %5543 = vmatprep.subr.bf16.mxu1 %v5915_v19 }
 0x575   :  { %5524 = vmatpush3.bf16.msra.mxu0 %v5817_v32 }
 0x576   :  { %5544 = vmatpush3.bf16.msra.mxu1 %v7163_v44  ;;  %5525 = vmatprep.subr.bf16.mxu0 %v5915_v19  ;;  %v5820_v44 = vld [vmem:[%s7637_s13 + $0x80] sm:$0xff]  }
 0x577   :  { %5545 = vmatprep.subr.bf16.mxu1 %v5915_v19 }
 0x579   :  { %5526 = vmatpush3.bf16.msra.mxu0 %v5818_v20 }
 0x57a   :  { %5546 = vmatpush3.bf16.msra.mxu1 %v7175_v22  ;;  %5527 = vmatprep.subr.bf16.mxu0 %v5915_v19  ;;  %v3156_v22 = vld [vmem:[#allocation5 + $0x2] sm:$0xff] }
 0x57b   :  { %5547 = vmatprep.subr.bf16.mxu1 %v5915_v19  ;;  %v3158_v38 = vpack.c.bf16 %v3157_v9, %v3156_v22 }
 0x57d   :  { %5528 = vmatpush3.bf16.msra.mxu0 %v5819_v46 }
 0x57e   :  { %5548 = vmatpush3.bf16.msra.mxu1 %v7189_v30  ;;  %5529 = vmatprep.subr.bf16.mxu0 %v5915_v19 }
 0x57f   :  { %5549 = vmatprep.subr.bf16.mxu1 %v5915_v19 }
 0x581   :  { %5530 = vmatpush3.bf16.msra.mxu0 %v5820_v44 }
 0x582   :  { %5550 = vmatpush3.bf16.msra.mxu1 %v7203_v10  ;;  %5555 = vmatprep.subr.bf16.mxu0 %v5915_v19 }
 0x583   :  { %5575 = vmatprep.subr.bf16.mxu1 %v5915_v19 }
 0x584   :  { %5532 = vmatmul.mubr.bf16.vlgmr.msra.gmra.mxu0 %v3158_v38 }
 0x585   :  { %5552 = vmatmul.mubr.bf16.vlgmr.msra.gmra.mxu1 %v3272_v60  ;;  %5556 = vmatpush3.bf16.msra.mxu0 %v7112_v50  ;;  %v3267_v50 = vld [vmem:[#allocation5 + $0x10] sm:$0xff] }
 0x586   :  { %5576 = vmatpush3.bf16.msra.mxu1 %v5813_v54  ;;  %5557 = vmatprep.subr.bf16.mxu0 %v5915_v19 }
 0x587   :  { %5577 = vmatprep.subr.bf16.mxu1 %v5915_v19  ;;  %5571 = vmatprep.mubr.msk.bf16.mxu0 %vm5916_vm8, %v5915_v19 }
 0x588   :  { %5591 = vmatprep.mubr.msk.bf16.mxu1 %vm5916_vm8, %v5915_v19 }
 0x589   :  { %5558 = vmatpush3.bf16.msra.mxu0 %v7126_v35  ;;  %v3268_v35 = vld [vmem:[#allocation5 + $0x18] sm:$0x3f] }
 0x58a   :  { %5578 = vmatpush3.bf16.msra.mxu1 %v5814_v26  ;;  %5559 = vmatprep.subr.bf16.mxu0 %v5915_v19 }
 0x58b   :  { %5579 = vmatprep.subr.bf16.mxu1 %v5915_v19 }
 0x58d   :  { %5560 = vmatpush3.bf16.msra.mxu0 %v7140_v37  ;;  %v3355_v37 = vld [vmem:[#allocation5 + $0x12] sm:$0xff] }
 0x58e   :  { %5580 = vmatpush3.bf16.msra.mxu1 %v5815_v43  ;;  %5561 = vmatprep.subr.bf16.mxu0 %v5915_v19 }
 0x58f   :  { %5581 = vmatprep.subr.bf16.mxu1 %v5915_v19 }
 0x591   :  { %5562 = vmatpush3.bf16.msra.mxu0 %v7154_v16  ;;  %v3356_v16 = vld [vmem:[#allocation5 + $0x1a] sm:$0x3f] }
 0x592   :  { %5582 = vmatpush3.bf16.msra.mxu1 %v5816_v56  ;;  %5563 = vmatprep.subr.bf16.mxu0 %v5915_v19 }
 0x593   :  { %5583 = vmatprep.subr.bf16.mxu1 %v5915_v19 }
 0x595   :  { %5564 = vmatpush3.bf16.msra.mxu0 %v7168_v49  ;;  %v3269_v49 = vpack.c.bf16 %v3268_v35, %v3267_v50 }
 0x596   :  { %5584 = vmatpush3.bf16.msra.mxu1 %v5817_v32  ;;  %5565 = vmatprep.subr.bf16.mxu0 %v5915_v19 }
 0x597   :  { %5585 = vmatprep.subr.bf16.mxu1 %v5915_v19 }
 0x599   :  { %5566 = vmatpush3.bf16.msra.mxu0 %v7180_v41  ;;  %v3357_v41 = vpack.c.bf16 %v3356_v16, %v3355_v37 }
 0x59a   :  { %5586 = vmatpush3.bf16.msra.mxu1 %v5818_v20  ;;  %5567 = vmatprep.subr.bf16.mxu0 %v5915_v19 }
 0x59b   :  { %5587 = vmatprep.subr.bf16.mxu1 %v5915_v19 }
 0x59d   :  { %5568 = vmatpush3.bf16.msra.mxu0 %v7194_v51 }
 0x59e   :  { %5588 = vmatpush3.bf16.msra.mxu1 %v5819_v46  ;;  %5569 = vmatprep.subr.bf16.mxu0 %v5915_v19 }
 0x59f   :  { %5589 = vmatprep.subr.bf16.mxu1 %v5915_v19 }
 0x5a1   :  { %5570 = vmatpush3.bf16.msra.mxu0 %v7208_v8 }
 0x5a2   :  { %5590 = vmatpush3.bf16.msra.mxu1 %v5820_v44  ;;  %5595 = vmatprep.subr.bf16.mxu0 %v5915_v19 }
 0x5a3   :  { %5615 = vmatprep.subr.bf16.mxu1 %v5915_v19 }
 0x5a4   :  { %5572 = vmatmul.mubr.bf16.vlgmr.msra.gmra.mxu0 %v3269_v49 }
 0x5a5   :  { %5592 = vmatmul.mubr.bf16.vlgmr.msra.gmra.mxu1 %v3357_v41  ;;  %5611 = vmatprep.mubr.msk.bf16.mxu0 %vm5916_vm8, %v5915_v19 }
 0x5a6   :  { %5631 = vmatprep.mubr.msk.bf16.mxu1 %vm5916_vm8, %v5915_v19  ;;  %5596 = vmatpush3.bf16.msra.mxu0 %v5821_v47 }
 0x5a7   :  { %5616 = vmatpush3.bf16.msra.mxu1 %v5822_v53  ;;  %5597 = vmatprep.subr.bf16.mxu0 %v5915_v19 }
 0x5a8   :  { %5617 = vmatprep.subr.bf16.mxu1 %v5915_v19 }
 0x5aa   :  { %5598 = vmatpush3.bf16.msra.mxu0 %v5823_v48 }
 0x5ab   :  { %5618 = vmatpush3.bf16.msra.mxu1 %v5824_v58  ;;  %5599 = vmatprep.subr.bf16.mxu0 %v5915_v19 }
 0x5ac   :  { %5619 = vmatprep.subr.bf16.mxu1 %v5915_v19 }
 0x5ae   :  { %5600 = vmatpush3.bf16.msra.mxu0 %v5825_v33 }
 0x5af   :  { %5620 = vmatpush3.bf16.msra.mxu1 %v5826_v1  ;;  %5601 = vmatprep.subr.bf16.mxu0 %v5915_v19 }
 0x5b0   :  { %5621 = vmatprep.subr.bf16.mxu1 %v5915_v19 }
 0x5b2   :  { %5602 = vmatpush3.bf16.msra.mxu0 %v5827_v62 }
 0x5b3   :  { %5622 = vmatpush3.bf16.msra.mxu1 %v5828_v34  ;;  %5603 = vmatprep.subr.bf16.mxu0 %v5915_v19 }
 0x5b4   :  { %5623 = vmatprep.subr.bf16.mxu1 %v5915_v19 }
 0x5b6   :  { %5604 = vmatpush3.bf16.msra.mxu0 %v5829_v15 }
 0x5b7   :  { %5624 = vmatpush3.bf16.msra.mxu1 %v5830_v14  ;;  %5605 = vmatprep.subr.bf16.mxu0 %v5915_v19 }
 0x5b8   :  { %5625 = vmatprep.subr.bf16.mxu1 %v5915_v19 }
 0x5ba   :  { %5606 = vmatpush3.bf16.msra.mxu0 %v5831_v17 }
 0x5bb   :  { %5626 = vmatpush3.bf16.msra.mxu1 %v5832_v2  ;;  %5607 = vmatprep.subr.bf16.mxu0 %v5915_v19 }
 0x5bc   :  { %5627 = vmatprep.subr.bf16.mxu1 %v5915_v19 }
 0x5be   :  { %5608 = vmatpush3.bf16.msra.mxu0 %v5833_v21 }
 0x5bf   :  { %5628 = vmatpush3.bf16.msra.mxu1 %v5834_v57  ;;  %5609 = vmatprep.subr.bf16.mxu0 %v5915_v19 }
 0x5c0   :  { %5629 = vmatprep.subr.bf16.mxu1 %v5915_v19 }
 0x5c2   :  { %5610 = vmatpush3.bf16.msra.mxu0 %v5835_v29 }
 0x5c3   :  { %5630 = vmatpush3.bf16.msra.mxu1 %v5836_v27  ;;  %5635 = vmatprep.subr.bf16.mxu0 %v5915_v19 }
 0x5c4   :  { %5655 = vmatprep.subr.bf16.mxu1 %v5915_v19 }
 0x624   :  { %v3060_v30 = vpop.f32.mrf.mxu0 }
 0x625   :  { %v3149_v51 = vpop.f32.mrf.mxu1 }
 0x626   :  { %v3150_v10 = vadd.f32 %v3149_v51, %v3060_v30  ;;  %v5493_v39 = vpop.f32.mrf.mxu0 }
 0x627   :  { %v5513_v8 = vpop.f32.mrf.mxu1 }
 0x628   :  { %v3063_v59 = vpop.f32.mrf.mxu0 }
 0x629   :  { %v3152_v25 = vpop.f32.mrf.mxu1 }
 0x62a   :  { %v3153_v61 = vadd.f32 %v3152_v25, %v3063_v59  ;;  %v5494_v42 = vpop.f32.mrf.mxu0 }
 0x62b   :  { %v5514_v45 = vpop.f32.mrf.mxu1 }
 0x644   :  { %v3258_v11 = vpop.f32.mrf.mxu0 }
 0x645   :  { %v3307_v55 = vpop.f32.mrf.mxu1  ;;  %v7386_v23 = vadd.f32 %v3258_v11, %v3150_v10 }
 0x646   :  { %v5533_v31 = vpop.f32.mrf.mxu0 }
 0x647   :  { %v5553_v24 = vpop.f32.mrf.mxu1 }
 0x648   :  { %v3261_v6 = vpop.f32.mrf.mxu0 }
 0x649   :  { %v3310_v0 = vpop.f32.mrf.mxu1  ;;  %v7384_v3 = vadd.f32 %v3261_v6, %v3153_v61 }
 0x64a   :  { %v5534_v4 = vpop.f32.mrf.mxu0 }
 0x64b   :  { %v5554_v63 = vpop.f32.mrf.mxu1  ;;  %v3401_v40 = vsel %vm2859_vm9, %v7384_v3, 0.0 }
 0x64c   :  { %v3402_v5 = vadd.f32 %v3401_v40, %v7386_v23  ;;  %v3449_v40 = vld [vmem:[%s7639_s15] sm:$0x1] }
 0x64e   :  { %v3403_v18 = vrot.slane %v3402_v5, 4 }
 0x650   :  { %v3404_v32 = vadd.f32 %v3403_v18, %v3402_v5 }
 0x652   :  { %v3405_v12 = vrot.slane %v3404_v32, 2 }
 0x654   :  { %v3406_v50 = vadd.f32 %v3405_v12, %v3404_v32 }
 0x656   :  { %v3407_v16 = vrot.slane %v3406_v50, 1 }
 0x658   :  { %v3408_v30 = vadd.f32 %v3407_v16, %v3406_v50 }
 0x664   :  { %v3348_v54 = vpop.f32.mrf.mxu0 }
 0x665   :  { %v3392_v28 = vpop.f32.mrf.mxu1  ;;  %v3349_v13 = vadd.f32 %v3348_v54, %v3307_v55 }
 0x666   :  { %v5573_v7 = vpop.f32.mrf.mxu0 }
 0x667   :  { %v5593_v36 = vpop.f32.mrf.mxu1  ;;  %v3399_v22 = vadd.f32 %v3392_v28, %v3349_v13 }
 0x668   :  { %v3351_v26 = vpop.f32.mrf.mxu0 }
 0x669   :  { %v3395_v43 = vpop.f32.mrf.mxu1  ;;  %v3352_v56 = vadd.f32 %v3351_v26, %v3310_v0  ;;  %v3447_v0 = vld [vmem:[%s7638_s14] sm:$0x1] }
 0x66a   :  { %v5574_v20 = vpop.f32.mrf.mxu0 }
 0x66b   :  { %v5594_v46 = vpop.f32.mrf.mxu1  ;;  %v3400_v44 = vadd.f32 %v3395_v43, %v3352_v56 }
 0x66d   :  { %v3409_v9 = vsel %vm2859_vm9, %v3400_v44, 0.0 }
 0x66e   :  { %v3410_v38 = vadd.f32 %v3409_v9, %v3399_v22 }
 0x670   :  { %v3411_v60 = vrot.slane %v3410_v38, 4 }
 0x672   :  { %v3412_v35 = vadd.f32 %v3411_v60, %v3410_v38 }
 0x674   :  { %v3413_v37 = vrot.slane %v3412_v35, 2 }
 0x676   :  { %v3414_v49 = vadd.f32 %v3413_v37, %v3412_v35 }
 0x678   :  { %v3415_v41 = vrot.slane %v3414_v49, 1 }
 0x67a   :  { %v3416_v51 = vadd.f32 %v3415_v41, %v3414_v49 }
 0x67c   :  { %v3417_v10 = vadd.f32 %v3416_v51, %v3408_v30 }
 0x67e   :  { %v3418_v39 = vmul.f32 0.035714287, %v3417_v10 }
 0x680   :  { %v3419_v8 = vsub.f32 %v7386_v23, %v3418_v39  ;;  %v3420_v59 = vsub.f32 %v7384_v3, %v3418_v39  ;;  %v3431_v25 = vsub.f32 %v3399_v22, %v3418_v39  ;;  %v3432_v61 = vsub.f32 %v3400_v44, %v3418_v39 }
 0x682   :  { %v3421_v42 = vmul.f32 %v3419_v8, %v3419_v8  ;;  %v3422_v45 = vmul.f32 %v3420_v59, %v3420_v59  ;;  %v3433_v47 = vmul.f32 %v3431_v25, %v3431_v25  ;;  %v3434_v53 = vmul.f32 %v3432_v61, %v3432_v61 }
 0x684   :  { %v3423_v48 = vsel %vm2859_vm9, %v3422_v45, 0.0  ;;  %v3435_v58 = vsel %vm2859_vm9, %v3434_v53, 0.0  ;;  %v5837_v53 = vld [vmem:[%s7640_s16 + $0xb8] sm:$0xff]  }
 0x685   :  { %v3424_v33 = vadd.f32 %v3423_v48, %v3421_v42  ;;  %v3436_v1 = vadd.f32 %v3435_v58, %v3433_v47 }
 0x687   :  { %v3425_v62 = vrot.slane %v3424_v33, 4  ;;  %v3437_v34 = vrot.slane %v3436_v1, 4 }
 0x689   :  { %v3426_v15 = vadd.f32 %v3425_v62, %v3424_v33  ;;  %v3438_v14 = vadd.f32 %v3437_v34, %v3436_v1  ;;  %v5838_v33 = vld [vmem:[%s7640_s16 + $0xf8] sm:$0xff]   ;;  %v5839_v62 = vld [vmem:[%s7640_s16 + $0xb0] sm:$0xff]  }
 0x68a   :  { %v5840_v34 = vld [vmem:[%s7640_s16 + $0xf0] sm:$0xff]  }
 0x68b   :  { %v3427_v17 = vrot.slane %v3426_v15, 2  ;;  %v3439_v2 = vrot.slane %v3438_v14, 2 }
 0x68d   :  { %v3428_v21 = vadd.f32 %v3427_v17, %v3426_v15  ;;  %v3440_v57 = vadd.f32 %v3439_v2, %v3438_v14  ;;  %v5841_v15 = vld [vmem:[%s7640_s16 + $0xa8] sm:$0xff]   ;;  %v5843_v17 = vld [vmem:[%s7640_s16 + $0xa0] sm:$0xff]  }
 0x68e   :  { %v5842_v14 = vld [vmem:[%s7640_s16 + $0xe8] sm:$0xff]   ;;  %v5844_v2 = vld [vmem:[%s7640_s16 + $0xe0] sm:$0xff]  }
 0x68f   :  { %v3429_v11 = vrot.slane %v3428_v21, 1  ;;  %v3441_v55 = vrot.slane %v3440_v57, 1 }
 0x691   :  { %v3430_v31 = vadd.f32 %v3429_v11, %v3428_v21  ;;  %v3442_v24 = vadd.f32 %v3441_v55, %v3440_v57  ;;  %v5845_v57 = vld [vmem:[%s7640_s16 + $0x98] sm:$0xff]  }
 0x692   :  { %v5846_v55 = vld [vmem:[%s7640_s16 + $0xd8] sm:$0xff]  }
 0x693   :  { %v3443_v29 = vadd.f32 %v3442_v24, %v3430_v31 }
 0x695   :  { %v3444_v27 = vmul.f32 0.035714287, %v3443_v29  ;;  %v5847_v29 = vld [vmem:[%s7640_s16 + $0x90] sm:$0xff]  }
 0x697   :  { %v3445_v6 = vadd.f32 1e-05, %v3444_v27  ;;  %v5848_v27 = vld [vmem:[%s7640_s16 + $0xd0] sm:$0xff]  }
 0x699   :  { %5891 = vrsqrt.f32 %v3445_v6 }
 0x6a6   :  { %v5892_v4 = vpop.eup %5891 }
 0x6a7   :  { %v3448_v63 = vmul.f32 %v5892_v4, %v3447_v0 }
 0x6a9   :  { %v3450_v5 = vmul.f32 %v3448_v63, %v3418_v39  ;;  %v3455_v54 = vrot.slane %v3448_v63, %v6411_v52 }
 0x6ab   :  { %v3451_v28 = vsub.f32 %v3449_v40, %v3450_v5  ;;  %v3456_v18 = vmul.f32 %v3455_v54, %v7386_v23  ;;  %v3457_v7 = vmul.f32 %v3455_v54, %v7384_v3  ;;  %v3483_v36 = vmul.f32 %v3455_v54, %v3399_v22  ;;  %v5849_v40 = vld [vmem:[%s7640_s16 + $0x88] sm:$0xff]  }
 0x6ac   :  { %v3484_v13 = vmul.f32 %v3455_v54, %v3400_v44  ;;  %v5850_v54 = vld [vmem:[%s7640_s16 + $0xc8] sm:$0xff]  }
 0x6ad   :  { %v3462_v26 = vrot.slane %v3451_v28, %v6411_v52 }
 0x6af   :  { %v3464_v43 = vadd.f32 %v3462_v26, %v3456_v18  ;;  %v3465_v56 = vadd.f32 %v3462_v26, %v3457_v7  ;;  %v3485_v32 = vadd.f32 %v3483_v36, %v3462_v26  ;;  %v3486_v20 = vadd.f32 %v3484_v13, %v3462_v26  ;;  %v5851_v36 = vld [vmem:[%s7640_s16 + $0x80] sm:$0xff]  }
 0x6b0   :  { %v5852_v26 = vld [vmem:[%s7640_s16 + $0xc0] sm:$0xff]  }
 0x6b1   :  { %v3466_v46 = vmax.f32 %v3464_v43, 0.0  ;;  %v3467_v9 = vmax.f32 %v3465_v56, 0.0  ;;  %v3487_v12 = vmax.f32 %v3485_v32, 0.0  ;;  %v3488_v38 = vmax.f32 %v3486_v20, 0.0  ;;  %v5853_v20 = vld [vmem:[%s7640_s16 + $0x138] sm:$0xff]  }
 0x6b3   :  { %v3469_v60 = vrot.slane %v3466_v46, 1  ;;  %v3477_v50 = vrot.slane %v3467_v9, 1  ;;  %v3490_v35 = vrot.slane %v3487_v12, 1  ;;  %v3499_v37 = vrot.slane %v3488_v38, 1 }
 0x6b5   :  { %v3471_v16 = vmax.f32 %v3466_v46, %v3469_v60  ;;  %v3479_v23 = vmax.f32 %v3467_v9, %v3477_v50  ;;  %v3492_v49 = vmax.f32 %v3487_v12, %v3490_v35  ;;  %v3501_v3 = vmax.f32 %v3488_v38, %v3499_v37  ;;  %v5854_v9 = vld [vmem:[%s7640_s16 + $0x178] sm:$0xff]   ;;  %v5855_v38 = vld [vmem:[%s7640_s16 + $0x130] sm:$0xff]   ;;  %v5857_v50 = vld [vmem:[%s7640_s16 + $0x128] sm:$0xff]  }
 0x6b6   :  { %v5856_v60 = vld [vmem:[%s7640_s16 + $0x170] sm:$0xff]   ;;  %v5858_v35 = vld [vmem:[%s7640_s16 + $0x168] sm:$0xff]   ;;  %v5859_v37 = vld [vmem:[%s7640_s16 + $0x120] sm:$0xff]  }
 0x6b7   :  { %3472 = vst [vmem:[#allocation6] sm:$0x1] %v3471_v16  ;;  %3473 = vst [vmem:[#allocation6 - $0x1] sm:$0x4] %v3471_v16 }
 0x6b8   :  { %3474 = vst [vmem:[#allocation6 - $0x2] sm:$0x10] %v3471_v16  ;;  %3475 = vst [vmem:[#allocation6 - $0x3] sm:$0x40] %v3471_v16  ;;  %v5860_v16 = vld [vmem:[%s7640_s16 + $0x160] sm:$0xff]  }
 0x6b9   :  { %3480 = vst [vmem:[#allocation6 + $0x4] sm:$0x1] %v3479_v23  ;;  %3481 = vst [vmem:[#allocation6 + $0x3] sm:$0x4] %v3479_v23 }
 0x6ba   :  { %3482 = vst [vmem:[#allocation6 + $0x2] sm:$0x10] %v3479_v23  ;;  %3494 = vst [vmem:[#allocation6 + $0x8] sm:$0x1] %v3492_v49 }
 0x6bb   :  { %3495 = vst [vmem:[#allocation6 + $0x7] sm:$0x4] %v3492_v49  ;;  %3496 = vst [vmem:[#allocation6 + $0x6] sm:$0x10] %v3492_v49 }
 0x6bc   :  { %3497 = vst [vmem:[#allocation6 + $0x5] sm:$0x40] %v3492_v49  ;;  %3502 = vst [vmem:[#allocation6 + $0xc] sm:$0x1] %v3501_v3  ;;  %v5861_v49 = vld [vmem:[%s7640_s16 + $0x118] sm:$0xff]  }
 0x6bd   :  { %3503 = vst [vmem:[#allocation6 + $0xb] sm:$0x4] %v3501_v3  ;;  %3504 = vst [vmem:[#allocation6 + $0xa] sm:$0x10] %v3501_v3 }
 0x6be   :  { %v3525_v52 = vld [vmem:[#allocation6 + $0x1] sm:$0x1]  ;;  %v3505_v22 = vld [vmem:[#allocation6] sm:$0x1] }
 0x6bf   :  { %v3527_v41 = vpack.c.bf16 %v3525_v52, %v3525_v52  ;;  %v3507_v10 = vpack.c.bf16 %v3505_v22, %v3505_v22  ;;  %v3739_v6 = vld [vmem:[#allocation6 + $0x2] sm:$0x1]  ;;  %v3857_v4 = vld [vmem:[#allocation6 + $0x3] sm:$0x1]  ;;  %v5862_v52 = vld [vmem:[%s7640_s16 + $0x158] sm:$0xff]  }
 0x6c0   :  { %v3741_v5 = vpack.c.bf16 %v3739_v6, %v3739_v6  ;;  %v3859_v28 = vpack.c.bf16 %v3857_v4, %v3857_v4  ;;  %v5876_v4 = vld [vmem:[%s7640_s16 + $0x180] sm:$0xff]  }
 0x6c1   :  { %v3506_v51 = vld [vmem:[#allocation6 + $0x8] sm:$0x1]  ;;  %v3548_v25 = vunpack.c.l.b16 %v3527_v41  ;;  %v3645_v42 = vunpack.c.l.b16 %v3507_v10  ;;  %v5863_v41 = vld [vmem:[%s7640_s16 + $0x110] sm:$0xff]  }
 0x6c2   :  { %v3526_v44 = vld [vmem:[#allocation6 + $0x9] sm:$0x1]  ;;  %v3508_v39 = vpack.c.bf16 %v3506_v51, %v3506_v51  ;;  %v3740_v21 = vld [vmem:[#allocation6 + $0xa] sm:$0x1]  ;;  %v3762_v13 = vunpack.c.l.b16 %v3741_v5  ;;  %v3880_v43 = vunpack.c.l.b16 %v3859_v28  ;;  %v3975_v51 = vld [vmem:[#allocation6 + $0x4] sm:$0x1] }
 0x6c3   :  { %v3528_v30 = vpack.c.bf16 %v3526_v44, %v3526_v44  ;;  %v3858_v11 = vld [vmem:[#allocation6 + $0xb] sm:$0x1]  ;;  %v3742_v31 = vpack.c.bf16 %v3740_v21, %v3740_v21  ;;  %v3976_v23 = vld [vmem:[#allocation6 + $0xc] sm:$0x1]  ;;  %v5872_v21 = vld [vmem:[%s7640_s16 + $0x1a0] sm:$0xff]  }
 0x6c4   :  { %v3646_v59 = vunpack.c.l.b16 %v3508_v39  ;;  %v3860_v24 = vpack.c.bf16 %v3858_v11, %v3858_v11  ;;  %v4094_v3 = vld [vmem:[#allocation6 + $0xd] sm:$0x1]  ;;  %v3978_v44 = vpack.c.bf16 %v3976_v23, %v3976_v23  ;;  %v4093_v39 = vld [vmem:[#allocation6 + $0x5] sm:$0x1]  ;;  %v5873_v11 = vld [vmem:[%s7640_s16 + $0x198] sm:$0xff]  }
 0x6c5   :  { %v3549_v8 = vunpack.c.l.b16 %v3528_v30  ;;  %v3763_v0 = vunpack.c.l.b16 %v3742_v31  ;;  %v4096_v22 = vpack.c.bf16 %v4094_v3, %v4094_v3  ;;  %v5864_v30 = vld [vmem:[%s7640_s16 + $0x150] sm:$0xff]  }
 0x6c6   :  { %v3647_v45 = vrot.slane %v3646_v59, 7  ;;  %v3881_v63 = vunpack.c.l.b16 %v3860_v24  ;;  %v3999_v10 = vunpack.c.l.b16 %v3978_v44  ;;  %v5865_v59 = vld [vmem:[%s7640_s16 + $0x108] sm:$0xff]   ;;  %v5874_v31 = vld [vmem:[%s7640_s16 + $0x190] sm:$0xff]   ;;  %v4211_v24 = vld [vmem:[#allocation6 + $0x6] sm:$0x1] }
 0x6c7   :  { %v3550_v61 = vrot.slane %v3549_v8, 7  ;;  %v3764_v18 = vrot.slane %v3763_v0, 7  ;;  %v4117_v8 = vunpack.c.l.b16 %v4096_v22  ;;  %v4213_v6 = vpack.c.bf16 %v4211_v24, %v4211_v24  ;;  %v5878_v28 = vld [vmem:[%s7642_s18 + $0x10] sm:$0xff]  }
 0x6c8   :  { %v3648_v58 = vsel %vm3551_vm10, %v3647_v45, %v3645_v42  ;;  %v3882_v7 = vrot.slane %v3881_v63, 7  ;;  %v4095_v42 = vpack.c.bf16 %v4093_v39, %v4093_v39  ;;  %v4000_v45 = vrot.slane %v3999_v10, 7 }
 0x6c9   :  { %v3552_v47 = vsel %vm3551_vm10, %v3550_v61, %v3548_v25  ;;  %v3649_v1 = vpack.c.b16 %v3648_v58, %v3648_v58  ;;  %v3765_v56 = vsel %vm3551_vm10, %v3764_v18, %v3762_v13  ;;  %v3977_v25 = vpack.c.bf16 %v3975_v51, %v3975_v51  ;;  %v5866_v61 = vld [vmem:[%s7640_s16 + $0x148] sm:$0xff]   ;;  %v5868_v58 = vld [vmem:[%s7640_s16 + $0x140] sm:$0xff]  }
 0x6ca   :  { %v3553_v48 = vpack.c.b16 %v3552_v47, %v3552_v47  ;;  %v3883_v32 = vsel %vm3551_vm10, %v3882_v7, %v3880_v43  ;;  %v3766_v46 = vpack.c.b16 %v3765_v56, %v3765_v56  ;;  %v4118_v47 = vrot.slane %v4117_v8, 7  ;;  %v5879_v18 = vld [vmem:[%s7642_s18 + $0x8] sm:$0xff]   ;;  %v5880_v7 = vld [vmem:[%s7642_s18] sm:$0xff]  }
 0x6cb   :  { %5632 = vmatmul.mubr.bf16.vlgmr.msra.gmra.mxu1 %v3649_v1  ;;  %v3884_v12 = vpack.c.b16 %v3883_v32, %v3883_v32  ;;  %v4234_v63 = vunpack.c.l.b16 %v4213_v6 }
 0x6cc   :  { %5612 = vmatmul.mubr.bf16.vlgmr.msra.gmra.mxu0 %v3553_v48  ;;  %5656 = vmatpush3.bf16.msra.mxu1 %v5838_v33  ;;  %v3998_v48 = vunpack.c.l.b16 %v3977_v25  ;;  %v4116_v33 = vunpack.c.l.b16 %v4095_v42 }
 0x6cd   :  { %5636 = vmatpush3.bf16.msra.mxu0 %v5837_v53  ;;  %5657 = vmatprep.subr.bf16.mxu1 %v5915_v19  ;;  %v5867_v53 = vld [vmem:[%s7640_s16 + $0x100] sm:$0xff]  }
 0x6ce   :  { %5637 = vmatprep.subr.bf16.mxu0 %v5915_v19  ;;  %5651 = vmatprep.mubr.msk.bf16.mxu0 %vm5916_vm8, %v5915_v19  ;;  %v4001_v1 = vsel %vm3551_vm10, %v4000_v45, %v3998_v48 }
 0x6cf   :  { %5671 = vmatprep.mubr.msk.bf16.mxu1 %vm5916_vm8, %v5915_v19 }
 0x6d0   :  { %5658 = vmatpush3.bf16.msra.mxu1 %v5840_v34  ;;  %v5869_v34 = vld [vmem:[%s7640_s16 + $0x1b8] sm:$0xff]  }
 0x6d1   :  { %5638 = vmatpush3.bf16.msra.mxu0 %v5839_v62  ;;  %5659 = vmatprep.subr.bf16.mxu1 %v5915_v19  ;;  %v4119_v62 = vsel %vm3551_vm10, %v4118_v47, %v4116_v33 }
 0x6d2   :  { %5639 = vmatprep.subr.bf16.mxu0 %v5915_v19 }
 0x6d4   :  { %5660 = vmatpush3.bf16.msra.mxu1 %v5842_v14  ;;  %v4120_v14 = vpack.c.b16 %v4119_v62, %v4119_v62  ;;  %v5882_v62 = vld [vmem:[%s7644_s20] sm:$0xff]  }
 0x6d5   :  { %5640 = vmatpush3.bf16.msra.mxu0 %v5841_v15  ;;  %5661 = vmatprep.subr.bf16.mxu1 %v5915_v19  ;;  %v4002_v15 = vpack.c.b16 %v4001_v1, %v4001_v1  ;;  %v5881_v1 = vld [vmem:[%s7644_s20 + $0x8] sm:$0xff]   ;;  %s5917_s20 = smov [#allocation7]  }
 0x6d6   :  { %5641 = vmatprep.subr.bf16.mxu0 %v5915_v19  ;;  %s4498_s29 = sshll.u32 %s5917_s20, 4  ;;  %s4499_s29 = int_to_ptr.vmem [resolvable:$true] %s4498_s29 }
 0x6d7   :  { %p5898_p1 = scmp.lt.s32.totalorder %s4499_s29, %s4499_s29 }
 0x6d8   :  { %5662 = vmatpush3.bf16.msra.mxu1 %v5844_v2  ;;  %v5871_v2 = vld [vmem:[%s7640_s16 + $0x1a8] sm:$0xff]  }
 0x6d9   :  { %5642 = vmatpush3.bf16.msra.mxu0 %v5843_v17  ;;  %5663 = vmatprep.subr.bf16.mxu1 %v5915_v19  ;;  %v5870_v17 = vld [vmem:[%s7640_s16 + $0x1b0] sm:$0xff]  }
 0x6da   :  { %5643 = vmatprep.subr.bf16.mxu0 %v5915_v19 }
 0x6dc   :  { %5664 = vmatpush3.bf16.msra.mxu1 %v5846_v55 }
 0x6dd   :  { %5644 = vmatpush3.bf16.msra.mxu0 %v5845_v57  ;;  %5665 = vmatprep.subr.bf16.mxu1 %v5915_v19  ;;  %v4212_v57 = vld [vmem:[#allocation6 + $0xe] sm:$0x1] }
 0x6de   :  { %5645 = vmatprep.subr.bf16.mxu0 %v5915_v19  ;;  %v4214_v55 = vpack.c.bf16 %v4212_v57, %v4212_v57 }
 0x6e0   :  { %5666 = vmatpush3.bf16.msra.mxu1 %v5848_v27  ;;  %v5875_v27 = vld [vmem:[%s7640_s16 + $0x188] sm:$0xff]  }
 0x6e1   :  { %5646 = vmatpush3.bf16.msra.mxu0 %v5847_v29  ;;  %5667 = vmatprep.subr.bf16.mxu1 %v5915_v19  ;;  %v4235_v29 = vunpack.c.l.b16 %v4214_v55  ;;  %v4902_v55 = vld [vmem:[%s7645_s21] ss:$0 sm:$0xff] }
 0x6e2   :  { %5647 = vmatprep.subr.bf16.mxu0 %v5915_v19 }
 0x6e3   :  { %v4236_v0 = vrot.slane %v4235_v29, 7 }
 0x6e4   :  { %5668 = vmatpush3.bf16.msra.mxu1 %v5850_v54  ;;  %v5877_v54 = vld [vmem:[%s7642_s18 + $0x18] sm:$0xff]  }
 0x6e5   :  { %5648 = vmatpush3.bf16.msra.mxu0 %v5849_v40  ;;  %5669 = vmatprep.subr.bf16.mxu1 %v5915_v19  ;;  %v4237_v40 = vsel %vm3551_vm10, %v4236_v0, %v4234_v63 }
 0x6e6   :  { %5649 = vmatprep.subr.bf16.mxu0 %v5915_v19  ;;  %v4238_v5 = vpack.c.b16 %v4237_v40, %v4237_v40 }
 0x6e8   :  { %5670 = vmatpush3.bf16.msra.mxu1 %v5852_v26 }
 0x6e9   :  { %5650 = vmatpush3.bf16.msra.mxu0 %v5851_v36  ;;  %5695 = vmatprep.subr.bf16.mxu1 %v5915_v19 }
 0x6ea   :  { %5675 = vmatprep.subr.bf16.mxu0 %v5915_v19 }
 0x6eb   :  { %5672 = vmatmul.mubr.bf16.vlgmr.msra.gmra.mxu1 %v3884_v12 }
 0x6ec   :  { %5652 = vmatmul.mubr.bf16.vlgmr.msra.gmra.mxu0 %v3766_v46  ;;  %5696 = vmatpush3.bf16.msra.mxu1 %v5854_v9 }
 0x6ed   :  { %5676 = vmatpush3.bf16.msra.mxu0 %v5853_v20  ;;  %5697 = vmatprep.subr.bf16.mxu1 %v5915_v19 }
 0x6ee   :  { %5677 = vmatprep.subr.bf16.mxu0 %v5915_v19  ;;  %5691 = vmatprep.mubr.msk.bf16.mxu0 %vm5916_vm8, %v5915_v19 }
 0x6ef   :  { %5711 = vmatprep.mubr.msk.bf16.mxu1 %vm5916_vm8, %v5915_v19 }
 0x6f0   :  { %5698 = vmatpush3.bf16.msra.mxu1 %v5856_v60 }
 0x6f1   :  { %5678 = vmatpush3.bf16.msra.mxu0 %v5855_v38  ;;  %5699 = vmatprep.subr.bf16.mxu1 %v5915_v19 }
 0x6f2   :  { %5679 = vmatprep.subr.bf16.mxu0 %v5915_v19 }
 0x6f4   :  { %5700 = vmatpush3.bf16.msra.mxu1 %v5858_v35 }
 0x6f5   :  { %5680 = vmatpush3.bf16.msra.mxu0 %v5857_v50  ;;  %5701 = vmatprep.subr.bf16.mxu1 %v5915_v19 }
 0x6f6   :  { %5681 = vmatprep.subr.bf16.mxu0 %v5915_v19 }
 0x6f8   :  { %5702 = vmatpush3.bf16.msra.mxu1 %v5860_v16 }
 0x6f9   :  { %5682 = vmatpush3.bf16.msra.mxu0 %v5859_v37  ;;  %5703 = vmatprep.subr.bf16.mxu1 %v5915_v19 }
 0x6fa   :  { %5683 = vmatprep.subr.bf16.mxu0 %v5915_v19 }
 0x6fc   :  { %5704 = vmatpush3.bf16.msra.mxu1 %v5862_v52 }
 0x6fd   :  { %5684 = vmatpush3.bf16.msra.mxu0 %v5861_v49  ;;  %5705 = vmatprep.subr.bf16.mxu1 %v5915_v19 }
 0x6fe   :  { %5685 = vmatprep.subr.bf16.mxu0 %v5915_v19 }
 0x700   :  { %5706 = vmatpush3.bf16.msra.mxu1 %v5864_v30 }
 0x701   :  { %5686 = vmatpush3.bf16.msra.mxu0 %v5863_v41  ;;  %5707 = vmatprep.subr.bf16.mxu1 %v5915_v19 }
 0x702   :  { %5687 = vmatprep.subr.bf16.mxu0 %v5915_v19 }
 0x704   :  { %5708 = vmatpush3.bf16.msra.mxu1 %v5866_v61  ;;  %v4895_v61 = vld [vmem:[%s7641_s17] ss:$0 sm:$0xff] }
 0x705   :  { %5688 = vmatpush3.bf16.msra.mxu0 %v5865_v59  ;;  %5709 = vmatprep.subr.bf16.mxu1 %v5915_v19 }
 0x706   :  { %5689 = vmatprep.subr.bf16.mxu0 %v5915_v19 }
 0x708   :  { %5710 = vmatpush3.bf16.msra.mxu1 %v5868_v58 }
 0x709   :  { %5690 = vmatpush3.bf16.msra.mxu0 %v5867_v53  ;;  %5735 = vmatprep.subr.bf16.mxu1 %v5915_v19 }
 0x70a   :  { %5715 = vmatprep.subr.bf16.mxu0 %v5915_v19 }
 0x70b   :  { %5712 = vmatmul.mubr.bf16.vlgmr.msra.gmra.mxu1 %v4120_v14 }
 0x70c   :  { %5692 = vmatmul.mubr.bf16.vlgmr.msra.gmra.mxu0 %v4002_v15  ;;  %5743 = vmatprep.mubr.msk.bf16.mxu1 %vm5916_vm8, %v5915_v19 }
 0x70d   :  { %5716 = vmatpush3.bf16.msra.mxu0 %v5869_v34  ;;  %5731 = vmatprep.mubr.msk.bf16.mxu0 %vm5916_vm8, %v5915_v19  ;;  %v4896_v34 = vld [vmem:[%s7643_s19] ss:$0 sm:$0xff]  ;;  %s5893_s19 = scalar_lea.vmem %s4499_s29, 32 }
 0x70e   :  { %5717 = vmatprep.subr.bf16.mxu0 %v5915_v19  ;;  %5736 = vmatpush3.bf16.msra.mxu1 %v5877_v54  ;;  %p5894_p0 = scmp.ne.s32.totalorder %s4499_s29, %s5893_s19  ;;  %p5899_p2 = scmp.lt.s32.totalorder %s5893_s19, %s5893_s19 }
 0x70f   :  { %5737 = vmatprep.subr.bf16.mxu1 %v5915_v19 }
 0x710   :  { %p5900_p3 = por %p5899_p2, %p5898_p1 }
 0x711   :  { %5718 = vmatpush3.bf16.msra.mxu0 %v5870_v17 }
 0x712   :  { %5719 = vmatprep.subr.bf16.mxu0 %v5915_v19  ;;  %5738 = vmatpush3.bf16.msra.mxu1 %v5878_v28  ;;  %p5901_p4 = pnand %p5900_p3, %p5894_p0 }
 0x713   :  { %5739 = vmatprep.subr.bf16.mxu1 %v5915_v19 }
 0x715   :  { %5720 = vmatpush3.bf16.msra.mxu0 %v5871_v2 }
 0x716   :  { %5721 = vmatprep.subr.bf16.mxu0 %v5915_v19  ;;  %5740 = vmatpush3.bf16.msra.mxu1 %v5879_v18 }
 0x717   :  { %5741 = vmatprep.subr.bf16.mxu1 %v5915_v19 }
 0x719   :  { %5722 = vmatpush3.bf16.msra.mxu0 %v5872_v21 }
 0x71a   :  { %5723 = vmatprep.subr.bf16.mxu0 %v5915_v19  ;;  %5742 = vmatpush3.bf16.msra.mxu1 %v5880_v7 }
 0x71b   :  { %5747 = vmatprep.subr.bf16.mxu1 %v5915_v19 }
 0x71d   :  { %5724 = vmatpush3.bf16.msra.mxu0 %v5873_v11 }
 0x71e   :  { %5725 = vmatprep.subr.bf16.mxu0 %v5915_v19 }
 0x721   :  { %5726 = vmatpush3.bf16.msra.mxu0 %v5874_v31 }
 0x722   :  { %5727 = vmatprep.subr.bf16.mxu0 %v5915_v19 }
 0x725   :  { %5728 = vmatpush3.bf16.msra.mxu0 %v5875_v27 }
 0x726   :  { %5729 = vmatprep.subr.bf16.mxu0 %v5915_v19 }
 0x729   :  { %5730 = vmatpush3.bf16.msra.mxu0 %v5876_v4 }
 0x72c   :  { %5732 = vmatmul.mubr.bf16.vlgmr.msra.gmra.mxu0 %v4238_v5 }
 0x78b   :  { %v3733_v13 = vpop.f32.mrf.mxu1 }
 0x78c   :  { %v3637_v36 = vpop.f32.mrf.mxu0 }
 0x78d   :  { %v3734_v26 = vadd.f32 %v3733_v13, %v3637_v36  ;;  %v5633_v56 = vpop.f32.mrf.mxu1 }
 0x78e   :  { %v5613_v43 = vpop.f32.mrf.mxu0 }
 0x78f   :  { %v3736_v20 = vpop.f32.mrf.mxu1 }
 0x790   :  { %v3640_v32 = vpop.f32.mrf.mxu0 }
 0x791   :  { %v5634_v9 = vpop.f32.mrf.mxu1 }
 0x792   :  { %v5614_v46 = vpop.f32.mrf.mxu0 }
 0x7ab   :  { %v3968_v38 = vpop.f32.mrf.mxu1 }
 0x7ac   :  { %v3850_v12 = vpop.f32.mrf.mxu0 }
 0x7ad   :  { %v5673_v50 = vpop.f32.mrf.mxu1  ;;  %v3856_v10 = vadd.f32 %v3850_v12, %v3734_v26 }
 0x7ae   :  { %v5653_v60 = vpop.f32.mrf.mxu0 }
 0x7af   :  { %v3971_v37 = vpop.f32.mrf.mxu1  ;;  %v3974_v39 = vadd.f32 %v3968_v38, %v3856_v10 }
 0x7b0   :  { %v3853_v35 = vpop.f32.mrf.mxu0 }
 0x7b1   :  { %v5674_v23 = vpop.f32.mrf.mxu1 }
 0x7b2   :  { %v5654_v16 = vpop.f32.mrf.mxu0 }
 0x7cb   :  { %v4204_v3 = vpop.f32.mrf.mxu1 }
 0x7cc   :  { %v4086_v49 = vpop.f32.mrf.mxu0 }
 0x7cd   :  { %v5713_v44 = vpop.f32.mrf.mxu1  ;;  %v4092_v8 = vadd.f32 %v4086_v49, %v3974_v39 }
 0x7ce   :  { %v5693_v52 = vpop.f32.mrf.mxu0 }
 0x7cf   :  { %v4207_v41 = vpop.f32.mrf.mxu1  ;;  %v4210_v59 = vadd.f32 %v4204_v3, %v4092_v8 }
 0x7d0   :  { %v4089_v22 = vpop.f32.mrf.mxu0 }
 0x7d1   :  { %v5714_v51 = vpop.f32.mrf.mxu1 }
 0x7d2   :  { %v5694_v30 = vpop.f32.mrf.mxu0 }
 0x7ec   :  { %v4322_v25 = vpop.f32.mrf.mxu0 }
 0x7ed   :  { %v4328_v42 = vadd.f32 %v4322_v25, %v4210_v59 }
 0x7ee   :  { %v5733_v45 = vpop.f32.mrf.mxu0 }
 0x7ef   :  { %v4336_v47 = vadd.f32 %v4895_v61, %v4328_v42 }
 0x7f0   :  { %v4325_v53 = vpop.f32.mrf.mxu0 }
 0x7f1   :  { %v4337_v48 = vmax.f32 %v4336_v47, 0.0 }
 0x7f2   :  { %v5734_v58 = vpop.f32.mrf.mxu0 }
 0x7f3   :  { %v4338_v33 = vpack.c.bf16 %v4337_v48, %v4337_v48 }
 0x7f5   :  { %5744 = vmatmul.mubr.msk.bf16.vlgmr.msra.gmra.mxu1 %vm73_vm1, %v4338_v33 }
 0x7f6   :  { %5751 = vmatprep.mubr.msk.bf16.mxu1 %vm5916_vm8, %v5915_v19  ;;  %5748 = vmatpush3.bf16.msra.mxu1 %v5881_v1 }
 0x7f7   :  { %5749 = vmatprep.subr.bf16.mxu1 %v5915_v19 }
 0x7fa   :  { %5750 = vmatpush3.bf16.msra.mxu1 %v5882_v62 }
 0x8b5   :  { %v4415_v15 = vpop.f32.mrf.mxu1 }
 0x8b6   :  { %v4416_v14 = vadd.f32 %v4896_v34, %v4415_v15 }
 0x8b7   :  { %v5745_v17 = vpop.f32.mrf.mxu1 }
 0x8b8   :  { %v4421_v2 = vmax.f32 %v4416_v14, 0.0 }
 0x8b9   :  { %v4418_v21 = vpop.f32.mrf.mxu1 }
 0x8ba   :  { %v4422_v57 = vpack.c.bf16 %v4421_v2, %v4421_v2 }
 0x8bb   :  { %v5746_v11 = vpop.f32.mrf.mxu1 }
 0x8bc   :  { %5752 = vmatmul.mubr.msk.bf16.vlgmr.msra.gmra.mxu1 %vm4446_vm11, %v4422_v57 }
 0x97c   :  { %v4484_v19 = vpop.f32.mrf.mxu1 }
 0x97d   :  { %v4485_v31 = vadd.f32 %v4902_v55, %v4484_v19 }
 0x97e   :  { %v5753_v24 = vpop.f32.mrf.mxu1 }
 0x97f   :  { %4491 = vst.msk [vmem:[#allocation7] sm:$0x3] %vm4490_vm12, %v4485_v31 }
 0x980   :  { %v4487_v29 = vpop.f32.mrf.mxu1 }
 0x981   :  { %5904 = shalt.err (!%p5901_p4)
}
 0x982   :  { %4501 = dma.vmem_to_hbm [thread:$0]  %s4499_s29, 32, %s7646_s22, [#allocation8]   ;;  %v5754_v27 = vpop.f32.mrf.mxu1 }
 0x983   :  { %5913 = dma.done.wait [#allocation8], 32  }
 0x984   :  { %5914 = vsyncadd [#allocation8], 4294967264 }
 0x985   :  { %4505 = vsyncpa [#allocation8], 1 }

</bundles_post_ra>
